<compile_context>
chip_gen: v7x
topology: tpu7x:2x2x1
jax: 0.10.0
libtpu: 0.0.40
codegen_flags: <defaults>
</compile_context>

<pallas_src>
import functools

import jax
import jax.numpy as jnp
import numpy as np
from jax import lax
from jax.experimental import pallas as pl
from jax.experimental.pallas import tpu as pltpu

BN_EPS = 1e-5
DILATIONS = (6, 12, 18)           # aspp2/3/4 (aspp1 is a 1x1 conv)
COMPUTE_DTYPE = jnp.bfloat16      # MXU-native; accumulation stays f32
LANE = 128


def _round_up(v, m):
    return -(-v // m) * m


def _choose_cin_tile(cin):
    """Chunk the Cin reduction axis; chunks must be lane-aligned unless full."""
    for t in (512, 256, 128):
        if cin % t == 0 and cin > t:
            return t
    return cin


def _tile_bytes(shape, dtype):
    """Approximate VMEM footprint of one buffer with (sublane, lane) padding."""
    itemsize = np.dtype(dtype).itemsize
    dims = list(shape)
    dims[-1] = _round_up(dims[-1], LANE)
    if len(dims) >= 2:
        sub = 8 * max(1, 4 // itemsize)
        dims[-2] = _round_up(dims[-2], sub)
    n = itemsize
    for d in dims:
        n *= d
    return n


# ----------------------------------------------------------------------------
# Pallas kernel: grid = (batch, Cin chunks).  All five branches + projection.
# ----------------------------------------------------------------------------
def _aspp_kernel(x_ref, w1_ref, w2_ref, w3_ref, w4_ref, wp_ref, wproj_ref,
                 shift_ref, out_ref,
                 xpad_s, acc1_s, acc2_s, acc3_s, acc4_s, accp_s,
                 *, H, W, P, TCin, Cp):
    k = pl.program_id(1)
    k_last = pl.num_programs(1) - 1

    @pl.when(k == 0)
    def _init():
        # Zero the padded scratch (border stays zero; interior overwritten below)
        # and the per-branch f32 accumulators.
        xpad_s[...] = jnp.zeros_like(xpad_s)
        acc1_s[...] = jnp.zeros_like(acc1_s)
        acc2_s[...] = jnp.zeros_like(acc2_s)
        acc3_s[...] = jnp.zeros_like(acc3_s)
        acc4_s[...] = jnp.zeros_like(acc4_s)
        accp_s[...] = jnp.zeros_like(accp_s)

    x_blk = x_ref[0]                                      # (H, W, TCin) bf16
    xpad_s[P:P + H, P:P + W, :] = x_blk                   # in-kernel zero padding

    center = x_blk.reshape(H * W, TCin)

    # ---- branch 1: 1x1 conv (BN scale already folded into w1) ----
    acc1_s[...] += jnp.dot(center, w1_ref[...],
                           preferred_element_type=jnp.float32)

    # ---- pooled branch: global average pool -> 1x1 conv (accumulate 1 x Cp) ----
    pooled = jnp.mean(center.astype(jnp.float32), axis=0, keepdims=True)
    accp_s[...] += jnp.dot(pooled.astype(COMPUTE_DTYPE), wp_ref[...],
                           preferred_element_type=jnp.float32)

    # ---- branches 2-4: dilated 3x3 conv, 3 matmuls of K = 3*TCin per branch ----
    def dil_contrib(w_ref, d):
        total = None
        for ky in range(3):
            oy = P + (ky - 1) * d
            lhs = jnp.concatenate(
                [xpad_s[oy:oy + H, P + (kx - 1) * d:P + (kx - 1) * d + W, :]
                 .reshape(H * W, TCin) for kx in range(3)],
                axis=-1)                                   # (H*W, 3*TCin) bf16
            part = jnp.dot(lhs, w_ref[0, ky],
                           preferred_element_type=jnp.float32)
            total = part if total is None else total + part
        return total

    acc2_s[...] += dil_contrib(w2_ref, DILATIONS[0])
    acc3_s[...] += dil_contrib(w3_ref, DILATIONS[1])
    acc4_s[...] += dil_contrib(w4_ref, DILATIONS[2])

    # ---- last Cin chunk: shift + ReLU each branch, project, shift + ReLU, store ----
    @pl.when(k == k_last)
    def _finalize():
        sh = shift_ref[...]                                # (6, Cp) f32
        relu = lambda v: jnp.maximum(v, 0.0)

        y1 = relu(acc1_s[...] + sh[0:1, :]).astype(COMPUTE_DTYPE)
        y2 = relu(acc2_s[...] + sh[1:2, :]).astype(COMPUTE_DTYPE)
        y3 = relu(acc3_s[...] + sh[2:3, :]).astype(COMPUTE_DTYPE)
        y4 = relu(acc4_s[...] + sh[3:4, :]).astype(COMPUTE_DTYPE)
        yp = relu(accp_s[...] + sh[4:5, :]).astype(COMPUTE_DTYPE)   # (1, Cp)

        wproj = wproj_ref[...]                             # (5, Cp, Cp) bf16
        proj = jnp.dot(y1, wproj[0], preferred_element_type=jnp.float32)
        proj = proj + jnp.dot(y2, wproj[1], preferred_element_type=jnp.float32)
        proj = proj + jnp.dot(y3, wproj[2], preferred_element_type=jnp.float32)
        proj = proj + jnp.dot(y4, wproj[3], preferred_element_type=jnp.float32)
        # pooled branch contributes a spatially-constant row (1x1 bilinear upsample
        # with align_corners=True is an exact broadcast) -> add as a bias row.
        proj = proj + jnp.dot(yp, wproj[4], preferred_element_type=jnp.float32)

        out = relu(proj + sh[5:6, :])                      # dropout = identity (eval)
        out_ref[0] = out.reshape(H, W, Cp).astype(out_ref.dtype)


# ----------------------------------------------------------------------------
# Wrapper: layout conversion, BN folding into weights, pallas_call plumbing.
# ----------------------------------------------------------------------------
def aspp_forward(x_nchw, params):
    N, Cin, H, W = x_nchw.shape
    Cout = params["w1"].shape[0]
    P = max(DILATIONS)
    Hp, Wp = H + 2 * P, W + 2 * P
    Cp = _round_up(Cout, LANE)          # lane-dense output channels
    TCin = _choose_cin_tile(Cin)
    Kc = Cin // TCin

    # Fold each eval-mode BatchNorm into per-output-channel (scale, shift).
    scales, shifts = [], []
    for name in ("bn1", "bn2", "bn3", "bn4", "bnp", "bnproj"):
        gamma, beta, mean, var = params[name]
        s = gamma / jnp.sqrt(var + BN_EPS)
        scales.append(s)
        shifts.append(beta - mean * s)

    def pad_cout(w):
        if Cp == Cout:
            return w
        cfg = [(0, 0)] * (w.ndim - 1) + [(0, Cp - Cout)]
        return jnp.pad(w, cfg)

    # 1x1 branches: (Cin, Cp), BN scale folded, bf16.
    w1 = pad_cout(jnp.transpose(params["w1"][:, :, 0, 0], (1, 0))
                  * scales[0][None, :]).astype(COMPUTE_DTYPE)
    wp = pad_cout(jnp.transpose(params["wp"][:, :, 0, 0], (1, 0))
                  * scales[4][None, :]).astype(COMPUTE_DTYPE)

    # Dilated 3x3 branches: regroup into (Kc, 3, 3*TCin, Cp) so each ky is one
    # K=3*TCin matmul slab (kx taps stacked along K), BN scale folded, bf16.
    def prep_dil(w_oihw, scale):
        w = jnp.transpose(w_oihw, (2, 3, 1, 0)) * scale[None, None, None, :]
        w = pad_cout(w)                                        # (ky, kx, Cin, Cp)
        w = w.reshape(3, 3, Kc, TCin, Cp).transpose(2, 0, 1, 3, 4)
        return w.reshape(Kc, 3, 3 * TCin, Cp).astype(COMPUTE_DTYPE)

    w2 = prep_dil(params["w2"], scales[1])
    w3 = prep_dil(params["w3"], scales[2])
    w4 = prep_dil(params["w4"], scales[3])

    # Projection: split (5*Cout, Cout) into five (Cp, Cp) per-branch chunks,
    # BN scale folded, bf16 (no concat in the kernel).
    wproj = jnp.transpose(params["wproj"][:, :, 0, 0], (1, 0)) * scales[5][None, :]
    wproj = wproj.reshape(5, Cout, Cout)
    if Cp != Cout:
        wproj = jnp.pad(wproj, ((0, 0), (0, Cp - Cout), (0, Cp - Cout)))
    wproj = wproj.astype(COMPUTE_DTYPE)

    shift = jnp.stack(
        [jnp.pad(s, (0, Cp - Cout)) if Cp != Cout else s for s in shifts],
        axis=0).astype(jnp.float32)                            # (6, Cp)

    # NCHW -> NHWC, bf16.  Zero padding happens inside the kernel (no extra
    # padded-activation HBM round trip).
    x_nhwc = jnp.transpose(x_nchw, (0, 2, 3, 1)).astype(COMPUTE_DTYPE)

    kernel = functools.partial(_aspp_kernel, H=H, W=W, P=P, TCin=TCin, Cp=Cp)

    block_bufs = [                                             # double-buffered
        ((1, H, W, TCin), COMPUTE_DTYPE),
        ((TCin, Cp), COMPUTE_DTYPE),
        ((1, 3, 3 * TCin, Cp), COMPUTE_DTYPE),
        ((1, 3, 3 * TCin, Cp), COMPUTE_DTYPE),
        ((1, 3, 3 * TCin, Cp), COMPUTE_DTYPE),
        ((TCin, Cp), COMPUTE_DTYPE),
        ((5, Cp, Cp), COMPUTE_DTYPE),
        ((6, Cp), jnp.float32),
        ((1, H, W, Cp), jnp.float32),
    ]
    scratch_bufs = [
        ((Hp, Wp, TCin), COMPUTE_DTYPE),
        ((H * W, Cp), jnp.float32), ((H * W, Cp), jnp.float32),
        ((H * W, Cp), jnp.float32), ((H * W, Cp), jnp.float32),
        ((1, Cp), jnp.float32),
    ]
    working_set = (sum(2 * _tile_bytes(s, d) for s, d in block_bufs)
                   + sum(_tile_bytes(s, d) for s, d in scratch_bufs))
    vmem_limit = int(min(64 * 1024 * 1024,
                         max(32 * 1024 * 1024, 1.25 * working_set)))

    out_nhwc = pl.pallas_call(
        kernel,
        out_shape=jax.ShapeDtypeStruct((N, H, W, Cp), jnp.float32),
        grid_spec=pltpu.PrefetchScalarGridSpec(
            num_scalar_prefetch=0,
            grid=(N, Kc),
            in_specs=[
                pl.BlockSpec((1, H, W, TCin), lambda n, k: (n, 0, 0, k)),
                pl.BlockSpec((TCin, Cp), lambda n, k: (k, 0)),
                pl.BlockSpec((1, 3, 3 * TCin, Cp), lambda n, k: (k, 0, 0, 0)),
                pl.BlockSpec((1, 3, 3 * TCin, Cp), lambda n, k: (k, 0, 0, 0)),
                pl.BlockSpec((1, 3, 3 * TCin, Cp), lambda n, k: (k, 0, 0, 0)),
                pl.BlockSpec((TCin, Cp), lambda n, k: (k, 0)),
                pl.BlockSpec((5, Cp, Cp), lambda n, k: (0, 0, 0)),
                pl.BlockSpec((6, Cp), lambda n, k: (0, 0)),
            ],
            out_specs=pl.BlockSpec((1, H, W, Cp), lambda n, k: (n, 0, 0, 0)),
            scratch_shapes=[
                pltpu.VMEM((Hp, Wp, TCin), COMPUTE_DTYPE),     # zero-padded x chunk
                pltpu.VMEM((H * W, Cp), jnp.float32),          # branch 1 acc
                pltpu.VMEM((H * W, Cp), jnp.float32),          # branch 2 acc
                pltpu.VMEM((H * W, Cp), jnp.float32),          # branch 3 acc
                pltpu.VMEM((H * W, Cp), jnp.float32),          # branch 4 acc
                pltpu.VMEM((1, Cp), jnp.float32),              # pooled branch acc
            ],
        ),
        compiler_params=pltpu.CompilerParams(
            dimension_semantics=("parallel", "arbitrary"),
            vmem_limit_bytes=vmem_limit),
    )(x_nhwc, w1, w2, w3, w4, wp, wproj, shift)

    out = out_nhwc[..., :Cout] if Cp != Cout else out_nhwc
    return jnp.transpose(out, (0, 3, 1, 2)).astype(x_nchw.dtype)   # back to NCHW


# ----------------------------------------------------------------------------
# Pure-JAX f32 reference (NCHW, lax convs) for correctness checking.
# ----------------------------------------------------------------------------
def aspp_reference(x, params):
    def bn_eval(y, p):
        gamma, beta, mean, var = p
        g = gamma[None, :, None, None]
        b = beta[None, :, None, None]
        m = mean[None, :, None, None]
        v = var[None, :, None, None]
        return (y - m) / jnp.sqrt(v + BN_EPS) * g + b

    def conv(x, w, pad, dil):
        return lax.conv_general_dilated(
            x, w, window_strides=(1, 1), padding=[(pad, pad), (pad, pad)],
            rhs_dilation=(dil, dil),
            dimension_numbers=("NCHW", "OIHW", "NCHW"))

    relu = lambda z: jnp.maximum(z, 0.0)
    H, W = x.shape[2], x.shape[3]

    x1 = relu(bn_eval(conv(x, params["w1"], 0, 1), params["bn1"]))
    x2 = relu(bn_eval(conv(x, params["w2"], 6, 6), params["bn2"]))
    x3 = relu(bn_eval(conv(x, params["w3"], 12, 12), params["bn3"]))
    x4 = relu(bn_eval(conv(x, params["w4"], 18, 18), params["bn4"]))

    pooled = jnp.mean(x, axis=(2, 3), keepdims=True)
    x6 = relu(bn_eval(conv(pooled, params["wp"], 0, 1), params["bnp"]))
    x6 = jnp.broadcast_to(x6, (x.shape[0], x6.shape[1], H, W))

    cat = jnp.concatenate([x1, x2, x3, x4, x6], axis=1)
    proj = relu(bn_eval(conv(cat, params["wproj"], 0, 1), params["bnproj"]))
    return proj                                               # dropout = identity (eval)


# ----------------------------------------------------------------------------
def make_params(key, inplanes, outplanes):
    ks = jax.random.split(key, 30)
    nrm = lambda k, s, sc=0.2: (jax.random.normal(k, s, jnp.float32) * sc)

    def bn_params(k):
        k1, k2, k3, k4 = jax.random.split(k, 4)
        gamma = 1.0 + 0.1 * jax.random.normal(k1, (outplanes,), jnp.float32)
        beta = 0.1 * jax.random.normal(k2, (outplanes,), jnp.float32)
        mean = 0.1 * jax.random.normal(k3, (outplanes,), jnp.float32)
        var = jnp.abs(jax.random.normal(k4, (outplanes,), jnp.float32)) * 0.5 + 0.5
        return (gamma, beta, mean, var)

    return {
        "w1": nrm(ks[0], (outplanes, inplanes, 1, 1)),
        "w2": nrm(ks[1], (outplanes, inplanes, 3, 3)),
        "w3": nrm(ks[2], (outplanes, inplanes, 3, 3)),
        "w4": nrm(ks[3], (outplanes, inplanes, 3, 3)),
        "wp": nrm(ks[4], (outplanes, inplanes, 1, 1)),
        "wproj": nrm(ks[5], (outplanes, 5 * outplanes, 1, 1)),
        "bn1": bn_params(ks[6]),
        "bn2": bn_params(ks[7]),
        "bn3": bn_params(ks[8]),
        "bn4": bn_params(ks[9]),
        "bnp": bn_params(ks[10]),
        "bnproj": bn_params(ks[11]),
    }


if __name__ == "__main__":
    key = jax.random.PRNGKey(0)
    k_x, k_p = jax.random.split(key)

    N, Cin, H, W = 2, 4, 16, 16
    Cout = 8

    x = jax.random.normal(k_x, (N, Cin, H, W), jnp.float32)
    params = make_params(k_p, Cin, Cout)

    out = jax.block_until_ready(aspp_forward(x, params))
    ref = jax.block_until_ready(aspp_reference(x, params))

    assert out.shape == (N, Cout, H, W), out.shape
    # Kernel matmuls run in bf16 (f32 accumulation); tolerance sized for two
    # stacked bf16 matmul layers vs the f32 reference.
    np.testing.assert_allclose(np.asarray(out), np.asarray(ref),
                               rtol=5e-2, atol=5e-2)
    print("KERNEL_OK")
</pallas_src>

<mosaic_0001>
module attributes {stable_mosaic.version = 11 : i64} {
  func.func @_aspp_kernel(%arg0: i32, %arg1: i32, %arg2: memref<1x16x16x4xbf16, #tpu.memory_space<vmem>>, %arg3: memref<4x128xbf16, #tpu.memory_space<vmem>>, %arg4: memref<1x3x12x128xbf16, #tpu.memory_space<vmem>>, %arg5: memref<1x3x12x128xbf16, #tpu.memory_space<vmem>>, %arg6: memref<1x3x12x128xbf16, #tpu.memory_space<vmem>>, %arg7: memref<4x128xbf16, #tpu.memory_space<vmem>>, %arg8: memref<5x128x128xbf16, #tpu.memory_space<vmem>>, %arg9: memref<6x128xf32, #tpu.memory_space<vmem>>, %arg10: memref<1x16x16x128xf32, #tpu.memory_space<vmem>>, %arg11: memref<52x52x4xbf16, #tpu.memory_space<vmem>>, %arg12: memref<256x128xf32, #tpu.memory_space<vmem>>, %arg13: memref<256x128xf32, #tpu.memory_space<vmem>>, %arg14: memref<256x128xf32, #tpu.memory_space<vmem>>, %arg15: memref<256x128xf32, #tpu.memory_space<vmem>>, %arg16: memref<1x128xf32, #tpu.memory_space<vmem>>) attributes {dimension_semantics = [#tpu.dimension_semantics<parallel>, #tpu.dimension_semantics<arbitrary>], iteration_bounds = array<i64: 2, 1>, scalar_prefetch = 0 : i64, scratch_operands = 6 : i64, tpu.core_type = #tpu.core_type<tc>, window_params = [{transform_indices = @transform_0, window_bounds = array<i64: 1, 16, 16, 4>}, {transform_indices = @transform_1, window_bounds = array<i64: 4, 128>}, {transform_indices = @transform_2, window_bounds = array<i64: 1, 3, 12, 128>}, {transform_indices = @transform_3, window_bounds = array<i64: 1, 3, 12, 128>}, {transform_indices = @transform_4, window_bounds = array<i64: 1, 3, 12, 128>}, {transform_indices = @transform_5, window_bounds = array<i64: 4, 128>}, {pipeline_mode = #tpu.pipeline_mode<synchronous>, transform_indices = @transform_6, window_bounds = array<i64: 5, 128, 128>}, {pipeline_mode = #tpu.pipeline_mode<synchronous>, transform_indices = @transform_7, window_bounds = array<i64: 6, 128>}, {transform_indices = @transform_8, window_bounds = array<i64: 1, 16, 16, 128>}]} {
    %c0_i32 = arith.constant 0 : i32
    %0 = arith.cmpi eq, %arg1, %c0_i32 : i32
    %1 = arith.extui %0 : i1 to i32
    %c0_i32_0 = arith.constant 0 : i32
    %2 = arith.cmpi ne, %1, %c0_i32_0 : i32
    scf.if %2 {
      %cst_154 = arith.constant 0.000000e+00 : bf16
      %131 = vector.broadcast %cst_154 : bf16 to vector<52x52x4xbf16>
      %c0_155 = arith.constant 0 : index
      %c0_156 = arith.constant 0 : index
      %c0_157 = arith.constant 0 : index
      %132 = vector.load %arg11[%c0_155, %c0_156, %c0_157] : memref<52x52x4xbf16, #tpu.memory_space<vmem>>, vector<52x52x4xbf16>
      tpu.vector_store %arg11[%c0_155, %c0_156, %c0_157], %131 {strides = array<i32>} : memref<52x52x4xbf16, #tpu.memory_space<vmem>>, vector<52x52x4xbf16>,
      %cst_158 = arith.constant 0.000000e+00 : f32
      %133 = vector.broadcast %cst_158 : f32 to vector<256x128xf32>
      %c0_159 = arith.constant 0 : index
      %c0_160 = arith.constant 0 : index
      %134 = vector.load %arg12[%c0_159, %c0_160] : memref<256x128xf32, #tpu.memory_space<vmem>>, vector<256x128xf32>
      tpu.vector_store %arg12[%c0_159, %c0_160], %133 {strides = array<i32>} : memref<256x128xf32, #tpu.memory_space<vmem>>, vector<256x128xf32>,
      %cst_161 = arith.constant 0.000000e+00 : f32
      %135 = vector.broadcast %cst_161 : f32 to vector<256x128xf32>
      %c0_162 = arith.constant 0 : index
      %c0_163 = arith.constant 0 : index
      %136 = vector.load %arg13[%c0_162, %c0_163] : memref<256x128xf32, #tpu.memory_space<vmem>>, vector<256x128xf32>
      tpu.vector_store %arg13[%c0_162, %c0_163], %135 {strides = array<i32>} : memref<256x128xf32, #tpu.memory_space<vmem>>, vector<256x128xf32>,
      %cst_164 = arith.constant 0.000000e+00 : f32
      %137 = vector.broadcast %cst_164 : f32 to vector<256x128xf32>
      %c0_165 = arith.constant 0 : index
      %c0_166 = arith.constant 0 : index
      %138 = vector.load %arg14[%c0_165, %c0_166] : memref<256x128xf32, #tpu.memory_space<vmem>>, vector<256x128xf32>
      tpu.vector_store %arg14[%c0_165, %c0_166], %137 {strides = array<i32>} : memref<256x128xf32, #tpu.memory_space<vmem>>, vector<256x128xf32>,
      %cst_167 = arith.constant 0.000000e+00 : f32
      %139 = vector.broadcast %cst_167 : f32 to vector<256x128xf32>
      %c0_168 = arith.constant 0 : index
      %c0_169 = arith.constant 0 : index
      %140 = vector.load %arg15[%c0_168, %c0_169] : memref<256x128xf32, #tpu.memory_space<vmem>>, vector<256x128xf32>
      tpu.vector_store %arg15[%c0_168, %c0_169], %139 {strides = array<i32>} : memref<256x128xf32, #tpu.memory_space<vmem>>, vector<256x128xf32>,
      %cst_170 = arith.constant 0.000000e+00 : f32
      %141 = vector.broadcast %cst_170 : f32 to vector<1x128xf32>
      %c0_171 = arith.constant 0 : index
      %c0_172 = arith.constant 0 : index
      %142 = vector.load %arg16[%c0_171, %c0_172] : memref<1x128xf32, #tpu.memory_space<vmem>>, vector<1x128xf32>
      tpu.vector_store %arg16[%c0_171, %c0_172], %141 {strides = array<i32>} : memref<1x128xf32, #tpu.memory_space<vmem>>, vector<1x128xf32>,
    } else {
    }
    %c0 = arith.constant 0 : index
    %c0_1 = arith.constant 0 : index
    %c0_2 = arith.constant 0 : index
    %c0_3 = arith.constant 0 : index
    %3 = vector.load %arg2[%c0, %c0_1, %c0_2, %c0_3] : memref<1x16x16x4xbf16, #tpu.memory_space<vmem>>, vector<1x16x16x4xbf16>
    %4 = vector.shape_cast %3 : vector<1x16x16x4xbf16> to vector<16x16x4xbf16>
    %c18 = arith.constant 18 : index
    %c18_4 = arith.constant 18 : index
    %c0_5 = arith.constant 0 : index
    %5 = vector.load %arg11[%c18, %c18_4, %c0_5] : memref<52x52x4xbf16, #tpu.memory_space<vmem>>, vector<16x16x4xbf16>
    tpu.vector_store %arg11[%c18, %c18_4, %c0_5], %4 {strides = array<i32>} : memref<52x52x4xbf16, #tpu.memory_space<vmem>>, vector<16x16x4xbf16>,
    %6 = vector.shape_cast %4 : vector<16x16x4xbf16> to vector<256x4xbf16>
    %c0_6 = arith.constant 0 : index
    %c0_7 = arith.constant 0 : index
    %7 = vector.load %arg12[%c0_6, %c0_7] : memref<256x128xf32, #tpu.memory_space<vmem>>, vector<256x128xf32>
    %c0_8 = arith.constant 0 : index
    %c0_9 = arith.constant 0 : index
    %8 = vector.load %arg3[%c0_8, %c0_9] : memref<4x128xbf16, #tpu.memory_space<vmem>>, vector<4x128xbf16>
    %cst = arith.constant dense<0.000000e+00> : vector<256x128xf32>
    %9 = tpu.matmul %6, %8, %cst {dimension_numbers = #tpu.dot_dimension_numbers<[1], [0], [0], [1], [0, 0, 1, 1], [], []>} : vector<256x4xbf16>, vector<4x128xbf16>, vector<256x128xf32> -> vector<256x128xf32>
    %10 = arith.addf %7, %9 : vector<256x128xf32>
    %c0_10 = arith.constant 0 : index
    %c0_11 = arith.constant 0 : index
    %11 = vector.load %arg12[%c0_10, %c0_11] : memref<256x128xf32, #tpu.memory_space<vmem>>, vector<256x128xf32>
    tpu.vector_store %arg12[%c0_10, %c0_11], %10 {strides = array<i32>} : memref<256x128xf32, #tpu.memory_space<vmem>>, vector<256x128xf32>,
    %12 = arith.extf %6 : vector<256x4xbf16> to vector<256x4xf32>
    %cst_12 = arith.constant dense<0.000000e+00> : vector<4xf32>
    %13 = vector.multi_reduction <add>, %12, %cst_12 [0] : vector<256x4xf32> to vector<4xf32>
    %14 = vector.shape_cast %13 : vector<4xf32> to vector<1x4xf32>
    %cst_13 = arith.constant 2.560000e+02 : f32
    %15 = vector.broadcast %cst_13 : f32 to vector<1x4xf32>
    %16 = arith.divf %14, %15 : vector<1x4xf32>
    %c0_14 = arith.constant 0 : index
    %c0_15 = arith.constant 0 : index
    %17 = vector.load %arg16[%c0_14, %c0_15] : memref<1x128xf32, #tpu.memory_space<vmem>>, vector<1x128xf32>
    %18 = arith.truncf %16 : vector<1x4xf32> to vector<1x4xbf16>
    %c0_16 = arith.constant 0 : index
    %c0_17 = arith.constant 0 : index
    %19 = vector.load %arg7[%c0_16, %c0_17] : memref<4x128xbf16, #tpu.memory_space<vmem>>, vector<4x128xbf16>
    %cst_18 = arith.constant dense<0.000000e+00> : vector<1x128xf32>
    %20 = tpu.matmul %18, %19, %cst_18 {dimension_numbers = #tpu.dot_dimension_numbers<[1], [0], [0], [1], [0, 0, 1, 1], [], []>} : vector<1x4xbf16>, vector<4x128xbf16>, vector<1x128xf32> -> vector<1x128xf32>
    %21 = arith.addf %17, %20 : vector<1x128xf32>
    %c0_19 = arith.constant 0 : index
    %c0_20 = arith.constant 0 : index
    %22 = vector.load %arg16[%c0_19, %c0_20] : memref<1x128xf32, #tpu.memory_space<vmem>>, vector<1x128xf32>
    tpu.vector_store %arg16[%c0_19, %c0_20], %21 {strides = array<i32>} : memref<1x128xf32, #tpu.memory_space<vmem>>, vector<1x128xf32>,
    %c0_21 = arith.constant 0 : index
    %c0_22 = arith.constant 0 : index
    %23 = vector.load %arg13[%c0_21, %c0_22] : memref<256x128xf32, #tpu.memory_space<vmem>>, vector<256x128xf32>
    %c12 = arith.constant 12 : index
    %c12_23 = arith.constant 12 : index
    %c0_24 = arith.constant 0 : index
    %24 = vector.load %arg11[%c12, %c12_23, %c0_24] : memref<52x52x4xbf16, #tpu.memory_space<vmem>>, vector<16x16x4xbf16>
    %25 = vector.shape_cast %24 : vector<16x16x4xbf16> to vector<256x4xbf16>
    %c12_25 = arith.constant 12 : index
    %c18_26 = arith.constant 18 : index
    %c0_27 = arith.constant 0 : index
    %26 = vector.load %arg11[%c12_25, %c18_26, %c0_27] : memref<52x52x4xbf16, #tpu.memory_space<vmem>>, vector<16x16x4xbf16>
    %27 = vector.shape_cast %26 : vector<16x16x4xbf16> to vector<256x4xbf16>
    %c12_28 = arith.constant 12 : index
    %c24 = arith.constant 24 : index
    %c0_29 = arith.constant 0 : index
    %28 = vector.load %arg11[%c12_28, %c24, %c0_29] : memref<52x52x4xbf16, #tpu.memory_space<vmem>>, vector<16x16x4xbf16>
    %29 = vector.shape_cast %28 : vector<16x16x4xbf16> to vector<256x4xbf16>
    %30 = tpu.concatenate %25, %27, %29 in 1 : vector<256x4xbf16>, vector<256x4xbf16>, vector<256x4xbf16> -> vector<256x12xbf16>
    %c0_30 = arith.constant 0 : index
    %c0_31 = arith.constant 0 : index
    %c0_32 = arith.constant 0 : index
    %c0_33 = arith.constant 0 : index
    %31 = vector.load %arg4[%c0_30, %c0_31, %c0_32, %c0_33] : memref<1x3x12x128xbf16, #tpu.memory_space<vmem>>, vector<1x1x12x128xbf16>
    %32 = vector.shape_cast %31 : vector<1x1x12x128xbf16> to vector<12x128xbf16>
    %cst_34 = arith.constant dense<0.000000e+00> : vector<256x128xf32>
    %33 = tpu.matmul %30, %32, %cst_34 {dimension_numbers = #tpu.dot_dimension_numbers<[1], [0], [0], [1], [0, 0, 1, 1], [], []>} : vector<256x12xbf16>, vector<12x128xbf16>, vector<256x128xf32> -> vector<256x128xf32>
    %c18_35 = arith.constant 18 : index
    %c12_36 = arith.constant 12 : index
    %c0_37 = arith.constant 0 : index
    %34 = vector.load %arg11[%c18_35, %c12_36, %c0_37] : memref<52x52x4xbf16, #tpu.memory_space<vmem>>, vector<16x16x4xbf16>
    %35 = vector.shape_cast %34 : vector<16x16x4xbf16> to vector<256x4xbf16>
    %c18_38 = arith.constant 18 : index
    %c18_39 = arith.constant 18 : index
    %c0_40 = arith.constant 0 : index
    %36 = vector.load %arg11[%c18_38, %c18_39, %c0_40] : memref<52x52x4xbf16, #tpu.memory_space<vmem>>, vector<16x16x4xbf16>
    %37 = vector.shape_cast %36 : vector<16x16x4xbf16> to vector<256x4xbf16>
    %c18_41 = arith.constant 18 : index
    %c24_42 = arith.constant 24 : index
    %c0_43 = arith.constant 0 : index
    %38 = vector.load %arg11[%c18_41, %c24_42, %c0_43] : memref<52x52x4xbf16, #tpu.memory_space<vmem>>, vector<16x16x4xbf16>
    %39 = vector.shape_cast %38 : vector<16x16x4xbf16> to vector<256x4xbf16>
    %40 = tpu.concatenate %35, %37, %39 in 1 : vector<256x4xbf16>, vector<256x4xbf16>, vector<256x4xbf16> -> vector<256x12xbf16>
    %c0_44 = arith.constant 0 : index
    %c1 = arith.constant 1 : index
    %c0_45 = arith.constant 0 : index
    %c0_46 = arith.constant 0 : index
    %41 = vector.load %arg4[%c0_44, %c1, %c0_45, %c0_46] : memref<1x3x12x128xbf16, #tpu.memory_space<vmem>>, vector<1x1x12x128xbf16>
    %42 = vector.shape_cast %41 : vector<1x1x12x128xbf16> to vector<12x128xbf16>
    %cst_47 = arith.constant dense<0.000000e+00> : vector<256x128xf32>
    %43 = tpu.matmul %40, %42, %cst_47 {dimension_numbers = #tpu.dot_dimension_numbers<[1], [0], [0], [1], [0, 0, 1, 1], [], []>} : vector<256x12xbf16>, vector<12x128xbf16>, vector<256x128xf32> -> vector<256x128xf32>
    %44 = arith.addf %33, %43 : vector<256x128xf32>
    %c24_48 = arith.constant 24 : index
    %c12_49 = arith.constant 12 : index
    %c0_50 = arith.constant 0 : index
    %45 = vector.load %arg11[%c24_48, %c12_49, %c0_50] : memref<52x52x4xbf16, #tpu.memory_space<vmem>>, vector<16x16x4xbf16>
    %46 = vector.shape_cast %45 : vector<16x16x4xbf16> to vector<256x4xbf16>
    %c24_51 = arith.constant 24 : index
    %c18_52 = arith.constant 18 : index
    %c0_53 = arith.constant 0 : index
    %47 = vector.load %arg11[%c24_51, %c18_52, %c0_53] : memref<52x52x4xbf16, #tpu.memory_space<vmem>>, vector<16x16x4xbf16>
    %48 = vector.shape_cast %47 : vector<16x16x4xbf16> to vector<256x4xbf16>
    %c24_54 = arith.constant 24 : index
    %c24_55 = arith.constant 24 : index
    %c0_56 = arith.constant 0 : index
    %49 = vector.load %arg11[%c24_54, %c24_55, %c0_56] : memref<52x52x4xbf16, #tpu.memory_space<vmem>>, vector<16x16x4xbf16>
    %50 = vector.shape_cast %49 : vector<16x16x4xbf16> to vector<256x4xbf16>
    %51 = tpu.concatenate %46, %48, %50 in 1 : vector<256x4xbf16>, vector<256x4xbf16>, vector<256x4xbf16> -> vector<256x12xbf16>
    %c0_57 = arith.constant 0 : index
    %c2 = arith.constant 2 : index
    %c0_58 = arith.constant 0 : index
    %c0_59 = arith.constant 0 : index
    %52 = vector.load %arg4[%c0_57, %c2, %c0_58, %c0_59] : memref<1x3x12x128xbf16, #tpu.memory_space<vmem>>, vector<1x1x12x128xbf16>
    %53 = vector.shape_cast %52 : vector<1x1x12x128xbf16> to vector<12x128xbf16>
    %cst_60 = arith.constant dense<0.000000e+00> : vector<256x128xf32>
    %54 = tpu.matmul %51, %53, %cst_60 {dimension_numbers = #tpu.dot_dimension_numbers<[1], [0], [0], [1], [0, 0, 1, 1], [], []>} : vector<256x12xbf16>, vector<12x128xbf16>, vector<256x128xf32> -> vector<256x128xf32>
    %55 = arith.addf %44, %54 : vector<256x128xf32>
    %56 = arith.addf %23, %55 : vector<256x128xf32>
    %c0_61 = arith.constant 0 : index
    %c0_62 = arith.constant 0 : index
    %57 = vector.load %arg13[%c0_61, %c0_62] : memref<256x128xf32, #tpu.memory_space<vmem>>, vector<256x128xf32>
    tpu.vector_store %arg13[%c0_61, %c0_62], %56 {strides = array<i32>} : memref<256x128xf32, #tpu.memory_space<vmem>>, vector<256x128xf32>,
    %c0_63 = arith.constant 0 : index
    %c0_64 = arith.constant 0 : index
    %58 = vector.load %arg14[%c0_63, %c0_64] : memref<256x128xf32, #tpu.memory_space<vmem>>, vector<256x128xf32>
    %c6 = arith.constant 6 : index
    %c6_65 = arith.constant 6 : index
    %c0_66 = arith.constant 0 : index
    %59 = vector.load %arg11[%c6, %c6_65, %c0_66] : memref<52x52x4xbf16, #tpu.memory_space<vmem>>, vector<16x16x4xbf16>
    %60 = vector.shape_cast %59 : vector<16x16x4xbf16> to vector<256x4xbf16>
    %c6_67 = arith.constant 6 : index
    %c18_68 = arith.constant 18 : index
    %c0_69 = arith.constant 0 : index
    %61 = vector.load %arg11[%c6_67, %c18_68, %c0_69] : memref<52x52x4xbf16, #tpu.memory_space<vmem>>, vector<16x16x4xbf16>
    %62 = vector.shape_cast %61 : vector<16x16x4xbf16> to vector<256x4xbf16>
    %c6_70 = arith.constant 6 : index
    %c30 = arith.constant 30 : index
    %c0_71 = arith.constant 0 : index
    %63 = vector.load %arg11[%c6_70, %c30, %c0_71] : memref<52x52x4xbf16, #tpu.memory_space<vmem>>, vector<16x16x4xbf16>
    %64 = vector.shape_cast %63 : vector<16x16x4xbf16> to vector<256x4xbf16>
    %65 = tpu.concatenate %60, %62, %64 in 1 : vector<256x4xbf16>, vector<256x4xbf16>, vector<256x4xbf16> -> vector<256x12xbf16>
    %c0_72 = arith.constant 0 : index
    %c0_73 = arith.constant 0 : index
    %c0_74 = arith.constant 0 : index
    %c0_75 = arith.constant 0 : index
    %66 = vector.load %arg5[%c0_72, %c0_73, %c0_74, %c0_75] : memref<1x3x12x128xbf16, #tpu.memory_space<vmem>>, vector<1x1x12x128xbf16>
    %67 = vector.shape_cast %66 : vector<1x1x12x128xbf16> to vector<12x128xbf16>
    %cst_76 = arith.constant dense<0.000000e+00> : vector<256x128xf32>
    %68 = tpu.matmul %65, %67, %cst_76 {dimension_numbers = #tpu.dot_dimension_numbers<[1], [0], [0], [1], [0, 0, 1, 1], [], []>} : vector<256x12xbf16>, vector<12x128xbf16>, vector<256x128xf32> -> vector<256x128xf32>
    %c18_77 = arith.constant 18 : index
    %c6_78 = arith.constant 6 : index
    %c0_79 = arith.constant 0 : index
    %69 = vector.load %arg11[%c18_77, %c6_78, %c0_79] : memref<52x52x4xbf16, #tpu.memory_space<vmem>>, vector<16x16x4xbf16>
    %70 = vector.shape_cast %69 : vector<16x16x4xbf16> to vector<256x4xbf16>
    %c18_80 = arith.constant 18 : index
    %c18_81 = arith.constant 18 : index
    %c0_82 = arith.constant 0 : index
    %71 = vector.load %arg11[%c18_80, %c18_81, %c0_82] : memref<52x52x4xbf16, #tpu.memory_space<vmem>>, vector<16x16x4xbf16>
    %72 = vector.shape_cast %71 : vector<16x16x4xbf16> to vector<256x4xbf16>
    %c18_83 = arith.constant 18 : index
    %c30_84 = arith.constant 30 : index
    %c0_85 = arith.constant 0 : index
    %73 = vector.load %arg11[%c18_83, %c30_84, %c0_85] : memref<52x52x4xbf16, #tpu.memory_space<vmem>>, vector<16x16x4xbf16>
    %74 = vector.shape_cast %73 : vector<16x16x4xbf16> to vector<256x4xbf16>
    %75 = tpu.concatenate %70, %72, %74 in 1 : vector<256x4xbf16>, vector<256x4xbf16>, vector<256x4xbf16> -> vector<256x12xbf16>
    %c0_86 = arith.constant 0 : index
    %c1_87 = arith.constant 1 : index
    %c0_88 = arith.constant 0 : index
    %c0_89 = arith.constant 0 : index
    %76 = vector.load %arg5[%c0_86, %c1_87, %c0_88, %c0_89] : memref<1x3x12x128xbf16, #tpu.memory_space<vmem>>, vector<1x1x12x128xbf16>
    %77 = vector.shape_cast %76 : vector<1x1x12x128xbf16> to vector<12x128xbf16>
    %cst_90 = arith.constant dense<0.000000e+00> : vector<256x128xf32>
    %78 = tpu.matmul %75, %77, %cst_90 {dimension_numbers = #tpu.dot_dimension_numbers<[1], [0], [0], [1], [0, 0, 1, 1], [], []>} : vector<256x12xbf16>, vector<12x128xbf16>, vector<256x128xf32> -> vector<256x128xf32>
    %79 = arith.addf %68, %78 : vector<256x128xf32>
    %c30_91 = arith.constant 30 : index
    %c6_92 = arith.constant 6 : index
    %c0_93 = arith.constant 0 : index
    %80 = vector.load %arg11[%c30_91, %c6_92, %c0_93] : memref<52x52x4xbf16, #tpu.memory_space<vmem>>, vector<16x16x4xbf16>
    %81 = vector.shape_cast %80 : vector<16x16x4xbf16> to vector<256x4xbf16>
    %c30_94 = arith.constant 30 : index
    %c18_95 = arith.constant 18 : index
    %c0_96 = arith.constant 0 : index
    %82 = vector.load %arg11[%c30_94, %c18_95, %c0_96] : memref<52x52x4xbf16, #tpu.memory_space<vmem>>, vector<16x16x4xbf16>
    %83 = vector.shape_cast %82 : vector<16x16x4xbf16> to vector<256x4xbf16>
    %c30_97 = arith.constant 30 : index
    %c30_98 = arith.constant 30 : index
    %c0_99 = arith.constant 0 : index
    %84 = vector.load %arg11[%c30_97, %c30_98, %c0_99] : memref<52x52x4xbf16, #tpu.memory_space<vmem>>, vector<16x16x4xbf16>
    %85 = vector.shape_cast %84 : vector<16x16x4xbf16> to vector<256x4xbf16>
    %86 = tpu.concatenate %81, %83, %85 in 1 : vector<256x4xbf16>, vector<256x4xbf16>, vector<256x4xbf16> -> vector<256x12xbf16>
    %c0_100 = arith.constant 0 : index
    %c2_101 = arith.constant 2 : index
    %c0_102 = arith.constant 0 : index
    %c0_103 = arith.constant 0 : index
    %87 = vector.load %arg5[%c0_100, %c2_101, %c0_102, %c0_103] : memref<1x3x12x128xbf16, #tpu.memory_space<vmem>>, vector<1x1x12x128xbf16>
    %88 = vector.shape_cast %87 : vector<1x1x12x128xbf16> to vector<12x128xbf16>
    %cst_104 = arith.constant dense<0.000000e+00> : vector<256x128xf32>
    %89 = tpu.matmul %86, %88, %cst_104 {dimension_numbers = #tpu.dot_dimension_numbers<[1], [0], [0], [1], [0, 0, 1, 1], [], []>} : vector<256x12xbf16>, vector<12x128xbf16>, vector<256x128xf32> -> vector<256x128xf32>
    %90 = arith.addf %79, %89 : vector<256x128xf32>
    %91 = arith.addf %58, %90 : vector<256x128xf32>
    %c0_105 = arith.constant 0 : index
    %c0_106 = arith.constant 0 : index
    %92 = vector.load %arg14[%c0_105, %c0_106] : memref<256x128xf32, #tpu.memory_space<vmem>>, vector<256x128xf32>
    tpu.vector_store %arg14[%c0_105, %c0_106], %91 {strides = array<i32>} : memref<256x128xf32, #tpu.memory_space<vmem>>, vector<256x128xf32>,
    %c0_107 = arith.constant 0 : index
    %c0_108 = arith.constant 0 : index
    %93 = vector.load %arg15[%c0_107, %c0_108] : memref<256x128xf32, #tpu.memory_space<vmem>>, vector<256x128xf32>
    %c0_109 = arith.constant 0 : index
    %c0_110 = arith.constant 0 : index
    %c0_111 = arith.constant 0 : index
    %94 = vector.load %arg11[%c0_109, %c0_110, %c0_111] : memref<52x52x4xbf16, #tpu.memory_space<vmem>>, vector<16x16x4xbf16>
    %95 = vector.shape_cast %94 : vector<16x16x4xbf16> to vector<256x4xbf16>
    %c0_112 = arith.constant 0 : index
    %c18_113 = arith.constant 18 : index
    %c0_114 = arith.constant 0 : index
    %96 = vector.load %arg11[%c0_112, %c18_113, %c0_114] : memref<52x52x4xbf16, #tpu.memory_space<vmem>>, vector<16x16x4xbf16>
    %97 = vector.shape_cast %96 : vector<16x16x4xbf16> to vector<256x4xbf16>
    %c0_115 = arith.constant 0 : index
    %c36 = arith.constant 36 : index
    %c0_116 = arith.constant 0 : index
    %98 = vector.load %arg11[%c0_115, %c36, %c0_116] : memref<52x52x4xbf16, #tpu.memory_space<vmem>>, vector<16x16x4xbf16>
    %99 = vector.shape_cast %98 : vector<16x16x4xbf16> to vector<256x4xbf16>
    %100 = tpu.concatenate %95, %97, %99 in 1 : vector<256x4xbf16>, vector<256x4xbf16>, vector<256x4xbf16> -> vector<256x12xbf16>
    %c0_117 = arith.constant 0 : index
    %c0_118 = arith.constant 0 : index
    %c0_119 = arith.constant 0 : index
    %c0_120 = arith.constant 0 : index
    %101 = vector.load %arg6[%c0_117, %c0_118, %c0_119, %c0_120] : memref<1x3x12x128xbf16, #tpu.memory_space<vmem>>, vector<1x1x12x128xbf16>
    %102 = vector.shape_cast %101 : vector<1x1x12x128xbf16> to vector<12x128xbf16>
    %cst_121 = arith.constant dense<0.000000e+00> : vector<256x128xf32>
    %103 = tpu.matmul %100, %102, %cst_121 {dimension_numbers = #tpu.dot_dimension_numbers<[1], [0], [0], [1], [0, 0, 1, 1], [], []>} : vector<256x12xbf16>, vector<12x128xbf16>, vector<256x128xf32> -> vector<256x128xf32>
    %c18_122 = arith.constant 18 : index
    %c0_123 = arith.constant 0 : index
    %c0_124 = arith.constant 0 : index
    %104 = vector.load %arg11[%c18_122, %c0_123, %c0_124] : memref<52x52x4xbf16, #tpu.memory_space<vmem>>, vector<16x16x4xbf16>
    %105 = vector.shape_cast %104 : vector<16x16x4xbf16> to vector<256x4xbf16>
    %c18_125 = arith.constant 18 : index
    %c18_126 = arith.constant 18 : index
    %c0_127 = arith.constant 0 : index
    %106 = vector.load %arg11[%c18_125, %c18_126, %c0_127] : memref<52x52x4xbf16, #tpu.memory_space<vmem>>, vector<16x16x4xbf16>
    %107 = vector.shape_cast %106 : vector<16x16x4xbf16> to vector<256x4xbf16>
    %c18_128 = arith.constant 18 : index
    %c36_129 = arith.constant 36 : index
    %c0_130 = arith.constant 0 : index
    %108 = vector.load %arg11[%c18_128, %c36_129, %c0_130] : memref<52x52x4xbf16, #tpu.memory_space<vmem>>, vector<16x16x4xbf16>
    %109 = vector.shape_cast %108 : vector<16x16x4xbf16> to vector<256x4xbf16>
    %110 = tpu.concatenate %105, %107, %109 in 1 : vector<256x4xbf16>, vector<256x4xbf16>, vector<256x4xbf16> -> vector<256x12xbf16>
    %c0_131 = arith.constant 0 : index
    %c1_132 = arith.constant 1 : index
    %c0_133 = arith.constant 0 : index
    %c0_134 = arith.constant 0 : index
    %111 = vector.load %arg6[%c0_131, %c1_132, %c0_133, %c0_134] : memref<1x3x12x128xbf16, #tpu.memory_space<vmem>>, vector<1x1x12x128xbf16>
    %112 = vector.shape_cast %111 : vector<1x1x12x128xbf16> to vector<12x128xbf16>
    %cst_135 = arith.constant dense<0.000000e+00> : vector<256x128xf32>
    %113 = tpu.matmul %110, %112, %cst_135 {dimension_numbers = #tpu.dot_dimension_numbers<[1], [0], [0], [1], [0, 0, 1, 1], [], []>} : vector<256x12xbf16>, vector<12x128xbf16>, vector<256x128xf32> -> vector<256x128xf32>
    %114 = arith.addf %103, %113 : vector<256x128xf32>
    %c36_136 = arith.constant 36 : index
    %c0_137 = arith.constant 0 : index
    %c0_138 = arith.constant 0 : index
    %115 = vector.load %arg11[%c36_136, %c0_137, %c0_138] : memref<52x52x4xbf16, #tpu.memory_space<vmem>>, vector<16x16x4xbf16>
    %116 = vector.shape_cast %115 : vector<16x16x4xbf16> to vector<256x4xbf16>
    %c36_139 = arith.constant 36 : index
    %c18_140 = arith.constant 18 : index
    %c0_141 = arith.constant 0 : index
    %117 = vector.load %arg11[%c36_139, %c18_140, %c0_141] : memref<52x52x4xbf16, #tpu.memory_space<vmem>>, vector<16x16x4xbf16>
    %118 = vector.shape_cast %117 : vector<16x16x4xbf16> to vector<256x4xbf16>
    %c36_142 = arith.constant 36 : index
    %c36_143 = arith.constant 36 : index
    %c0_144 = arith.constant 0 : index
    %119 = vector.load %arg11[%c36_142, %c36_143, %c0_144] : memref<52x52x4xbf16, #tpu.memory_space<vmem>>, vector<16x16x4xbf16>
    %120 = vector.shape_cast %119 : vector<16x16x4xbf16> to vector<256x4xbf16>
    %121 = tpu.concatenate %116, %118, %120 in 1 : vector<256x4xbf16>, vector<256x4xbf16>, vector<256x4xbf16> -> vector<256x12xbf16>
    %c0_145 = arith.constant 0 : index
    %c2_146 = arith.constant 2 : index
    %c0_147 = arith.constant 0 : index
    %c0_148 = arith.constant 0 : index
    %122 = vector.load %arg6[%c0_145, %c2_146, %c0_147, %c0_148] : memref<1x3x12x128xbf16, #tpu.memory_space<vmem>>, vector<1x1x12x128xbf16>
    %123 = vector.shape_cast %122 : vector<1x1x12x128xbf16> to vector<12x128xbf16>
    %cst_149 = arith.constant dense<0.000000e+00> : vector<256x128xf32>
    %124 = tpu.matmul %121, %123, %cst_149 {dimension_numbers = #tpu.dot_dimension_numbers<[1], [0], [0], [1], [0, 0, 1, 1], [], []>} : vector<256x12xbf16>, vector<12x128xbf16>, vector<256x128xf32> -> vector<256x128xf32>
    %125 = arith.addf %114, %124 : vector<256x128xf32>
    %126 = arith.addf %93, %125 : vector<256x128xf32>
    %c0_150 = arith.constant 0 : index
    %c0_151 = arith.constant 0 : index
    %127 = vector.load %arg15[%c0_150, %c0_151] : memref<256x128xf32, #tpu.memory_space<vmem>>, vector<256x128xf32>
    tpu.vector_store %arg15[%c0_150, %c0_151], %126 {strides = array<i32>} : memref<256x128xf32, #tpu.memory_space<vmem>>, vector<256x128xf32>,
    %c0_i32_152 = arith.constant 0 : i32
    %128 = arith.cmpi eq, %arg1, %c0_i32_152 : i32
    %129 = arith.extui %128 : i1 to i32
    %c0_i32_153 = arith.constant 0 : i32
    %130 = arith.cmpi ne, %129, %c0_i32_153 : i32
    scf.if %130 {
      %c0_154 = arith.constant 0 : index
      %c0_155 = arith.constant 0 : index
      %131 = vector.load %arg9[%c0_154, %c0_155] : memref<6x128xf32, #tpu.memory_space<vmem>>, vector<6x128xf32>
      %c0_156 = arith.constant 0 : index
      %c0_157 = arith.constant 0 : index
      %132 = vector.load %arg12[%c0_156, %c0_157] : memref<256x128xf32, #tpu.memory_space<vmem>>, vector<256x128xf32>
      %133 = vector.extract_strided_slice %131 {offsets = [0, 0], sizes = [1, 128], strides = [1, 1]} : vector<6x128xf32> to vector<1x128xf32>
      %134 = vector.broadcast %133 : vector<1x128xf32> to vector<256x128xf32>
      %135 = arith.addf %132, %134 : vector<256x128xf32>
      %cst_158 = arith.constant 0.000000e+00 : f32
      %136 = vector.broadcast %cst_158 : f32 to vector<256x128xf32>
      %137 = arith.maximumf %135, %136 : vector<256x128xf32>
      %138 = arith.truncf %137 : vector<256x128xf32> to vector<256x128xbf16>
      %c0_159 = arith.constant 0 : index
      %c0_160 = arith.constant 0 : index
      %139 = vector.load %arg13[%c0_159, %c0_160] : memref<256x128xf32, #tpu.memory_space<vmem>>, vector<256x128xf32>
      %140 = vector.extract_strided_slice %131 {offsets = [1, 0], sizes = [1, 128], strides = [1, 1]} : vector<6x128xf32> to vector<1x128xf32>
      %141 = vector.broadcast %140 : vector<1x128xf32> to vector<256x128xf32>
      %142 = arith.addf %139, %141 : vector<256x128xf32>
      %cst_161 = arith.constant 0.000000e+00 : f32
      %143 = vector.broadcast %cst_161 : f32 to vector<256x128xf32>
      %144 = arith.maximumf %142, %143 : vector<256x128xf32>
      %145 = arith.truncf %144 : vector<256x128xf32> to vector<256x128xbf16>
      %c0_162 = arith.constant 0 : index
      %c0_163 = arith.constant 0 : index
      %146 = vector.load %arg14[%c0_162, %c0_163] : memref<256x128xf32, #tpu.memory_space<vmem>>, vector<256x128xf32>
      %147 = vector.extract_strided_slice %131 {offsets = [2, 0], sizes = [1, 128], strides = [1, 1]} : vector<6x128xf32> to vector<1x128xf32>
      %148 = vector.broadcast %147 : vector<1x128xf32> to vector<256x128xf32>
      %149 = arith.addf %146, %148 : vector<256x128xf32>
      %cst_164 = arith.constant 0.000000e+00 : f32
      %150 = vector.broadcast %cst_164 : f32 to vector<256x128xf32>
      %151 = arith.maximumf %149, %150 : vector<256x128xf32>
      %152 = arith.truncf %151 : vector<256x128xf32> to vector<256x128xbf16>
      %c0_165 = arith.constant 0 : index
      %c0_166 = arith.constant 0 : index
      %153 = vector.load %arg15[%c0_165, %c0_166] : memref<256x128xf32, #tpu.memory_space<vmem>>, vector<256x128xf32>
      %154 = vector.extract_strided_slice %131 {offsets = [3, 0], sizes = [1, 128], strides = [1, 1]} : vector<6x128xf32> to vector<1x128xf32>
      %155 = vector.broadcast %154 : vector<1x128xf32> to vector<256x128xf32>
      %156 = arith.addf %153, %155 : vector<256x128xf32>
      %cst_167 = arith.constant 0.000000e+00 : f32
      %157 = vector.broadcast %cst_167 : f32 to vector<256x128xf32>
      %158 = arith.maximumf %156, %157 : vector<256x128xf32>
      %159 = arith.truncf %158 : vector<256x128xf32> to vector<256x128xbf16>
      %c0_168 = arith.constant 0 : index
      %c0_169 = arith.constant 0 : index
      %160 = vector.load %arg16[%c0_168, %c0_169] : memref<1x128xf32, #tpu.memory_space<vmem>>, vector<1x128xf32>
      %161 = vector.extract_strided_slice %131 {offsets = [4, 0], sizes = [1, 128], strides = [1, 1]} : vector<6x128xf32> to vector<1x128xf32>
      %162 = arith.addf %160, %161 : vector<1x128xf32>
      %cst_170 = arith.constant 0.000000e+00 : f32
      %163 = vector.broadcast %cst_170 : f32 to vector<1x128xf32>
      %164 = arith.maximumf %162, %163 : vector<1x128xf32>
      %165 = arith.truncf %164 : vector<1x128xf32> to vector<1x128xbf16>
      %c0_171 = arith.constant 0 : index
      %c0_172 = arith.constant 0 : index
      %c0_173 = arith.constant 0 : index
      %166 = vector.load %arg8[%c0_171, %c0_172, %c0_173] : memref<5x128x128xbf16, #tpu.memory_space<vmem>>, vector<5x128x128xbf16>
      %167 = vector.extract_strided_slice %166 {offsets = [0, 0, 0], sizes = [1, 128, 128], strides = [1, 1, 1]} : vector<5x128x128xbf16> to vector<1x128x128xbf16>
      %168 = vector.shape_cast %167 : vector<1x128x128xbf16> to vector<128x128xbf16>
      %cst_174 = arith.constant dense<0.000000e+00> : vector<256x128xf32>
      %169 = tpu.matmul %138, %168, %cst_174 {dimension_numbers = #tpu.dot_dimension_numbers<[1], [0], [0], [1], [0, 0, 1, 1], [], []>} : vector<256x128xbf16>, vector<128x128xbf16>, vector<256x128xf32> -> vector<256x128xf32>
      %170 = vector.extract_strided_slice %166 {offsets = [1, 0, 0], sizes = [1, 128, 128], strides = [1, 1, 1]} : vector<5x128x128xbf16> to vector<1x128x128xbf16>
      %171 = vector.shape_cast %170 : vector<1x128x128xbf16> to vector<128x128xbf16>
      %cst_175 = arith.constant dense<0.000000e+00> : vector<256x128xf32>
      %172 = tpu.matmul %145, %171, %cst_175 {dimension_numbers = #tpu.dot_dimension_numbers<[1], [0], [0], [1], [0, 0, 1, 1], [], []>} : vector<256x128xbf16>, vector<128x128xbf16>, vector<256x128xf32> -> vector<256x128xf32>
      %173 = arith.addf %169, %172 : vector<256x128xf32>
      %174 = vector.extract_strided_slice %166 {offsets = [2, 0, 0], sizes = [1, 128, 128], strides = [1, 1, 1]} : vector<5x128x128xbf16> to vector<1x128x128xbf16>
      %175 = vector.shape_cast %174 : vector<1x128x128xbf16> to vector<128x128xbf16>
      %cst_176 = arith.constant dense<0.000000e+00> : vector<256x128xf32>
      %176 = tpu.matmul %152, %175, %cst_176 {dimension_numbers = #tpu.dot_dimension_numbers<[1], [0], [0], [1], [0, 0, 1, 1], [], []>} : vector<256x128xbf16>, vector<128x128xbf16>, vector<256x128xf32> -> vector<256x128xf32>
      %177 = arith.addf %173, %176 : vector<256x128xf32>
      %178 = vector.extract_strided_slice %166 {offsets = [3, 0, 0], sizes = [1, 128, 128], strides = [1, 1, 1]} : vector<5x128x128xbf16> to vector<1x128x128xbf16>
      %179 = vector.shape_cast %178 : vector<1x128x128xbf16> to vector<128x128xbf16>
      %cst_177 = arith.constant dense<0.000000e+00> : vector<256x128xf32>
      %180 = tpu.matmul %159, %179, %cst_177 {dimension_numbers = #tpu.dot_dimension_numbers<[1], [0], [0], [1], [0, 0, 1, 1], [], []>} : vector<256x128xbf16>, vector<128x128xbf16>, vector<256x128xf32> -> vector<256x128xf32>
      %181 = arith.addf %177, %180 : vector<256x128xf32>
      %182 = vector.extract_strided_slice %166 {offsets = [4, 0, 0], sizes = [1, 128, 128], strides = [1, 1, 1]} : vector<5x128x128xbf16> to vector<1x128x128xbf16>
      %183 = vector.shape_cast %182 : vector<1x128x128xbf16> to vector<128x128xbf16>
      %cst_178 = arith.constant dense<0.000000e+00> : vector<1x128xf32>
      %184 = tpu.matmul %165, %183, %cst_178 {dimension_numbers = #tpu.dot_dimension_numbers<[1], [0], [0], [1], [0, 0, 1, 1], [], []>} : vector<1x128xbf16>, vector<128x128xbf16>, vector<1x128xf32> -> vector<1x128xf32>
      %185 = vector.broadcast %184 : vector<1x128xf32> to vector<256x128xf32>
      %186 = arith.addf %181, %185 : vector<256x128xf32>
      %187 = vector.extract_strided_slice %131 {offsets = [5, 0], sizes = [1, 128], strides = [1, 1]} : vector<6x128xf32> to vector<1x128xf32>
      %188 = vector.broadcast %187 : vector<1x128xf32> to vector<256x128xf32>
      %189 = arith.addf %186, %188 : vector<256x128xf32>
      %cst_179 = arith.constant 0.000000e+00 : f32
      %190 = vector.broadcast %cst_179 : f32 to vector<256x128xf32>
      %191 = arith.maximumf %189, %190 : vector<256x128xf32>
      %192 = vector.shape_cast %191 : vector<256x128xf32> to vector<16x16x128xf32>
      %c0_180 = arith.constant 0 : index
      %c0_181 = arith.constant 0 : index
      %c0_182 = arith.constant 0 : index
      %c0_183 = arith.constant 0 : index
      %193 = vector.load %arg10[%c0_180, %c0_181, %c0_182, %c0_183] : memref<1x16x16x128xf32, #tpu.memory_space<vmem>>, vector<1x16x16x128xf32>
      %194 = vector.shape_cast %193 : vector<1x16x16x128xf32> to vector<16x16x128xf32>
      %195 = vector.shape_cast %192 : vector<16x16x128xf32> to vector<1x16x16x128xf32>
      tpu.vector_store %arg10[%c0_180, %c0_181, %c0_182, %c0_183], %195 {strides = array<i32>} : memref<1x16x16x128xf32, #tpu.memory_space<vmem>>, vector<1x16x16x128xf32>,
    } else {
    }
    return
  }
  func.func @transform_0(%arg0: i32, %arg1: i32) -> (i32, i32, i32, i32) {
    %c0_i32 = arith.constant 0 : i32
    %c0_i32_0 = arith.constant 0 : i32
    %c0_i32_1 = arith.constant 0 : i32
    return %arg0, %c0_i32, %c0_i32_0, %arg1 : i32, i32, i32, i32
  }
  func.func @transform_1(%arg0: i32, %arg1: i32) -> (i32, i32) {
    %c0_i32 = arith.constant 0 : i32
    %c0_i32_0 = arith.constant 0 : i32
    return %arg1, %c0_i32 : i32, i32
  }
  func.func @transform_2(%arg0: i32, %arg1: i32) -> (i32, i32, i32, i32) {
    %c0_i32 = arith.constant 0 : i32
    %c0_i32_0 = arith.constant 0 : i32
    %c0_i32_1 = arith.constant 0 : i32
    %c0_i32_2 = arith.constant 0 : i32
    return %arg1, %c0_i32, %c0_i32_0, %c0_i32_1 : i32, i32, i32, i32
  }
  func.func @transform_3(%arg0: i32, %arg1: i32) -> (i32, i32, i32, i32) {
    %c0_i32 = arith.constant 0 : i32
    %c0_i32_0 = arith.constant 0 : i32
    %c0_i32_1 = arith.constant 0 : i32
    %c0_i32_2 = arith.constant 0 : i32
    return %arg1, %c0_i32, %c0_i32_0, %c0_i32_1 : i32, i32, i32, i32
  }
  func.func @transform_4(%arg0: i32, %arg1: i32) -> (i32, i32, i32, i32) {
    %c0_i32 = arith.constant 0 : i32
    %c0_i32_0 = arith.constant 0 : i32
    %c0_i32_1 = arith.constant 0 : i32
    %c0_i32_2 = arith.constant 0 : i32
    return %arg1, %c0_i32, %c0_i32_0, %c0_i32_1 : i32, i32, i32, i32
  }
  func.func @transform_5(%arg0: i32, %arg1: i32) -> (i32, i32) {
    %c0_i32 = arith.constant 0 : i32
    %c0_i32_0 = arith.constant 0 : i32
    return %arg1, %c0_i32 : i32, i32
  }
  func.func @transform_6(%arg0: i32, %arg1: i32) -> (i32, i32, i32) {
    %c0_i32 = arith.constant 0 : i32
    %c0_i32_0 = arith.constant 0 : i32
    %c0_i32_1 = arith.constant 0 : i32
    %c0_i32_2 = arith.constant 0 : i32
    return %c0_i32, %c0_i32_0, %c0_i32_1 : i32, i32, i32
  }
  func.func @transform_7(%arg0: i32, %arg1: i32) -> (i32, i32) {
    %c0_i32 = arith.constant 0 : i32
    %c0_i32_0 = arith.constant 0 : i32
    %c0_i32_1 = arith.constant 0 : i32
    return %c0_i32, %c0_i32_0 : i32, i32
  }
  func.func @transform_8(%arg0: i32, %arg1: i32) -> (i32, i32, i32, i32) {
    %c0_i32 = arith.constant 0 : i32
    %c0_i32_0 = arith.constant 0 : i32
    %c0_i32_1 = arith.constant 0 : i32
    %c0_i32_2 = arith.constant 0 : i32
    return %arg0, %c0_i32, %c0_i32_0, %c0_i32_1 : i32, i32, i32, i32
  }
}

</mosaic_0001>

<bundles_post_ra>
// kernel: tpu_custom_call.1
= control target key start
LH: loop header
LB: loop body
LE: loop exit
PB: predicated region body
PF: predicated region fallthrough
CT: control target
= control target key end

     0   :  { %s21531_s0 = inlined_call_operand.vmem [shape: bf16[2,16,16,4], index: 0, kind: input, shape index: {}]   ;;  %s21532_s1 = inlined_call_operand.vmem [shape: bf16[4,128], index: 1, kind: input, shape index: {}]   ;;  %s21533_s2 = inlined_call_operand.hbm [shape: bf16[1,3,12,128], index: 2, kind: input, shape index: {}]   ;;  %s21534_s3 = inlined_call_operand.hbm [shape: bf16[1,3,12,128], index: 3, kind: input, shape index: {}]   ;;  %s21535_s4 = inlined_call_operand.hbm [shape: bf16[1,3,12,128], index: 4, kind: input, shape index: {}]   ;;  %s21536_s5 = inlined_call_operand.vmem [shape: bf16[4,128], index: 5, kind: input, shape index: {}]   ;;  %s21537_s6 = inlined_call_operand.vmem [shape: bf16[5,128,128], index: 6, kind: input, shape index: {}]   ;;  %s21538_s7 = inlined_call_operand.vmem [shape: f32[6,128], index: 7, kind: input, shape index: {}]   ;;  %s21539_s8 = inlined_call_operand.hbm [shape: f32[2,16,16,128], index: 8, kind: output, shape index: {}]  }
   0x1   :  { %21606 = sst [smem:[#allocation55_spill]] %s21534_s3 }
   0x2   :  { %13 = vsyncpa [#allocation9], 0 }
   0x3   :  { %14 = vsyncpa [#allocation12], 0 }
   0x4   :  { %15 = vsyncpa [#allocation10], 0 }
   0x5   :  { %17 = vsyncpa [#allocation10 + $0x1], 0  ;;  %s15644_s27 = smov 0   ;;  %s15646_s28 = smov 0  }
   0x6   :  { %s15648_s29 = smov 0   ;;  %s15650_s30 = smov 0  }
   0x7   :  { %s15652_s9 = smov 0   ;;  %s15654_s10 = smov 0  }
   0x8 LB: > { %21607 = sst [smem:[#allocation18_spill]] %s15572_s29  ;;  %s13018_s11 = sadd.s32 4294967295, %s15584_s10   ;;  %s15584_s10 = sphi %s15654_s10, %s23_s10   ;;  %s15580_s9 = sphi %s15652_s9, %s21911_s9   ;;  %s15576_s30 = sphi %s15650_s30, %s21910_s30   ;;  %s15572_s29 = sphi %s15648_s29, %s21909_s29   ;;  %s15568_s28 = sphi %s15646_s28, %s21913_s28   ;;  %s15564_s27 = sphi %s15644_s27, %s21912_s27  }
   0x9   : > { %21608 = sst [smem:[#allocation19_spill]] %s15580_s9  ;;  %s13019_s12 = sadd.s32 4294967294, %s15584_s10  }
   0xa   : > { %s35_s13 = sadd.s32 1, %s15580_s9  ;;  %s242_s14 = sadd.s32 1, %s15572_s29 }
   0xb   : > { %p37_p0 = scmp.ge.s32.totalorder %s35_s13, 2  ;;  %p252_p1 = scmp.ne.s32.totalorder %s15572_s29, %s15568_s28 }
   0xc   : > { %p253_p2 = scmp.eq.s32.totalorder %s13018_s11, 1  ;;  %p258_p3 = scmp.ne.s32.totalorder %s15568_s28, %s15564_s27 }
   0xd   : > { %s21915_s13 = smov (%p37_p0, %s35_s13), 0  ;;  %p259_p5 = scmp.eq.s32.totalorder %s13019_s12, 1 }
   0xe   : > { %21609 = sst [smem:[#allocation20_spill]] %s21915_s13  ;;  %p15684_p4 = por %p253_p2, %p252_p1 }
   0xf   : > { %s239_s16 = ssub.s32 %s15580_s9, %s21915_s13  ;;  %p13020_p6 = scmp.ge.s32.totalorder %s15584_s10, 1 }
  0x10   : > { %s21610_s15 = scalar_select %p15684_p4, 1, 0 }
  0x11   : > { %p240_p7 = scmp.eq.s32.totalorder %s239_s16, 0  ;;  %p15691_p8 = por %p259_p5, %p258_p3 }
  0x12   : > { %p266_p9 = scmp.lt.s32.totalorder %s15584_s10, 3  ;;  %p15703_p11 = scmp.eq.s32.totalorder %s13018_s11, 0 }
  0x13   : > { %s21611_s17 = scalar_select %p15691_p8, 1, 0 }
  0x14   : > { %s15697_s18 = scalar_select %p240_p7, %s15572_s29, %s242_s14  }
  0x15   : > { %21612 = sst [smem:[#allocation21_spill]] %s21611_s17  ;;  %p15699_p10 = pnand %p13020_p6, %p266_p9 }
  0x16   : > { %21613 = sst [smem:[#allocation22_spill]] %s15697_s18  ;;  %s15586_s21 = smov [#allocation11]  }
  0x17   : > { %s21614_s19 = scalar_select %p15699_p10, 1, 0 }
  0x18   : > { %s21615_s20 = scalar_select %p15703_p11, 1, 0 }
  0x19   : > { %p15185_p12 = pneg %p15699_p10  ;;  %s304_s22 = sshll.u32 %s15586_s21, 4  ;;  %s305_s22 = int_to_ptr.vmem [resolvable:$true] %s304_s22 }
  0x1a   : > { %s15587_s24 = smov [#allocation8]   ;;  %s21617_s3 = sld [smem:[#allocation55_spill]] }
  0x1b   : > { %p15711_p13 = pnand %p15703_p11, %p15185_p12  ;;  %s288_s25 = sshll.u32 %s15587_s24, 4  ;;  %s289_s25 = int_to_ptr.vmem [resolvable:$true] %s288_s25 }
  0x1d   : > { %p15723_p1 = pneg %p15711_p13 }
  0x20   : > { %s15414_s11 = scalar_lea.hbm %s21617_s3, 384 }
  0x21   : > { %p15415_p0 = scmp.ne.s32.totalorder %s21617_s3, %s15414_s11  ;;  %p15421_p5 = scmp.lt.u32.totalorder %s15414_s11, %s21617_s3 }
  0x23   : > { %p15417_p2 = pnand %p15723_p1, %p15415_p0 }
  0x25   : > { %p15418_p3 = pneg %p15417_p2 }
  0x27   : > { %p15423_p6 = pnand %p15421_p5, %p15418_p3 }
  0x29   : > { %15426 = shalt.err (!%p15423_p6)
}
  0x2a   : > { %s15427_s24 = scalar_lea.vmem %s305_s22, 384  ;;  %p15435_p8 = scmp.lt.s32.totalorder %s305_s22, %s305_s22 }
  0x2b   : > { %p15428_p7 = scmp.ne.s32.totalorder %s305_s22, %s15427_s24  ;;  %p15436_p4 = scmp.lt.s32.totalorder %s15427_s24, %s15427_s24 }
  0x2d   : > { %p15430_p9 = pnand %p15428_p7, %p15723_p1  ;;  %p15437_p11 = por %p15436_p4, %p15435_p8 }
  0x2f   : > { %p15431_p12 = pneg %p15430_p9 }
  0x31   : > { %p15438_p10 = pnand %p15437_p11, %p15431_p12 }
  0x33   : > { %15441 = shalt.err (!%p15438_p10)
}
  0x34   : > { %s15588_s26 = smov 64   ;;  %s15589_s12 = smov 4  }
  0x35   : > { %15191 = dma.hbm_to_vmem [thread:$0]  (!%p15711_p13), %s21617_s3, 384, %s305_s22, [#allocation12], %s15588_s26, %s15588_s26, %s15589_s12  }
  0x36   : > { %s15442_s16 = scalar_lea.hbm %s21533_s2, 384 }
  0x37   : > { %p15443_p4 = scmp.ne.s32.totalorder %s21533_s2, %s15442_s16  ;;  %p15449_p11 = scmp.lt.u32.totalorder %s15442_s16, %s21533_s2 }
  0x39   : > { %p15445_p8 = pnand %p15443_p4, %p15723_p1 }
  0x3b   : > { %p15446_p10 = pneg %p15445_p8 }
  0x3d   : > { %p15451_p0 = pnand %p15449_p11, %p15446_p10 }
  0x3f   : > { %15454 = shalt.err (!%p15451_p0)
}
  0x40   : > { %s15455_s9 = scalar_lea.vmem %s289_s25, 384  ;;  %p15463_p6 = scmp.lt.s32.totalorder %s289_s25, %s289_s25 }
  0x41   : > { %p15456_p2 = scmp.ne.s32.totalorder %s289_s25, %s15455_s9  ;;  %p15464_p7 = scmp.lt.s32.totalorder %s15455_s9, %s15455_s9 }
  0x43   : > { %p15458_p3 = pnand %p15456_p2, %p15723_p1  ;;  %p15465_p9 = por %p15464_p7, %p15463_p6 }
  0x45   : > { %p15459_p5 = pneg %p15458_p3 }
  0x47   : > { %p15466_p12 = pnand %p15465_p9, %p15459_p5 }
  0x49   : > { %15469 = shalt.err (!%p15466_p12)
}
  0x4a   : > { %15188 = dma.hbm_to_vmem [thread:$0]  (!%p15711_p13), %s21533_s2, 384, %s289_s25, [#allocation9], %s15588_s26, %s15588_s26, %s15589_s12  }
  0x4b   : > { %s15590_s18 = smov [#allocation13]   ;;  %s15470_s14 = scalar_lea.hbm %s21535_s4, 384 }
  0x4c   : > { %s320_s22 = sshll.u32 %s15590_s18, 4  ;;  %p15471_p4 = scmp.ne.s32.totalorder %s21535_s4, %s15470_s14  ;;  %s321_s22 = int_to_ptr.vmem [resolvable:$true] %s320_s22 }
  0x4d   : > { %p15477_p11 = scmp.lt.u32.totalorder %s15470_s14, %s21535_s4 }
  0x4e   : > { %p15473_p8 = pnand %p15471_p4, %p15723_p1 }
  0x50   : > { %p15474_p10 = pneg %p15473_p8 }
  0x52   : > { %p15479_p0 = pnand %p15477_p11, %p15474_p10 }
  0x54   : > { %15482 = shalt.err (!%p15479_p0)
}
  0x55   : > { %s15483_s25 = scalar_lea.vmem %s321_s22, 384  ;;  %p15491_p6 = scmp.lt.s32.totalorder %s321_s22, %s321_s22 }
  0x56   : > { %p15484_p2 = scmp.ne.s32.totalorder %s321_s22, %s15483_s25  ;;  %p15492_p7 = scmp.lt.s32.totalorder %s15483_s25, %s15483_s25 }
  0x58   : > { %p15486_p3 = pnand %p15484_p2, %p15723_p1  ;;  %p15493_p9 = por %p15492_p7, %p15491_p6 }
  0x5a   : > { %p15487_p5 = pneg %p15486_p3 }
  0x5c   : > { %p15494_p12 = pnand %p15493_p9, %p15487_p5 }
  0x5e   : > { %15497 = shalt.err (!%p15494_p12)
}
  0x5f   : > { %15194 = dma.hbm_to_vmem [thread:$0]  (!%p15711_p13), %s21535_s4, 384, %s321_s22, [#allocation12], %s15588_s26, %s15588_s26, %s15589_s12  }
  0x60   : > { %p21619_p4 = scmp.ne.s32.totalorder %s21614_s19, 0 }
  0x62   : > { %360 = sbr.rel (%p21619_p4) target bundleno = 1622 (0x656), region = 52 }
  0x69   : > { %p21620_p1 = scmp.ne.s32.totalorder %s21615_s20, 0 }
  0x6b   : > { %15551 = dma.done.wait (%p21620_p1), [#allocation9], 384  }
  0x6c   : > { %15553 = vsyncadd (%p21620_p1), [#allocation9], 4294966912 }
  0x6d   : > { %15555 = dma.done.wait (%p21620_p1), [#allocation12], 768  }
  0x6e   : > { %15557 = vsyncadd (%p21620_p1), [#allocation12], 4294966528  ;;  %vm441_vm0 = vcmask 25600   ;;  %p413_p8 = scmp.lt.s32.totalorder %s15576_s30, 1  ;;  %vm434_vm1 = vcmask 27648   ;;  %v15591_v0 = vmov 0  }
  0x6f   : > { %442 = vst.msk [vmem:[#allocation2 + $0x18] sm:$0x3] %vm441_vm0, %v15591_v0  ;;  %449 = vst.msk [vmem:[#allocation2 + $0x34] sm:$0x3] %vm441_vm0, %v15591_v0  ;;  %vm993_vm2 = vcmask 1040384   ;;  %vm994_vm3 = vcmask 1044484  }
  0x70   : > { %456 = vst.msk [vmem:[#allocation2 + $0x50] sm:$0x3] %vm441_vm0, %v15591_v0  ;;  %463 = vst.msk [vmem:[#allocation2 + $0x6c] sm:$0x3] %vm441_vm0, %v15591_v0  ;;  %s414_s19 = scalar_select %p413_p8, %s15576_s30, 1  ;;  %vm1129_vm4 = vcmask 24576  }
  0x71   : > { %470 = vst.msk [vmem:[#allocation2 + $0x88] sm:$0x3] %vm441_vm0, %v15591_v0  ;;  %477 = vst.msk [vmem:[#allocation2 + $0xa4] sm:$0x3] %vm441_vm0, %v15591_v0  ;;  %vm1257_vm5 = vcmask 31744   ;;  %vm1125_vm6 = vcmask 27649  }
  0x72   : > { %484 = vst.msk [vmem:[#allocation2 + $0xc0] sm:$0x3] %vm441_vm0, %v15591_v0  ;;  %491 = vst.msk [vmem:[#allocation2 + $0xdc] sm:$0x3] %vm441_vm0, %v15591_v0  ;;  %s14033_s20 = sshll.u32 %s414_s19, 7  ;;  %v21621_v9 = vmov 0 }
  0x73   : > { %498 = vst.msk [vmem:[#allocation2 + $0xf8] sm:$0x3] %vm441_vm0, %v15591_v0  ;;  %505 = vst.msk [vmem:[#allocation2 + $0x114] sm:$0x3] %vm441_vm0, %v15591_v0  ;;  %s16521_s26 = scalar_lea.vmem %s21531_s0, %s14033_s20  ;;  %vm2029_vm8 = vcmask 1042432   ;;  %vm2030_vm9 = vcmask 1046532  }
  0x74   : > { %512 = vst.msk [vmem:[#allocation2 + $0x130] sm:$0x3] %vm441_vm0, %v15591_v0  ;;  %519 = vst.msk [vmem:[#allocation2 + $0x14c] sm:$0x3] %vm441_vm0, %v15591_v0  ;;  %v16524_v1 = vld [vmem:[%s16521_s26 + $0x10] sm:$0xf] }
  0x75   : > { %526 = vst.msk [vmem:[#allocation2 + $0x168] sm:$0x3] %vm441_vm0, %v15591_v0  ;;  %533 = vst.msk [vmem:[#allocation2 + $0x184] sm:$0x3] %vm441_vm0, %v15591_v0  ;;  %v16527_v2 = vld [vmem:[%s16521_s26 + $0x14] sm:$0xf]  ;;  %v1539_v6 = vunpack.c.l.bf16 %v16524_v1 }
  0x76   : > { %540 = vst.msk [vmem:[#allocation2 + $0x1a0] sm:$0x3] %vm441_vm0, %v15591_v0  ;;  %547 = vst.msk [vmem:[#allocation2 + $0x1bc] sm:$0x3] %vm441_vm0, %v15591_v0  ;;  %v929_v3 = vld [vmem:[%s16521_s26] sm:$0xf]  ;;  %v1540_v7 = vunpack.c.l.bf16 %v16527_v2 }
  0x77   : > { %568 = vst.msk [vmem:[#allocation2 + $0x210] sm:$0x3] %vm441_vm0, %v15591_v0  ;;  %575 = vst.msk [vmem:[#allocation2 + $0x22c] sm:$0x3] %vm441_vm0, %v15591_v0  ;;  %v1006_v4 = vrot.slane %v16524_v1, 7  ;;  %v1008_v5 = vrot.slane %v16527_v2, 7  ;;  %v1535_v12 = vunpack.c.l.bf16 %v929_v3 }
  0x78   : > { %582 = vst.msk [vmem:[#allocation2 + $0x248] sm:$0x3] %vm441_vm0, %v15591_v0  ;;  %589 = vst.msk [vmem:[#allocation2 + $0x264] sm:$0x3] %vm441_vm0, %v15591_v0  ;;  %v930_v8 = vld [vmem:[%s16521_s26 + $0x4] sm:$0xf] }
  0x79   : > { %596 = vst.msk [vmem:[#allocation2 + $0x280] sm:$0x3] %vm441_vm0, %v15591_v0  ;;  %603 = vst.msk [vmem:[#allocation2 + $0x29c] sm:$0x3] %vm441_vm0, %v15591_v0  ;;  %v996_v10 = vrot.slane %v929_v3, 7  ;;  %v998_v11 = vrot.slane %v930_v8, 7  ;;  %v1536_v13 = vunpack.c.l.bf16 %v930_v8 }
  0x7a   : > { %610 = vst.msk [vmem:[#allocation2 + $0x2b8] sm:$0x3] %vm441_vm0, %v15591_v0  ;;  %617 = vst.msk [vmem:[#allocation2 + $0x2d4] sm:$0x3] %vm441_vm0, %v15591_v0  ;;  %v16540_v14 = vld [vmem:[%s16521_s26 + $0x20] sm:$0xf] }
  0x7b   : > { %624 = vst.msk [vmem:[#allocation2 + $0x2f0] sm:$0x3] %vm441_vm0, %v15591_v0  ;;  %631 = vst.msk [vmem:[#allocation2 + $0x30c] sm:$0x3] %vm441_vm0, %v15591_v0  ;;  %v16543_v15 = vld [vmem:[%s16521_s26 + $0x24] sm:$0xf]  ;;  %v1543_v31 = vunpack.c.l.bf16 %v16540_v14 }
  0x7c   : > { %638 = vst.msk [vmem:[#allocation2 + $0x328] sm:$0x3] %vm441_vm0, %v15591_v0  ;;  %645 = vst.msk [vmem:[#allocation2 + $0x344] sm:$0x3] %vm441_vm0, %v15591_v0  ;;  %v1007_v16 = vrot.slane %v1006_v4, 4  ;;  %v1010_v17 = vrot.slane %v1008_v5, 4  ;;  %v1544_v39 = vunpack.c.l.bf16 %v16543_v15 }
  0x7d   : > { %652 = vst.msk [vmem:[#allocation2 + $0x360] sm:$0x3] %vm441_vm0, %v15591_v0  ;;  %659 = vst.msk [vmem:[#allocation2 + $0x37c] sm:$0x3] %vm441_vm0, %v15591_v0  ;;  %v16546_v18 = vsel %vm1257_vm5, %v1539_v6, 0.0  ;;  %v997_v20 = vrot.slane %v996_v10, 4 }
  0x7e   : > { %666 = vst.msk [vmem:[#allocation2 + $0x398] sm:$0x3] %vm441_vm0, %v15591_v0  ;;  %673 = vst.msk [vmem:[#allocation2 + $0x3b4] sm:$0x3] %vm441_vm0, %v15591_v0  ;;  %v931_v19 = vld [vmem:[%s16521_s26 + $0x8] sm:$0xf] }
  0x7f   : > { %694 = vst.msk [vmem:[#allocation2 + $0x408] sm:$0x3] %vm441_vm0, %v15591_v0  ;;  %701 = vst.msk [vmem:[#allocation2 + $0x424] sm:$0x3] %vm441_vm0, %v15591_v0  ;;  %v1000_v21 = vrot.slane %v998_v11, 4  ;;  %v1567_v22 = vsel %vm1257_vm5, %v1535_v12, 0.0  ;;  %v1537_v37 = vunpack.c.l.bf16 %v931_v19 }
  0x80   : > { %708 = vst.msk [vmem:[#allocation2 + $0x440] sm:$0x3] %vm441_vm0, %v15591_v0  ;;  %715 = vst.msk [vmem:[#allocation2 + $0x45c] sm:$0x3] %vm441_vm0, %v15591_v0  ;;  %v1568_v23 = vsel %vm1257_vm5, %v1536_v13, 0.0  ;;  %v16558_v26 = vsel %vm1257_vm5, %v1540_v7, 0.0 }
  0x81   : > { %722 = vst.msk [vmem:[#allocation2 + $0x478] sm:$0x3] %vm441_vm0, %v15591_v0  ;;  %729 = vst.msk [vmem:[#allocation2 + $0x494] sm:$0x3] %vm441_vm0, %v15591_v0  ;;  %v932_v24 = vld [vmem:[%s16521_s26 + $0xc] sm:$0xf]  ;;  %v1569_v30 = vadd.f32 %v1568_v23, %v1567_v22 }
  0x82   : > { %736 = vst.msk [vmem:[#allocation2 + $0x4b0] sm:$0x3] %vm441_vm0, %v15591_v0  ;;  %743 = vst.msk [vmem:[#allocation2 + $0x4cc] sm:$0x3] %vm441_vm0, %v15591_v0  ;;  %v1016_v27 = vrot.slane %v16540_v14, 7  ;;  %v1018_v28 = vrot.slane %v16543_v15, 7  ;;  %v1538_v42 = vunpack.c.l.bf16 %v932_v24 }
  0x83   : > { %750 = vst.msk [vmem:[#allocation2 + $0x4e8] sm:$0x3] %vm441_vm0, %v15591_v0  ;;  %757 = vst.msk [vmem:[#allocation2 + $0x504] sm:$0x3] %vm441_vm0, %v15591_v0  ;;  %v1001_v32 = vrot.slane %v931_v19, 7  ;;  %v1003_v36 = vrot.slane %v932_v24, 7 }
  0x84   : > { %764 = vst.msk [vmem:[#allocation2 + $0x520] sm:$0x3] %vm441_vm0, %v15591_v0  ;;  %771 = vst.msk [vmem:[#allocation2 + $0x53c] sm:$0x3] %vm441_vm0, %v15591_v0  ;;  %v16568_v33 = vld [vmem:[%s16521_s26 + $0x30] sm:$0xf] }
  0x85   : > { %778 = vst.msk [vmem:[#allocation2 + $0x558] sm:$0x3] %vm441_vm0, %v15591_v0  ;;  %785 = vst.msk [vmem:[#allocation2 + $0x574] sm:$0x3] %vm441_vm0, %v15591_v0  ;;  %v1017_v34 = vrot.slane %v1016_v27, 4  ;;  %v1020_v35 = vrot.slane %v1018_v28, 4  ;;  %v1547_v54 = vunpack.c.l.bf16 %v16568_v33 }
  0x86   : > { %792 = vst.msk [vmem:[#allocation2 + $0x590] sm:$0x3] %vm441_vm0, %v15591_v0  ;;  %799 = vst.msk [vmem:[#allocation2 + $0x5ac] sm:$0x3] %vm441_vm0, %v15591_v0  ;;  %v16572_v38 = vld [vmem:[%s16521_s26 + $0x34] sm:$0xf] }
  0x87   : > { %579 = vst.msk [vmem:[#allocation2 + $0x23c] sm:$0xf] %vm434_vm1, %v15591_v0  ;;  %580 = vst.msk [vmem:[#allocation2 + $0x240] sm:$0xf] %vm434_vm1, %v15591_v0  ;;  %v16577_v40 = vsel %vm1257_vm5, %v1543_v31, 0.0  ;;  %v1002_v41 = vrot.slane %v1001_v32, 4  ;;  %v1548_v55 = vunpack.c.l.bf16 %v16572_v38 }
  0x88   : > { %435 = vst.msk [vmem:[#allocation2] sm:$0xf] %vm434_vm1, %v15591_v0  ;;  %436 = vst.msk [vmem:[#allocation2 + $0x4] sm:$0xf] %vm434_vm1, %v15591_v0  ;;  %v16580_v43 = vld [vmem:[%s16521_s26 + $0x18] sm:$0xf] }
  0x89   : > { %437 = vst.msk [vmem:[#allocation2 + $0x8] sm:$0xf] %vm434_vm1, %v15591_v0  ;;  %438 = vst.msk [vmem:[#allocation2 + $0xc] sm:$0xf] %vm434_vm1, %v15591_v0  ;;  %v1005_v45 = vrot.slane %v1003_v36, 4  ;;  %v1570_v46 = vsel %vm1257_vm5, %v1537_v37, 0.0  ;;  %v1541_v61 = vunpack.c.l.bf16 %v16580_v43 }
  0x8a   : > { %439 = vst.msk [vmem:[#allocation2 + $0x10] sm:$0xf] %vm434_vm1, %v15591_v0  ;;  %440 = vst.msk [vmem:[#allocation2 + $0x14] sm:$0xf] %vm434_vm1, %v15591_v0  ;;  %v1026_v47 = vrot.slane %v16568_v33, 7  ;;  %v1571_v50 = vadd.f32 %v1570_v46, %v1569_v30  ;;  %v1572_v51 = vsel %vm1257_vm5, %v1538_v42, 0.0 }
  0x8b   : > { %443 = vst.msk [vmem:[#allocation2 + $0x1c] sm:$0xf] %vm434_vm1, %v15591_v0  ;;  %444 = vst.msk [vmem:[#allocation2 + $0x20] sm:$0xf] %vm434_vm1, %v15591_v0  ;;  %v16589_v48 = vld [vmem:[%s16521_s26 + $0x1c] sm:$0xf] }
  0x8c   : > { %445 = vst.msk [vmem:[#allocation2 + $0x24] sm:$0xf] %vm434_vm1, %v15591_v0  ;;  %446 = vst.msk [vmem:[#allocation2 + $0x28] sm:$0xf] %vm434_vm1, %v15591_v0  ;;  %v1028_v52 = vrot.slane %v16572_v38, 7  ;;  %v1027_v53 = vrot.slane %v1026_v47, 4  ;;  %v1573_v58 = vadd.f32 %v1572_v51, %v1571_v50  ;;  %v1542_v6 = vunpack.c.l.bf16 %v16589_v48 }
  0x8d   : > { %447 = vst.msk [vmem:[#allocation2 + $0x2c] sm:$0xf] %vm434_vm1, %v15591_v0  ;;  %448 = vst.msk [vmem:[#allocation2 + $0x30] sm:$0xf] %vm434_vm1, %v15591_v0  ;;  %v1011_v56 = vrot.slane %v16580_v43, 7  ;;  %v1013_v60 = vrot.slane %v16589_v48, 7 }
  0x8e   : > { %450 = vst.msk [vmem:[#allocation2 + $0x38] sm:$0xf] %vm434_vm1, %v15591_v0  ;;  %451 = vst.msk [vmem:[#allocation2 + $0x3c] sm:$0xf] %vm434_vm1, %v15591_v0  ;;  %v1030_v59 = vrot.slane %v1028_v52, 4  ;;  %v16610_v3 = vsel %vm1257_vm5, %v1544_v39, 0.0 }
  0x8f   : > { %452 = vst.msk [vmem:[#allocation2 + $0x40] sm:$0xf] %vm434_vm1, %v15591_v0  ;;  %453 = vst.msk [vmem:[#allocation2 + $0x44] sm:$0xf] %vm434_vm1, %v15591_v0  ;;  %v16605_v62 = vld [vmem:[%s16521_s26 + $0x28] sm:$0xf] }
  0x90   : > { %454 = vst.msk [vmem:[#allocation2 + $0x48] sm:$0xf] %vm434_vm1, %v15591_v0  ;;  %455 = vst.msk [vmem:[#allocation2 + $0x4c] sm:$0xf] %vm434_vm1, %v15591_v0  ;;  %v1012_v12 = vrot.slane %v1011_v56, 4  ;;  %v1015_v19 = vrot.slane %v1013_v60, 4 }
  0x91   : > { %457 = vst.msk [vmem:[#allocation2 + $0x54] sm:$0xf] %vm434_vm1, %v15591_v0  ;;  %458 = vst.msk [vmem:[#allocation2 + $0x58] sm:$0xf] %vm434_vm1, %v15591_v0  ;;  %v16627_v13 = vld [vmem:[%s16521_s26 + $0x2c] sm:$0xf] }
  0x92   : > { %459 = vst.msk [vmem:[#allocation2 + $0x5c] sm:$0xf] %vm434_vm1, %v15591_v0  ;;  %460 = vst.msk [vmem:[#allocation2 + $0x60] sm:$0xf] %vm434_vm1, %v15591_v0  ;;  %s15592_s12 = smov 8   ;;  %v1023_v30 = vrot.slane %v16627_v13, 7  ;;  %v1546_v37 = vunpack.c.l.bf16 %v16627_v13 }
  0x93   : > { %461 = vst.msk [vmem:[#allocation2 + $0x64] sm:$0xf] %vm434_vm1, %v15591_v0  ;;  %462 = vst.msk [vmem:[#allocation2 + $0x68] sm:$0xf] %vm434_vm1, %v15591_v0  ;;  %v16658_v39 = vld [vmem:[%s16521_s26 + $0x38] sm:$0xf] }
  0x94   : > { %464 = vst.msk [vmem:[#allocation2 + $0x70] sm:$0xf] %vm434_vm1, %v15591_v0  ;;  %465 = vst.msk [vmem:[#allocation2 + $0x74] sm:$0xf] %vm434_vm1, %v15591_v0  ;;  %s15593_s17 = smov 4   ;;  %vm1306_vm11 = vcmask 1041408  }
  0x95   : > { %466 = vst.msk [vmem:[#allocation2 + $0x78] sm:$0xf] %vm434_vm1, %v15591_v0  ;;  %467 = vst.msk [vmem:[#allocation2 + $0x7c] sm:$0xf] %vm434_vm1, %v15591_v0  ;;  %vm1819_vm12 = vcmask 1045508   ;;  %vm3244_vm14 = vcmask 1045504  }
  0x96   : > { %468 = vst.msk [vmem:[#allocation2 + $0x80] sm:$0xf] %vm434_vm1, %v15591_v0  ;;  %469 = vst.msk [vmem:[#allocation2 + $0x84] sm:$0xf] %vm434_vm1, %v15591_v0  ;;  %vm15595_vm15 = vmmov 0   ;;  %vm2432_vm0 = vcmask 64512  }
  0x97   : > { %471 = vst.msk [vmem:[#allocation2 + $0x8c] sm:$0xf] %vm434_vm1, %v15591_v0  ;;  %472 = vst.msk [vmem:[#allocation2 + $0x90] sm:$0xf] %vm434_vm1, %v15591_v0  ;;  %s410_s14 = sand.u32 1, %s15568_s28   ;;  %s14034_s9 = sshll.u32 %s15576_s30, 12 }
  0x98   : > { %473 = vst.msk [vmem:[#allocation2 + $0x94] sm:$0xf] %vm434_vm1, %v15591_v0  ;;  %474 = vst.msk [vmem:[#allocation2 + $0x98] sm:$0xf] %vm434_vm1, %v15591_v0  ;;  %s13031_s16 = sshll.u32 %s410_s14, 8  ;;  %s21475_s29 = scalar_lea.hbm %s21539_s8, %s14034_s9 }
  0x99   : > { %475 = vst.msk [vmem:[#allocation2 + $0x9c] sm:$0xf] %vm434_vm1, %v15591_v0  ;;  %476 = vst.msk [vmem:[#allocation2 + $0xa0] sm:$0xf] %vm434_vm1, %v15591_v0  ;;  %s21383_s24 = scalar_lea.vmem [#allocation14], %s13031_s16  ;;  %s21484_s30 = scalar_lea.sflag [#allocation10], %s410_s14 }
  0x9a   : > { %478 = vst.msk [vmem:[#allocation2 + $0xa8] sm:$0xf] %vm434_vm1, %v15591_v0  ;;  %479 = vst.msk [vmem:[#allocation2 + $0xac] sm:$0xf] %vm434_vm1, %v15591_v0  ;;  %p21905_p10 = scmp.ne.s32.totalorder %s21610_s15, 0  ;;  %s15597_s20 = smov [#allocation14]  }
  0x9b   : > { %480 = vst.msk [vmem:[#allocation2 + $0xb0] sm:$0xf] %vm434_vm1, %v15591_v0  ;;  %481 = vst.msk [vmem:[#allocation2 + $0xb4] sm:$0xf] %vm434_vm1, %v15591_v0  ;;  %s15502_s23 = sshll.u32 %s15597_s20, 4  ;;  %s15503_s23 = int_to_ptr.vmem [resolvable:$false] %s15502_s23 }
  0x9c   : > { %482 = vst.msk [vmem:[#allocation2 + $0xb8] sm:$0xf] %vm434_vm1, %v15591_v0  ;;  %483 = vst.msk [vmem:[#allocation2 + $0xbc] sm:$0xf] %vm434_vm1, %v15591_v0  ;;  %s15504_s21 = scalar_lea.vmem %s15503_s23, 8192 }
  0x9d   : > { %485 = vst.msk [vmem:[#allocation2 + $0xc4] sm:$0xf] %vm434_vm1, %v15591_v0  ;;  %486 = vst.msk [vmem:[#allocation2 + $0xc8] sm:$0xf] %vm434_vm1, %v15591_v0 }
  0x9e   : > { %487 = vst.msk [vmem:[#allocation2 + $0xcc] sm:$0xf] %vm434_vm1, %v15591_v0  ;;  %488 = vst.msk [vmem:[#allocation2 + $0xd0] sm:$0xf] %vm434_vm1, %v15591_v0 }
  0x9f   : > { %489 = vst.msk [vmem:[#allocation2 + $0xd4] sm:$0xf] %vm434_vm1, %v15591_v0  ;;  %490 = vst.msk [vmem:[#allocation2 + $0xd8] sm:$0xf] %vm434_vm1, %v15591_v0 }
  0xa0   : > { %492 = vst.msk [vmem:[#allocation2 + $0xe0] sm:$0xf] %vm434_vm1, %v15591_v0  ;;  %493 = vst.msk [vmem:[#allocation2 + $0xe4] sm:$0xf] %vm434_vm1, %v15591_v0 }
  0xa1   : > { %494 = vst.msk [vmem:[#allocation2 + $0xe8] sm:$0xf] %vm434_vm1, %v15591_v0  ;;  %495 = vst.msk [vmem:[#allocation2 + $0xec] sm:$0xf] %vm434_vm1, %v15591_v0 }
  0xa2   : > { %496 = vst.msk [vmem:[#allocation2 + $0xf0] sm:$0xf] %vm434_vm1, %v15591_v0  ;;  %497 = vst.msk [vmem:[#allocation2 + $0xf4] sm:$0xf] %vm434_vm1, %v15591_v0 }
  0xa3   : > { %499 = vst.msk [vmem:[#allocation2 + $0xfc] sm:$0xf] %vm434_vm1, %v15591_v0  ;;  %500 = vst.msk [vmem:[#allocation2 + $0x100] sm:$0xf] %vm434_vm1, %v15591_v0 }
  0xa4   : > { %501 = vst.msk [vmem:[#allocation2 + $0x104] sm:$0xf] %vm434_vm1, %v15591_v0  ;;  %502 = vst.msk [vmem:[#allocation2 + $0x108] sm:$0xf] %vm434_vm1, %v15591_v0 }
  0xa5   : > { %503 = vst.msk [vmem:[#allocation2 + $0x10c] sm:$0xf] %vm434_vm1, %v15591_v0  ;;  %504 = vst.msk [vmem:[#allocation2 + $0x110] sm:$0xf] %vm434_vm1, %v15591_v0 }
  0xa6   : > { %506 = vst.msk [vmem:[#allocation2 + $0x118] sm:$0xf] %vm434_vm1, %v15591_v0  ;;  %507 = vst.msk [vmem:[#allocation2 + $0x11c] sm:$0xf] %vm434_vm1, %v15591_v0 }
  0xa7   : > { %508 = vst.msk [vmem:[#allocation2 + $0x120] sm:$0xf] %vm434_vm1, %v15591_v0  ;;  %509 = vst.msk [vmem:[#allocation2 + $0x124] sm:$0xf] %vm434_vm1, %v15591_v0 }
  0xa8   : > { %510 = vst.msk [vmem:[#allocation2 + $0x128] sm:$0xf] %vm434_vm1, %v15591_v0  ;;  %511 = vst.msk [vmem:[#allocation2 + $0x12c] sm:$0xf] %vm434_vm1, %v15591_v0 }
  0xa9   : > { %513 = vst.msk [vmem:[#allocation2 + $0x134] sm:$0xf] %vm434_vm1, %v15591_v0  ;;  %514 = vst.msk [vmem:[#allocation2 + $0x138] sm:$0xf] %vm434_vm1, %v15591_v0 }
  0xaa   : > { %515 = vst.msk [vmem:[#allocation2 + $0x13c] sm:$0xf] %vm434_vm1, %v15591_v0  ;;  %516 = vst.msk [vmem:[#allocation2 + $0x140] sm:$0xf] %vm434_vm1, %v15591_v0 }
  0xab   : > { %517 = vst.msk [vmem:[#allocation2 + $0x144] sm:$0xf] %vm434_vm1, %v15591_v0  ;;  %518 = vst.msk [vmem:[#allocation2 + $0x148] sm:$0xf] %vm434_vm1, %v15591_v0 }
  0xac   : > { %520 = vst.msk [vmem:[#allocation2 + $0x150] sm:$0xf] %vm434_vm1, %v15591_v0  ;;  %521 = vst.msk [vmem:[#allocation2 + $0x154] sm:$0xf] %vm434_vm1, %v15591_v0 }
  0xad   : > { %522 = vst.msk [vmem:[#allocation2 + $0x158] sm:$0xf] %vm434_vm1, %v15591_v0  ;;  %523 = vst.msk [vmem:[#allocation2 + $0x15c] sm:$0xf] %vm434_vm1, %v15591_v0 }
  0xae   : > { %524 = vst.msk [vmem:[#allocation2 + $0x160] sm:$0xf] %vm434_vm1, %v15591_v0  ;;  %525 = vst.msk [vmem:[#allocation2 + $0x164] sm:$0xf] %vm434_vm1, %v15591_v0 }
  0xaf   : > { %527 = vst.msk [vmem:[#allocation2 + $0x16c] sm:$0xf] %vm434_vm1, %v15591_v0  ;;  %528 = vst.msk [vmem:[#allocation2 + $0x170] sm:$0xf] %vm434_vm1, %v15591_v0 }
  0xb0   : > { %529 = vst.msk [vmem:[#allocation2 + $0x174] sm:$0xf] %vm434_vm1, %v15591_v0  ;;  %530 = vst.msk [vmem:[#allocation2 + $0x178] sm:$0xf] %vm434_vm1, %v15591_v0 }
  0xb1   : > { %531 = vst.msk [vmem:[#allocation2 + $0x17c] sm:$0xf] %vm434_vm1, %v15591_v0  ;;  %532 = vst.msk [vmem:[#allocation2 + $0x180] sm:$0xf] %vm434_vm1, %v15591_v0 }
  0xb2   : > { %534 = vst.msk [vmem:[#allocation2 + $0x188] sm:$0xf] %vm434_vm1, %v15591_v0  ;;  %535 = vst.msk [vmem:[#allocation2 + $0x18c] sm:$0xf] %vm434_vm1, %v15591_v0 }
  0xb3   : > { %536 = vst.msk [vmem:[#allocation2 + $0x190] sm:$0xf] %vm434_vm1, %v15591_v0  ;;  %537 = vst.msk [vmem:[#allocation2 + $0x194] sm:$0xf] %vm434_vm1, %v15591_v0 }
  0xb4   : > { %538 = vst.msk [vmem:[#allocation2 + $0x198] sm:$0xf] %vm434_vm1, %v15591_v0  ;;  %539 = vst.msk [vmem:[#allocation2 + $0x19c] sm:$0xf] %vm434_vm1, %v15591_v0 }
  0xb5   : > { %541 = vst.msk [vmem:[#allocation2 + $0x1a4] sm:$0xf] %vm434_vm1, %v15591_v0  ;;  %542 = vst.msk [vmem:[#allocation2 + $0x1a8] sm:$0xf] %vm434_vm1, %v15591_v0 }
  0xb6   : > { %543 = vst.msk [vmem:[#allocation2 + $0x1ac] sm:$0xf] %vm434_vm1, %v15591_v0  ;;  %544 = vst.msk [vmem:[#allocation2 + $0x1b0] sm:$0xf] %vm434_vm1, %v15591_v0 }
  0xb7   : > { %545 = vst.msk [vmem:[#allocation2 + $0x1b4] sm:$0xf] %vm434_vm1, %v15591_v0  ;;  %546 = vst.msk [vmem:[#allocation2 + $0x1b8] sm:$0xf] %vm434_vm1, %v15591_v0 }
  0xb8   : > { %548 = vst.msk [vmem:[#allocation2 + $0x1c0] sm:$0xf] %vm434_vm1, %v15591_v0  ;;  %549 = vst.msk [vmem:[#allocation2 + $0x1c4] sm:$0xf] %vm434_vm1, %v15591_v0 }
  0xb9   : > { %550 = vst.msk [vmem:[#allocation2 + $0x1c8] sm:$0xf] %vm434_vm1, %v15591_v0  ;;  %551 = vst.msk [vmem:[#allocation2 + $0x1cc] sm:$0xf] %vm434_vm1, %v15591_v0 }
  0xba   : > { %552 = vst.msk [vmem:[#allocation2 + $0x1d0] sm:$0xf] %vm434_vm1, %v15591_v0  ;;  %553 = vst.msk [vmem:[#allocation2 + $0x1d4] sm:$0xf] %vm434_vm1, %v15591_v0 }
  0xbb   : > { %555 = vst.msk [vmem:[#allocation2 + $0x1dc] sm:$0xf] %vm434_vm1, %v15591_v0  ;;  %556 = vst.msk [vmem:[#allocation2 + $0x1e0] sm:$0xf] %vm434_vm1, %v15591_v0 }
  0xbc   : > { %557 = vst.msk [vmem:[#allocation2 + $0x1e4] sm:$0xf] %vm434_vm1, %v15591_v0  ;;  %558 = vst.msk [vmem:[#allocation2 + $0x1e8] sm:$0xf] %vm434_vm1, %v15591_v0 }
  0xbd   : > { %559 = vst.msk [vmem:[#allocation2 + $0x1ec] sm:$0xf] %vm434_vm1, %v15591_v0  ;;  %560 = vst.msk [vmem:[#allocation2 + $0x1f0] sm:$0xf] %vm434_vm1, %v15591_v0 }
  0xbe   : > { %562 = vst.msk [vmem:[#allocation2 + $0x1f8] sm:$0xf] %vm434_vm1, %v15591_v0  ;;  %563 = vst.msk [vmem:[#allocation2 + $0x1fc] sm:$0xf] %vm434_vm1, %v15591_v0 }
  0xbf   : > { %564 = vst.msk [vmem:[#allocation2 + $0x200] sm:$0xf] %vm434_vm1, %v15591_v0  ;;  %565 = vst.msk [vmem:[#allocation2 + $0x204] sm:$0xf] %vm434_vm1, %v15591_v0 }
  0xc0   : > { %566 = vst.msk [vmem:[#allocation2 + $0x208] sm:$0xf] %vm434_vm1, %v15591_v0  ;;  %567 = vst.msk [vmem:[#allocation2 + $0x20c] sm:$0xf] %vm434_vm1, %v15591_v0 }
  0xc1   : > { %569 = vst.msk [vmem:[#allocation2 + $0x214] sm:$0xf] %vm434_vm1, %v15591_v0  ;;  %570 = vst.msk [vmem:[#allocation2 + $0x218] sm:$0xf] %vm434_vm1, %v15591_v0 }
  0xc2   : > { %571 = vst.msk [vmem:[#allocation2 + $0x21c] sm:$0xf] %vm434_vm1, %v15591_v0  ;;  %572 = vst.msk [vmem:[#allocation2 + $0x220] sm:$0xf] %vm434_vm1, %v15591_v0 }
  0xc3   : > { %573 = vst.msk [vmem:[#allocation2 + $0x224] sm:$0xf] %vm434_vm1, %v15591_v0  ;;  %574 = vst.msk [vmem:[#allocation2 + $0x228] sm:$0xf] %vm434_vm1, %v15591_v0 }
  0xc4   : > { %576 = vst.msk [vmem:[#allocation2 + $0x230] sm:$0xf] %vm434_vm1, %v15591_v0  ;;  %577 = vst.msk [vmem:[#allocation2 + $0x234] sm:$0xf] %vm434_vm1, %v15591_v0 }
  0xc5   : > { %578 = vst.msk [vmem:[#allocation2 + $0x238] sm:$0xf] %vm434_vm1, %v15591_v0  ;;  %581 = vst.msk [vmem:[#allocation2 + $0x244] sm:$0xf] %vm434_vm1, %v15591_v0 }
  0xc6   : > { %583 = vst.msk [vmem:[#allocation2 + $0x24c] sm:$0xf] %vm434_vm1, %v15591_v0  ;;  %584 = vst.msk [vmem:[#allocation2 + $0x250] sm:$0xf] %vm434_vm1, %v15591_v0 }
  0xc7   : > { %585 = vst.msk [vmem:[#allocation2 + $0x254] sm:$0xf] %vm434_vm1, %v15591_v0  ;;  %586 = vst.msk [vmem:[#allocation2 + $0x258] sm:$0xf] %vm434_vm1, %v15591_v0 }
  0xc8   : > { %587 = vst.msk [vmem:[#allocation2 + $0x25c] sm:$0xf] %vm434_vm1, %v15591_v0  ;;  %588 = vst.msk [vmem:[#allocation2 + $0x260] sm:$0xf] %vm434_vm1, %v15591_v0 }
  0xc9   : > { %590 = vst.msk [vmem:[#allocation2 + $0x268] sm:$0xf] %vm434_vm1, %v15591_v0  ;;  %591 = vst.msk [vmem:[#allocation2 + $0x26c] sm:$0xf] %vm434_vm1, %v15591_v0 }
  0xca   : > { %592 = vst.msk [vmem:[#allocation2 + $0x270] sm:$0xf] %vm434_vm1, %v15591_v0  ;;  %593 = vst.msk [vmem:[#allocation2 + $0x274] sm:$0xf] %vm434_vm1, %v15591_v0 }
  0xcb   : > { %594 = vst.msk [vmem:[#allocation2 + $0x278] sm:$0xf] %vm434_vm1, %v15591_v0  ;;  %595 = vst.msk [vmem:[#allocation2 + $0x27c] sm:$0xf] %vm434_vm1, %v15591_v0 }
  0xcc   : > { %597 = vst.msk [vmem:[#allocation2 + $0x284] sm:$0xf] %vm434_vm1, %v15591_v0  ;;  %598 = vst.msk [vmem:[#allocation2 + $0x288] sm:$0xf] %vm434_vm1, %v15591_v0 }
  0xcd   : > { %599 = vst.msk [vmem:[#allocation2 + $0x28c] sm:$0xf] %vm434_vm1, %v15591_v0  ;;  %600 = vst.msk [vmem:[#allocation2 + $0x290] sm:$0xf] %vm434_vm1, %v15591_v0 }
  0xce   : > { %601 = vst.msk [vmem:[#allocation2 + $0x294] sm:$0xf] %vm434_vm1, %v15591_v0  ;;  %602 = vst.msk [vmem:[#allocation2 + $0x298] sm:$0xf] %vm434_vm1, %v15591_v0 }
  0xcf   : > { %604 = vst.msk [vmem:[#allocation2 + $0x2a0] sm:$0xf] %vm434_vm1, %v15591_v0  ;;  %605 = vst.msk [vmem:[#allocation2 + $0x2a4] sm:$0xf] %vm434_vm1, %v15591_v0 }
  0xd0   : > { %606 = vst.msk [vmem:[#allocation2 + $0x2a8] sm:$0xf] %vm434_vm1, %v15591_v0  ;;  %607 = vst.msk [vmem:[#allocation2 + $0x2ac] sm:$0xf] %vm434_vm1, %v15591_v0 }
  0xd1   : > { %608 = vst.msk [vmem:[#allocation2 + $0x2b0] sm:$0xf] %vm434_vm1, %v15591_v0  ;;  %609 = vst.msk [vmem:[#allocation2 + $0x2b4] sm:$0xf] %vm434_vm1, %v15591_v0 }
  0xd2   : > { %611 = vst.msk [vmem:[#allocation2 + $0x2bc] sm:$0xf] %vm434_vm1, %v15591_v0  ;;  %612 = vst.msk [vmem:[#allocation2 + $0x2c0] sm:$0xf] %vm434_vm1, %v15591_v0 }
  0xd3   : > { %613 = vst.msk [vmem:[#allocation2 + $0x2c4] sm:$0xf] %vm434_vm1, %v15591_v0  ;;  %614 = vst.msk [vmem:[#allocation2 + $0x2c8] sm:$0xf] %vm434_vm1, %v15591_v0 }
  0xd4   : > { %615 = vst.msk [vmem:[#allocation2 + $0x2cc] sm:$0xf] %vm434_vm1, %v15591_v0  ;;  %616 = vst.msk [vmem:[#allocation2 + $0x2d0] sm:$0xf] %vm434_vm1, %v15591_v0 }
  0xd5   : > { %618 = vst.msk [vmem:[#allocation2 + $0x2d8] sm:$0xf] %vm434_vm1, %v15591_v0  ;;  %619 = vst.msk [vmem:[#allocation2 + $0x2dc] sm:$0xf] %vm434_vm1, %v15591_v0 }
  0xd6   : > { %620 = vst.msk [vmem:[#allocation2 + $0x2e0] sm:$0xf] %vm434_vm1, %v15591_v0  ;;  %621 = vst.msk [vmem:[#allocation2 + $0x2e4] sm:$0xf] %vm434_vm1, %v15591_v0 }
  0xd7   : > { %622 = vst.msk [vmem:[#allocation2 + $0x2e8] sm:$0xf] %vm434_vm1, %v15591_v0  ;;  %623 = vst.msk [vmem:[#allocation2 + $0x2ec] sm:$0xf] %vm434_vm1, %v15591_v0 }
  0xd8   : > { %625 = vst.msk [vmem:[#allocation2 + $0x2f4] sm:$0xf] %vm434_vm1, %v15591_v0  ;;  %626 = vst.msk [vmem:[#allocation2 + $0x2f8] sm:$0xf] %vm434_vm1, %v15591_v0 }
  0xd9   : > { %627 = vst.msk [vmem:[#allocation2 + $0x2fc] sm:$0xf] %vm434_vm1, %v15591_v0  ;;  %628 = vst.msk [vmem:[#allocation2 + $0x300] sm:$0xf] %vm434_vm1, %v15591_v0 }
  0xda   : > { %629 = vst.msk [vmem:[#allocation2 + $0x304] sm:$0xf] %vm434_vm1, %v15591_v0  ;;  %630 = vst.msk [vmem:[#allocation2 + $0x308] sm:$0xf] %vm434_vm1, %v15591_v0 }
  0xdb   : > { %632 = vst.msk [vmem:[#allocation2 + $0x310] sm:$0xf] %vm434_vm1, %v15591_v0  ;;  %633 = vst.msk [vmem:[#allocation2 + $0x314] sm:$0xf] %vm434_vm1, %v15591_v0 }
  0xdc   : > { %634 = vst.msk [vmem:[#allocation2 + $0x318] sm:$0xf] %vm434_vm1, %v15591_v0  ;;  %635 = vst.msk [vmem:[#allocation2 + $0x31c] sm:$0xf] %vm434_vm1, %v15591_v0 }
  0xdd   : > { %636 = vst.msk [vmem:[#allocation2 + $0x320] sm:$0xf] %vm434_vm1, %v15591_v0  ;;  %637 = vst.msk [vmem:[#allocation2 + $0x324] sm:$0xf] %vm434_vm1, %v15591_v0 }
  0xde   : > { %639 = vst.msk [vmem:[#allocation2 + $0x32c] sm:$0xf] %vm434_vm1, %v15591_v0  ;;  %640 = vst.msk [vmem:[#allocation2 + $0x330] sm:$0xf] %vm434_vm1, %v15591_v0 }
  0xdf   : > { %641 = vst.msk [vmem:[#allocation2 + $0x334] sm:$0xf] %vm434_vm1, %v15591_v0  ;;  %642 = vst.msk [vmem:[#allocation2 + $0x338] sm:$0xf] %vm434_vm1, %v15591_v0 }
  0xe0   : > { %643 = vst.msk [vmem:[#allocation2 + $0x33c] sm:$0xf] %vm434_vm1, %v15591_v0  ;;  %644 = vst.msk [vmem:[#allocation2 + $0x340] sm:$0xf] %vm434_vm1, %v15591_v0 }
  0xe1   : > { %646 = vst.msk [vmem:[#allocation2 + $0x348] sm:$0xf] %vm434_vm1, %v15591_v0  ;;  %647 = vst.msk [vmem:[#allocation2 + $0x34c] sm:$0xf] %vm434_vm1, %v15591_v0 }
  0xe2   : > { %648 = vst.msk [vmem:[#allocation2 + $0x350] sm:$0xf] %vm434_vm1, %v15591_v0  ;;  %649 = vst.msk [vmem:[#allocation2 + $0x354] sm:$0xf] %vm434_vm1, %v15591_v0 }
  0xe3   : > { %650 = vst.msk [vmem:[#allocation2 + $0x358] sm:$0xf] %vm434_vm1, %v15591_v0  ;;  %651 = vst.msk [vmem:[#allocation2 + $0x35c] sm:$0xf] %vm434_vm1, %v15591_v0 }
  0xe4   : > { %653 = vst.msk [vmem:[#allocation2 + $0x364] sm:$0xf] %vm434_vm1, %v15591_v0  ;;  %654 = vst.msk [vmem:[#allocation2 + $0x368] sm:$0xf] %vm434_vm1, %v15591_v0 }
  0xe5   : > { %655 = vst.msk [vmem:[#allocation2 + $0x36c] sm:$0xf] %vm434_vm1, %v15591_v0  ;;  %656 = vst.msk [vmem:[#allocation2 + $0x370] sm:$0xf] %vm434_vm1, %v15591_v0 }
  0xe6   : > { %657 = vst.msk [vmem:[#allocation2 + $0x374] sm:$0xf] %vm434_vm1, %v15591_v0  ;;  %658 = vst.msk [vmem:[#allocation2 + $0x378] sm:$0xf] %vm434_vm1, %v15591_v0 }
  0xe7   : > { %660 = vst.msk [vmem:[#allocation2 + $0x380] sm:$0xf] %vm434_vm1, %v15591_v0  ;;  %661 = vst.msk [vmem:[#allocation2 + $0x384] sm:$0xf] %vm434_vm1, %v15591_v0 }
  0xe8   : > { %662 = vst.msk [vmem:[#allocation2 + $0x388] sm:$0xf] %vm434_vm1, %v15591_v0  ;;  %663 = vst.msk [vmem:[#allocation2 + $0x38c] sm:$0xf] %vm434_vm1, %v15591_v0 }
  0xe9   : > { %664 = vst.msk [vmem:[#allocation2 + $0x390] sm:$0xf] %vm434_vm1, %v15591_v0  ;;  %665 = vst.msk [vmem:[#allocation2 + $0x394] sm:$0xf] %vm434_vm1, %v15591_v0 }
  0xea   : > { %667 = vst.msk [vmem:[#allocation2 + $0x39c] sm:$0xf] %vm434_vm1, %v15591_v0  ;;  %668 = vst.msk [vmem:[#allocation2 + $0x3a0] sm:$0xf] %vm434_vm1, %v15591_v0 }
  0xeb   : > { %669 = vst.msk [vmem:[#allocation2 + $0x3a4] sm:$0xf] %vm434_vm1, %v15591_v0  ;;  %670 = vst.msk [vmem:[#allocation2 + $0x3a8] sm:$0xf] %vm434_vm1, %v15591_v0 }
  0xec   : > { %671 = vst.msk [vmem:[#allocation2 + $0x3ac] sm:$0xf] %vm434_vm1, %v15591_v0  ;;  %672 = vst.msk [vmem:[#allocation2 + $0x3b0] sm:$0xf] %vm434_vm1, %v15591_v0 }
  0xed   : > { %674 = vst.msk [vmem:[#allocation2 + $0x3b8] sm:$0xf] %vm434_vm1, %v15591_v0  ;;  %675 = vst.msk [vmem:[#allocation2 + $0x3bc] sm:$0xf] %vm434_vm1, %v15591_v0 }
  0xee   : > { %676 = vst.msk [vmem:[#allocation2 + $0x3c0] sm:$0xf] %vm434_vm1, %v15591_v0  ;;  %677 = vst.msk [vmem:[#allocation2 + $0x3c4] sm:$0xf] %vm434_vm1, %v15591_v0 }
  0xef   : > { %678 = vst.msk [vmem:[#allocation2 + $0x3c8] sm:$0xf] %vm434_vm1, %v15591_v0  ;;  %679 = vst.msk [vmem:[#allocation2 + $0x3cc] sm:$0xf] %vm434_vm1, %v15591_v0 }
  0xf0   : > { %681 = vst.msk [vmem:[#allocation2 + $0x3d4] sm:$0xf] %vm434_vm1, %v15591_v0  ;;  %682 = vst.msk [vmem:[#allocation2 + $0x3d8] sm:$0xf] %vm434_vm1, %v15591_v0 }
  0xf1   : > { %683 = vst.msk [vmem:[#allocation2 + $0x3dc] sm:$0xf] %vm434_vm1, %v15591_v0  ;;  %684 = vst.msk [vmem:[#allocation2 + $0x3e0] sm:$0xf] %vm434_vm1, %v15591_v0 }
  0xf2   : > { %685 = vst.msk [vmem:[#allocation2 + $0x3e4] sm:$0xf] %vm434_vm1, %v15591_v0  ;;  %686 = vst.msk [vmem:[#allocation2 + $0x3e8] sm:$0xf] %vm434_vm1, %v15591_v0 }
  0xf3   : > { %688 = vst.msk [vmem:[#allocation2 + $0x3f0] sm:$0xf] %vm434_vm1, %v15591_v0  ;;  %689 = vst.msk [vmem:[#allocation2 + $0x3f4] sm:$0xf] %vm434_vm1, %v15591_v0 }
  0xf4   : > { %690 = vst.msk [vmem:[#allocation2 + $0x3f8] sm:$0xf] %vm434_vm1, %v15591_v0  ;;  %691 = vst.msk [vmem:[#allocation2 + $0x3fc] sm:$0xf] %vm434_vm1, %v15591_v0 }
  0xf5   : > { %692 = vst.msk [vmem:[#allocation2 + $0x400] sm:$0xf] %vm434_vm1, %v15591_v0  ;;  %693 = vst.msk [vmem:[#allocation2 + $0x404] sm:$0xf] %vm434_vm1, %v15591_v0 }
  0xf6   : > { %695 = vst.msk [vmem:[#allocation2 + $0x40c] sm:$0xf] %vm434_vm1, %v15591_v0  ;;  %696 = vst.msk [vmem:[#allocation2 + $0x410] sm:$0xf] %vm434_vm1, %v15591_v0 }
  0xf7   : > { %697 = vst.msk [vmem:[#allocation2 + $0x414] sm:$0xf] %vm434_vm1, %v15591_v0  ;;  %698 = vst.msk [vmem:[#allocation2 + $0x418] sm:$0xf] %vm434_vm1, %v15591_v0 }
  0xf8   : > { %699 = vst.msk [vmem:[#allocation2 + $0x41c] sm:$0xf] %vm434_vm1, %v15591_v0  ;;  %700 = vst.msk [vmem:[#allocation2 + $0x420] sm:$0xf] %vm434_vm1, %v15591_v0 }
  0xf9   : > { %702 = vst.msk [vmem:[#allocation2 + $0x428] sm:$0xf] %vm434_vm1, %v15591_v0  ;;  %703 = vst.msk [vmem:[#allocation2 + $0x42c] sm:$0xf] %vm434_vm1, %v15591_v0 }
  0xfa   : > { %704 = vst.msk [vmem:[#allocation2 + $0x430] sm:$0xf] %vm434_vm1, %v15591_v0  ;;  %705 = vst.msk [vmem:[#allocation2 + $0x434] sm:$0xf] %vm434_vm1, %v15591_v0 }
  0xfb   : > { %706 = vst.msk [vmem:[#allocation2 + $0x438] sm:$0xf] %vm434_vm1, %v15591_v0  ;;  %707 = vst.msk [vmem:[#allocation2 + $0x43c] sm:$0xf] %vm434_vm1, %v15591_v0 }
  0xfc   : > { %709 = vst.msk [vmem:[#allocation2 + $0x444] sm:$0xf] %vm434_vm1, %v15591_v0  ;;  %710 = vst.msk [vmem:[#allocation2 + $0x448] sm:$0xf] %vm434_vm1, %v15591_v0 }
  0xfd   : > { %711 = vst.msk [vmem:[#allocation2 + $0x44c] sm:$0xf] %vm434_vm1, %v15591_v0  ;;  %712 = vst.msk [vmem:[#allocation2 + $0x450] sm:$0xf] %vm434_vm1, %v15591_v0 }
  0xfe   : > { %713 = vst.msk [vmem:[#allocation2 + $0x454] sm:$0xf] %vm434_vm1, %v15591_v0  ;;  %714 = vst.msk [vmem:[#allocation2 + $0x458] sm:$0xf] %vm434_vm1, %v15591_v0 }
  0xff   : > { %716 = vst.msk [vmem:[#allocation2 + $0x460] sm:$0xf] %vm434_vm1, %v15591_v0  ;;  %717 = vst.msk [vmem:[#allocation2 + $0x464] sm:$0xf] %vm434_vm1, %v15591_v0 }
 0x100   : > { %718 = vst.msk [vmem:[#allocation2 + $0x468] sm:$0xf] %vm434_vm1, %v15591_v0  ;;  %719 = vst.msk [vmem:[#allocation2 + $0x46c] sm:$0xf] %vm434_vm1, %v15591_v0 }
 0x101   : > { %720 = vst.msk [vmem:[#allocation2 + $0x470] sm:$0xf] %vm434_vm1, %v15591_v0  ;;  %721 = vst.msk [vmem:[#allocation2 + $0x474] sm:$0xf] %vm434_vm1, %v15591_v0 }
 0x102   : > { %723 = vst.msk [vmem:[#allocation2 + $0x47c] sm:$0xf] %vm434_vm1, %v15591_v0  ;;  %724 = vst.msk [vmem:[#allocation2 + $0x480] sm:$0xf] %vm434_vm1, %v15591_v0 }
 0x103   : > { %725 = vst.msk [vmem:[#allocation2 + $0x484] sm:$0xf] %vm434_vm1, %v15591_v0  ;;  %726 = vst.msk [vmem:[#allocation2 + $0x488] sm:$0xf] %vm434_vm1, %v15591_v0 }
 0x104   : > { %727 = vst.msk [vmem:[#allocation2 + $0x48c] sm:$0xf] %vm434_vm1, %v15591_v0  ;;  %728 = vst.msk [vmem:[#allocation2 + $0x490] sm:$0xf] %vm434_vm1, %v15591_v0 }
 0x105   : > { %730 = vst.msk [vmem:[#allocation2 + $0x498] sm:$0xf] %vm434_vm1, %v15591_v0  ;;  %731 = vst.msk [vmem:[#allocation2 + $0x49c] sm:$0xf] %vm434_vm1, %v15591_v0 }
 0x106   : > { %732 = vst.msk [vmem:[#allocation2 + $0x4a0] sm:$0xf] %vm434_vm1, %v15591_v0  ;;  %733 = vst.msk [vmem:[#allocation2 + $0x4a4] sm:$0xf] %vm434_vm1, %v15591_v0 }
 0x107   : > { %734 = vst.msk [vmem:[#allocation2 + $0x4a8] sm:$0xf] %vm434_vm1, %v15591_v0  ;;  %735 = vst.msk [vmem:[#allocation2 + $0x4ac] sm:$0xf] %vm434_vm1, %v15591_v0 }
 0x108   : > { %737 = vst.msk [vmem:[#allocation2 + $0x4b4] sm:$0xf] %vm434_vm1, %v15591_v0  ;;  %738 = vst.msk [vmem:[#allocation2 + $0x4b8] sm:$0xf] %vm434_vm1, %v15591_v0 }
 0x109   : > { %739 = vst.msk [vmem:[#allocation2 + $0x4bc] sm:$0xf] %vm434_vm1, %v15591_v0  ;;  %740 = vst.msk [vmem:[#allocation2 + $0x4c0] sm:$0xf] %vm434_vm1, %v15591_v0 }
 0x10a   : > { %741 = vst.msk [vmem:[#allocation2 + $0x4c4] sm:$0xf] %vm434_vm1, %v15591_v0  ;;  %742 = vst.msk [vmem:[#allocation2 + $0x4c8] sm:$0xf] %vm434_vm1, %v15591_v0 }
 0x10b   : > { %744 = vst.msk [vmem:[#allocation2 + $0x4d0] sm:$0xf] %vm434_vm1, %v15591_v0  ;;  %745 = vst.msk [vmem:[#allocation2 + $0x4d4] sm:$0xf] %vm434_vm1, %v15591_v0 }
 0x10c   : > { %746 = vst.msk [vmem:[#allocation2 + $0x4d8] sm:$0xf] %vm434_vm1, %v15591_v0  ;;  %747 = vst.msk [vmem:[#allocation2 + $0x4dc] sm:$0xf] %vm434_vm1, %v15591_v0 }
 0x10d   : > { %748 = vst.msk [vmem:[#allocation2 + $0x4e0] sm:$0xf] %vm434_vm1, %v15591_v0  ;;  %749 = vst.msk [vmem:[#allocation2 + $0x4e4] sm:$0xf] %vm434_vm1, %v15591_v0 }
 0x10e   : > { %751 = vst.msk [vmem:[#allocation2 + $0x4ec] sm:$0xf] %vm434_vm1, %v15591_v0  ;;  %752 = vst.msk [vmem:[#allocation2 + $0x4f0] sm:$0xf] %vm434_vm1, %v15591_v0 }
 0x10f   : > { %753 = vst.msk [vmem:[#allocation2 + $0x4f4] sm:$0xf] %vm434_vm1, %v15591_v0  ;;  %754 = vst.msk [vmem:[#allocation2 + $0x4f8] sm:$0xf] %vm434_vm1, %v15591_v0 }
 0x110   : > { %755 = vst.msk [vmem:[#allocation2 + $0x4fc] sm:$0xf] %vm434_vm1, %v15591_v0  ;;  %756 = vst.msk [vmem:[#allocation2 + $0x500] sm:$0xf] %vm434_vm1, %v15591_v0 }
 0x111   : > { %758 = vst.msk [vmem:[#allocation2 + $0x508] sm:$0xf] %vm434_vm1, %v15591_v0  ;;  %759 = vst.msk [vmem:[#allocation2 + $0x50c] sm:$0xf] %vm434_vm1, %v15591_v0 }
 0x112   : > { %760 = vst.msk [vmem:[#allocation2 + $0x510] sm:$0xf] %vm434_vm1, %v15591_v0  ;;  %761 = vst.msk [vmem:[#allocation2 + $0x514] sm:$0xf] %vm434_vm1, %v15591_v0 }
 0x113   : > { %762 = vst.msk [vmem:[#allocation2 + $0x518] sm:$0xf] %vm434_vm1, %v15591_v0  ;;  %763 = vst.msk [vmem:[#allocation2 + $0x51c] sm:$0xf] %vm434_vm1, %v15591_v0 }
 0x114   : > { %765 = vst.msk [vmem:[#allocation2 + $0x524] sm:$0xf] %vm434_vm1, %v15591_v0  ;;  %766 = vst.msk [vmem:[#allocation2 + $0x528] sm:$0xf] %vm434_vm1, %v15591_v0 }
 0x115   : > { %767 = vst.msk [vmem:[#allocation2 + $0x52c] sm:$0xf] %vm434_vm1, %v15591_v0  ;;  %768 = vst.msk [vmem:[#allocation2 + $0x530] sm:$0xf] %vm434_vm1, %v15591_v0 }
 0x116   : > { %769 = vst.msk [vmem:[#allocation2 + $0x534] sm:$0xf] %vm434_vm1, %v15591_v0  ;;  %770 = vst.msk [vmem:[#allocation2 + $0x538] sm:$0xf] %vm434_vm1, %v15591_v0 }
 0x117   : > { %772 = vst.msk [vmem:[#allocation2 + $0x540] sm:$0xf] %vm434_vm1, %v15591_v0  ;;  %773 = vst.msk [vmem:[#allocation2 + $0x544] sm:$0xf] %vm434_vm1, %v15591_v0 }
 0x118   : > { %774 = vst.msk [vmem:[#allocation2 + $0x548] sm:$0xf] %vm434_vm1, %v15591_v0  ;;  %775 = vst.msk [vmem:[#allocation2 + $0x54c] sm:$0xf] %vm434_vm1, %v15591_v0 }
 0x119   : > { %776 = vst.msk [vmem:[#allocation2 + $0x550] sm:$0xf] %vm434_vm1, %v15591_v0  ;;  %777 = vst.msk [vmem:[#allocation2 + $0x554] sm:$0xf] %vm434_vm1, %v15591_v0 }
 0x11a   : > { %779 = vst.msk [vmem:[#allocation2 + $0x55c] sm:$0xf] %vm434_vm1, %v15591_v0  ;;  %780 = vst.msk [vmem:[#allocation2 + $0x560] sm:$0xf] %vm434_vm1, %v15591_v0 }
 0x11b   : > { %781 = vst.msk [vmem:[#allocation2 + $0x564] sm:$0xf] %vm434_vm1, %v15591_v0  ;;  %782 = vst.msk [vmem:[#allocation2 + $0x568] sm:$0xf] %vm434_vm1, %v15591_v0 }
 0x11c   : > { %783 = vst.msk [vmem:[#allocation2 + $0x56c] sm:$0xf] %vm434_vm1, %v15591_v0  ;;  %784 = vst.msk [vmem:[#allocation2 + $0x570] sm:$0xf] %vm434_vm1, %v15591_v0 }
 0x11d   : > { %786 = vst.msk [vmem:[#allocation2 + $0x578] sm:$0xf] %vm434_vm1, %v15591_v0  ;;  %787 = vst.msk [vmem:[#allocation2 + $0x57c] sm:$0xf] %vm434_vm1, %v15591_v0 }
 0x11e   : > { %788 = vst.msk [vmem:[#allocation2 + $0x580] sm:$0xf] %vm434_vm1, %v15591_v0  ;;  %789 = vst.msk [vmem:[#allocation2 + $0x584] sm:$0xf] %vm434_vm1, %v15591_v0 }
 0x11f   : > { %790 = vst.msk [vmem:[#allocation2 + $0x588] sm:$0xf] %vm434_vm1, %v15591_v0  ;;  %791 = vst.msk [vmem:[#allocation2 + $0x58c] sm:$0xf] %vm434_vm1, %v15591_v0 }
 0x120   : > { %793 = vst.msk [vmem:[#allocation2 + $0x594] sm:$0xf] %vm434_vm1, %v15591_v0  ;;  %794 = vst.msk [vmem:[#allocation2 + $0x598] sm:$0xf] %vm434_vm1, %v15591_v0 }
 0x121   : > { %795 = vst.msk [vmem:[#allocation2 + $0x59c] sm:$0xf] %vm434_vm1, %v15591_v0  ;;  %796 = vst.msk [vmem:[#allocation2 + $0x5a0] sm:$0xf] %vm434_vm1, %v15591_v0 }
 0x122   : > { %797 = vst.msk [vmem:[#allocation2 + $0x5a4] sm:$0xf] %vm434_vm1, %v15591_v0  ;;  %798 = vst.msk [vmem:[#allocation2 + $0x5a8] sm:$0xf] %vm434_vm1, %v15591_v0 }
 0x123   : > { %vm16535_vm7 = vmor %vm993_vm2, %vm994_vm3  ;;  %1134 = vst.msk [vmem:[#allocation2 + $0x238] sm:$0xe] %vm1125_vm6, %v1006_v4 }
 0x124   : > { %v21622_v9 = vsel %vm16535_vm7, 4294967295, %v21621_v9  ;;  %1126 = vst.msk [vmem:[#allocation2 + $0x200] sm:$0xe] %vm1125_vm6, %v996_v10  ;;  %v1009_v25 = vsel %vm16535_vm7, %v1007_v16, %v1008_v5  ;;  %v999_v29 = vsel %vm16535_vm7, %v997_v20, %v998_v11  ;;  %1140 = vst.msk [vmem:[#allocation2 + $0x270] sm:$0xe] %vm1125_vm6, %v1016_v27  ;;  %v1019_v44 = vsel %vm16535_vm7, %v1017_v34, %v1018_v28 }
 0x125   : > { %21623 = vst [vmem:[#allocation23_spill] sm:$0xff] %v21622_v9  ;;  %1136 = vst.msk [vmem:[#allocation2 + $0x240] sm:$0x1] %vm1129_vm4, %v1010_v17  ;;  %v1004_v49 = vsel %vm16535_vm7, %v1002_v41, %v1003_v36  ;;  %v1029_v4 = vsel %vm16535_vm7, %v1027_v53, %v1028_v52  ;;  %v16615_v5 = vsel %vm1257_vm5, %v1547_v54, 0.0  ;;  %v1575_v11 = vadd.f32 %v16546_v18, %v1573_v58  ;;  %v16676_v53 = vld [vmem:[%s16521_s26 + $0x3c] sm:$0xf] }
 0x126   : > { %1135 = vst.msk [vmem:[#allocation2 + $0x23c] sm:$0xf] %vm434_vm1, %v1009_v25  ;;  %1128 = vst.msk [vmem:[#allocation2 + $0x204] sm:$0xf] %vm434_vm1, %v999_v29  ;;  %v16631_v17 = vsel %vm1257_vm5, %v1548_v55, 0.0  ;;  %v1578_v20 = vsel %vm1257_vm5, %v1541_v61, 0.0  ;;  %v1014_v24 = vsel %vm16535_vm7, %v1012_v12, %v1013_v60 }
 0x127   : > { %1130 = vst.msk [vmem:[#allocation2 + $0x208] sm:$0x1] %vm1129_vm4, %v1000_v21  ;;  %1142 = vst.msk [vmem:[#allocation2 + $0x278] sm:$0x1] %vm1129_vm4, %v1020_v35  ;;  %v1577_v23 = vadd.f32 %v16558_v26, %v1575_v11  ;;  %v1580_v28 = vsel %vm1257_vm5, %v1542_v6, 0.0  ;;  %v1021_v29 = vrot.slane %v16605_v62, 7  ;;  %v1545_v26 = vunpack.c.l.bf16 %v16605_v62 }
 0x128   : > { %1131 = vst.msk [vmem:[#allocation2 + $0x21c] sm:$0xe] %vm1125_vm6, %v1001_v32  ;;  %1146 = vst.msk [vmem:[#allocation2 + $0x2a8] sm:$0xe] %vm1125_vm6, %v1026_v47  ;;  %v1031_v12 = vrot.slane %v16658_v39, 7 }
 0x129   : > { %1141 = vst.msk [vmem:[#allocation2 + $0x274] sm:$0xf] %vm434_vm1, %v1019_v44  ;;  %1132 = vst.msk [vmem:[#allocation2 + $0x220] sm:$0xf] %vm434_vm1, %v1004_v49  ;;  %v1579_v36 = vadd.f32 %v1578_v20, %v1577_v23  ;;  %v1022_v44 = vrot.slane %v1021_v29, 4  ;;  %v1586_v51 = vsel %vm1257_vm5, %v1545_v26, 0.0 }
 0x12a   : > { %1133 = vst.msk [vmem:[#allocation2 + $0x224] sm:$0x1] %vm1129_vm4, %v1005_v45  ;;  %1148 = vst.msk [vmem:[#allocation2 + $0x2b0] sm:$0x1] %vm1129_vm4, %v1030_v59  ;;  %v1025_v45 = vrot.slane %v1023_v30, 4  ;;  %v1549_v59 = vunpack.c.l.bf16 %v16658_v39  ;;  %v1032_v26 = vrot.slane %v1031_v12, 4 }
 0x12b   : > { %1137 = vst.msk [vmem:[#allocation2 + $0x254] sm:$0xe] %vm1125_vm6, %v1011_v56  ;;  %v2675_v25 = vld [vmem:[#allocation2 + $0x200] sm:$0xe]  ;;  %1143 = vst.msk [vmem:[#allocation2 + $0x28c] sm:$0xe] %vm1125_vm6, %v1021_v29  ;;  %v1581_v50 = vadd.f32 %v1580_v28, %v1579_v36  ;;  %v1024_v56 = vsel %vm16535_vm7, %v1022_v44, %v1023_v30 }
 0x12c   : > { %v2885_v57 = vld [vmem:[#allocation2 + $0x240] sm:$0xf]  ;;  %1147 = vst.msk [vmem:[#allocation2 + $0x2ac] sm:$0xf] %vm434_vm1, %v1029_v4  ;;  %1138 = vst.msk [vmem:[#allocation2 + $0x258] sm:$0xf] %vm434_vm1, %v1014_v24 }
 0x12d   : > { %v16607_v63 = vld [vmem:[#allocation2 + $0x23c] sm:$0xf]  ;;  %v16621_v10 = vld [vmem:[#allocation2 + $0x204] sm:$0xf]  ;;  %1139 = vst.msk [vmem:[#allocation2 + $0x25c] sm:$0x1] %vm1129_vm4, %v1015_v19  ;;  %vm16671_vm10 = vmor %vm2029_vm8, %vm2030_vm9 }
 0x12e   : > { %v2883_v0 = vld [vmem:[#allocation2 + $0x208] sm:$0xf]  ;;  %v13213_v7 = vcombine.low %v16607_v63, %v2885_v57  ;;  %v2787_v8 = vrot.slane %v16607_v63, 5  ;;  %v2773_v21 = vrot.slane %v16621_v10, 5  ;;  %v2887_v22 = vld [vmem:[#allocation2 + $0x278] sm:$0xf]  ;;  %vm17490_vm13 = vmor %vm1306_vm11, %vm1819_vm12 }
 0x12f   : > { %v13211_v16 = vcombine.low %v16621_v10, %v2883_v0  ;;  %v2677_v46 = vld [vmem:[#allocation2 + $0x208] sm:$0x1]  ;;  %1145 = vst.msk [vmem:[#allocation2 + $0x294] sm:$0x1] %vm1129_vm4, %v1025_v45  ;;  %v1588_v57 = vsel %vm1257_vm5, %v1546_v37, 0.0  ;;  %v13163_v58 = vrot.slane %v2675_v25, 9  ;;  %v1583_v0 = vadd.f32 %v16577_v40, %v1581_v50 }
 0x130   : > { %3095 = vrot.lane.b32.xlu0 %v13213_v7, %s15592_s12  ;;  %v16637_v18 = vrot.slane %v2787_v8, 4  ;;  %v16644_v27 = vld [vmem:[#allocation2 + $0x274] sm:$0xf]  ;;  %v16654_v34 = vld [vmem:[#allocation2 + $0x220] sm:$0xf]  ;;  %v2775_v47 = vrot.slane %v2773_v21, 4 }
 0x131   : > { %3091 = vrot.lane.b32.xlu1 %v13211_v16, %s15592_s12  ;;  %v2801_v31 = vrot.slane %v16644_v27, 5  ;;  %v13215_v32 = vcombine.low %v16644_v27, %v2887_v22  ;;  %v2884_v35 = vld [vmem:[#allocation2 + $0x224] sm:$0xf]  ;;  %v2780_v41 = vrot.slane %v16654_v34, 5  ;;  %v2889_v55 = vld [vmem:[#allocation2 + $0x2b0] sm:$0xf]  ;;  %v2774_v11 = vsel %vm16671_vm10, %v13163_v58, %v2773_v21 }
 0x132   : > { %v13212_v42 = vcombine.low %v16654_v34, %v2884_v35  ;;  %1144 = vst.msk [vmem:[#allocation2 + $0x290] sm:$0xf] %vm434_vm1, %v1024_v56  ;;  %v2776_v4 = vrot.slane %v2677_v46, 5  ;;  %v2678_v6 = vld [vmem:[#allocation2 + $0x21c] sm:$0xe]  ;;  %v1033_v16 = vrot.slane %v16676_v53, 7  ;;  %v1585_v24 = vadd.f32 %v16610_v3, %v1583_v0 }
 0x133   : > { %v16665_v49 = vrot.slane %v2801_v31, 4  ;;  %v16679_v54 = vld [vmem:[#allocation2 + $0x2ac] sm:$0xf]  ;;  %v2680_v7 = vld [vmem:[#allocation2 + $0x224] sm:$0x1]  ;;  %v2782_v10 = vrot.slane %v2780_v41, 4  ;;  %v1550_v21 = vunpack.c.l.bf16 %v16676_v53 }
 0x134   : > { %3099 = vrot.lane.b32.xlu0 %v13215_v32, %s15592_s12  ;;  %v2815_v60 = vrot.slane %v16679_v54, 5  ;;  %v13217_v61 = vcombine.low %v16679_v54, %v2889_v55  ;;  %v2684_v19 = vld [vmem:[#allocation2 + $0x254] sm:$0xe]  ;;  %v2681_v20 = vld [vmem:[#allocation2 + $0x238] sm:$0xe]  ;;  %v2777_v25 = vsel %vm16671_vm10, %v2775_v47, %v2776_v4  ;;  %v1587_v36 = vadd.f32 %v1586_v51, %v1585_v24 }
 0x135   : > { %3093 = vrot.lane.b32.xlu1 %v13212_v42, %s15592_s12  ;;  %v2685_v22 = vld [vmem:[#allocation2 + $0x258] sm:$0xf]  ;;  %v2886_v23 = vld [vmem:[#allocation2 + $0x25c] sm:$0xf]  ;;  %v13195_v30 = vcombine.low %v2774_v11, %v2777_v25  ;;  %1149 = vst.msk [vmem:[#allocation2 + $0x2c4] sm:$0xe] %vm1125_vm6, %v1031_v12  ;;  %v1034_v46 = vsel %vm16535_vm7, %v1032_v26, %v1033_v16 }
 0x136   : > { %v16698_v40 = vrot.slane %v2815_v60, 4  ;;  %v2794_v28 = vrot.slane %v2685_v22, 5  ;;  %v13214_v29 = vcombine.low %v2685_v22, %v2886_v23  ;;  %v2686_v32 = vld [vmem:[#allocation2 + $0x25c] sm:$0x1]  ;;  %v2683_v35 = vld [vmem:[#allocation2 + $0x240] sm:$0x1]  ;;  %v1589_v55 = vadd.f32 %v1588_v57, %v1587_v36 }
 0x137   : > { %v1035_v37 = vrot.slane %v1033_v16, 4  ;;  %v1594_v42 = vsel %vm1257_vm5, %v1549_v59, 0.0  ;;  %v13164_v44 = vrot.slane %v2678_v6, 9  ;;  %v2690_v45 = vld [vmem:[#allocation2 + $0x28c] sm:$0xe]  ;;  %v2783_v47 = vrot.slane %v2680_v7, 5 }
 0x138   : > { %3103 = vrot.lane.b32.xlu0 %v13217_v61, %s15592_s12  ;;  %v2796_v3 = vrot.slane %v2794_v28, 4  ;;  %v13166_v50 = vrot.slane %v2684_v19, 9  ;;  %v2888_v56 = vld [vmem:[#allocation2 + $0x294] sm:$0xf]  ;;  %1150 = vst.msk [vmem:[#allocation2 + $0x2c8] sm:$0xf] %vm434_vm1, %v1034_v46  ;;  %v1591_v11 = vadd.f32 %v16615_v5, %v1589_v55 }
 0x139   : > { %3097 = vrot.lane.b32.xlu1 %v13214_v29, %s15592_s12  ;;  %1151 = vst.msk [vmem:[#allocation2 + $0x2cc] sm:$0x1] %vm1129_vm4, %v1035_v37  ;;  %v2781_v51 = vsel %vm16671_vm10, %v13164_v44, %v2780_v41  ;;  %v2797_v58 = vrot.slane %v2686_v32, 5  ;;  %v13165_v59 = vrot.slane %v2681_v20, 9  ;;  %v2692_v61 = vld [vmem:[#allocation2 + $0x294] sm:$0x1]  ;;  %v2784_v57 = vsel %vm16671_vm10, %v2782_v10, %v2783_v47 }
 0x13a   : > { %v2691_v0 = vld [vmem:[#allocation2 + $0x290] sm:$0xf]  ;;  %v1596_v4 = vsel %vm1257_vm5, %v1550_v21, 0.0  ;;  %v2790_v6 = vrot.slane %v2683_v35, 5  ;;  %v13168_v7 = vrot.slane %v2690_v45, 9  ;;  %v13196_v19 = vcombine.low %v2781_v51, %v2784_v57 }
 0x13b   : > { %v2808_v12 = vrot.slane %v2691_v0, 5  ;;  %v13216_v16 = vcombine.low %v2691_v0, %v2888_v56  ;;  %v2687_v34 = vld [vmem:[#allocation2 + $0x270] sm:$0xe]  ;;  %v2689_v22 = vld [vmem:[#allocation2 + $0x278] sm:$0x1]  ;;  %v16723_v41 = vsel %vm16671_vm10, %v13166_v50, %v2794_v28  ;;  %v2788_v20 = vsel %vm16671_vm10, %v13165_v59, %v2787_v8 }
 0x13c   : > { %2995 = vrot.lane.b32.xlu0 %v13195_v30, %s15593_s17  ;;  %v2791_v10 = vsel %vm16671_vm10, %v16637_v18, %v2790_v6  ;;  %v2811_v5 = vrot.slane %v2692_v61, 5  ;;  %v2693_v23 = vld [vmem:[#allocation2 + $0x2a8] sm:$0xe]  ;;  %v2695_v24 = vld [vmem:[#allocation2 + $0x2b0] sm:$0x1]  ;;  %v1593_v21 = vadd.f32 %v16631_v17, %v1591_v11  ;;  %v16737_v63 = vsel %vm16671_vm10, %v2796_v3, %v2797_v58 }
 0x13d   : > { %v2810_v25 = vrot.slane %v2808_v12, 4  ;;  %3101 = vrot.lane.b32.xlu1 %v13216_v16, %s15592_s12  ;;  %v13197_v8 = vcombine.low %v2788_v20, %v2791_v10  ;;  %v2696_v18 = vld [vmem:[#allocation2 + $0x2c4] sm:$0xe]  ;;  %v16740_v28 = vld [vmem:[%s16521_s26 + $0x48] sm:$0xf]  ;;  %v16744_v29 = vsel %vm16671_vm10, %v13168_v7, %v2808_v12  ;;  %v13167_v30 = vrot.slane %v2687_v34, 9 }
 0x13e   : > { %v2804_v26 = vrot.slane %v2689_v22, 5  ;;  %v13170_v32 = vrot.slane %v2696_v18, 9  ;;  %v16747_v35 = vld [vmem:[%s16521_s26 + $0x4c] sm:$0xf]  ;;  %v1595_v17 = vadd.f32 %v1594_v42, %v1593_v21  ;;  %v13169_v37 = vrot.slane %v2693_v23, 9 }
 0x13f   : > { %v16751_v36 = vsel %vm16671_vm10, %v2810_v25, %v2811_v5  ;;  %v2818_v44 = vrot.slane %v2695_v24, 5  ;;  %v16754_v45 = vld [vmem:[%s16521_s26 + $0x40] sm:$0xf]  ;;  %v16757_v3 = vld [vmem:[%s16521_s26 + $0x44] sm:$0xf]  ;;  %v13198_v50 = vcombine.low %v16723_v41, %v16737_v63  ;;  %v2802_v55 = vsel %vm16671_vm10, %v13167_v30, %v2801_v31 }
 0x140   : > { %2997 = vrot.lane.b32.xlu0 %v13196_v19, %s15593_s17  ;;  %v2697_v46 = vld [vmem:[#allocation2 + $0x2c8] sm:$0xf]  ;;  %v2890_v47 = vld [vmem:[#allocation2 + $0x2cc] sm:$0xf]  ;;  %v13200_v42 = vcombine.low %v16744_v29, %v16751_v36  ;;  %v2805_v56 = vsel %vm16671_vm10, %v16665_v49, %v2804_v26  ;;  %v16770_v58 = vadd.f32 %v1596_v4, %v1595_v17  ;;  %v16774_v27 = vld [vmem:[%s16521_s26 + $0x58] sm:$0xf]  ;;  %v2816_v49 = vsel %vm16671_vm10, %v13169_v37, %v2815_v60 }
 0x141   : > { %v2698_v51 = vld [vmem:[#allocation2 + $0x2cc] sm:$0x1]  ;;  %v2822_v59 = vrot.slane %v2697_v46, 5  ;;  %v13218_v61 = vcombine.low %v2697_v46, %v2890_v47  ;;  %v13199_v0 = vcombine.low %v2802_v55, %v2805_v56  ;;  %v16777_v57 = vld [vmem:[%s16521_s26 + $0x5c] sm:$0xf]  ;;  %v2819_v4 = vsel %vm16671_vm10, %v16698_v40, %v2818_v44 }
 0x142   : > { %21626 = vst [vmem:[#allocation24_spill] sm:$0xff] %v16770_v58  ;;  %v2825_v31 = vrot.slane %v2698_v51, 5  ;;  %v1041_v6 = vrot.slane %v16740_v28, 7  ;;  %v16788_v7 = vld [vmem:[%s16521_s26 + $0x50] sm:$0xf]  ;;  %v13201_v16 = vcombine.low %v2816_v49, %v2819_v4  ;;  %v1043_v60 = vrot.slane %v16747_v35, 7 }
 0x143   : > { %v16791_v11 = vld [vmem:[%s16521_s26 + $0x54] sm:$0xf]  ;;  %v2824_v12 = vrot.slane %v2822_v59, 4  ;;  %3105 = vrot.lane.b32.xlu1 %v13218_v61, %s15592_s12  ;;  %v16796_v54 = vsel %vm16671_vm10, %v13170_v32, %v2822_v59  ;;  %v16800_v19 = vld [vmem:[%s16521_s26 + $0x68] sm:$0xf]  ;;  %v1036_v41 = vrot.slane %v16754_v45, 7 }
 0x144   : > { %2999 = vrot.lane.b32.xlu0 %v13197_v8, %s15593_s17  ;;  %v16803_v40 = vld [vmem:[%s16521_s26 + $0x6c] sm:$0xf]  ;;  %v16806_v34 = vld [vmem:[%s16521_s26 + $0x60] sm:$0xf]  ;;  %v1042_v22 = vrot.slane %v1041_v6, 4  ;;  %v1038_v20 = vrot.slane %v16757_v3, 7 }
 0x145   : > { %21627 = vst [vmem:[#allocation25_spill] sm:$0xff] %v16806_v34  ;;  %1155 = vst.msk [vmem:[#allocation2 + $0x2fc] sm:$0xe] %vm1125_vm6, %v1041_v6  ;;  %v1051_v10 = vrot.slane %v16774_v27, 7  ;;  %v16813_v5 = vld [vmem:[%s16521_s26 + $0x64] sm:$0xf]  ;;  %v16818_v23 = vsel %vm16671_vm10, %v2824_v12, %v2825_v31 }
 0x146   : > { %v1045_v24 = vrot.slane %v1043_v60, 4  ;;  %v1053_v25 = vrot.slane %v16777_v57, 7  ;;  %v1046_v21 = vrot.slane %v16788_v7, 7  ;;  %v16823_v63 = vld [vmem:[%s16521_s26 + $0x78] sm:$0xf]  ;;  %v13202_v8 = vcombine.low %v16796_v54, %v16818_v23 }
 0x147   : > { %21628 = vst [vmem:[#allocation26_spill] sm:$0xff] %v16823_v63  ;;  %v1044_v18 = vsel %vm16535_vm7, %v1042_v22, %v1043_v60  ;;  %v1037_v30 = vrot.slane %v1036_v41, 4  ;;  %v1040_v26 = vrot.slane %v1038_v20, 4  ;;  %1152 = vst.msk [vmem:[#allocation2 + $0x2e0] sm:$0xe] %vm1125_vm6, %v1036_v41  ;;  %3001 = vrot.lane.b32.xlu1 %v13198_v50, %s15593_s17  ;;  %v1052_v37 = vrot.slane %v1051_v10, 4 }
 0x148   : > { %3003 = vrot.lane.b32.xlu0 %v13199_v0, %s15593_s17  ;;  %1161 = vst.msk [vmem:[#allocation2 + $0x334] sm:$0xe] %vm1125_vm6, %v1051_v10  ;;  %v16832_v32 = vld [vmem:[%s16521_s26 + $0x7c] sm:$0xf]  ;;  %v16837_v17 = vld [vmem:[%s21532_s1] sm:$0x3] }
 0x149   : > { %21629 = vst [vmem:[#allocation27_spill] sm:$0xff] %v16832_v32  ;;  %1156 = vst.msk [vmem:[#allocation2 + $0x300] sm:$0xf] %vm434_vm1, %v1044_v18  ;;  %v1055_v44 = vrot.slane %v1053_v25, 4  ;;  %v1047_v46 = vrot.slane %v1046_v21, 4  ;;  %v1048_v47 = vrot.slane %v16791_v11, 7  ;;  %15161 = vmatprep.subr.msk.bf16.mxu1 %vm1306_vm11, %v16837_v17  ;;  %v1039_v56 = vsel %vm16535_vm7, %v1037_v30, %v1038_v20  ;;  %15160 = vmatprep.subr.msk.bf16.mxu0 %vm1306_vm11, %v16837_v17 }
 0x14a   : > { %1157 = vst.msk [vmem:[#allocation2 + $0x304] sm:$0x1] %vm1129_vm4, %v1045_v24  ;;  %v16845_v55 = vld [vmem:[%s16521_s26 + $0x70] sm:$0xf]  ;;  %1154 = vst.msk [vmem:[#allocation2 + $0x2e8] sm:$0x1] %vm1129_vm4, %v1040_v26  ;;  %v1054_v0 = vsel %vm16535_vm7, %v1052_v37, %v1053_v25 }
 0x14b   : > { %1158 = vst.msk [vmem:[#allocation2 + $0x318] sm:$0xe] %vm1125_vm6, %v1046_v21  ;;  %21630 = vst [vmem:[#allocation28_spill] sm:$0xff] %v16845_v55  ;;  %v1061_v50 = vrot.slane %v16800_v19, 7  ;;  %v1063_v51 = vrot.slane %v16803_v40, 7  ;;  %v1056_v59 = vrot.slane %v16806_v34, 7  ;;  %v1049_v31 = vsel %vm16535_vm7, %v1047_v46, %v1048_v47  ;;  %3005 = vrot.lane.b32.xlu1 %v13200_v42, %s15593_s17 }
 0x14c   : > { %v16856_v61 = vld [vmem:[%s16521_s26 + $0x74] sm:$0xf]  ;;  %3007 = vrot.lane.b32.xlu0 %v13201_v16, %s15593_s17  ;;  %1153 = vst.msk [vmem:[#allocation2 + $0x2e4] sm:$0xf] %vm434_vm1, %v1039_v56  ;;  %v1050_v49 = vrot.slane %v1048_v47, 4  ;;  %v1058_v4 = vrot.slane %v16813_v5, 7  ;;  %v13036_v47 = vcombine.low %v16524_v1, %v16527_v2 }
 0x14d   : > { %21631 = vst [vmem:[#allocation29_spill] sm:$0xff] %v16856_v61  ;;  %1163 = vst.msk [vmem:[#allocation2 + $0x33c] sm:$0x1] %vm1129_vm4, %v1055_v44  ;;  %v1062_v6 = vrot.slane %v1061_v50, 4  ;;  %v1065_v12 = vrot.slane %v1063_v51, 4  ;;  %v1057_v16 = vrot.slane %v1056_v59, 4 }
 0x14e   : > { %1162 = vst.msk [vmem:[#allocation2 + $0x338] sm:$0xf] %vm434_vm1, %v1054_v0  ;;  %1159 = vst.msk [vmem:[#allocation2 + $0x31c] sm:$0xf] %vm434_vm1, %v1049_v31  ;;  %v1071_v60 = vrot.slane %v16823_v63, 7  ;;  %v1060_v41 = vrot.slane %v1058_v4, 4  ;;  %14318 = vmatprep.mubr.msk.bf16.mxu1 %vm1257_vm5, %v13036_v47 }
 0x14f   : > { %1167 = vst.msk [vmem:[#allocation2 + $0x36c] sm:$0xe] %vm1125_vm6, %v1061_v50  ;;  %1164 = vst.msk [vmem:[#allocation2 + $0x350] sm:$0xe] %vm1125_vm6, %v1056_v59  ;;  %v2702_v22 = vld [vmem:[#allocation2 + $0x2fc] sm:$0xe]  ;;  %v1064_v21 = vsel %vm16535_vm7, %v1062_v6, %v1063_v51  ;;  %v1059_v29 = vsel %vm16535_vm7, %v1057_v16, %v1058_v4  ;;  %3009 = vrot.lane.b32.xlu1 %v13202_v8, %s15593_s17 }
 0x150   : > { %1160 = vst.msk [vmem:[#allocation2 + $0x320] sm:$0x1] %vm1129_vm4, %v1050_v49  ;;  %v1073_v20 = vrot.slane %v16832_v32, 7  ;;  %v1066_v10 = vrot.slane %v16845_v55, 7  ;;  %v1068_v24 = vrot.slane %v16856_v61, 7  ;;  %v13172_v25 = vrot.slane %v2702_v22, 9 }
 0x151   : > { %1169 = vst.msk [vmem:[#allocation2 + $0x374] sm:$0x1] %vm1129_vm4, %v1065_v12  ;;  %v1072_v36 = vrot.slane %v1071_v60, 4  ;;  %v16887_v42 = vld [vmem:[#allocation2 + $0x17c] sm:$0xf] }
 0x152   : > { %1173 = vst.msk [vmem:[#allocation2 + $0x3a4] sm:$0xe] %vm1125_vm6, %v1071_v60  ;;  %21632 = vst [vmem:[#allocation30_spill] sm:$0xff] %v16887_v42  ;;  %v16889_v18 = vld [vmem:[#allocation2 + $0x160] sm:$0xf]  ;;  %v1075_v37 = vrot.slane %v1073_v20, 4 }
 0x153   : > { %21633 = vst [vmem:[#allocation31_spill] sm:$0xff] %v16889_v18  ;;  %v2699_v30 = vld [vmem:[#allocation2 + $0x2e0] sm:$0xe]  ;;  %v16891_v26 = vld [vmem:[#allocation2 + $0x334] sm:$0xe]  ;;  %v1067_v44 = vrot.slane %v1066_v10, 4  ;;  %v1074_v0 = vsel %vm16535_vm7, %v1072_v36, %v1073_v20 }
 0x154   : > { %1168 = vst.msk [vmem:[#allocation2 + $0x370] sm:$0xf] %vm434_vm1, %v1064_v21  ;;  %1165 = vst.msk [vmem:[#allocation2 + $0x354] sm:$0xf] %vm434_vm1, %v1059_v29  ;;  %v16897_v46 = vld [vmem:[#allocation2 + $0x178] sm:$0xf] }
 0x155   : > { %1166 = vst.msk [vmem:[#allocation2 + $0x358] sm:$0x1] %vm1129_vm4, %v1060_v41  ;;  %21634 = vst [vmem:[#allocation32_spill] sm:$0xff] %v16897_v46  ;;  %v16901_v56 = vld [vmem:[#allocation2 + $0x300] sm:$0xf]  ;;  %v13171_v51 = vrot.slane %v2699_v30, 9  ;;  %v1069_v12 = vsel %vm16535_vm7, %v1067_v44, %v1068_v24 }
 0x156   : > { %1170 = vst.msk [vmem:[#allocation2 + $0x388] sm:$0xe] %vm1125_vm6, %v1066_v10  ;;  %v2704_v50 = vld [vmem:[#allocation2 + $0x304] sm:$0x1]  ;;  %v13174_v59 = vrot.slane %v16891_v26, 9  ;;  %v2836_v49 = vrot.slane %v16901_v56, 5 }
 0x157   : > { %v16906_v31 = vld [vmem:[#allocation2 + $0x15c] sm:$0xf]  ;;  %v2839_v4 = vrot.slane %v2704_v50, 5  ;;  %v2701_v2 = vld [vmem:[#allocation2 + $0x2e8] sm:$0x1]  ;;  %v1070_v8 = vrot.slane %v1068_v24, 4 }
 0x158   : > { %21635 = vst [vmem:[#allocation33_spill] sm:$0xff] %v16906_v31  ;;  %v16914_v6 = vld [vmem:[#allocation2 + $0x304] sm:$0xf]  ;;  %1174 = vst.msk [vmem:[#allocation2 + $0x3a8] sm:$0xf] %vm434_vm1, %v1074_v0  ;;  %v2832_v54 = vrot.slane %v2701_v2, 5  ;;  %v2837_v41 = vsel %vm16671_vm10, %v13172_v25, %v2836_v49 }
 0x159   : > { %1175 = vst.msk [vmem:[#allocation2 + $0x3ac] sm:$0x1] %vm1129_vm4, %v1075_v37  ;;  %v16921_v16 = vld [vmem:[#allocation2 + $0x2e4] sm:$0xf]  ;;  %v16923_v23 = vld [vmem:[#allocation2 + $0x2e8] sm:$0xf] }
 0x15a   : > { %1171 = vst.msk [vmem:[#allocation2 + $0x38c] sm:$0xf] %vm434_vm1, %v1069_v12  ;;  %v2838_v20 = vrot.slane %v2836_v49, 4  ;;  %v2829_v10 = vrot.slane %v16921_v16, 5  ;;  %v16933_v21 = vld [vmem:[#allocation2 + $0x338] sm:$0xf] }
 0x15b   : > { %v2710_v29 = vld [vmem:[#allocation2 + $0x33c] sm:$0x1]  ;;  %v2850_v36 = vrot.slane %v16933_v21, 5  ;;  %v2705_v26 = vld [vmem:[#allocation2 + $0x318] sm:$0xe]  ;;  %vm3211_vm1 = vcmask 97280  }
 0x15c   : > { %v2853_v30 = vrot.slane %v2710_v29, 5  ;;  %v16938_v37 = vld [vmem:[#allocation2 + $0x31c] sm:$0xf]  ;;  %1172 = vst.msk [vmem:[#allocation2 + $0x390] sm:$0x1] %vm1129_vm4, %v1070_v8  ;;  %v2840_v47 = vsel %vm16671_vm10, %v2838_v20, %v2839_v4  ;;  %v2830_v50 = vsel %vm16671_vm10, %v13171_v51, %v2829_v10  ;;  %v2831_v0 = vrot.slane %v2829_v10, 4 }
 0x15d   : > { %v2707_v49 = vld [vmem:[#allocation2 + $0x320] sm:$0x1]  ;;  %v13173_v2 = vrot.slane %v2705_v26, 9  ;;  %v13204_v12 = vcombine.low %v2837_v41, %v2840_v47  ;;  %v13220_v29 = vcombine.low %v16901_v56, %v16914_v6  ;;  %v2852_v8 = vrot.slane %v2850_v36, 4  ;;  %v16952_v24 = vld [vmem:[#allocation2 + $0x33c] sm:$0xf] }
 0x15e   : > { %v2843_v1 = vrot.slane %v16938_v37, 5  ;;  %v16954_v60 = vld [vmem:[#allocation2 + $0x320] sm:$0xf]  ;;  %v2714_v44 = vld [vmem:[#allocation2 + $0x36c] sm:$0xe]  ;;  %v2833_v4 = vsel %vm16671_vm10, %v2831_v0, %v2832_v54  ;;  %v13219_v51 = vcombine.low %v16921_v16, %v16923_v23  ;;  %v2846_v20 = vrot.slane %v2707_v49, 5 }
 0x15f   : > { %v16960_v10 = vld [vmem:[#allocation2 + $0x370] sm:$0xf]  ;;  %v2716_v41 = vld [vmem:[#allocation2 + $0x374] sm:$0x1]  ;;  %3013 = vrot.lane.b32.xlu1 %v13204_v12, %s15593_s17  ;;  %v13203_v6 = vcombine.low %v2830_v50, %v2833_v4  ;;  %v2851_v26 = vsel %vm16671_vm10, %v13174_v59, %v2850_v36  ;;  %v2854_v47 = vsel %vm16671_vm10, %v2852_v8, %v2853_v30  ;;  %v13176_v23 = vrot.slane %v2714_v44, 9 }
 0x160   : > { %v2845_v54 = vrot.slane %v2843_v1, 4  ;;  %v2711_v0 = vld [vmem:[#allocation2 + $0x350] sm:$0xe]  ;;  %v16969_v22 = vld [vmem:[#allocation2 + $0x354] sm:$0xf]  ;;  %v2844_v16 = vsel %vm16671_vm10, %v13173_v2, %v2843_v1  ;;  %v2864_v49 = vrot.slane %v16960_v10, 5  ;;  %v13206_v8 = vcombine.low %v2851_v26, %v2854_v47 }
 0x161   : > { %v2867_v56 = vrot.slane %v2716_v41, 5  ;;  %v2713_v25 = vld [vmem:[#allocation2 + $0x358] sm:$0x1]  ;;  %3011 = vrot.lane.b32.xlu0 %v13203_v6, %s15593_s17  ;;  %v13175_v36 = vrot.slane %v2711_v0, 9  ;;  %v2857_v30 = vrot.slane %v16969_v22, 5  ;;  %v13222_v1 = vcombine.low %v16933_v21, %v16952_v24 }
 0x162   : > { %v2847_v59 = vsel %vm16671_vm10, %v2845_v54, %v2846_v20  ;;  %v2860_v50 = vrot.slane %v2713_v25, 5  ;;  %v16978_v12 = vld [vmem:[#allocation2 + $0x374] sm:$0xf]  ;;  %v2866_v2 = vrot.slane %v2864_v49, 4  ;;  %v16984_v4 = vld [vmem:[#allocation2 + $0x358] sm:$0xf]  ;;  %v16989_v6 = vsel %vm16671_vm10, %v13176_v23, %v2864_v49 }
 0x163   : > { %v2720_v41 = vld [vmem:[#allocation2 + $0x3a4] sm:$0xe]  ;;  %3109 = vrot.lane.b32.xlu1 %v13220_v29, %s15592_s12  ;;  %v13205_v20 = vcombine.low %v2844_v16, %v2847_v59  ;;  %v2859_v25 = vrot.slane %v2857_v30, 4  ;;  %v16991_v54 = vld [vmem:[#allocation2 + $0x3a8] sm:$0xf]  ;;  %v16999_v44 = vsel %vm16671_vm10, %v13175_v36, %v2857_v30 }
 0x164   : > { %v2722_v26 = vld [vmem:[#allocation2 + $0x3ac] sm:$0x1]  ;;  %v13178_v47 = vrot.slane %v2720_v41, 9  ;;  %v1936_v21 = vld [vmem:[#allocation2 + $0x174] sm:$0xe]  ;;  %v16995_v0 = vsel %vm16671_vm10, %v2866_v2, %v2867_v56  ;;  %v2878_v16 = vrot.slane %v16991_v54, 5 }
 0x165   : > { %v1938_v24 = vld [vmem:[#allocation2 + $0x17c] sm:$0x1]  ;;  %v2717_v23 = vld [vmem:[#allocation2 + $0x388] sm:$0xe]  ;;  %v17004_v49 = vld [vmem:[#allocation2 + $0x38c] sm:$0xf]  ;;  %3107 = vrot.lane.b32.xlu0 %v13219_v51, %s15592_s12  ;;  %v17009_v41 = vsel %vm16671_vm10, %v2859_v25, %v2860_v50  ;;  %v13208_v50 = vcombine.low %v16989_v6, %v16995_v0 }
 0x166   : > { %v1933_v59 = vld [vmem:[#allocation2 + $0x158] sm:$0xe]  ;;  %v2881_v56 = vrot.slane %v2722_v26, 5  ;;  %v2719_v2 = vld [vmem:[#allocation2 + $0x390] sm:$0x1]  ;;  %v13177_v9 = vrot.slane %v2717_v23, 9  ;;  %v17027_v26 = vsel %vm16671_vm10, %v13178_v47, %v2878_v16 }
 0x167   : > { %v2871_v36 = vrot.slane %v17004_v49, 5  ;;  %v2880_v29 = vrot.slane %v2878_v16, 4  ;;  %v2874_v58 = vrot.slane %v2719_v2, 5  ;;  %v17014_v63 = vld [vmem:[#allocation2 + $0x3ac] sm:$0xf]  ;;  %3017 = vrot.lane.b32.xlu1 %v13206_v8, %s15593_s17  ;;  %v13084_v18 = vrot.slane %v1936_v21, 9 }
 0x168   : > { %v17016_v32 = vld [vmem:[#allocation2 + $0x390] sm:$0xf]  ;;  %v1935_v2 = vld [vmem:[#allocation2 + $0x160] sm:$0x1]  ;;  %v2041_v51 = vrot.slane %v16897_v46, 5  ;;  %v2044_v8 = vrot.slane %v1938_v24, 5 }
 0x169   : > { %v2873_v23 = vrot.slane %v2871_v36, 4  ;;  %v17031_v30 = vsel %vm16671_vm10, %v13177_v9, %v2871_v36  ;;  %v1942_v55 = vld [vmem:[#allocation2 + $0x1ac] sm:$0xe]  ;;  %3015 = vrot.lane.b32.xlu0 %v13205_v20, %s15593_s17  ;;  %v13083_v0 = vrot.slane %v1933_v59, 9  ;;  %v2034_v16 = vrot.slane %v16906_v31, 5 }
 0x16a   : > { %v17040_v25 = vld [vmem:[#allocation2 + $0x1b0] sm:$0xf]  ;;  %v1944_v9 = vld [vmem:[#allocation2 + $0x1b4] sm:$0x1]  ;;  %v17044_v21 = vsel %vm16671_vm10, %v2880_v29, %v2881_v56  ;;  %v2043_v20 = vrot.slane %v2041_v51, 4  ;;  %v2037_v36 = vrot.slane %v1935_v2, 5  ;;  %v17055_v59 = vsel %vm16671_vm10, %v13084_v18, %v2041_v51 }
 0x16b   : > { %v17048_v24 = vsel %vm16671_vm10, %v2873_v23, %v2874_v58  ;;  %v1939_v6 = vld [vmem:[#allocation2 + $0x190] sm:$0xe]  ;;  %v17050_v61 = vld [vmem:[#allocation2 + $0x194] sm:$0xf]  ;;  %3113 = vrot.lane.b32.xlu1 %v13222_v1, %s15592_s12  ;;  %v2036_v47 = vrot.slane %v2034_v16, 4  ;;  %v1308_v29 = vsel %vm1306_vm11, %v16837_v17, 0  ;;  %v17065_v23 = vsel %vm16671_vm10, %v13083_v0, %v2034_v16 }
 0x16c   : > { %21636 = vst [vmem:[#allocation34_spill] sm:$0xff] %v17050_v61  ;;  %v13086_v56 = vrot.slane %v1942_v55, 9  ;;  %v1941_v31 = vld [vmem:[#allocation2 + $0x198] sm:$0x1]  ;;  %v17061_v58 = vsel %vm16671_vm10, %v2043_v20, %v2044_v8  ;;  %14871 = vmatpush3.bf16.msra.mxu1 %v1308_v29  ;;  %v2055_v1 = vrot.slane %v17040_v25, 5  ;;  %v2058_v2 = vrot.slane %v1944_v9, 5  ;;  %14313 = vmatpush3.bf16.msra.mxu0 %v1308_v29 }
 0x16d   : > { %v17068_v18 = vld [vmem:[#allocation2 + $0x1b4] sm:$0xf]  ;;  %v1948_v51 = vld [vmem:[#allocation2 + $0x1e4] sm:$0xe]  ;;  %v17070_v42 = vld [vmem:[#allocation2 + $0x1e8] sm:$0xf]  ;;  %v21637_v17 = vcombine.low %v16938_v37, %v16954_v60  ;;  %v17080_v8 = vsel %vm16671_vm10, %v2036_v47, %v2037_v36  ;;  %v21638_v47 = vcombine.low %v16580_v43, %v16589_v48 }
 0x16e   : > { %v13085_v0 = vrot.slane %v1939_v6, 9  ;;  %v2048_v16 = vrot.slane %v17050_v61, 5  ;;  %v1950_v9 = vld [vmem:[#allocation2 + $0x1ec] sm:$0x1]  ;;  %v1945_v20 = vld [vmem:[#allocation2 + $0x1c8] sm:$0xe]  ;;  %v17098_v36 = vsel %vm16671_vm10, %v13086_v56, %v2055_v1  ;;  %v21640_v6 = vcombine.low %v16540_v14, %v16543_v15 }
 0x16f   : > { %3111 = vrot.lane.b32.xlu0 %v21637_v17, %s15592_s12  ;;  %v2057_v60 = vrot.slane %v2055_v1, 4  ;;  %v2051_v37 = vrot.slane %v1941_v31, 5  ;;  %v17087_v17 = vld [vmem:[#allocation2 + $0x1cc] sm:$0xf]  ;;  %v1947_v55 = vld [vmem:[#allocation2 + $0x1d0] sm:$0x1]  ;;  %3021 = vrot.lane.b32.xlu1 %v13208_v50, %s15593_s17  ;;  %v21641_v1 = vcombine.low %v16999_v44, %v17009_v41 }
 0x170   : > { %14319 = vmatmul.mubr.msk.bf16.vlgmr.msra.gmra.mrb[0].mxu1 %vm1257_vm5, %v21638_v47  ;;  %v2050_v46 = vrot.slane %v2048_v16, 4  ;;  %v17100_v29 = vld [vmem:[#allocation2 + $0x198] sm:$0xf]  ;;  %v13088_v31 = vrot.slane %v1948_v51, 9  ;;  %v1954_v34 = vld [vmem:[#allocation2 + $0x21c] sm:$0xe] }
 0x171   : > { %21639 = vst [vmem:[#allocation35_spill] sm:$0xff] %v17100_v29  ;;  %v17104_v50 = vsel %vm16671_vm10, %v2057_v60, %v2058_v2  ;;  %14322 = vmatprep.mubr.msk.bf16.mxu1 %vm1257_vm5, %v21640_v6  ;;  %v2069_v43 = vrot.slane %v17070_v42, 5  ;;  %v2072_v48 = vrot.slane %v1950_v9, 5  ;;  %v13087_v47 = vrot.slane %v1945_v20, 9  ;;  %v17111_v56 = vld [vmem:[#allocation2 + $0x220] sm:$0xf] }
 0x172   : > { %v17119_v2 = vsel %vm16671_vm10, %v13085_v0, %v2048_v16  ;;  %v2062_v15 = vrot.slane %v17087_v17, 5  ;;  %v2065_v51 = vrot.slane %v1947_v55, 5  ;;  %v1956_v60 = vld [vmem:[#allocation2 + $0x224] sm:$0x1]  ;;  %v1951_v9 = vld [vmem:[#allocation2 + $0x200] sm:$0xe]  ;;  %v17128_v6 = vsel %vm16671_vm10, %v2050_v46, %v2051_v37 }
 0x173   : > { %3019 = vrot.lane.b32.xlu0 %v21641_v1, %s15593_s17  ;;  %v2071_v41 = vrot.slane %v2069_v43, 4  ;;  %v17132_v0 = vld [vmem:[#allocation2 + $0x204] sm:$0xf]  ;;  %v1953_v16 = vld [vmem:[#allocation2 + $0x208] sm:$0x1]  ;;  %v21643_v55 = vcombine.low %v16960_v10, %v16978_v12  ;;  %v17140_v1 = vsel %vm16671_vm10, %v13088_v31, %v2069_v43  ;;  %v13090_v20 = vrot.slane %v1954_v34, 9 }
 0x174   : > { %21642 = vst [vmem:[#allocation36_spill] sm:$0xff] %v17132_v0  ;;  %v17144_v46 = vsel %vm16671_vm10, %v13087_v47, %v2062_v15  ;;  %v2064_v37 = vrot.slane %v2062_v15, 4  ;;  %v17146_v14 = vld [vmem:[#allocation2 + $0x1ec] sm:$0xf]  ;;  %v17148_v44 = vld [vmem:[#allocation2 + $0x1d0] sm:$0xf]  ;;  %v21646_v43 = vcombine.low %v16969_v22, %v16984_v4 }
 0x175   : > { %3117 = vrot.lane.b32.xlu1 %v21643_v55, %s15592_s12  ;;  %21644 = vst [vmem:[#allocation37_spill] sm:$0xff] %v17148_v44  ;;  %v17152_v29 = vsel %vm16671_vm10, %v2071_v41, %v2072_v48  ;;  %v2083_v10 = vrot.slane %v17111_v56, 5  ;;  %v2086_v12 = vrot.slane %v1956_v60, 5  ;;  %v13089_v55 = vrot.slane %v1951_v9, 9  ;;  %v17155_v31 = vld [vmem:[#allocation2 + $0x224] sm:$0xf] }
 0x176   : > { %21645 = vst [vmem:[#allocation38_spill] sm:$0xff] %v17155_v31  ;;  %v17165_v34 = vsel %vm16671_vm10, %v2064_v37, %v2065_v51  ;;  %v2076_v48 = vrot.slane %v17132_v0, 5  ;;  %v2079_v15 = vrot.slane %v1953_v16, 5  ;;  %v1960_v41 = vld [vmem:[#allocation2 + $0x254] sm:$0xe]  ;;  %v21648_v51 = vcombine.low %v17027_v26, %v17044_v21 }
 0x177   : > { %3115 = vrot.lane.b32.xlu0 %v21646_v43, %s15592_s12  ;;  %v17168_v60 = vld [vmem:[#allocation2 + $0x258] sm:$0xf]  ;;  %v2085_v43 = vrot.slane %v2083_v10, 4  ;;  %v1962_v47 = vld [vmem:[#allocation2 + $0x25c] sm:$0x1]  ;;  %v21649_v16 = vcombine.low %v16605_v62, %v16627_v13  ;;  %v17188_v22 = vsel %vm16671_vm10, %v13090_v20, %v2083_v10  ;;  %v13042_v9 = vcombine.low %v16754_v45, %v16757_v3 }
 0x178   : > { %21647 = vst [vmem:[#allocation39_spill] sm:$0xff] %v17168_v60  ;;  %v1957_v61 = vld [vmem:[#allocation2 + $0x238] sm:$0xe]  ;;  %v2078_v4 = vrot.slane %v2076_v48, 4  ;;  %v17192_v44 = vld [vmem:[#allocation2 + $0x208] sm:$0xf]  ;;  %v21652_v62 = vcombine.low %v16568_v33, %v16572_v38  ;;  %v17206_v21 = vsel %vm16671_vm10, %v13089_v55, %v2076_v48  ;;  %v21654_v33 = vcombine.low %v17031_v30, %v17048_v24 }
 0x179   : > { %3025 = vrot.lane.b32.xlu1 %v21648_v51, %s15593_s17  ;;  %14323 = vmatmul.mubr.msk.bf16.gmra.mrb[4].mxu1 %vm1257_vm5, %v21649_v16  ;;  %21650 = vst [vmem:[#allocation40_spill] sm:$0xff] %v17192_v44  ;;  %v17194_v26 = vld [vmem:[#allocation2 + $0x23c] sm:$0xf]  ;;  %v17202_v13 = vsel %vm16671_vm10, %v2085_v43, %v2086_v12  ;;  %v13092_v20 = vrot.slane %v1960_v41, 9  ;;  %v2097_v10 = vrot.slane %v17168_v60, 5  ;;  %v2100_v55 = vrot.slane %v1962_v47, 5 }
 0x17a   : > { %21651 = vst [vmem:[#allocation41_spill] sm:$0xff] %v17194_v26  ;;  %14326 = vmatprep.mubr.msk.bf16.mxu1 %vm1257_vm5, %v21652_v62  ;;  %v1959_v51 = vld [vmem:[#allocation2 + $0x240] sm:$0x1]  ;;  %v17209_v16 = vld [vmem:[#allocation2 + $0x25c] sm:$0xf]  ;;  %v17217_v38 = vsel %vm16671_vm10, %v2078_v4, %v2079_v15  ;;  %v13091_v48 = vrot.slane %v1957_v61, 9  ;;  %v21656_v4 = vcombine.low %v16991_v54, %v17014_v63 }
 0x17b   : > { %21653 = vst [vmem:[#allocation42_spill] sm:$0xff] %v17209_v16  ;;  %3023 = vrot.lane.b32.xlu0 %v21654_v33, %s15593_s17  ;;  %v1966_v41 = vld [vmem:[#allocation2 + $0x28c] sm:$0xe]  ;;  %v17221_v43 = vld [vmem:[#allocation2 + $0x290] sm:$0xf]  ;;  %v2099_v30 = vrot.slane %v2097_v10, 4  ;;  %v17238_v62 = vsel %vm16671_vm10, %v13092_v20, %v2097_v10  ;;  %v21659_v20 = vcombine.low %v17004_v49, %v17016_v32  ;;  %v21662_v49 = vcombine.low %v17055_v59, %v17061_v58 }
 0x17c   : > { %21655 = vst [vmem:[#allocation43_spill] sm:$0xff] %v17221_v43  ;;  %v2090_v24 = vrot.slane %v17194_v26, 5  ;;  %v1968_v33 = vld [vmem:[#allocation2 + $0x294] sm:$0x1]  ;;  %v1963_v15 = vld [vmem:[#allocation2 + $0x270] sm:$0xe] }
 0x17d   : > { %3121 = vrot.lane.b32.xlu1 %v21656_v4, %s15592_s12  ;;  %v2093_v12 = vrot.slane %v1959_v51, 5  ;;  %v17240_v37 = vld [vmem:[#allocation2 + $0x274] sm:$0xf]  ;;  %v1965_v44 = vld [vmem:[#allocation2 + $0x278] sm:$0x1]  ;;  %v17244_v0 = vsel %vm16671_vm10, %v2099_v30, %v2100_v55  ;;  %v13094_v51 = vrot.slane %v1966_v41, 9 }
 0x17e   : > { %21657 = vst [vmem:[#allocation44_spill] sm:$0xff] %v17240_v37  ;;  %v2092_v63 = vrot.slane %v2090_v24, 4  ;;  %v17250_v47 = vld [vmem:[#allocation2 + $0x240] sm:$0xf]  ;;  %v17258_v10 = vsel %vm16671_vm10, %v13091_v48, %v2090_v24  ;;  %v2111_v55 = vrot.slane %v17221_v43, 5  ;;  %v2114_v30 = vrot.slane %v1968_v33, 5 }
 0x17f   : > { %21658 = vst [vmem:[#allocation45_spill] sm:$0xff] %v17250_v47  ;;  %3119 = vrot.lane.b32.xlu0 %v21659_v20, %s15592_s12  ;;  %v1972_v61 = vld [vmem:[#allocation2 + $0x2c4] sm:$0xe]  ;;  %v13093_v4 = vrot.slane %v1963_v15, 9  ;;  %v2104_v16 = vrot.slane %v17240_v37, 5  ;;  %v2107_v60 = vrot.slane %v1965_v44, 5  ;;  %v21663_v48 = vcombine.low %v16658_v39, %v16676_v53 }
 0x180   : > { %v17263_v54 = vsel %vm16671_vm10, %v2092_v63, %v2093_v12  ;;  %v17266_v31 = vld [vmem:[#allocation2 + $0x294] sm:$0xf]  ;;  %v17268_v32 = vld [vmem:[#allocation2 + $0x2c8] sm:$0xf]  ;;  %v2113_v24 = vrot.slane %v2111_v55, 4  ;;  %v17289_v39 = vsel %vm16671_vm10, %v13094_v51, %v2111_v55  ;;  %v13096_v55 = vrot.slane %v1972_v61, 9 }
 0x181   : > { %21660 = vst [vmem:[#allocation46_spill] sm:$0xff] %v17263_v54  ;;  %21661 = vst [vmem:[#allocation47_spill] sm:$0xff] %v17266_v31  ;;  %2258 = vrot.lane.b32.xlu1 %v21662_v49, %s15593_s17  ;;  %14327 = vmatmul.mubr.msk.bf16.gmra.mrb[8].mxu1 %vm1257_vm5, %v21663_v48  ;;  %v1974_v33 = vld [vmem:[#allocation2 + $0x2cc] sm:$0x1]  ;;  %v1969_v15 = vld [vmem:[#allocation2 + $0x2a8] sm:$0xe]  ;;  %v17293_v53 = vsel %vm16671_vm10, %v13093_v4, %v2104_v16 }
 0x182   : > { %14330 = vmatprep.mubr.msk.bf16.mxu1 %vm1257_vm5, %v13042_v9  ;;  %21664 = vst [vmem:[#allocation48_spill] sm:$0xff] %v17293_v53  ;;  %v2106_v58 = vrot.slane %v2104_v16, 4  ;;  %v17295_v63 = vld [vmem:[#allocation2 + $0x278] sm:$0xf]  ;;  %v17297_v20 = vld [vmem:[#allocation2 + $0x2ac] sm:$0xf]  ;;  %v21666_v9 = vcombine.low %v17065_v23, %v17080_v8  ;;  %v17305_v49 = vsel %vm16671_vm10, %v2113_v24, %v2114_v30 }
 0x183   : > { %21665 = vst [vmem:[#allocation49_spill] sm:$0xff] %v17295_v63  ;;  %v2125_v4 = vrot.slane %v17268_v32, 5  ;;  %v1971_v16 = vld [vmem:[#allocation2 + $0x2b0] sm:$0x1]  ;;  %v2128_v23 = vrot.slane %v1974_v33, 5  ;;  %v13095_v8 = vrot.slane %v1969_v15, 9 }
 0x184   : > { %2256 = vrot.lane.b32.xlu0 %v21666_v9, %s15593_s17  ;;  %v17312_v48 = vsel %vm16671_vm10, %v2106_v58, %v2107_v60  ;;  %v21668_v44 = vld [vmem:[#allocation25_spill] sm:$0xff]  ;;  %v1978_v9 = vld [vmem:[#allocation2 + $0x2fc] sm:$0xe]  ;;  %v17316_v12 = vld [vmem:[#allocation2 + $0x300] sm:$0xf]  ;;  %v2118_v41 = vrot.slane %v17297_v20, 5 }
 0x185   : > { %21667 = vst [vmem:[#allocation50_spill] sm:$0xff] %v17312_v48  ;;  %21669 = vst [vmem:[#allocation25_spill] sm:$0xff] %v17316_v12  ;;  %v21670_v30 = vld [vmem:[#allocation32_spill] sm:$0xff]  ;;  %v21671_v24 = vld [vmem:[#allocation30_spill] sm:$0xff]  ;;  %v2127_v58 = vrot.slane %v2125_v4, 4  ;;  %v2121_v26 = vrot.slane %v1971_v16, 5  ;;  %v17341_v31 = vsel %vm16671_vm10, %v13096_v55, %v2125_v4 }
 0x186   : > { %v21672_v51 = vcombine.low %v21670_v30, %v21671_v24  ;;  %v1980_v59 = vld [vmem:[#allocation2 + $0x304] sm:$0x1]  ;;  %v1975_v33 = vld [vmem:[#allocation2 + $0x2e0] sm:$0xe]  ;;  %v21673_v30 = vld [vmem:[#allocation29_spill] sm:$0xff]  ;;  %v2120_v16 = vrot.slane %v2118_v41, 4 }
 0x187   : > { %v17333_v54 = vld [vmem:[#allocation2 + $0x2e4] sm:$0xf]  ;;  %v1977_v61 = vld [vmem:[#allocation2 + $0x2e8] sm:$0x1]  ;;  %v21676_v60 = vld [vmem:[#allocation33_spill] sm:$0xff]  ;;  %v17345_v15 = vsel %vm16671_vm10, %v2127_v58, %v2128_v23  ;;  %v2139_v55 = vrot.slane %v17316_v12, 5  ;;  %v21682_v58 = vcombine.low %v16740_v28, %v16747_v35 }
 0x188   : > { %2354 = vrot.lane.b32.xlu1 %v21672_v51, %s15592_s12  ;;  %v21674_v51 = vld [vmem:[#allocation28_spill] sm:$0xff]  ;;  %21675 = vst [vmem:[#allocation32_spill] sm:$0xff] %v17333_v54  ;;  %v21677_v63 = vld [vmem:[#allocation31_spill] sm:$0xff]  ;;  %v17347_v47 = vld [vmem:[#allocation2 + $0x2cc] sm:$0xf]  ;;  %v2142_v4 = vrot.slane %v1980_v59, 5 }
 0x189   : > { %v21678_v37 = vcombine.low %v21676_v60, %v21677_v63  ;;  %v17349_v24 = vld [vmem:[#allocation2 + $0x2b0] sm:$0xf]  ;;  %v21679_v43 = vld [vmem:[#allocation27_spill] sm:$0xff]  ;;  %v17355_v63 = vsel %vm16671_vm10, %v13095_v8, %v2118_v41  ;;  %v21681_v60 = vcombine.low %v17098_v36, %v17104_v50  ;;  %14331 = vmatmul.mubr.msk.bf16.gmra.mrb[12].mxu1 %vm1257_vm5, %v21682_v58  ;;  %v17371_v41 = vsel %vm16671_vm10, %v2120_v16, %v2121_v26  ;;  %v17374_v53 = vld [vmem:[#allocation2 + $0x304] sm:$0xf] }
 0x18a   : > { %v21680_v48 = vld [vmem:[#allocation26_spill] sm:$0xff]  ;;  %v1640_v23 = vld [vmem:[%s21536_s5] sm:$0x3]  ;;  %v13097_v8 = vrot.slane %v1975_v33, 9  ;;  %v2132_v59 = vrot.slane %v17333_v54, 5  ;;  %21683 = vst [vmem:[#allocation30_spill] sm:$0xff] %v17374_v53  ;;  %v21684_v36 = vcombine.low %v16788_v7, %v16791_v11 }
 0x18b   : > { %2352 = vrot.lane.b32.xlu0 %v21678_v37, %s15592_s12  ;;  %v13098_v37 = vrot.slane %v1978_v9, 9  ;;  %v2135_v9 = vrot.slane %v1977_v61, 5  ;;  %v2141_v26 = vrot.slane %v2139_v55, 4  ;;  %v17386_v33 = vld [vmem:[#allocation2 + $0x2e8] sm:$0xf]  ;;  %v21687_v61 = vcombine.low %v17119_v2, %v17128_v6 }
 0x18c   : > { %2262 = vrot.lane.b32.xlu1 %v21681_v60, %s15593_s17  ;;  %14334 = vmatprep.mubr.msk.bf16.mxu1 %vm1257_vm5, %v21684_v36  ;;  %21686 = vst [vmem:[#allocation28_spill] sm:$0xff] %v17386_v33  ;;  %v17396_v58 = vsel %vm16671_vm10, %v13097_v8, %v2132_v59  ;;  %v2134_v36 = vrot.slane %v2132_v59, 4  ;;  %v21581_v50 = vmov 0.0   ;;  %v21690_v59 = vcombine.low %v17040_v25, %v17068_v18  ;;  %v17441_v2 = vld [vmem:[#allocation2 + $0x204] sm:$0x3] }
 0x18d   : > { %v17384_v60 = vsel %vm16671_vm10, %v13098_v37, %v2139_v55  ;;  %21688 = vst [vmem:[#allocation33_spill] sm:$0xff] %v17396_v58  ;;  %14346 = vmatprep.subr.bf16.mxu1 %v21581_v50  ;;  %928 = vst [vmem:[#allocation7] sm:$0x1] %v21581_v50  ;;  %v1645_v37 = vsel %vm1306_vm11, %v1640_v23, 0  ;;  %v17407_v6 = vsel %vm16671_vm10, %v2141_v26, %v2142_v4  ;;  %v1552_v26 = vunpack.c.l.bf16 %v16757_v3  ;;  %v21693_v23 = vld [vmem:[#allocation35_spill] sm:$0xff] }
 0x18e   : > { %21685 = vst [vmem:[#allocation29_spill] sm:$0xff] %v17384_v60  ;;  %21689 = vst [vmem:[#allocation31_spill] sm:$0xff] %v17407_v6  ;;  %14347 = vmatpush3.bf16.msra.mxu1 %v1645_v37  ;;  %v1553_v8 = vunpack.c.l.bf16 %v16740_v28  ;;  %v1554_v25 = vunpack.c.l.bf16 %v16747_v35  ;;  %v1555_v18 = vunpack.c.l.bf16 %v16788_v7  ;;  %v1558_v3 = vunpack.c.l.bf16 %v16777_v57  ;;  %v2467_v54 = vld [vmem:[#allocation2 + $0x1fc] sm:$0xc]  ;;  %v2468_v53 = vld [vmem:[#allocation2 + $0x200] sm:$0xf] }
 0x18f   : > { %2260 = vrot.lane.b32.xlu0 %v21687_v61, %s15593_s17  ;;  %v17419_v61 = vsel %vm16671_vm10, %v2134_v36, %v2135_v9  ;;  %v1556_v9 = vunpack.c.l.bf16 %v16791_v11  ;;  %v1557_v36 = vunpack.c.l.bf16 %v16774_v27  ;;  %v1559_v4 = vunpack.c.l.bf16 %v21668_v44  ;;  %v5802_v12 = vld [vmem:[#allocation2 + $0x200] sm:$0xe]  ;;  %v15294_v60 = vld [vmem:[#allocation8 + $0x8] sm:$0x3f]  }
 0x190   : > { %2358 = vrot.lane.b32.xlu1 %v21690_v59, %s15592_s12  ;;  %21691 = vst [vmem:[#allocation27_spill] sm:$0xff] %v17419_v61  ;;  %v21692_v59 = vld [vmem:[#allocation34_spill] sm:$0xff]  ;;  %v1560_v37 = vunpack.c.l.bf16 %v16813_v5  ;;  %v1561_v28 = vunpack.c.l.bf16 %v16800_v19  ;;  %v1562_v35 = vunpack.c.l.bf16 %v16803_v40  ;;  %v1563_v7 = vunpack.c.l.bf16 %v21674_v51  ;;  %15162 = vmatprep.subr.msk.bf16.mxu1 %vm3244_vm14, %v15294_v60 }
 0x191   : > { %v21694_v16 = vcombine.low %v21692_v59, %v21693_v23  ;;  %v21695_v11 = vcombine.low %v17140_v1, %v17152_v29  ;;  %v1564_v23 = vunpack.c.l.bf16 %v21673_v30  ;;  %v1565_v59 = vunpack.c.l.bf16 %v21680_v48 }
 0x192   : > { %v21697_v55 = vunpack.c.l.bf16 %v16754_v45  ;;  %v1600_v33 = vsel %vm1257_vm5, %v1552_v26, 0.0  ;;  %v21698_v29 = vcombine.low %v21668_v44, %v16813_v5  ;;  %v1604_v45 = vsel %vm1257_vm5, %v1554_v25, 0.0 }
 0x193   : > { %2356 = vrot.lane.b32.xlu0 %v21694_v16, %s15592_s12  ;;  %v21696_v16 = vcombine.low %v16774_v27, %v16777_v57  ;;  %v1566_v27 = vunpack.c.l.bf16 %v21679_v43  ;;  %v21699_v57 = vld [vmem:[#allocation24_spill] sm:$0xff]  ;;  %v21700_v26 = vcombine.low %v17144_v46, %v17165_v34  ;;  %v1606_v61 = vsel %vm1257_vm5, %v1555_v18, 0.0  ;;  %v17486_v34 = vld [vmem:[#allocation2 + $0x2ac] sm:$0xf]  ;;  %v6948_v18 = vld [vmem:[#allocation2 + $0x498] sm:$0x8] }
 0x194   : > { %2266 = vrot.lane.b32.xlu1 %v21695_v11, %s15593_s17  ;;  %v1598_v50 = vsel %vm1257_vm5, %v21697_v55, 0.0  ;;  %v1602_v11 = vsel %vm1257_vm5, %v1553_v8, 0.0  ;;  %v5804_v55 = vld [vmem:[#allocation2 + $0x208] sm:$0x1]  ;;  %v1608_v5 = vsel %vm1257_vm5, %v1556_v9, 0.0  ;;  %v17472_v44 = vsel %vm1257_vm5, %v1557_v36, 0.0 }
 0x195   : > { %14335 = vmatmul.mubr.msk.bf16.gmra.mrb[16].mxu1 %vm1257_vm5, %v21696_v16  ;;  %v1599_v1 = vadd.f32 %v1598_v50, %v21699_v57  ;;  %v5803_v16 = vld [vmem:[#allocation2 + $0x204] sm:$0xf]  ;;  %v17475_v50 = vsel %vm1257_vm5, %v1558_v3, 0.0  ;;  %v3819_v8 = vld [vmem:[#allocation2 + $0x2a8] sm:$0xe]  ;;  %v17478_v25 = vsel %vm1257_vm5, %v1559_v4, 0.0 }
 0x196   : > { %14338 = vmatprep.mubr.msk.bf16.mxu1 %vm1257_vm5, %v21698_v29  ;;  %v17481_v57 = vsel %vm1257_vm5, %v1560_v37, 0.0  ;;  %v17484_v46 = vsel %vm1257_vm5, %v1561_v28, 0.0  ;;  %v17499_v4 = vsel %vm1257_vm5, %v1562_v35, 0.0  ;;  %v17502_v37 = vsel %vm1257_vm5, %v1563_v7, 0.0  ;;  %v3821_v3 = vld [vmem:[#allocation2 + $0x2b0] sm:$0x1] }
 0x197   : > { %2264 = vrot.lane.b32.xlu0 %v21700_v26, %s15593_s17  ;;  %v1601_v29 = vadd.f32 %v1600_v33, %v1599_v1  ;;  %v21703_v33 = vcombine.low %v17070_v42, %v17146_v14  ;;  %v17505_v9 = vsel %vm1257_vm5, %v1564_v23, 0.0  ;;  %v2568_v36 = vrot.slane %v17441_v2, 6  ;;  %v21704_v42 = vld [vmem:[#allocation37_spill] sm:$0xff] }
 0x198   : > { %v13147_v1 = vrot.slane %v2467_v54, 10  ;;  %v2565_v26 = vrot.slane %v2468_v53, 6  ;;  %v13470_v58 = vrot.slane %v5802_v12, 9  ;;  %v21705_v14 = vcombine.low %v17087_v17, %v21704_v42  ;;  %v2470_v53 = vld [vmem:[#allocation2 + $0x218] sm:$0xc] }
 0x199   : > { %2362 = vrot.lane.b32.xlu1 %v21703_v33, %s15592_s12  ;;  %v1603_v28 = vadd.f32 %v1602_v11, %v1601_v29  ;;  %v5900_v35 = vrot.slane %v5803_v16, 5  ;;  %v5903_v33 = vrot.slane %v5804_v55, 5  ;;  %v13277_v6 = vrot.slane %v3819_v8, 9  ;;  %v2471_v29 = vld [vmem:[#allocation2 + $0x21c] sm:$0xf] }
 0x19a   : > { %v3917_v7 = vrot.slane %v17486_v34, 5  ;;  %v17515_v2 = vsel %vm17490_vm13, %v13147_v1, %v2565_v26  ;;  %v2567_v11 = vrot.slane %v2565_v26, 4  ;;  %v3920_v54 = vrot.slane %v3821_v3, 5  ;;  %v2472_v3 = vld [vmem:[#allocation2 + $0x220] sm:$0x3] }
 0x19b   : > { %2360 = vrot.lane.b32.xlu0 %v21705_v14, %s15592_s12  ;;  %v1605_v23 = vadd.f32 %v1604_v45, %v1603_v28  ;;  %v21706_v12 = vcombine.low %v17188_v22, %v17202_v13  ;;  %v21707_v17 = vcombine.low %v16800_v19, %v16803_v40  ;;  %v17527_v45 = vsel %vm16671_vm10, %v13470_v58, %v5900_v35  ;;  %v17544_v58 = vld [vmem:[#allocation2 + $0x2b0] sm:$0xf]  ;;  %v2477_v14 = vld [vmem:[#allocation2 + $0x254] sm:$0xf] }
 0x19c   : > { %v5902_v16 = vrot.slane %v5900_v35, 4  ;;  %v17531_v55 = vsel %vm16671_vm10, %v13277_v6, %v3917_v7  ;;  %v3919_v8 = vrot.slane %v3917_v7, 4  ;;  %v21708_v22 = vcombine.low %v21674_v51, %v21673_v30  ;;  %v3822_v6 = vld [vmem:[#allocation2 + $0x2c4] sm:$0xe]  ;;  %v2476_v42 = vld [vmem:[#allocation2 + $0x250] sm:$0xc] }
 0x19d   : > { %2270 = vrot.lane.b32.xlu1 %v21706_v12, %s15593_s17  ;;  %14339 = vmatmul.mubr.msk.bf16.gmra.mrb[20].mxu1 %vm1257_vm5, %v21707_v17  ;;  %v1607_v19 = vadd.f32 %v1606_v61, %v1605_v23  ;;  %v17538_v40 = vsel %vm1257_vm5, %v1565_v59, 0.0  ;;  %v17542_v13 = vsel %vm17490_vm13, %v2567_v11, %v2568_v36  ;;  %v21709_v28 = vcombine.low %v17206_v21, %v17217_v38  ;;  %v17564_v36 = vld [vmem:[#allocation2 + $0x2c8] sm:$0xf]  ;;  %v3824_v21 = vld [vmem:[#allocation2 + $0x2cc] sm:$0x1]  ;;  %v21711_v35 = vld [vmem:[#allocation38_spill] sm:$0xff] }
 0x19e   : > { %14342 = vmatprep.mubr.msk.bf16.mxu1 %vm1257_vm5, %v21708_v22  ;;  %v17551_v30 = vsel %vm1257_vm5, %v1566_v27, 0.0  ;;  %v17557_v61 = vsel %vm16671_vm10, %v5902_v16, %v5903_v33  ;;  %v17561_v59 = vsel %vm16671_vm10, %v3919_v8, %v3920_v54  ;;  %21710 = vst [vmem:[#allocation26_spill] sm:$0xff] %v17564_v36  ;;  %v17571_v26 = vsel %vm3244_vm14, %v15294_v60, 0  ;;  %v2478_v54 = vld [vmem:[#allocation2 + $0x258] sm:$0x3]  ;;  %v21713_v22 = vld [vmem:[#allocation36_spill] sm:$0xff] }
 0x19f   : > { %2268 = vrot.lane.b32.xlu0 %v21709_v28, %s15593_s17  ;;  %v1609_v38 = vadd.f32 %v1608_v5, %v1607_v19  ;;  %v21712_v33 = vcombine.low %v17111_v56, %v21711_v35  ;;  %v13148_v7 = vrot.slane %v2470_v53, 10  ;;  %v2572_v23 = vrot.slane %v2471_v29, 6  ;;  %v2473_v8 = vld [vmem:[#allocation2 + $0x234] sm:$0xc]  ;;  %v21714_v19 = vld [vmem:[#allocation40_spill] sm:$0xff]  ;;  %v21725_v51 = vld [vmem:[#allocation45_spill] sm:$0xff] }
 0x1a0   : > { %v2575_v11 = vrot.slane %v2472_v3, 6  ;;  %v13278_v17 = vrot.slane %v3822_v6, 9  ;;  %v3924_v60 = vrot.slane %v17564_v36, 5  ;;  %v3927_v16 = vrot.slane %v3824_v21, 5  ;;  %v2474_v35 = vld [vmem:[#allocation2 + $0x238] sm:$0xf] }
 0x1a1   : > { %2366 = vrot.lane.b32.xlu1 %v21712_v33, %s15592_s12  ;;  %v1611_v12 = vadd.f32 %v17472_v44, %v1609_v38  ;;  %v21715_v28 = vcombine.low %v21713_v22, %v21714_v19  ;;  %v17587_v56 = vsel %vm17490_vm13, %v13148_v7, %v2572_v23  ;;  %v2574_v53 = vrot.slane %v2572_v23, 4  ;;  %v2475_v33 = vld [vmem:[#allocation2 + $0x23c] sm:$0x3]  ;;  %v6010_v5 = vld [vmem:[#allocation2 + $0x204] sm:$0x8] }
 0x1a2   : > { %v13150_v29 = vrot.slane %v2476_v42, 10  ;;  %v2586_v3 = vrot.slane %v2477_v14, 6  ;;  %v17592_v6 = vsel %vm16671_vm10, %v13278_v17, %v3924_v60  ;;  %v3926_v21 = vrot.slane %v3924_v60, 4  ;;  %v5805_v17 = vld [vmem:[#allocation2 + $0x21c] sm:$0xe] }
 0x1a3   : > { %2364 = vrot.lane.b32.xlu0 %v21715_v28, %s15592_s12  ;;  %v1613_v44 = vadd.f32 %v17475_v50, %v1611_v12  ;;  %v2589_v38 = vrot.slane %v2478_v54, 6  ;;  %v21716_v22 = vcombine.low %v17238_v62, %v17244_v0  ;;  %v21717_v42 = vcombine.low %v21680_v48, %v21679_v43  ;;  %v6011_v54 = vld [vmem:[#allocation2 + $0x208] sm:$0xf]  ;;  %v6012_v12 = vld [vmem:[#allocation2 + $0x20c] sm:$0x7] }
 0x1a4   : > { %v17604_v50 = vsel %vm17490_vm13, %v2574_v53, %v2575_v11  ;;  %v17608_v14 = vsel %vm17490_vm13, %v13150_v29, %v2586_v3  ;;  %v2588_v7 = vrot.slane %v2586_v3, 4  ;;  %v13149_v23 = vrot.slane %v2473_v8, 10  ;;  %v5806_v60 = vld [vmem:[#allocation2 + $0x220] sm:$0xf]  ;;  %v21719_v8 = vld [vmem:[#allocation46_spill] sm:$0xff]  ;;  %v21724_v62 = vld [vmem:[#allocation41_spill] sm:$0xff] }
 0x1a5   : > { %2274 = vrot.lane.b32.xlu1 %v21716_v22, %s15593_s17  ;;  %14343 = vmatmul.mubr.msk.bf16.gmra.mrb[24].mxu1 %vm1257_vm5, %v21717_v42  ;;  %v21718_v0 = vmov 0.0   ;;  %v1615_v43 = vadd.f32 %v17478_v25, %v1613_v44  ;;  %v17617_v48 = vsel %vm16671_vm10, %v3926_v21, %v3927_v16  ;;  %v2579_v11 = vrot.slane %v2474_v35, 6  ;;  %v5807_v3 = vld [vmem:[#allocation2 + $0x224] sm:$0x1]  ;;  %v2482_v16 = vld [vmem:[#allocation2 + $0x288] sm:$0xc] }
 0x1a6   : > { %14348 = vmatprep.mubr.msk.bf16.mxu1 %vm15595_vm15, %v21718_v0  ;;  %v21720_v19 = vcombine.low %v17258_v10, %v21719_v8  ;;  %v17627_v25 = vsel %vm17490_vm13, %v2588_v7, %v2589_v38  ;;  %v2582_v53 = vrot.slane %v2475_v33, 6  ;;  %v13486_v29 = vrot.slane %v6010_v5, 11  ;;  %v2483_v22 = vld [vmem:[#allocation2 + $0x28c] sm:$0xf]  ;;  %v2484_v42 = vld [vmem:[#allocation2 + $0x290] sm:$0x3] }
 0x1a7   : > { %v1617_v35 = vadd.f32 %v17481_v57, %v1615_v43  ;;  %v17634_v10 = vsel %vm17490_vm13, %v13149_v23, %v2579_v11  ;;  %v2581_v21 = vrot.slane %v2579_v11, 4  ;;  %v21721_v8 = vld [vmem:[#allocation39_spill] sm:$0xff]  ;;  %v21722_v38 = vld [vmem:[#allocation42_spill] sm:$0xff]  ;;  %v6108_v5 = vrot.slane %v6011_v54, 7  ;;  %v2479_v57 = vld [vmem:[#allocation2 + $0x26c] sm:$0xc] }
 0x1a8   : > { %2272 = vrot.lane.b32.xlu0 %v21720_v19, %s15593_s17  ;;  %v21723_v7 = vcombine.low %v21721_v8, %v21722_v38  ;;  %v6111_v33 = vrot.slane %v6012_v12, 7  ;;  %v13471_v19 = vrot.slane %v5805_v17, 9  ;;  %v5907_v28 = vrot.slane %v5806_v60, 5  ;;  %v2480_v1 = vld [vmem:[#allocation2 + $0x270] sm:$0xf] }
 0x1a9   : > { %v1619_v43 = vadd.f32 %v17484_v46, %v1617_v35  ;;  %v17643_v44 = vsel %vm17490_vm13, %v2581_v21, %v2582_v53  ;;  %v5910_v23 = vrot.slane %v5807_v3, 5  ;;  %v13152_v11 = vrot.slane %v2482_v16, 10  ;;  %v2481_v27 = vld [vmem:[#allocation2 + $0x274] sm:$0x3]  ;;  %v6013_v53 = vld [vmem:[#allocation2 + $0x220] sm:$0x8] }
 0x1aa   : > { %2370 = vrot.lane.b32.xlu1 %v21723_v7, %s15592_s12  ;;  %v21726_v8 = vcombine.low %v21724_v62, %v21725_v51  ;;  %v17653_v17 = vsel %vm16535_vm7, %v13486_v29, %v6108_v5  ;;  %v6110_v46 = vrot.slane %v6108_v5, 4  ;;  %v17657_v60 = vsel %vm16671_vm10, %v13471_v19, %v5907_v28  ;;  %v6014_v51 = vld [vmem:[#allocation2 + $0x224] sm:$0xf]  ;;  %v6015_v19 = vld [vmem:[#allocation2 + $0x228] sm:$0x7] }
 0x1ab   : > { %v1621_v3 = vadd.f32 %v17499_v4, %v1619_v43  ;;  %v5909_v16 = vrot.slane %v5907_v28, 4  ;;  %v2600_v35 = vrot.slane %v2483_v22, 6  ;;  %v2603_v21 = vrot.slane %v2484_v42, 6  ;;  %v21732_v42 = vld [vmem:[#allocation48_spill] sm:$0xff]  ;;  %v5810_v36 = vld [vmem:[#allocation2 + $0x240] sm:$0x1] }
 0x1ac   : > { %2368 = vrot.lane.b32.xlu0 %v21726_v8, %s15592_s12  ;;  %v21728_v62 = vcombine.low %v17289_v39, %v17305_v49  ;;  %v17666_v29 = vsel %vm16535_vm7, %v6110_v46, %v6111_v33  ;;  %v13151_v38 = vrot.slane %v2479_v57, 10  ;;  %v2593_v7 = vrot.slane %v2480_v1, 6  ;;  %v17668_v8 = vpop.permute.xlu0 %3095  ;;  %v17681_v49 = vld [vmem:[#allocation2 + $0x2cc] sm:$0xf]  ;;  %v2488_v1 = vld [vmem:[#allocation2 + $0x2c0] sm:$0xc] }
 0x1ad   : > { %21729 = vst [vmem:[#allocation34_spill] sm:$0xff] %v17666_v29  ;;  %v2596_v5 = vrot.slane %v2481_v27, 6  ;;  %v1623_v4 = vadd.f32 %v17502_v37, %v1621_v3  ;;  %v17675_v22 = vsel %vm16671_vm10, %v5909_v16, %v5910_v23  ;;  %v17679_v39 = vsel %vm17490_vm13, %v13152_v11, %v2600_v35  ;;  %21731 = vst [vmem:[#allocation24_spill] sm:$0xff] %v17681_v49  ;;  %v2489_v27 = vld [vmem:[#allocation2 + $0x2c4] sm:$0xf]  ;;  %v21733_v33 = vld [vmem:[#allocation50_spill] sm:$0xff]  ;;  %v17687_v37 = vpop.permute.xlu1 %3091 }
 0x1ae   : > { %2278 = vrot.lane.b32.xlu1 %v21728_v62, %s15593_s17  ;;  %21730 = vst [vmem:[#allocation35_spill] sm:$0xff] %v17675_v22  ;;  %v21734_v57 = vcombine.low %v21732_v42, %v21733_v33  ;;  %v2602_v23 = vrot.slane %v2600_v35, 4  ;;  %v17693_v46 = vsel %vm17490_vm13, %v13151_v38, %v2593_v7  ;;  %v2595_v11 = vrot.slane %v2593_v7, 4  ;;  %v2490_v3 = vld [vmem:[#allocation2 + $0x2c8] sm:$0x3]  ;;  %v21735_v33 = vld [vmem:[#allocation43_spill] sm:$0xff] }
 0x1af   : > { %v2485_v16 = vld [vmem:[#allocation2 + $0x2a4] sm:$0xc]  ;;  %v1625_v62 = vadd.f32 %v17505_v9, %v1623_v4  ;;  %v13487_v28 = vrot.slane %v6013_v53, 11  ;;  %v6115_v54 = vrot.slane %v6014_v51, 7  ;;  %v6118_v0 = vrot.slane %v6015_v19, 7 }
 0x1b0   : > { %2276 = vrot.lane.b32.xlu0 %v21734_v57, %s15593_s17  ;;  %v2486_v42 = vld [vmem:[#allocation2 + $0x2a8] sm:$0xf]  ;;  %v21736_v57 = vld [vmem:[#allocation47_spill] sm:$0xff]  ;;  %v17702_v35 = vsel %vm17490_vm13, %v2602_v23, %v2603_v21  ;;  %v17706_v38 = vsel %vm17490_vm13, %v2595_v11, %v2596_v5  ;;  %v13154_v53 = vrot.slane %v2488_v1, 10  ;;  %v2487_v51 = vld [vmem:[#allocation2 + $0x2ac] sm:$0x3]  ;;  %v17710_v19 = vpop.permute.xlu0 %3099 }
 0x1b1   : > { %v21737_v29 = vcombine.low %v21735_v33, %v21736_v57  ;;  %v5808_v7 = vld [vmem:[#allocation2 + $0x238] sm:$0xe]  ;;  %v1627_v4 = vadd.f32 %v17538_v40, %v1625_v62  ;;  %v17719_v5 = vsel %vm16535_vm7, %v13487_v28, %v6115_v54  ;;  %v5809_v23 = vld [vmem:[#allocation2 + $0x23c] sm:$0xf]  ;;  %v21738_v11 = vld [vmem:[#allocation44_spill] sm:$0xff]  ;;  %v17725_v57 = vpop.permute.xlu1 %3093  ;;  %v6117_v9 = vrot.slane %v6115_v54, 4 }
 0x1b2   : > { %v21739_v1 = vld [vmem:[#allocation49_spill] sm:$0xff]  ;;  %v2614_v40 = vrot.slane %v2489_v27, 6  ;;  %v2617_v62 = vrot.slane %v2490_v3, 6  ;;  %v13153_v43 = vrot.slane %v2485_v16, 10  ;;  %v2607_v49 = vrot.slane %v2486_v42, 6 }
 0x1b3   : > { %2374 = vrot.lane.b32.xlu1 %v21737_v29, %s15592_s12  ;;  %v21740_v33 = vcombine.low %v21738_v11, %v21739_v1  ;;  %v1629_v29 = vadd.f32 %v17551_v30, %v1627_v4  ;;  %v2610_v21 = vrot.slane %v2487_v51, 6  ;;  %v13472_v22 = vrot.slane %v5808_v7, 9  ;;  %v3825_v30 = vld [vmem:[#allocation2 + $0x2e0] sm:$0xe]  ;;  %v2494_v1 = vld [vmem:[#allocation2 + $0x2f8] sm:$0xc] }
 0x1b4   : > { %v21741_v28 = vcombine.low %v17341_v31, %v17345_v15  ;;  %v17734_v11 = vsel %vm16535_vm7, %v6117_v9, %v6118_v0  ;;  %v17738_v54 = vsel %vm17490_vm13, %v13154_v53, %v2614_v40  ;;  %v2616_v27 = vrot.slane %v2614_v40, 4  ;;  %v17740_v16 = vpop.permute.xlu0 %3103  ;;  %v17748_v0 = vld [vmem:[#allocation2 + $0x2e4] sm:$0xf]  ;;  %v3827_v9 = vld [vmem:[#allocation2 + $0x2e8] sm:$0x1] }
 0x1b5   : > { %2372 = vrot.lane.b32.xlu0 %v21740_v33, %s15592_s12  ;;  %v5914_v3 = vrot.slane %v5809_v23, 5  ;;  %v1630_v42 = vrot.slane %v1629_v29, 4  ;;  %v17746_v31 = vsel %vm17490_vm13, %v13153_v43, %v2607_v49  ;;  %v2609_v15 = vrot.slane %v2607_v49, 4  ;;  %21742 = vst [vmem:[#allocation37_spill] sm:$0xff] %v17748_v0  ;;  %v2495_v49 = vld [vmem:[#allocation2 + $0x2fc] sm:$0xf] }
 0x1b6   : > { %v21743_v53 = vcombine.low %v17355_v63, %v17371_v41  ;;  %v17756_v7 = vsel %vm17490_vm13, %v2616_v27, %v2617_v62  ;;  %v5917_v43 = vrot.slane %v5810_v36, 5  ;;  %v13279_v41 = vrot.slane %v3825_v30, 9  ;;  %v2492_v30 = vld [vmem:[#allocation2 + $0x2e0] sm:$0xf] }
 0x1b7   : > { %2282 = vrot.lane.b32.xlu1 %v21741_v28, %s15593_s17  ;;  %v17760_v4 = vsel %vm16671_vm10, %v13472_v22, %v5914_v3  ;;  %v5916_v23 = vrot.slane %v5914_v3, 4  ;;  %v1631_v33 = vadd.f32 %v1630_v42, %v1629_v29  ;;  %v17766_v63 = vsel %vm17490_vm13, %v2609_v15, %v2610_v21  ;;  %v2496_v28 = vld [vmem:[#allocation2 + $0x300] sm:$0x3]  ;;  %v17772_v22 = vpop.permute.xlu1 %3097  ;;  %v2491_v3 = vld [vmem:[#allocation2 + $0x2dc] sm:$0xc] }
 0x1b8   : > { %v21744_v62 = vcombine.low %v17268_v32, %v17347_v47  ;;  %v3931_v27 = vrot.slane %v17748_v0, 5  ;;  %v3934_v21 = vrot.slane %v3827_v9, 5  ;;  %v2996_v15 = vpop.permute.xlu0 %2995  ;;  %v13156_v32 = vrot.slane %v2494_v1, 10  ;;  %v17795_v47 = vld [vmem:[#allocation2 + $0x2e8] sm:$0xf] }
 0x1b9   : > { %2280 = vrot.lane.b32.xlu0 %v21743_v53, %s15593_s17  ;;  %v17778_v29 = vsel %vm16671_vm10, %v5916_v23, %v5917_v43  ;;  %v1632_v42 = vrot.slane %v1631_v33, 2  ;;  %v2628_v53 = vrot.slane %v2495_v49, 6  ;;  %v21746_v40 = vcombine.low %v17297_v20, %v17349_v24  ;;  %21748 = vst [vmem:[#allocation36_spill] sm:$0xff] %v17795_v47 }
 0x1ba   : > { %21745 = vst [vmem:[#allocation38_spill] sm:$0xff] %v17778_v29  ;;  %v21747_v23 = vcombine.low %v17515_v2, %v17542_v13  ;;  %v17793_v43 = vsel %vm16671_vm10, %v13279_v41, %v3931_v27  ;;  %v3933_v51 = vrot.slane %v3931_v27, 4  ;;  %v2631_v36 = vrot.slane %v2496_v28, 6  ;;  %v3828_v2 = vld [vmem:[#allocation2 + $0x2fc] sm:$0xe] }
 0x1bb   : > { %2378 = vrot.lane.b32.xlu1 %v21744_v62, %s15592_s12  ;;  %v2493_v62 = vld [vmem:[#allocation2 + $0x2e4] sm:$0x3]  ;;  %v1633_v1 = vadd.f32 %v1632_v42, %v1631_v33  ;;  %v17803_v20 = vsel %vm17490_vm13, %v13156_v32, %v2628_v53  ;;  %v2630_v24 = vrot.slane %v2628_v53, 4  ;;  %v17805_v13 = vld [vmem:[#allocation2 + $0x300] sm:$0xf]  ;;  %v2621_v27 = vrot.slane %v2492_v30, 6  ;;  %v17815_v32 = vpop.permute.xlu1 %3101 }
 0x1bc   : > { %v3125_v9 = vsel %vm1257_vm5, %v21747_v23, %v2996_v15  ;;  %v21750_v41 = vld [vmem:[#allocation31_spill] sm:$0xff]  ;;  %v17813_v33 = vsel %vm16671_vm10, %v3933_v51, %v3934_v21  ;;  %v2624_v42 = vrot.slane %v2493_v62, 6  ;;  %v3830_v15 = vld [vmem:[#allocation2 + $0x304] sm:$0x1]  ;;  %v2998_v53 = vpop.permute.xlu0 %2997 }
 0x1bd   : > { %2376 = vrot.lane.b32.xlu0 %v21746_v40, %s15592_s12  ;;  %v17799_v49 = vsel %vm2432_vm0, %v3125_v9, %v17687_v37  ;;  %v21749_v40 = vld [vmem:[#allocation29_spill] sm:$0xff]  ;;  %v13155_v37 = vrot.slane %v2491_v3, 10  ;;  %v1634_v23 = vrot.slane %v1633_v1, 1  ;;  %v17821_v29 = vsel %vm17490_vm13, %v2630_v24, %v2631_v36  ;;  %v6016_v51 = vld [vmem:[#allocation2 + $0x23c] sm:$0x8] }
 0x1be   : > { %v21751_v28 = vcombine.low %v21749_v40, %v21750_v41  ;;  %21752 = vst [vmem:[#allocation40_spill] sm:$0xff] %v17821_v29  ;;  %v6017_v21 = vld [vmem:[#allocation2 + $0x240] sm:$0xf]  ;;  %v21753_v3 = vld [vmem:[#allocation33_spill] sm:$0xff]  ;;  %v21756_v41 = vcombine.low %v17587_v56, %v17604_v50  ;;  %v2623_v24 = vrot.slane %v2621_v27, 4 }
 0x1bf   : > { %v21754_v30 = vld [vmem:[#allocation27_spill] sm:$0xff]  ;;  %v17837_v36 = vsel %vm17490_vm13, %v13155_v37, %v2621_v27  ;;  %v1635_v40 = vadd.f32 %v1634_v23, %v1633_v1  ;;  %v5811_v56 = vld [vmem:[#allocation2 + $0x254] sm:$0xe]  ;;  %v21758_v50 = vld [vmem:[#allocation25_spill] sm:$0xff]  ;;  %v3941_v27 = vrot.slane %v3830_v15, 5  ;;  %v13488_v1 = vrot.slane %v6016_v51, 11 }
 0x1c0   : > { %2286 = vrot.lane.b32.xlu1 %v21751_v28, %s15593_s17  ;;  %v21755_v62 = vcombine.low %v21753_v3, %v21754_v30  ;;  %v3128_v28 = vsel %vm1257_vm5, %v21756_v41, %v2998_v53  ;;  %21757 = vst [vmem:[#allocation46_spill] sm:$0xff] %v17837_v36  ;;  %v13280_v3 = vrot.slane %v3828_v2, 9  ;;  %v3938_v30 = vrot.slane %v17805_v13, 5  ;;  %v21759_v53 = vld [vmem:[#allocation30_spill] sm:$0xff]  ;;  %v17870_v36 = vpop.permute.xlu1 %3105 }
 0x1c1   : > { %v17841_v47 = vsel %vm2432_vm0, %v3128_v28, %v17725_v57  ;;  %v21760_v41 = vcombine.low %v21758_v50, %v21759_v53  ;;  %v17850_v37 = vsel %vm17490_vm13, %v2623_v24, %v2624_v42  ;;  %v6122_v23 = vrot.slane %v6017_v21, 7  ;;  %v5812_v9 = vld [vmem:[#allocation2 + $0x258] sm:$0xf]  ;;  %v3000_v28 = vpop.permute.xlu0 %2999  ;;  %v5813_v50 = vld [vmem:[#allocation2 + $0x25c] sm:$0x1]  ;;  %v21763_v42 = vld [vmem:[#allocation28_spill] sm:$0xff] }
 0x1c2   : > { %2284 = vrot.lane.b32.xlu0 %v21755_v62, %s15593_s17  ;;  %v6018_v62 = vld [vmem:[#allocation2 + $0x244] sm:$0x7]  ;;  %21761 = vst [vmem:[#allocation39_spill] sm:$0xff] %v17850_v37  ;;  %v1637_v57 = vmul.f32 0.00390625, %v1635_v40  ;;  %v17856_v0 = vsel %vm16671_vm10, %v13280_v3, %v3938_v30  ;;  %v3940_v29 = vrot.slane %v3938_v30, 4  ;;  %v21765_v15 = vcombine.low %v17634_v10, %v17643_v44 }
 0x1c3   : > { %v2500_v53 = vld [vmem:[#allocation2 + $0x330] sm:$0xc]  ;;  %v17868_v51 = vsel %vm16535_vm7, %v13488_v1, %v6122_v23  ;;  %v6124_v21 = vrot.slane %v6122_v23, 4  ;;  %v6125_v3 = vrot.slane %v6018_v62, 7  ;;  %v2501_v2 = vld [vmem:[#allocation2 + $0x334] sm:$0xf]  ;;  %v21766_v1 = vcombine.low %v17527_v45, %v17557_v61 }
 0x1c4   : > { %2382 = vrot.lane.b32.xlu1 %v21760_v41, %s15592_s12  ;;  %v21762_v41 = vld [vmem:[#allocation32_spill] sm:$0xff]  ;;  %v3131_v40 = vsel %vm1257_vm5, %v21765_v15, %v3000_v28  ;;  %v2502_v30 = vld [vmem:[#allocation2 + $0x338] sm:$0x3]  ;;  %v1639_v37 = vpack.c.bf16 %v1637_v57, %v1637_v57  ;;  %v17878_v44 = vsel %vm16671_vm10, %v3940_v29, %v3941_v27  ;;  %v13473_v10 = vrot.slane %v5811_v56, 9  ;;  %v2497_v28 = vld [vmem:[#allocation2 + $0x314] sm:$0xc] }
 0x1c5   : > { %v21764_v24 = vcombine.low %v21762_v41, %v21763_v42  ;;  %v17874_v41 = vsel %vm2432_vm0, %v3131_v40, %v17668_v8  ;;  %v13312_v62 = vcombine.low %v17856_v0, %v17878_v44  ;;  %v17888_v23 = vsel %vm16535_vm7, %v6124_v21, %v6125_v3  ;;  %v2498_v42 = vld [vmem:[#allocation2 + $0x318] sm:$0xf]  ;;  %v3004_v29 = vpop.permute.xlu0 %3003  ;;  %v3002_v21 = vpop.permute.xlu1 %3001  ;;  %v6021_v3 = vld [vmem:[#allocation2 + $0x260] sm:$0x7]  ;;  %v5820_v0 = vld [vmem:[#allocation2 + $0x2a8] sm:$0xe] }
 0x1c6   : > { %v5921_v8 = vrot.slane %v5812_v9, 5  ;;  %v5924_v57 = vrot.slane %v5813_v50, 5  ;;  %14349 = vmatmul.mubr.msk.bf16.vlgmr.msra.gmra.mrb[28].mxu1 %vm1257_vm5, %v1639_v37  ;;  %v13536_v56 = vcombine.low %v17868_v51, %v17888_v23  ;;  %v13158_v27 = vrot.slane %v2500_v53, 10  ;;  %v6019_v15 = vld [vmem:[#allocation2 + $0x258] sm:$0x8] }
 0x1c7   : > { %2380 = vrot.lane.b32.xlu0 %v21764_v24, %s15592_s12  ;;  %v2499_v24 = vld [vmem:[#allocation2 + $0x31c] sm:$0x3]  ;;  %v2642_v45 = vrot.slane %v2501_v2, 6  ;;  %v2645_v61 = vrot.slane %v2502_v30, 6  ;;  %v21767_v40 = vcombine.low %v17531_v55, %v17561_v59  ;;  %14354 = vmatprep.mubr.msk.bf16.mxu1 %vm3211_vm1, %v17799_v49  ;;  %v21768_v9 = vcombine.low %v17693_v46, %v17706_v38 }
 0x1c8   : > { %6314 = vrot.lane.b32.xlu1 %v21766_v1, %s15593_s17  ;;  %v17905_v50 = vsel %vm16671_vm10, %v13473_v10, %v5921_v8  ;;  %v5923_v2 = vrot.slane %v5921_v8, 4  ;;  %v13157_v53 = vrot.slane %v2497_v28, 10  ;;  %14353 = vmatpush3.bf16.msra.mxu1 %v17571_v26  ;;  %v2635_v38 = vrot.slane %v2498_v42, 6  ;;  %v6020_v49 = vld [vmem:[#allocation2 + $0x25c] sm:$0xf] }
 0x1c9   : > { %v3137_v37 = vsel %vm1257_vm5, %v21768_v9, %v3004_v29  ;;  %v17914_v59 = vsel %vm17490_vm13, %v13158_v27, %v2642_v45  ;;  %v2644_v46 = vrot.slane %v2642_v45, 4  ;;  %v21769_v30 = vcombine.low %v17486_v34, %v17544_v58  ;;  %v17928_v8 = vld [vmem:[#allocation2 + $0x304] sm:$0xf]  ;;  %v5814_v42 = vld [vmem:[#allocation2 + $0x270] sm:$0xe]  ;;  %v3008_v34 = vpop.permute.xlu0 %3007 }
 0x1ca   : > { %v17910_v55 = vsel %vm2432_vm0, %v3137_v37, %v17710_v19  ;;  %v21770_v26 = vcombine.low %v17608_v14, %v17627_v25  ;;  %v17926_v19 = vsel %vm16671_vm10, %v5923_v2, %v5924_v57  ;;  %v2638_v28 = vrot.slane %v2499_v24, 6  ;;  %v5815_v57 = vld [vmem:[#allocation2 + $0x274] sm:$0xf]  ;;  %v3831_v9 = vld [vmem:[#allocation2 + $0x318] sm:$0xe]  ;;  %v3006_v37 = vpop.permute.xlu1 %3005 }
 0x1cb   : > { %4139 = vrot.lane.b32.xlu0 %v21767_v40, %s15593_s17  ;;  %v13489_v1 = vrot.slane %v6019_v15, 11  ;;  %v13521_v58 = vcombine.low %v17905_v50, %v17926_v19  ;;  %v17938_v14 = vsel %vm17490_vm13, %v2644_v46, %v2645_v61  ;;  %v17942_v25 = vsel %vm17490_vm13, %v13157_v53, %v2635_v38  ;;  %v5816_v40 = vld [vmem:[#allocation2 + $0x278] sm:$0x1] }
 0x1cc   : > { %4235 = vrot.lane.b32.xlu1 %v21769_v30, %s15592_s12  ;;  %v3134_v10 = vsel %vm1257_vm5, %v21770_v26, %v3002_v21  ;;  %v21771_v24 = vcombine.low %v17592_v6, %v17617_v48  ;;  %v13190_v45 = vcombine.low %v17914_v59, %v17938_v14  ;;  %v2637_v61 = vrot.slane %v2635_v38, 4  ;;  %v21773_v21 = vld [vmem:[#allocation34_spill] sm:$0xff]  ;;  %v2506_v26 = vld [vmem:[#allocation2 + $0x368] sm:$0xc] }
 0x1cd   : > { %v17932_v29 = vsel %vm2432_vm0, %v3134_v10, %v17772_v22  ;;  %v21772_v22 = vcombine.low %v17746_v31, %v17766_v63  ;;  %v6129_v15 = vrot.slane %v6020_v49, 7  ;;  %v6132_v53 = vrot.slane %v6021_v3, 7  ;;  %v17960_v31 = vld [vmem:[#allocation2 + $0x31c] sm:$0xf]  ;;  %v3833_v63 = vld [vmem:[#allocation2 + $0x320] sm:$0x1] }
 0x1ce   : > { %v13474_v48 = vrot.slane %v5814_v42, 9  ;;  %v21774_v46 = vcombine.low %v17653_v17, %v21773_v21  ;;  %v21775_v38 = vcombine.low %v17679_v39, %v17702_v35  ;;  %14355 = vmatmul.mubr.msk.bf16.vlgmr.msra.gmra.mrb[32].mxu1 %vm3211_vm1, %v17841_v47  ;;  %v5928_v35 = vrot.slane %v5815_v57, 5  ;;  %v2508_v42 = vld [vmem:[#allocation2 + $0x370] sm:$0x3]  ;;  %v2503_v57 = vld [vmem:[#allocation2 + $0x34c] sm:$0xc] }
 0x1cf   : > { %4141 = vrot.lane.b32.xlu0 %v21771_v24, %s15593_s17  ;;  %v3143_v27 = vsel %vm1257_vm5, %v21772_v22, %v3008_v34  ;;  %v17976_v3 = vsel %vm16535_vm7, %v13489_v1, %v6129_v15  ;;  %v6131_v30 = vrot.slane %v6129_v15, 4  ;;  %v5931_v10 = vrot.slane %v5816_v40, 5  ;;  %v21776_v1 = vld [vmem:[#allocation35_spill] sm:$0xff]  ;;  %14358 = vmatprep.mubr.msk.bf16.mxu1 %vm3211_vm1, %v17874_v41  ;;  %v2504_v41 = vld [vmem:[#allocation2 + $0x350] sm:$0xf] }
 0x1d0   : > { %v17956_v2 = vsel %vm2432_vm0, %v3143_v27, %v17740_v16  ;;  %6394 = vrot.lane.b32.xlu1 %v21774_v46, %s15592_s12  ;;  %v3140_v49 = vsel %vm1257_vm5, %v21775_v38, %v3006_v37  ;;  %v17972_v16 = vsel %vm17490_vm13, %v2637_v61, %v2638_v28  ;;  %v2507_v28 = vld [vmem:[#allocation2 + $0x36c] sm:$0xf]  ;;  %v21777_v34 = vcombine.low %v17657_v60, %v21776_v1  ;;  %v3010_v27 = vpop.permute.xlu1 %3009  ;;  %v2505_v37 = vld [vmem:[#allocation2 + $0x354] sm:$0x3]  ;;  %v18015_v38 = vld [vmem:[#allocation2 + $0x320] sm:$0xf] }
 0x1d1   : > { %v17982_v17 = vsel %vm2432_vm0, %v3140_v49, %v17815_v32  ;;  %v17994_v47 = vsel %vm16535_vm7, %v6131_v30, %v6132_v53  ;;  %v13281_v32 = vrot.slane %v3831_v9, 9  ;;  %v3945_v24 = vrot.slane %v17960_v31, 5  ;;  %v3834_v49 = vld [vmem:[#allocation2 + $0x334] sm:$0xe]  ;;  %v21781_v1 = vld [vmem:[#allocation24_spill] sm:$0xff] }
 0x1d2   : > { %v3948_v22 = vrot.slane %v3833_v63, 5  ;;  %v18001_v60 = vsel %vm16671_vm10, %v13474_v48, %v5928_v35  ;;  %v5930_v15 = vrot.slane %v5928_v35, 4  ;;  %v13160_v40 = vrot.slane %v2506_v26, 10  ;;  %v3836_v26 = vld [vmem:[#allocation2 + $0x33c] sm:$0x1]  ;;  %v21780_v35 = vld [vmem:[#allocation26_spill] sm:$0xff] }
 0x1d3   : > { %6316 = vrot.lane.b32.xlu0 %v21777_v34, %s15593_s17  ;;  %v21778_v9 = vcombine.low %v17719_v5, %v17734_v11  ;;  %v21779_v53 = vcombine.low %v17738_v54, %v17756_v7  ;;  %v18013_v21 = vsel %vm16671_vm10, %v13281_v32, %v3945_v24  ;;  %v3947_v48 = vrot.slane %v3945_v24, 4  ;;  %v18025_v7 = vld [vmem:[#allocation2 + $0x338] sm:$0xf]  ;;  %v6022_v32 = vld [vmem:[#allocation2 + $0x274] sm:$0x8]  ;;  %v3012_v6 = vpop.permute.xlu0 %3011 }
 0x1d4   : > { %v2656_v46 = vrot.slane %v2507_v28, 6  ;;  %v18023_v5 = vsel %vm16671_vm10, %v5930_v15, %v5931_v10  ;;  %v2659_v11 = vrot.slane %v2508_v42, 6  ;;  %v13159_v54 = vrot.slane %v2503_v57, 10  ;;  %v6023_v24 = vld [vmem:[#allocation2 + $0x278] sm:$0xf] }
 0x1d5   : > { %6396 = vrot.lane.b32.xlu1 %v21778_v9, %s15592_s12  ;;  %v3146_v63 = vsel %vm1257_vm5, %v21779_v53, %v3010_v27  ;;  %v21782_v28 = vcombine.low %v21780_v35, %v21781_v1  ;;  %v2649_v27 = vrot.slane %v2504_v41, 6  ;;  %v2652_v15 = vrot.slane %v2505_v37, 6  ;;  %v6024_v53 = vld [vmem:[#allocation2 + $0x27c] sm:$0x7]  ;;  %v5818_v41 = vld [vmem:[#allocation2 + $0x290] sm:$0xf] }
 0x1d6   : > { %v18019_v30 = vsel %vm2432_vm0, %v3146_v63, %v17870_v36  ;;  %v18035_v36 = vsel %vm16671_vm10, %v3947_v48, %v3948_v22  ;;  %v18039_v10 = vsel %vm17490_vm13, %v13160_v40, %v2656_v46  ;;  %v2658_v42 = vrot.slane %v2656_v46, 4  ;;  %v5817_v63 = vld [vmem:[#allocation2 + $0x28c] sm:$0xe]  ;;  %v21783_v22 = vld [vmem:[#allocation38_spill] sm:$0xff]  ;;  %14359 = vmatmul.mubr.msk.bf16.gmra.mrb[36].mxu1 %vm3211_vm1, %v17932_v29  ;;  %v3014_v29 = vpop.permute.xlu1 %3013  ;;  %v2509_v34 = vld [vmem:[#allocation2 + $0x384] sm:$0xc] }
 0x1d7   : > { %4237 = vrot.lane.b32.xlu0 %v21782_v28, %s15592_s12  ;;  %v21784_v48 = vcombine.low %v17760_v4, %v21783_v22  ;;  %v13282_v46 = vrot.slane %v3834_v49, 9  ;;  %v3952_v35 = vrot.slane %v18025_v7, 5  ;;  %v3955_v1 = vrot.slane %v3836_v26, 5  ;;  %14362 = vmatprep.mubr.msk.bf16.mxu1 %vm3211_vm1, %v17910_v55  ;;  %v18117_v61 = vld [vmem:[#allocation2 + $0x33c] sm:$0xf]  ;;  %v3108_v44 = vpop.permute.xlu0 %3107 }
 0x1d8   : > { %v18051_v40 = vsel %vm17490_vm13, %v2658_v42, %v2659_v11  ;;  %v18060_v28 = vsel %vm17490_vm13, %v13159_v54, %v2649_v27  ;;  %v2651_v4 = vrot.slane %v2649_v27, 4  ;;  %v13490_v22 = vrot.slane %v6022_v32, 11  ;;  %v2512_v11 = vld [vmem:[#allocation2 + $0x3a0] sm:$0xc]  ;;  %v2513_v27 = vld [vmem:[#allocation2 + $0x3a4] sm:$0xf] }
 0x1d9   : > { %6318 = vrot.lane.b32.xlu1 %v21784_v48, %s15593_s17  ;;  %v5819_v48 = vld [vmem:[#allocation2 + $0x294] sm:$0x1]  ;;  %v21785_v49 = vcombine.low %v17793_v43, %v17813_v33  ;;  %v18070_v26 = vsel %vm16671_vm10, %v13282_v46, %v3952_v35  ;;  %v3954_v42 = vrot.slane %v3952_v35, 4  ;;  %v6136_v54 = vrot.slane %v6023_v24, 7  ;;  %v21786_v32 = vld [vmem:[#allocation40_spill] sm:$0xff]  ;;  %v21788_v46 = vld [vmem:[#allocation37_spill] sm:$0xff] }
 0x1da   : > { %v6139_v9 = vrot.slane %v6024_v53, 7  ;;  %v21787_v37 = vcombine.low %v17803_v20, %v21786_v32  ;;  %v18078_v55 = vsel %vm17490_vm13, %v2651_v4, %v2652_v15  ;;  %v13475_v43 = vrot.slane %v5817_v63, 9  ;;  %v21789_v35 = vld [vmem:[#allocation36_spill] sm:$0xff]  ;;  %v21791_v4 = vld [vmem:[#allocation46_spill] sm:$0xff] }
 0x1db   : > { %4143 = vrot.lane.b32.xlu0 %v21785_v49, %s15593_s17  ;;  %v5935_v33 = vrot.slane %v5818_v41, 5  ;;  %v2514_v49 = vld [vmem:[#allocation2 + $0x3a8] sm:$0x3]  ;;  %v21790_v24 = vcombine.low %v21788_v46, %v21789_v35  ;;  %v18088_v20 = vsel %vm16671_vm10, %v3954_v42, %v3955_v1  ;;  %v18092_v15 = vsel %vm16535_vm7, %v13490_v22, %v6136_v54  ;;  %v6025_v42 = vld [vmem:[#allocation2 + $0x290] sm:$0x8]  ;;  %v3110_v22 = vpop.permute.xlu1 %3109 }
 0x1dc   : > { %v3152_v57 = vsel %vm1257_vm5, %v21787_v37, %v3014_v29  ;;  %v6138_v63 = vrot.slane %v6136_v54, 4  ;;  %v2510_v41 = vld [vmem:[#allocation2 + $0x388] sm:$0xf]  ;;  %v2511_v37 = vld [vmem:[#allocation2 + $0x38c] sm:$0x3]  ;;  %v21792_v29 = vld [vmem:[#allocation39_spill] sm:$0xff]  ;;  %v21794_v59 = vcombine.low %v17976_v3, %v17994_v47 }
 0x1dd   : > { %4239 = vrot.lane.b32.xlu1 %v21790_v24, %s15592_s12  ;;  %v21793_v32 = vcombine.low %v21791_v4, %v21792_v29  ;;  %v18102_v24 = vsel %vm16671_vm10, %v13475_v43, %v5935_v33  ;;  %v5937_v1 = vrot.slane %v5935_v33, 4  ;;  %v6026_v53 = vld [vmem:[#allocation2 + $0x294] sm:$0xf]  ;;  %v13162_v4 = vrot.slane %v2512_v11, 10 }
 0x1de   : > { %v18110_v54 = vsel %vm16535_vm7, %v6138_v63, %v6139_v9  ;;  %v2670_v29 = vrot.slane %v2513_v27, 6  ;;  %v18113_v43 = vsel %vm2432_vm0, %v3152_v57, %v3110_v22  ;;  %v2673_v35 = vrot.slane %v2514_v49, 6  ;;  %14363 = vmatmul.mubr.msk.bf16.gmra.mrb[40].mxu1 %vm3211_vm1, %v17982_v17  ;;  %v18136_v27 = vld [vmem:[#allocation8] sm:$0x3f]  }
 0x1df   : > { %v3149_v46 = vsel %vm1257_vm5, %v21793_v32, %v3012_v6  ;;  %4145 = vrot.lane.b32.xlu0 %v13312_v62, %s15593_s17  ;;  %v5938_v6 = vrot.slane %v5819_v48, 5  ;;  %v6027_v32 = vld [vmem:[#allocation2 + $0x298] sm:$0x7]  ;;  %v13538_v33 = vcombine.low %v18092_v15, %v18110_v54  ;;  %v13161_v39 = vrot.slane %v2509_v34, 10  ;;  %v5821_v34 = vld [vmem:[#allocation2 + $0x2ac] sm:$0xf]  ;;  %14366 = vmatprep.mubr.msk.bf16.mxu1 %vm3211_vm1, %v17956_v2  ;;  %v3018_v49 = vpop.permute.xlu1 %3017 }
 0x1e0   : > { %v18129_v57 = vsel %vm17490_vm13, %v13162_v4, %v2670_v29  ;;  %v2672_v9 = vrot.slane %v2670_v29, 4  ;;  %v2663_v48 = vrot.slane %v2510_v41, 6  ;;  %v3188_v11 = vsel %vm2432_vm0, %v3149_v46, %v3108_v44  ;;  %v5822_v46 = vld [vmem:[#allocation2 + $0x2b0] sm:$0x1]  ;;  %15163 = vmatprep.subr.msk.bf16.mxu1 %vm3244_vm14, %v18136_v27  ;;  %v1725_v44 = vld [vmem:[#allocation2 + $0x170] sm:$0xc] }
 0x1e1   : > { %6398 = vrot.lane.b32.xlu1 %v13536_v56, %s15592_s12  ;;  %v18125_v62 = vsel %vm16671_vm10, %v5937_v1, %v5938_v6  ;;  %v2666_v23 = vrot.slane %v2511_v37, 6  ;;  %v13491_v56 = vrot.slane %v6025_v42, 11  ;;  %v6143_v37 = vrot.slane %v6026_v53, 7  ;;  %v3837_v1 = vld [vmem:[#allocation2 + $0x350] sm:$0xe]  ;;  %v3016_v53 = vpop.permute.xlu0 %3015 }
 0x1e2   : > { %v13523_v51 = vcombine.low %v18102_v24, %v18125_v62  ;;  %v18146_v17 = vsel %vm17490_vm13, %v2672_v9, %v2673_v35  ;;  %v18150_v63 = vsel %vm17490_vm13, %v13161_v39, %v2663_v48  ;;  %v2665_v41 = vrot.slane %v2663_v48, 4  ;;  %v18160_v35 = vld [vmem:[#allocation2 + $0x354] sm:$0xf]  ;;  %v3839_v39 = vld [vmem:[#allocation2 + $0x358] sm:$0x1] }
 0x1e3   : > { %6320 = vrot.lane.b32.xlu0 %v13521_v58, %s15593_s17  ;;  %v3158_v2 = vsel %vm1257_vm5, %v13190_v45, %v3018_v49  ;;  %v13194_v50 = vcombine.low %v18129_v57, %v18146_v17  ;;  %v6146_v19 = vrot.slane %v6027_v32, 7  ;;  %v13330_v58 = vcombine.low %v18025_v7, %v18117_v61  ;;  %v1727_v6 = vld [vmem:[#allocation2 + $0x178] sm:$0x3]  ;;  %v1726_v9 = vld [vmem:[#allocation2 + $0x174] sm:$0xf] }
 0x1e4   : > { %v18170_v14 = vsel %vm17490_vm13, %v2665_v41, %v2666_v23  ;;  %v18174_v45 = vsel %vm16535_vm7, %v13491_v56, %v6143_v37  ;;  %v6145_v42 = vrot.slane %v6143_v37, 4  ;;  %v13476_v22 = vrot.slane %v5820_v0, 9  ;;  %v3114_v23 = vpop.permute.xlu1 %3113  ;;  %v1724_v49 = vld [vmem:[#allocation2 + $0x15c] sm:$0x3]  ;;  %v1722_v37 = vld [vmem:[#allocation2 + $0x154] sm:$0xc] }
 0x1e5   : > { %6400 = vrot.lane.b32.xlu1 %v21794_v59, %s15592_s12  ;;  %v21795_v4 = vcombine.low %v17942_v25, %v17972_v16  ;;  %v13193_v3 = vcombine.low %v18150_v63, %v18170_v14  ;;  %v5942_v47 = vrot.slane %v5821_v34, 5  ;;  %v5945_v32 = vrot.slane %v5822_v46, 5  ;;  %v1723_v46 = vld [vmem:[#allocation2 + $0x158] sm:$0xf]  ;;  %v1733_v15 = vld [vmem:[#allocation2 + $0x1b0] sm:$0x3] }
 0x1e6   : > { %v21796_v48 = vcombine.low %v17805_v13, %v17928_v8  ;;  %v18188_v0 = vsel %vm16535_vm7, %v6145_v42, %v6146_v19  ;;  %v13283_v25 = vrot.slane %v3837_v1, 9  ;;  %v3959_v16 = vrot.slane %v18160_v35, 5  ;;  %v3112_v19 = vpop.permute.xlu0 %3111  ;;  %14367 = vmatmul.mubr.msk.bf16.gmra.mrb[44].mxu1 %vm3211_vm1, %v18019_v30  ;;  %v1728_v54 = vld [vmem:[#allocation2 + $0x18c] sm:$0xc] }
 0x1e7   : > { %v3155_v29 = vsel %vm1257_vm5, %v21795_v4, %v3016_v53  ;;  %v3962_v56 = vrot.slane %v3839_v39, 5  ;;  %v18192_v34 = vsel %vm2432_vm0, %v3158_v2, %v3114_v23  ;;  %v13539_v41 = vcombine.low %v18174_v45, %v18188_v0  ;;  %14370 = vmatprep.mubr.msk.bf16.mxu1 %vm3211_vm1, %v3188_v11  ;;  %v3842_v23 = vld [vmem:[#allocation2 + $0x374] sm:$0x1]  ;;  %v6033_v45 = vld [vmem:[#allocation2 + $0x2d0] sm:$0x7] }
 0x1e8   : > { %4241 = vrot.lane.b32.xlu0 %v21796_v48, %s15592_s12  ;;  %v18198_v13 = vsel %vm16671_vm10, %v13476_v22, %v5942_v47  ;;  %v5944_v8 = vrot.slane %v5942_v47, 4  ;;  %v21797_v1 = vcombine.low %v18001_v60, %v18023_v5  ;;  %v18206_v2 = vsel %vm16671_vm10, %v13283_v25, %v3959_v16  ;;  %v18215_v60 = vld [vmem:[#allocation2 + $0x358] sm:$0xf]  ;;  %v3840_v5 = vld [vmem:[#allocation2 + $0x36c] sm:$0xe] }
 0x1e9   : > { %v3961_v39 = vrot.slane %v3959_v16, 4  ;;  %v1833_v53 = vrot.slane %v1727_v6, 6  ;;  %v13068_v59 = vrot.slane %v1725_v44, 10  ;;  %v3192_v42 = vsel %vm2432_vm0, %v3155_v29, %v3112_v19  ;;  %v3022_v44 = vpop.permute.xlu1 %3021  ;;  %v18228_v48 = vld [vmem:[#allocation2 + $0x370] sm:$0xf] }
 0x1ea   : > { %6322 = vrot.lane.b32.xlu1 %v21797_v1, %s15593_s17  ;;  %v18213_v22 = vsel %vm16671_vm10, %v5944_v8, %v5945_v32  ;;  %v1830_v4 = vrot.slane %v1726_v9, 6  ;;  %v1826_v47 = vrot.slane %v1724_v49, 6  ;;  %v21798_v6 = vcombine.low %v18013_v21, %v18035_v36  ;;  %v6029_v49 = vld [vmem:[#allocation2 + $0x2b0] sm:$0xf]  ;;  %v3020_v8 = vpop.permute.xlu0 %3019  ;;  %v18330_v0 = vld [vmem:[#allocation2 + $0x374] sm:$0xf] }
 0x1eb   : > { %v13524_v30 = vcombine.low %v18198_v13, %v18213_v22  ;;  %v18226_v29 = vsel %vm16671_vm10, %v3961_v39, %v3962_v56  ;;  %v13067_v32 = vrot.slane %v1722_v37, 10  ;;  %v1823_v9 = vrot.slane %v1723_v46, 6  ;;  %v6028_v56 = vld [vmem:[#allocation2 + $0x2ac] sm:$0x8] }
 0x1ec   : > { %4147 = vrot.lane.b32.xlu0 %v21798_v6, %s15593_s17  ;;  %v21799_v11 = vcombine.low %v18039_v10, %v18051_v40  ;;  %v13315_v21 = vcombine.low %v18206_v2, %v18226_v29  ;;  %v18238_v36 = vsel %vm17490_vm13, %v13068_v59, %v1830_v4  ;;  %v1832_v16 = vrot.slane %v1830_v4, 4  ;;  %v6030_v4 = vld [vmem:[#allocation2 + $0x2b4] sm:$0x7]  ;;  %v5823_v6 = vld [vmem:[#allocation2 + $0x2c4] sm:$0xe] }
 0x1ed   : > { %v21800_v37 = vcombine.low %v17960_v31, %v18015_v38  ;;  %v18246_v10 = vsel %vm17490_vm13, %v13067_v32, %v1823_v9  ;;  %v1825_v40 = vrot.slane %v1823_v9, 4  ;;  %v13331_v46 = vcombine.low %v18160_v35, %v18215_v60  ;;  %v5824_v9 = vld [vmem:[#allocation2 + $0x2c8] sm:$0xf] }
 0x1ee   : > { %v3164_v25 = vsel %vm1257_vm5, %v21799_v11, %v3022_v44  ;;  %v13284_v19 = vrot.slane %v3840_v5, 9  ;;  %v21801_v1 = vcombine.low %v18060_v28, %v18078_v55  ;;  %v18256_v59 = vsel %vm17490_vm13, %v1832_v16, %v1833_v53  ;;  %v3118_v5 = vpop.permute.xlu1 %3117  ;;  %v5825_v11 = vld [vmem:[#allocation2 + $0x2cc] sm:$0x1]  ;;  %14371 = vmatmul.mubr.msk.bf16.gmra.mrb[48].mxu1 %vm3211_vm1, %v18113_v43 }
 0x1ef   : > { %4243 = vrot.lane.b32.xlu1 %v21800_v37, %s15592_s12  ;;  %v3966_v31 = vrot.slane %v18228_v48, 5  ;;  %v3969_v38 = vrot.slane %v3842_v23, 5  ;;  %v21802_v44 = vcombine.low %v18070_v26, %v18088_v20  ;;  %v13100_v28 = vcombine.low %v18238_v36, %v18256_v59  ;;  %v1732_v37 = vld [vmem:[#allocation2 + $0x1ac] sm:$0xf]  ;;  %14374 = vmatprep.mubr.msk.bf16.mxu1 %vm3211_vm1, %v3192_v42 }
 0x1f0   : > { %v3161_v39 = vsel %vm1257_vm5, %v21801_v1, %v3020_v8  ;;  %v18267_v55 = vsel %vm17490_vm13, %v1825_v40, %v1826_v47  ;;  %v13492_v53 = vrot.slane %v6028_v56, 11  ;;  %v6150_v32 = vrot.slane %v6029_v49, 7  ;;  %v1731_v8 = vld [vmem:[#allocation2 + $0x1a8] sm:$0xc]  ;;  %v3116_v1 = vpop.permute.xlu0 %3115 }
 0x1f1   : > { %4149 = vrot.lane.b32.xlu0 %v21802_v44, %s15593_s17  ;;  %v18270_v23 = vsel %vm2432_vm0, %v3164_v25, %v3118_v5  ;;  %v13099_v16 = vcombine.low %v18246_v10, %v18267_v55  ;;  %v18276_v26 = vsel %vm16671_vm10, %v13284_v19, %v3966_v31  ;;  %v3968_v20 = vrot.slane %v3966_v31, 4  ;;  %v1730_v5 = vld [vmem:[#allocation2 + $0x194] sm:$0x3] }
 0x1f2   : > { %v18284_v47 = vsel %vm16535_vm7, %v13492_v53, %v6150_v32  ;;  %v6152_v25 = vrot.slane %v6150_v32, 4  ;;  %v6153_v56 = vrot.slane %v6030_v4, 7  ;;  %v13477_v49 = vrot.slane %v5823_v6, 9  ;;  %v1729_v6 = vld [vmem:[#allocation2 + $0x190] sm:$0xf] }
 0x1f3   : > { %6402 = vrot.lane.b32.xlu1 %v13538_v33, %s15592_s12  ;;  %v3196_v40 = vsel %vm2432_vm0, %v3161_v39, %v3116_v1  ;;  %v18291_v19 = vsel %vm16671_vm10, %v3968_v20, %v3969_v38  ;;  %v5949_v31 = vrot.slane %v5824_v9, 5  ;;  %v5952_v44 = vrot.slane %v5825_v11, 5  ;;  %v3026_v33 = vpop.permute.xlu1 %3025  ;;  %v6031_v53 = vld [vmem:[#allocation2 + $0x2c8] sm:$0x8]  ;;  %v6032_v32 = vld [vmem:[#allocation2 + $0x2cc] sm:$0xf] }
 0x1f4   : > { %v13316_v43 = vcombine.low %v18276_v26, %v18291_v19  ;;  %v18302_v39 = vsel %vm16535_vm7, %v6152_v25, %v6153_v56  ;;  %v13070_v38 = vrot.slane %v1731_v8, 10  ;;  %v1844_v4 = vrot.slane %v1732_v37, 6  ;;  %v3024_v9 = vpop.permute.xlu0 %3023  ;;  %v5826_v56 = vld [vmem:[#allocation2 + $0x2e0] sm:$0xe] }
 0x1f5   : > { %6324 = vrot.lane.b32.xlu0 %v13523_v51, %s15593_s17  ;;  %v3170_v42 = vsel %vm1257_vm5, %v13194_v50, %v3026_v33  ;;  %v13540_v24 = vcombine.low %v18284_v47, %v18302_v39  ;;  %v18312_v62 = vsel %vm16671_vm10, %v13477_v49, %v5949_v31  ;;  %v5951_v51 = vrot.slane %v5949_v31, 4  ;;  %v5827_v49 = vld [vmem:[#allocation2 + $0x2e4] sm:$0xf] }
 0x1f6   : > { %v18320_v57 = vsel %vm17490_vm13, %v13070_v38, %v1844_v4  ;;  %v1846_v17 = vrot.slane %v1844_v4, 4  ;;  %v1847_v50 = vrot.slane %v1733_v15, 6  ;;  %v13069_v11 = vrot.slane %v1728_v54, 10  ;;  %v3843_v15 = vld [vmem:[#allocation2 + $0x388] sm:$0xe]  ;;  %14375 = vmatmul.mubr.msk.bf16.gmra.mrb[52].mxu1 %vm3211_vm1, %v18192_v34 }
 0x1f7   : > { %6404 = vrot.lane.b32.xlu1 %v13539_v41, %s15592_s12  ;;  %v3167_v20 = vsel %vm1257_vm5, %v13193_v3, %v3024_v9  ;;  %v18328_v8 = vsel %vm16671_vm10, %v5951_v51, %v5952_v44  ;;  %v1837_v37 = vrot.slane %v1729_v6, 6  ;;  %v1840_v1 = vrot.slane %v1730_v5, 6  ;;  %v3122_v41 = vpop.permute.xlu1 %3121  ;;  %v18361_v5 = vld [vmem:[#allocation2 + $0x38c] sm:$0xf]  ;;  %v3845_v51 = vld [vmem:[#allocation2 + $0x390] sm:$0x1]  ;;  %14378 = vmatprep.mubr.msk.bf16.mxu1 %vm3211_vm1, %v3196_v40 }
 0x1f8   : > { %v13525_v63 = vcombine.low %v18312_v62, %v18328_v8  ;;  %v18340_v14 = vsel %vm17490_vm13, %v1846_v17, %v1847_v50  ;;  %v13493_v3 = vrot.slane %v6031_v53, 11  ;;  %v6157_v25 = vrot.slane %v6032_v32, 7  ;;  %v3120_v54 = vpop.permute.xlu0 %3119  ;;  %v1737_v53 = vld [vmem:[#allocation2 + $0x1e0] sm:$0xc] }
 0x1f9   : > { %4245 = vrot.lane.b32.xlu0 %v13330_v58, %s15592_s12  ;;  %v18343_v31 = vsel %vm2432_vm0, %v3170_v42, %v3122_v41  ;;  %v13102_v44 = vcombine.low %v18320_v57, %v18340_v14  ;;  %v18349_v61 = vsel %vm17490_vm13, %v13069_v11, %v1837_v37  ;;  %v1839_v7 = vrot.slane %v1837_v37, 4  ;;  %v5828_v58 = vld [vmem:[#allocation2 + $0x2e8] sm:$0x1]  ;;  %v1738_v11 = vld [vmem:[#allocation2 + $0x1e4] sm:$0xf] }
 0x1fa   : > { %v18357_v33 = vsel %vm16535_vm7, %v13493_v3, %v6157_v25  ;;  %v6159_v38 = vrot.slane %v6157_v25, 4  ;;  %v6160_v4 = vrot.slane %v6033_v45, 7  ;;  %v13332_v6 = vcombine.low %v18228_v48, %v18330_v0  ;;  %v1734_v37 = vld [vmem:[#allocation2 + $0x1c4] sm:$0xc]  ;;  %v1736_v3 = vld [vmem:[#allocation2 + $0x1cc] sm:$0x3] }
 0x1fb   : > { %6326 = vrot.lane.b32.xlu1 %v13524_v30, %s15593_s17  ;;  %v18366_v42 = vsel %vm2432_vm0, %v3167_v20, %v3120_v54  ;;  %v18370_v13 = vsel %vm17490_vm13, %v1839_v7, %v1840_v1  ;;  %v13478_v22 = vrot.slane %v5826_v56, 9  ;;  %v5956_v30 = vrot.slane %v5827_v49, 5  ;;  %v2259_v32 = vpop.permute.xlu1 %2258  ;;  %v1739_v20 = vld [vmem:[#allocation2 + $0x1e8] sm:$0x3]  ;;  %v3846_v49 = vld [vmem:[#allocation2 + $0x3a4] sm:$0xe] }
 0x1fc   : > { %v13101_v34 = vcombine.low %v18349_v61, %v18370_v13  ;;  %v18381_v9 = vsel %vm16535_vm7, %v6159_v38, %v6160_v4  ;;  %v5959_v17 = vrot.slane %v5828_v58, 5  ;;  %v13285_v50 = vrot.slane %v3843_v15, 9  ;;  %v1735_v1 = vld [vmem:[#allocation2 + $0x1c8] sm:$0xf]  ;;  %v2257_v45 = vpop.permute.xlu0 %2256  ;;  %v6037_v48 = vld [vmem:[#allocation2 + $0x300] sm:$0x8] }
 0x1fd   : > { %4151 = vrot.lane.b32.xlu0 %v13315_v21, %s15593_s17  ;;  %v2389_v40 = vsel %vm1257_vm5, %v13100_v28, %v2259_v32  ;;  %v13541_v2 = vcombine.low %v18357_v33, %v18381_v9  ;;  %v18391_v29 = vsel %vm16671_vm10, %v13478_v22, %v5956_v30  ;;  %v5958_v21 = vrot.slane %v5956_v30, 4  ;;  %v18420_v58 = vld [vmem:[#allocation2 + $0x3a8] sm:$0xf]  ;;  %v6034_v33 = vld [vmem:[#allocation2 + $0x2e4] sm:$0x8] }
 0x1fe   : > { %v3973_v36 = vrot.slane %v18361_v5, 5  ;;  %v3976_v59 = vrot.slane %v3845_v51, 5  ;;  %v3447_v28 = vsel %vm3244_vm14, %v18136_v27, 0  ;;  %v13072_v41 = vrot.slane %v1737_v53, 10  ;;  %v6035_v53 = vld [vmem:[#allocation2 + $0x2e8] sm:$0xf]  ;;  %14379 = vmatmul.mubr.msk.bf16.gmra.mrb[56].mxu1 %vm3211_vm1, %v18270_v23 }
 0x1ff   : > { %4247 = vrot.lane.b32.xlu1 %v13331_v46, %s15592_s12  ;;  %v2386_v25 = vsel %vm1257_vm5, %v13099_v16, %v2257_v45  ;;  %v18406_v56 = vsel %vm16671_vm10, %v5958_v21, %v5959_v17  ;;  %14387 = vmatpush3.bf16.msra.mxu1 %v3447_v28  ;;  %v1858_v35 = vrot.slane %v1738_v11, 6  ;;  %v1861_v60 = vrot.slane %v1739_v20, 6  ;;  %v18408_v46 = vld [vmem:[#allocation2 + $0x390] sm:$0xf]  ;;  %v2355_v27 = vpop.permute.xlu1 %2354  ;;  %v6036_v32 = vld [vmem:[#allocation2 + $0x2ec] sm:$0x7] }
 0x200   : > { %v13526_v10 = vcombine.low %v18391_v29, %v18406_v56  ;;  %v18418_v55 = vsel %vm16671_vm10, %v13285_v50, %v3973_v36  ;;  %v3975_v16 = vrot.slane %v3973_v36, 4  ;;  %v13071_v7 = vrot.slane %v1734_v37, 10  ;;  %v2353_v38 = vpop.permute.xlu0 %2352  ;;  %v5829_v17 = vld [vmem:[#allocation2 + $0x2fc] sm:$0xe]  ;;  %v5830_v50 = vld [vmem:[#allocation2 + $0x300] sm:$0xf]  ;;  %14382 = vmatprep.mubr.msk.bf16.mxu1 %vm3211_vm1, %v18366_v42 }
 0x201   : > { %4153 = vrot.lane.b32.xlu0 %v13316_v43, %s15593_s17  ;;  %v18423_v15 = vsel %vm2432_vm0, %v2389_v40, %v2355_v27  ;;  %v18427_v54 = vsel %vm17490_vm13, %v13072_v41, %v1858_v35  ;;  %v1860_v26 = vrot.slane %v1858_v35, 4  ;;  %v1851_v19 = vrot.slane %v1735_v1, 6  ;;  %v3848_v43 = vld [vmem:[#allocation2 + $0x3ac] sm:$0x1]  ;;  %v5831_v37 = vld [vmem:[#allocation2 + $0x304] sm:$0x1] }
 0x202   : > { %v18435_v4 = vsel %vm16671_vm10, %v3975_v16, %v3976_v59  ;;  %v1854_v22 = vrot.slane %v1736_v3, 6  ;;  %v13333_v30 = vcombine.low %v18361_v5, %v18408_v46  ;;  %v13286_v51 = vrot.slane %v3846_v49, 9  ;;  %v1743_v59 = vld [vmem:[#allocation2 + $0x218] sm:$0xc]  ;;  %v1744_v3 = vld [vmem:[#allocation2 + $0x21c] sm:$0xf] }
 0x203   : > { %6406 = vrot.lane.b32.xlu1 %v13540_v24, %s15592_s12  ;;  %v2434_v9 = vsel %vm2432_vm0, %v2386_v25, %v2353_v38  ;;  %v13317_v47 = vcombine.low %v18418_v55, %v18435_v4  ;;  %v18446_v39 = vsel %vm17490_vm13, %v1860_v26, %v1861_v60  ;;  %v18450_v24 = vsel %vm17490_vm13, %v13071_v7, %v1851_v19  ;;  %v2263_v23 = vpop.permute.xlu1 %2262  ;;  %v1745_v25 = vld [vmem:[#allocation2 + $0x220] sm:$0x3]  ;;  %v1740_v35 = vld [vmem:[#allocation2 + $0x1fc] sm:$0xc]  ;;  %v1742_v26 = vld [vmem:[#allocation2 + $0x204] sm:$0x3] }
 0x204   : > { %v13104_v11 = vcombine.low %v18427_v54, %v18446_v39  ;;  %v1853_v20 = vrot.slane %v1851_v19, 4  ;;  %v3980_v40 = vrot.slane %v18420_v58, 5  ;;  %v3983_v21 = vrot.slane %v3848_v43, 5  ;;  %v2261_v62 = vpop.permute.xlu0 %2260  ;;  %v1741_v27 = vld [vmem:[#allocation2 + $0x200] sm:$0xf] }
 0x205   : > { %6328 = vrot.lane.b32.xlu0 %v13525_v63, %s15593_s17  ;;  %v2395_v1 = vsel %vm1257_vm5, %v13102_v44, %v2263_v23  ;;  %v13494_v42 = vrot.slane %v6034_v33, 11  ;;  %v6164_v45 = vrot.slane %v6035_v53, 7  ;;  %v6167_v36 = vrot.slane %v6036_v32, 7  ;;  %v6038_v38 = vld [vmem:[#allocation2 + $0x304] sm:$0xf] }
 0x206   : > { %v1855_v8 = vsel %vm17490_vm13, %v1853_v20, %v1854_v22  ;;  %v18470_v63 = vsel %vm16671_vm10, %v13286_v51, %v3980_v40  ;;  %v3982_v28 = vrot.slane %v3980_v40, 4  ;;  %v13479_v41 = vrot.slane %v5829_v17, 9  ;;  %14383 = vmatmul.mubr.msk.bf16.gmra.mrb[60].mxu1 %vm3211_vm1, %v18343_v31  ;;  %v18509_v51 = vld [vmem:[#allocation2 + $0x3ac] sm:$0xf]  ;;  %v5832_v17 = vld [vmem:[#allocation2 + $0x318] sm:$0xe] }
 0x207   : > { %6408 = vrot.lane.b32.xlu1 %v13541_v2, %s15592_s12  ;;  %v2392_v57 = vsel %vm1257_vm5, %v13101_v34, %v2261_v62  ;;  %v13103_v14 = vcombine.low %v18450_v24, %v1855_v8  ;;  %v18479_v44 = vsel %vm16535_vm7, %v13494_v42, %v6164_v45  ;;  %v6166_v2 = vrot.slane %v6164_v45, 4  ;;  %v2359_v60 = vpop.permute.xlu1 %2358  ;;  %14388 = vmatprep.mubr.msk.bf16.mxu1 %vm3211_vm1, %v2434_v9  ;;  %v5834_v9 = vld [vmem:[#allocation2 + $0x320] sm:$0x1]  ;;  %v3849_v45 = vld [vmem:[#allocation2 + $0x3c0] sm:$0xe] }
 0x208   : > { %v3984_v61 = vsel %vm16671_vm10, %v3982_v28, %v3983_v21  ;;  %v5963_v13 = vrot.slane %v5830_v50, 5  ;;  %v5966_v34 = vrot.slane %v5831_v37, 5  ;;  %v13074_v49 = vrot.slane %v1743_v59, 10  ;;  %v2357_v0 = vpop.permute.xlu0 %2356  ;;  %v5833_v21 = vld [vmem:[#allocation2 + $0x31c] sm:$0xf] }
 0x209   : > { %4249 = vrot.lane.b32.xlu0 %v13332_v6, %s15592_s12  ;;  %v18488_v55 = vsel %vm2432_vm0, %v2395_v1, %v2359_v60  ;;  %v13318_v16 = vcombine.low %v18470_v63, %v3984_v61  ;;  %v6168_v7 = vsel %vm16535_vm7, %v6166_v2, %v6167_v36  ;;  %v1872_v54 = vrot.slane %v1744_v3, 6  ;;  %v18526_v36 = vld [vmem:[#allocation2 + $0x3c4] sm:$0xf]  ;;  %v3851_v46 = vld [vmem:[#allocation2 + $0x3c8] sm:$0x1] }
 0x20a   : > { %v13542_v6 = vcombine.low %v18479_v44, %v6168_v7  ;;  %v18500_v19 = vsel %vm16671_vm10, %v13479_v41, %v5963_v13  ;;  %v5965_v43 = vrot.slane %v5963_v13, 4  ;;  %v1875_v33 = vrot.slane %v1745_v25, 6  ;;  %v1750_v44 = vld [vmem:[#allocation2 + $0x254] sm:$0xf] }
 0x20b   : > { %6330 = vrot.lane.b32.xlu1 %v13526_v10, %s15593_s17  ;;  %v2438_v4 = vsel %vm2432_vm0, %v2392_v57, %v2357_v0  ;;  %v18507_v22 = vsel %vm17490_vm13, %v13074_v49, %v1872_v54  ;;  %v1874_v29 = vrot.slane %v1872_v54, 4  ;;  %v13073_v56 = vrot.slane %v1740_v35, 10  ;;  %v6039_v10 = vld [vmem:[#allocation2 + $0x308] sm:$0x7]  ;;  %v2267_v53 = vpop.permute.xlu1 %2266  ;;  %v1751_v35 = vld [vmem:[#allocation2 + $0x258] sm:$0x3] }
 0x20c   : > { %v5967_v32 = vsel %vm16671_vm10, %v5965_v43, %v5966_v34  ;;  %v1865_v31 = vrot.slane %v1741_v27, 6  ;;  %v1868_v39 = vrot.slane %v1742_v26, 6  ;;  %v13495_v24 = vrot.slane %v6037_v48, 11  ;;  %v2265_v37 = vpop.permute.xlu0 %2264  ;;  %v1746_v27 = vld [vmem:[#allocation2 + $0x234] sm:$0xc] }
 0x20d   : > { %4155 = vrot.lane.b32.xlu0 %v13317_v47, %s15593_s17  ;;  %v2401_v50 = vsel %vm1257_vm5, %v13104_v11, %v2267_v53  ;;  %v13527_v23 = vcombine.low %v18500_v19, %v5967_v32  ;;  %v1876_v20 = vsel %vm17490_vm13, %v1874_v29, %v1875_v33  ;;  %v6171_v40 = vrot.slane %v6038_v38, 7  ;;  %v1748_v0 = vld [vmem:[#allocation2 + $0x23c] sm:$0x3]  ;;  %v3854_v53 = vld [vmem:[#allocation2 + $0x3e4] sm:$0x1] }
 0x20e   : > { %v13106_v47 = vcombine.low %v18507_v22, %v1876_v20  ;;  %v1866_v1 = vsel %vm17490_vm13, %v13073_v56, %v1865_v31  ;;  %v1867_v11 = vrot.slane %v1865_v31, 4  ;;  %v6174_v42 = vrot.slane %v6039_v10, 7  ;;  %14389 = vmatmul.mubr.msk.bf16.vlgmr.msra.gmra.mrb[32].mxu1 %vm3211_vm1, %v18423_v15  ;;  %v4037_v15 = vld [vmem:[#allocation2 + $0x3c8] sm:$0xf]  ;;  %v3852_v22 = vld [vmem:[#allocation2 + $0x3dc] sm:$0xe] }
 0x20f   : > { %4251 = vrot.lane.b32.xlu1 %v13333_v30, %s15592_s12  ;;  %v2398_v59 = vsel %vm1257_vm5, %v13103_v14, %v2265_v37  ;;  %v6172_v62 = vsel %vm16535_vm7, %v13495_v24, %v6171_v40  ;;  %v6173_v8 = vrot.slane %v6171_v40, 4  ;;  %v13334_v5 = vcombine.low %v18420_v58, %v18509_v51  ;;  %v1749_v30 = vld [vmem:[#allocation2 + $0x250] sm:$0xc]  ;;  %v2363_v63 = vpop.permute.xlu1 %2362  ;;  %14392 = vmatprep.mubr.msk.bf16.mxu1 %vm3211_vm1, %v2438_v4  ;;  %v18557_v51 = vld [vmem:[#allocation2 + $0x3e0] sm:$0xf] }
 0x210   : > { %v1869_v28 = vsel %vm17490_vm13, %v1867_v11, %v1868_v39  ;;  %v13480_v41 = vrot.slane %v5832_v17, 9  ;;  %v5970_v3 = vrot.slane %v5833_v21, 5  ;;  %v5973_v57 = vrot.slane %v5834_v9, 5  ;;  %v2361_v60 = vpop.permute.xlu0 %2360  ;;  %v6041_v9 = vld [vmem:[#allocation2 + $0x320] sm:$0xf] }
 0x211   : > { %4157 = vrot.lane.b32.xlu0 %v13318_v16, %s15593_s17  ;;  %v18537_v14 = vsel %vm2432_vm0, %v2401_v50, %v2363_v63  ;;  %v13105_v2 = vcombine.low %v1866_v1, %v1869_v28  ;;  %v6175_v25 = vsel %vm16535_vm7, %v6173_v8, %v6174_v42  ;;  %v13287_v58 = vrot.slane %v3849_v45, 9  ;;  %v1747_v16 = vld [vmem:[#allocation2 + $0x238] sm:$0xf]  ;;  %v6040_v50 = vld [vmem:[#allocation2 + $0x31c] sm:$0x8] }
 0x212   : > { %v13543_v61 = vcombine.low %v6172_v62, %v6175_v25  ;;  %v5971_v13 = vsel %vm16671_vm10, %v13480_v41, %v5970_v3  ;;  %v5972_v34 = vrot.slane %v5970_v3, 4  ;;  %v3987_v49 = vrot.slane %v18526_v36, 5  ;;  %v6042_v37 = vld [vmem:[#allocation2 + $0x324] sm:$0x7]  ;;  %v5836_v62 = vld [vmem:[#allocation2 + $0x338] sm:$0xf] }
 0x213   : > { %6410 = vrot.lane.b32.xlu1 %v13542_v6, %s15592_s12  ;;  %v2442_v7 = vsel %vm2432_vm0, %v2398_v59, %v2361_v60  ;;  %v3990_v54 = vrot.slane %v3851_v46, 5  ;;  %v13076_v26 = vrot.slane %v1749_v30, 10  ;;  %v1886_v48 = vrot.slane %v1750_v44, 6  ;;  %v2271_v6 = vpop.permute.xlu1 %2270  ;;  %v5837_v8 = vld [vmem:[#allocation2 + $0x33c] sm:$0x1] }
 0x214   : > { %v5974_v19 = vsel %vm16671_vm10, %v5972_v34, %v5973_v57  ;;  %v3988_v43 = vsel %vm16671_vm10, %v13287_v58, %v3987_v49  ;;  %v3989_v33 = vrot.slane %v3987_v49, 4  ;;  %v1889_v38 = vrot.slane %v1751_v35, 6  ;;  %v2269_v32 = vpop.permute.xlu0 %2268  ;;  %v1755_v28 = vld [vmem:[#allocation2 + $0x288] sm:$0xc] }
 0x215   : > { %6332 = vrot.lane.b32.xlu0 %v13527_v23, %s15593_s17  ;;  %v2407_v29 = vsel %vm1257_vm5, %v13106_v47, %v2271_v6  ;;  %v13528_v56 = vcombine.low %v5971_v13, %v5974_v19  ;;  %v1887_v10 = vsel %vm17490_vm13, %v13076_v26, %v1886_v48  ;;  %v1888_v4 = vrot.slane %v1886_v48, 4  ;;  %v5835_v47 = vld [vmem:[#allocation2 + $0x334] sm:$0xe]  ;;  %v1753_v6 = vld [vmem:[#allocation2 + $0x270] sm:$0xf] }
 0x216   : > { %v3991_v31 = vsel %vm16671_vm10, %v3989_v33, %v3990_v54  ;;  %v13075_v39 = vrot.slane %v1746_v27, 10  ;;  %v1879_v24 = vrot.slane %v1747_v16, 6  ;;  %v1882_v17 = vrot.slane %v1748_v0, 6  ;;  %14393 = vmatmul.mubr.msk.bf16.gmra.mrb[36].mxu1 %vm3211_vm1, %v18488_v55  ;;  %v1757_v16 = vld [vmem:[#allocation2 + $0x290] sm:$0x3] }
 0x217   : > { %6412 = vrot.lane.b32.xlu1 %v13543_v61, %s15592_s12  ;;  %v2404_v23 = vsel %vm1257_vm5, %v13105_v2, %v2269_v32  ;;  %v13319_v20 = vcombine.low %v3988_v43, %v3991_v31  ;;  %v1890_v40 = vsel %vm17490_vm13, %v1888_v4, %v1889_v38  ;;  %v13335_v21 = vcombine.low %v18526_v36, %v4037_v15  ;;  %v2367_v1 = vpop.permute.xlu1 %2366  ;;  %v1756_v2 = vld [vmem:[#allocation2 + $0x28c] sm:$0xf]  ;;  %v1754_v15 = vld [vmem:[#allocation2 + $0x274] sm:$0x3]  ;;  %v6045_v32 = vld [vmem:[#allocation2 + $0x340] sm:$0x7] }
 0x218   : > { %v13108_v11 = vcombine.low %v1887_v10, %v1890_v40  ;;  %v1880_v42 = vsel %vm17490_vm13, %v13075_v39, %v1879_v24  ;;  %v1881_v45 = vrot.slane %v1879_v24, 4  ;;  %v13288_v59 = vrot.slane %v3852_v22, 9  ;;  %v2365_v41 = vpop.permute.xlu0 %2364  ;;  %14396 = vmatprep.mubr.msk.bf16.mxu1 %vm3211_vm1, %v2442_v7  ;;  %v1752_v0 = vld [vmem:[#allocation2 + $0x26c] sm:$0xc]  ;;  %v6043_v22 = vld [vmem:[#allocation2 + $0x338] sm:$0x8] }
 0x219   : > { %4253 = vrot.lane.b32.xlu0 %v13334_v5, %s15592_s12  ;;  %v18570_v46 = vsel %vm2432_vm0, %v2407_v29, %v2367_v1  ;;  %v3994_v30 = vrot.slane %v18557_v51, 5  ;;  %v3997_v36 = vrot.slane %v3854_v53, 5  ;;  %v13496_v63 = vrot.slane %v6040_v50, 11  ;;  %v6044_v53 = vld [vmem:[#allocation2 + $0x33c] sm:$0xf] }
 0x21a   : > { %v1883_v5 = vsel %vm17490_vm13, %v1881_v45, %v1882_v17  ;;  %v6178_v3 = vrot.slane %v6041_v9, 7  ;;  %v6181_v57 = vrot.slane %v6042_v37, 7  ;;  %v13481_v44 = vrot.slane %v5835_v47, 9  ;;  %v5838_v37 = vld [vmem:[#allocation2 + $0x350] sm:$0xe] }
 0x21b   : > { %6334 = vrot.lane.b32.xlu1 %v13528_v56, %s15593_s17  ;;  %v2446_v25 = vsel %vm2432_vm0, %v2404_v23, %v2365_v41  ;;  %v13107_v58 = vcombine.low %v1880_v42, %v1883_v5  ;;  %v3995_v35 = vsel %vm16671_vm10, %v13288_v59, %v3994_v30  ;;  %v3996_v60 = vrot.slane %v3994_v30, 4  ;;  %v2275_v61 = vpop.permute.xlu1 %2274  ;;  %v4038_v23 = vld [vmem:[#allocation2 + $0x3e4] sm:$0xf]  ;;  %v5839_v47 = vld [vmem:[#allocation2 + $0x354] sm:$0xf] }
 0x21c   : > { %v6179_v13 = vsel %vm16535_vm7, %v13496_v63, %v6178_v3  ;;  %v6180_v34 = vrot.slane %v6178_v3, 4  ;;  %v5977_v49 = vrot.slane %v5836_v62, 5  ;;  %v5980_v27 = vrot.slane %v5837_v8, 5  ;;  %v2273_v7 = vpop.permute.xlu0 %2272  ;;  %v5840_v62 = vld [vmem:[#allocation2 + $0x358] sm:$0x1] }
 0x21d   : > { %4159 = vrot.lane.b32.xlu0 %v13319_v20, %s15593_s17  ;;  %v2413_v55 = vsel %vm1257_vm5, %v13108_v11, %v2275_v61  ;;  %v3998_v54 = vsel %vm16671_vm10, %v3996_v60, %v3997_v36  ;;  %v13078_v26 = vrot.slane %v1755_v28, 10  ;;  %v1900_v48 = vrot.slane %v1756_v2, 6  ;;  %v3855_v8 = vld [vmem:[#allocation2 + $0x3f8] sm:$0xe]  ;;  %v18613_v41 = vld [vmem:[#allocation2 + $0x3fc] sm:$0xf] }
 0x21e   : > { %v13320_v19 = vcombine.low %v3995_v35, %v3998_v54  ;;  %v6182_v43 = vsel %vm16535_vm7, %v6180_v34, %v6181_v57  ;;  %v5978_v33 = vsel %vm16671_vm10, %v13481_v44, %v5977_v49  ;;  %v5979_v38 = vrot.slane %v5977_v49, 4  ;;  %14397 = vmatmul.mubr.msk.bf16.gmra.mrb[40].mxu1 %vm3211_vm1, %v18537_v14  ;;  %v3857_v5 = vld [vmem:[#allocation2 + $0x400] sm:$0x1]  ;;  %v1762_v35 = vld [vmem:[#allocation2 + $0x2c4] sm:$0xf] }
 0x21f   : > { %4255 = vrot.lane.b32.xlu1 %v13335_v21, %s15592_s12  ;;  %v2410_v29 = vsel %vm1257_vm5, %v13107_v58, %v2273_v7  ;;  %v13544_v56 = vcombine.low %v6179_v13, %v6182_v43  ;;  %v1901_v10 = vsel %vm17490_vm13, %v13078_v26, %v1900_v48  ;;  %v1902_v4 = vrot.slane %v1900_v48, 4  ;;  %v2371_v31 = vpop.permute.xlu1 %2370  ;;  %14400 = vmatprep.mubr.msk.bf16.mxu1 %vm3211_vm1, %v2446_v25  ;;  %v1761_v58 = vld [vmem:[#allocation2 + $0x2c0] sm:$0xc]  ;;  %v1763_v34 = vld [vmem:[#allocation2 + $0x2c8] sm:$0x3] }
 0x220   : > { %v5981_v39 = vsel %vm16671_vm10, %v5979_v38, %v5980_v27  ;;  %v1903_v24 = vrot.slane %v1757_v16, 6  ;;  %v13077_v17 = vrot.slane %v1752_v0, 10  ;;  %v1893_v50 = vrot.slane %v1753_v6, 6  ;;  %v2369_v1 = vpop.permute.xlu0 %2368  ;;  %v1758_v25 = vld [vmem:[#allocation2 + $0x2a4] sm:$0xc] }
 0x221   : > { %4161 = vrot.lane.b32.xlu0 %v13320_v19, %s15593_s17  ;;  %v18600_v20 = vsel %vm2432_vm0, %v2413_v55, %v2371_v31  ;;  %v13529_v40 = vcombine.low %v5978_v33, %v5981_v39  ;;  %v1896_v21 = vrot.slane %v1754_v15, 6  ;;  %v13497_v9 = vrot.slane %v6043_v22, 11  ;;  %v1759_v26 = vld [vmem:[#allocation2 + $0x2a8] sm:$0xf]  ;;  %v1760_v48 = vld [vmem:[#allocation2 + $0x2ac] sm:$0x3] }
 0x222   : > { %v1904_v11 = vsel %vm17490_vm13, %v1902_v4, %v1903_v24  ;;  %v1894_v42 = vsel %vm17490_vm13, %v13077_v17, %v1893_v50  ;;  %v1895_v45 = vrot.slane %v1893_v50, 4  ;;  %v6185_v59 = vrot.slane %v6044_v53, 7  ;;  %v18628_v43 = vld [vmem:[#allocation2 + $0x400] sm:$0xf]  ;;  %v18630_v33 = vld [vmem:[#allocation11 + $0x8] sm:$0x3f]  }
 0x223   : > { %6414 = vrot.lane.b32.xlu1 %v13544_v56, %s15592_s12  ;;  %v18610_v30 = vsel %vm2432_vm0, %v2410_v29, %v2369_v1  ;;  %v13110_v36 = vcombine.low %v1901_v10, %v1904_v11  ;;  %v6188_v63 = vrot.slane %v6045_v32, 7  ;;  %v13336_v28 = vcombine.low %v18557_v51, %v4038_v23  ;;  %v2279_v3 = vpop.permute.xlu1 %2278  ;;  %v3858_v10 = vld [vmem:[#allocation2 + $0x414] sm:$0xe]  ;;  %v18641_v39 = vld [vmem:[#allocation2 + $0x418] sm:$0xf]  ;;  %15165 = vmatprep.subr.msk.bf16.mxu0 %vm3244_vm14, %v18630_v33 }
 0x224   : > { %v1897_v57 = vsel %vm17490_vm13, %v1895_v45, %v1896_v21  ;;  %v6186_v14 = vsel %vm16535_vm7, %v13497_v9, %v6185_v59  ;;  %v6187_v44 = vrot.slane %v6185_v59, 4  ;;  %v13482_v2 = vrot.slane %v5838_v37, 9  ;;  %v2277_v49 = vpop.permute.xlu0 %2276  ;;  %v3860_v24 = vld [vmem:[#allocation2 + $0x41c] sm:$0x1]  ;;  %v6046_v9 = vld [vmem:[#allocation2 + $0x354] sm:$0x8] }
 0x225   : > { %6336 = vrot.lane.b32.xlu0 %v13529_v40, %s15593_s17  ;;  %v2419_v51 = vsel %vm1257_vm5, %v13110_v36, %v2279_v3  ;;  %v13109_v60 = vcombine.low %v1894_v42, %v1897_v57  ;;  %v5984_v61 = vrot.slane %v5839_v47, 5  ;;  %v5987_v13 = vrot.slane %v5840_v62, 5  ;;  %v6047_v37 = vld [vmem:[#allocation2 + $0x358] sm:$0xf]  ;;  %v6048_v45 = vld [vmem:[#allocation2 + $0x35c] sm:$0x7] }
 0x226   : > { %v6189_v27 = vsel %vm16535_vm7, %v6187_v44, %v6188_v63  ;;  %v13289_v16 = vrot.slane %v3855_v8, 9  ;;  %v4001_v55 = vrot.slane %v18613_v41, 5  ;;  %v4004_v54 = vrot.slane %v3857_v5, 5  ;;  %14401 = vmatmul.mubr.msk.bf16.gmra.mrb[44].mxu1 %vm3211_vm1, %v18570_v46  ;;  %v5841_v59 = vld [vmem:[#allocation2 + $0x36c] sm:$0xe] }
 0x227   : > { %v2416_v0 = vsel %vm1257_vm5, %v13109_v60, %v2277_v49  ;;  %v13545_v6 = vcombine.low %v6186_v14, %v6189_v27  ;;  %v5985_v7 = vsel %vm16671_vm10, %v13482_v2, %v5984_v61  ;;  %v5986_v19 = vrot.slane %v5984_v61, 4  ;;  %v2375_v38 = vpop.permute.xlu1 %2374  ;;  %14404 = vmatprep.mubr.msk.bf16.mxu1 %vm3211_vm1, %v18610_v30  ;;  %v5843_v5 = vld [vmem:[#allocation2 + $0x374] sm:$0x1]  ;;  %v1767_v44 = vld [vmem:[#allocation2 + $0x2f8] sm:$0xc] }
 0x228   : > { %v4002_v15 = vsel %vm16671_vm10, %v13289_v16, %v4001_v55  ;;  %v4003_v22 = vrot.slane %v4001_v55, 4  ;;  %v13080_v29 = vrot.slane %v1761_v58, 10  ;;  %v1914_v56 = vrot.slane %v1762_v35, 6  ;;  %v2373_v17 = vpop.permute.xlu0 %2372  ;;  %v18668_v49 = vld [vmem:[#allocation8 + $0x10] sm:$0x3f]  }
 0x229   : > { %4257 = vrot.lane.b32.xlu0 %v13336_v28, %s15592_s12  ;;  %6416 = vrot.lane.b32.xlu1 %v13545_v6, %s15592_s12  ;;  %v18637_v4 = vsel %vm2432_vm0, %v2419_v51, %v2375_v38  ;;  %v5988_v53 = vsel %vm16671_vm10, %v5986_v19, %v5987_v13  ;;  %v1917_v32 = vrot.slane %v1763_v34, 6  ;;  %v13079_v31 = vrot.slane %v1758_v25, 10  ;;  %v5842_v28 = vld [vmem:[#allocation2 + $0x370] sm:$0xf]  ;;  %v1768_v25 = vld [vmem:[#allocation2 + $0x2fc] sm:$0xf] }
 0x22a   : > { %v13530_v50 = vcombine.low %v5985_v7, %v5988_v53  ;;  %v4005_v23 = vsel %vm16671_vm10, %v4003_v22, %v4004_v54  ;;  %v1915_v40 = vsel %vm17490_vm13, %v13080_v29, %v1914_v56  ;;  %v1916_v21 = vrot.slane %v1914_v56, 4  ;;  %v1765_v38 = vld [vmem:[#allocation2 + $0x2e0] sm:$0xf]  ;;  %15164 = vmatprep.subr.msk.bf16.mxu1 %vm3244_vm14, %v18668_v49 }
 0x22b   : > { %v2454_v47 = vsel %vm2432_vm0, %v2416_v0, %v2373_v17  ;;  %v13321_v1 = vcombine.low %v4002_v15, %v4005_v23  ;;  %v1907_v11 = vrot.slane %v1759_v26, 6  ;;  %v1910_v42 = vrot.slane %v1760_v48, 6  ;;  %v2283_v8 = vpop.permute.xlu1 %2282  ;;  %v1769_v48 = vld [vmem:[#allocation2 + $0x300] sm:$0x3]  ;;  %v1764_v0 = vld [vmem:[#allocation2 + $0x2dc] sm:$0xc] }
 0x22c   : > { %v1918_v62 = vsel %vm17490_vm13, %v1916_v21, %v1917_v32  ;;  %v13337_v36 = vcombine.low %v18613_v41, %v18628_v43  ;;  %v13290_v63 = vrot.slane %v3858_v10, 9  ;;  %v4008_v46 = vrot.slane %v18641_v39, 5  ;;  %v2281_v2 = vpop.permute.xlu0 %2280  ;;  %v1766_v15 = vld [vmem:[#allocation2 + $0x2e4] sm:$0x3]  ;;  %v6049_v32 = vld [vmem:[#allocation2 + $0x370] sm:$0x8] }
 0x22d   : > { %6338 = vrot.lane.b32.xlu1 %v13530_v50, %s15593_s17  ;;  %4163 = vrot.lane.b32.xlu0 %v13321_v1, %s15593_s17  ;;  %v13112_v3 = vcombine.low %v1915_v40, %v1918_v62  ;;  %v1908_v30 = vsel %vm17490_vm13, %v13079_v31, %v1907_v11  ;;  %v1909_v57 = vrot.slane %v1907_v11, 4  ;;  %v4011_v14 = vrot.slane %v3860_v24, 5  ;;  %v6050_v31 = vld [vmem:[#allocation2 + $0x374] sm:$0xf]  ;;  %v6051_v40 = vld [vmem:[#allocation2 + $0x378] sm:$0x7] }
 0x22e   : > { %v4009_v41 = vsel %vm16671_vm10, %v13290_v63, %v4008_v46  ;;  %v4010_v58 = vrot.slane %v4008_v46, 4  ;;  %v13498_v35 = vrot.slane %v6046_v9, 11  ;;  %v6192_v51 = vrot.slane %v6047_v37, 7  ;;  %14405 = vmatmul.mubr.msk.bf16.gmra.mrb[48].mxu1 %vm3211_vm1, %v18600_v20  ;;  %v4040_v21 = vld [vmem:[#allocation2 + $0x41c] sm:$0xf] }
 0x22f   : > { %v2425_v60 = vsel %vm1257_vm5, %v13112_v3, %v2283_v8  ;;  %v1911_v61 = vsel %vm17490_vm13, %v1909_v57, %v1910_v42  ;;  %v6195_v13 = vrot.slane %v6048_v45, 7  ;;  %v13483_v34 = vrot.slane %v5841_v59, 9  ;;  %v2379_v55 = vpop.permute.xlu1 %2378  ;;  %14408 = vmatprep.mubr.msk.bf16.mxu1 %vm3211_vm1, %v2454_v47  ;;  %v5844_v45 = vld [vmem:[#allocation2 + $0x388] sm:$0xe]  ;;  %v5846_v3 = vld [vmem:[#allocation2 + $0x390] sm:$0x1] }
 0x230   : > { %v13111_v27 = vcombine.low %v1908_v30, %v1911_v61  ;;  %v4012_v16 = vsel %vm16671_vm10, %v4010_v58, %v4011_v14  ;;  %v6193_v54 = vsel %vm16535_vm7, %v13498_v35, %v6192_v51  ;;  %v6194_v26 = vrot.slane %v6192_v51, 4  ;;  %v2377_v29 = vpop.permute.xlu0 %2376  ;;  %v3861_v30 = vld [vmem:[#allocation2 + $0x430] sm:$0xe]  ;;  %v3863_v58 = vld [vmem:[#allocation2 + $0x438] sm:$0x1] }
 0x231   : > { %4259 = vrot.lane.b32.xlu1 %v13337_v36, %s15592_s12  ;;  %v13322_v6 = vcombine.low %v4009_v41, %v4012_v16  ;;  %v18676_v7 = vsel %vm2432_vm0, %v2425_v60, %v2379_v55  ;;  %v5991_v19 = vrot.slane %v5842_v28, 5  ;;  %v5994_v43 = vrot.slane %v5843_v5, 5  ;;  %v5845_v36 = vld [vmem:[#allocation2 + $0x38c] sm:$0xf]  ;;  %v18700_v41 = vld [vmem:[#allocation2 + $0x434] sm:$0xf] }
 0x232   : > { %v2422_v22 = vsel %vm1257_vm5, %v13111_v27, %v2281_v2  ;;  %v6196_v56 = vsel %vm16535_vm7, %v6194_v26, %v6195_v13  ;;  %v13082_v10 = vrot.slane %v1767_v44, 10  ;;  %v1928_v53 = vrot.slane %v1768_v25, 6  ;;  %v5595_v55 = vld [vmem:[#allocation2 + $0x1fc] sm:$0xf] }
 0x233   : > { %4165 = vrot.lane.b32.xlu0 %v13322_v6, %s15593_s17  ;;  %v2458_v24 = vsel %vm2432_vm0, %v2422_v22, %v2377_v29  ;;  %v13546_v17 = vcombine.low %v6193_v54, %v6196_v56  ;;  %v5992_v50 = vsel %vm16671_vm10, %v13483_v34, %v5991_v19  ;;  %v5993_v23 = vrot.slane %v5991_v19, 4  ;;  %v2287_v11 = vpop.permute.xlu1 %2286  ;;  %v5594_v34 = vld [vmem:[#allocation2 + $0x1f8] sm:$0x8]  ;;  %v5596_v54 = vld [vmem:[#allocation2 + $0x200] sm:$0x7] }
 0x234   : > { %v1929_v9 = vsel %vm17490_vm13, %v13082_v10, %v1928_v53  ;;  %v1930_v37 = vrot.slane %v1928_v53, 4  ;;  %v1931_v1 = vrot.slane %v1769_v48, 6  ;;  %v13081_v42 = vrot.slane %v1764_v0, 10  ;;  %v2285_v46 = vpop.permute.xlu0 %2284  ;;  %v3613_v10 = vld [vmem:[#allocation2 + $0x2ac] sm:$0x3] }
 0x235   : > { %6418 = vrot.lane.b32.xlu1 %v13546_v17, %s15592_s12  ;;  %v5995_v20 = vsel %vm16671_vm10, %v5993_v23, %v5994_v43  ;;  %v1921_v59 = vrot.slane %v1765_v38, 6  ;;  %v1924_v62 = vrot.slane %v1766_v15, 6  ;;  %v13499_v8 = vrot.slane %v6049_v32, 11  ;;  %v3611_v43 = vld [vmem:[#allocation2 + $0x2a4] sm:$0xc] }
 0x236   : > { %v13531_v63 = vcombine.low %v5992_v50, %v5995_v20  ;;  %v1932_v47 = vsel %vm17490_vm13, %v1930_v37, %v1931_v1  ;;  %v6199_v28 = vrot.slane %v6050_v31, 7  ;;  %v6202_v5 = vrot.slane %v6051_v40, 7  ;;  %v3612_v38 = vld [vmem:[#allocation2 + $0x2a8] sm:$0xf]  ;;  %14409 = vmatmul.mubr.msk.bf16.gmra.mrb[52].mxu1 %vm3211_vm1, %v18637_v4  ;;  %v4041_v23 = vld [vmem:[#allocation2 + $0x438] sm:$0xf] }
 0x237   : > { %v13114_v57 = vcombine.low %v1929_v9, %v1932_v47  ;;  %v1922_v14 = vsel %vm17490_vm13, %v13081_v42, %v1921_v59  ;;  %v1923_v44 = vrot.slane %v1921_v59, 4  ;;  %v13338_v2 = vcombine.low %v18641_v39, %v4040_v21  ;;  %v2383_v60 = vpop.permute.xlu1 %2382  ;;  %14412 = vmatprep.mubr.msk.bf16.mxu1 %vm3211_vm1, %v2458_v24  ;;  %v3864_v37 = vld [vmem:[#allocation2 + $0x44c] sm:$0xe]  ;;  %v18727_v1 = vld [vmem:[#allocation2 + $0x450] sm:$0xf] }
 0x238   : > { %6340 = vrot.lane.b32.xlu0 %v13531_v63, %s15593_s17  ;;  %v6200_v35 = vsel %vm16535_vm7, %v13499_v8, %v6199_v28  ;;  %v6201_v51 = vrot.slane %v6199_v28, 4  ;;  %v13484_v61 = vrot.slane %v5844_v45, 9  ;;  %v5998_v13 = vrot.slane %v5845_v36, 5  ;;  %v3866_v59 = vld [vmem:[#allocation2 + $0x454] sm:$0x1] }
 0x239   : > { %v2431_v25 = vsel %vm1257_vm5, %v13114_v57, %v2287_v11  ;;  %v1925_v27 = vsel %vm17490_vm13, %v1923_v44, %v1924_v62  ;;  %v6001_v16 = vrot.slane %v5846_v3, 5  ;;  %v13291_v39 = vrot.slane %v3861_v30, 9  ;;  %v2381_v6 = vpop.permute.xlu0 %2380  ;;  %v3614_v47 = vld [vmem:[#allocation2 + $0x2c0] sm:$0xc] }
 0x23a   : > { %v13113_v26 = vcombine.low %v1922_v14, %v1925_v27  ;;  %v6203_v48 = vsel %vm16535_vm7, %v6201_v51, %v6202_v5  ;;  %v18711_v0 = vsel %vm2432_vm0, %v2431_v25, %v2383_v60  ;;  %v5999_v19 = vsel %vm16671_vm10, %v13484_v61, %v5998_v13  ;;  %v3616_v14 = vld [vmem:[#allocation2 + $0x2c8] sm:$0x3]  ;;  %v6053_v25 = vld [vmem:[#allocation2 + $0x390] sm:$0xf] }
 0x23b   : > { %v13547_v15 = vcombine.low %v6200_v35, %v6203_v48  ;;  %v6000_v22 = vrot.slane %v5998_v13, 4  ;;  %v4015_v29 = vrot.slane %v18700_v41, 5  ;;  %v4018_v56 = vrot.slane %v3863_v58, 5  ;;  %v6315_v50 = vpop.permute.xlu1 %6314  ;;  %v6052_v35 = vld [vmem:[#allocation2 + $0x38c] sm:$0x8] }
 0x23c   : > { %v2428_v53 = vsel %vm1257_vm5, %v13113_v26, %v2285_v46  ;;  %4261 = vrot.lane.b32.xlu0 %v13338_v2, %s15592_s12  ;;  %v13454_v32 = vrot.slane %v5594_v34, 11  ;;  %v5692_v31 = vrot.slane %v5595_v55, 7  ;;  %v5695_v17 = vrot.slane %v5596_v54, 7  ;;  %v3615_v46 = vld [vmem:[#allocation2 + $0x2c4] sm:$0xf] }
 0x23d   : > { %6420 = vrot.lane.b32.xlu1 %v13547_v15, %s15592_s12  ;;  %v2462_v4 = vsel %vm2432_vm0, %v2428_v53, %v2381_v6  ;;  %v6002_v40 = vsel %vm16671_vm10, %v6000_v22, %v6001_v16  ;;  %v4016_v21 = vsel %vm16671_vm10, %v13291_v39, %v4015_v29  ;;  %v4017_v9 = vrot.slane %v4015_v29, 4  ;;  %v4140_v20 = vpop.permute.xlu0 %4139  ;;  %v15408_v55 = vld [vmem:[%s16521_s26] sm:$0xf]  ;;  %v15409_v54 = vld [vmem:[%s16521_s26 + $0x4] sm:$0xf] }
 0x23e   : > { %v13532_v24 = vcombine.low %v5999_v19, %v6002_v40  ;;  %v5693_v11 = vsel %vm16535_vm7, %v13454_v32, %v5692_v31  ;;  %v5694_v42 = vrot.slane %v5692_v31, 4  ;;  %v13261_v45 = vrot.slane %v3611_v43, 10  ;;  %14413 = vmatmul.mubr.msk.bf16.gmra.mrb[56].mxu1 %vm3211_vm1, %v18676_v7  ;;  %v6054_v48 = vld [vmem:[#allocation2 + $0x394] sm:$0x7]  ;;  %v5847_v6 = vld [vmem:[#allocation2 + $0x3a4] sm:$0xe] }
 0x23f   : > { %v4019_v62 = vsel %vm16671_vm10, %v4017_v9, %v4018_v56  ;;  %v3709_v8 = vrot.slane %v3612_v38, 6  ;;  %v3712_v36 = vrot.slane %v3613_v10, 6  ;;  %v13339_v63 = vcombine.low %v18700_v41, %v4041_v23  ;;  %v4236_v57 = vpop.permute.xlu1 %4235  ;;  %14416 = vmatprep.mubr.msk.bf16.mxu1 %vm3211_vm1, %v2462_v4  ;;  %v5848_v22 = vld [vmem:[#allocation2 + $0x3a8] sm:$0xf]  ;;  %v15411_v10 = vld [vmem:[%s16521_s26 + $0xc] sm:$0xf] }
 0x240   : > { %v13323_v28 = vcombine.low %v4016_v21, %v4019_v62  ;;  %v5696_v5 = vsel %vm16535_vm7, %v5694_v42, %v5695_v17  ;;  %v13292_v3 = vrot.slane %v3864_v37, 9  ;;  %v4022_v30 = vrot.slane %v18727_v1, 5  ;;  %v15410_v56 = vld [vmem:[%s16521_s26 + $0x8] sm:$0xf]  ;;  %v5849_v17 = vld [vmem:[#allocation2 + $0x3ac] sm:$0x1] }
 0x241   : > { %6342 = vrot.lane.b32.xlu1 %v13532_v24, %s15593_s17  ;;  %v13502_v44 = vcombine.low %v5693_v11, %v5696_v5  ;;  %v3710_v2 = vsel %vm17490_vm13, %v13261_v45, %v3709_v8  ;;  %v3711_v41 = vrot.slane %v3709_v8, 4  ;;  %v4025_v58 = vrot.slane %v3866_v59, 5  ;;  %v4142_v34 = vpop.permute.xlu0 %4141  ;;  %v5598_v9 = vld [vmem:[#allocation2 + $0x218] sm:$0xf]  ;;  %v5599_v37 = vld [vmem:[#allocation2 + $0x21c] sm:$0x7] }
 0x242   : > { %4167 = vrot.lane.b32.xlu0 %v13323_v28, %s15593_s17  ;;  %v4023_v51 = vsel %vm16671_vm10, %v13292_v3, %v4022_v30  ;;  %v4024_v60 = vrot.slane %v4022_v30, 4  ;;  %v13262_v61 = vrot.slane %v3614_v47, 10  ;;  %v3716_v13 = vrot.slane %v3615_v46, 6  ;;  %v6055_v59 = vld [vmem:[#allocation2 + $0x3a8] sm:$0x8] }
 0x243   : > { %v6428_v27 = vsel %vm1257_vm5, %v13502_v44, %v6315_v50  ;;  %v3713_v16 = vsel %vm17490_vm13, %v3711_v41, %v3712_v36  ;;  %v3719_v39 = vrot.slane %v3616_v14, 6  ;;  %v13034_v26 = vcombine.low %v15408_v55, %v15409_v54  ;;  %v6395_v7 = vpop.permute.xlu1 %6394  ;;  %v5597_v50 = vld [vmem:[#allocation2 + $0x214] sm:$0x8]  ;;  %v6056_v62 = vld [vmem:[#allocation2 + $0x3ac] sm:$0xf] }
 0x244   : > { %v13293_v19 = vcombine.low %v3710_v2, %v3713_v16  ;;  %v4026_v43 = vsel %vm16671_vm10, %v4024_v60, %v4025_v58  ;;  %v3717_v38 = vsel %vm17490_vm13, %v13262_v61, %v3716_v13  ;;  %v3718_v15 = vrot.slane %v3716_v13, 4  ;;  %v6057_v46 = vld [vmem:[#allocation2 + $0x3b0] sm:$0x7]  ;;  %v18774_v14 = vld [vmem:[#allocation2 + $0x454] sm:$0xf] }
 0x245   : > { %4263 = vrot.lane.b32.xlu1 %v13339_v63, %s15592_s12  ;;  %v13324_v29 = vcombine.low %v4023_v51, %v4026_v43  ;;  %14314 = vmatprep.mubr.msk.bf16.mxu0 %vm1257_vm5, %v13034_v26  ;;  %v13035_v53 = vcombine.low %v15410_v56, %v15411_v10  ;;  %v13500_v32 = vrot.slane %v6052_v35, 11  ;;  %v6206_v31 = vrot.slane %v6053_v25, 7  ;;  %v18762_v24 = vpop.permute.xlu0 %6316  ;;  %v8958_v44 = vld [vmem:[#allocation2 + $0x200] sm:$0xe]  ;;  %v8959_v60 = vld [vmem:[#allocation2 + $0x204] sm:$0xf] }
 0x246   : > { %v4269_v23 = vsel %vm1257_vm5, %v13293_v19, %v4140_v20  ;;  %v3720_v40 = vsel %vm17490_vm13, %v3718_v15, %v3719_v39  ;;  %v6209_v4 = vrot.slane %v6054_v48, 7  ;;  %v13485_v21 = vrot.slane %v5847_v6, 9  ;;  %v8960_v61 = vld [vmem:[#allocation2 + $0x208] sm:$0x1]  ;;  %14417 = vmatmul.mubr.msk.bf16.gmra.mrb[60].mxu1 %vm3211_vm1, %v18711_v0  ;;  %v4888_v16 = vld [vmem:[#allocation2 + $0xb0] sm:$0xe] }
 0x247   : > { %4169 = vrot.lane.b32.xlu0 %v13324_v29, %s15593_s17  ;;  %v4316_v11 = vsel %vm2432_vm0, %v4269_v23, %v4236_v57  ;;  %v13294_v42 = vcombine.low %v3717_v38, %v3720_v40  ;;  %14315 = vmatmul.mubr.msk.bf16.vlgmr.msra.gmra.mrb[0].mxu0 %vm1257_vm5, %v13035_v53  ;;  %v6207_v45 = vsel %vm16535_vm7, %v13500_v32, %v6206_v31  ;;  %v6208_v20 = vrot.slane %v6206_v31, 4  ;;  %v6397_v28 = vpop.permute.xlu1 %6396  ;;  %v4889_v48 = vld [vmem:[#allocation2 + $0xb4] sm:$0xf]  ;;  %v4890_v6 = vld [vmem:[#allocation2 + $0xb8] sm:$0x1] }
 0x248   : > { %v6005_v8 = vrot.slane %v5848_v22, 5  ;;  %v6008_v36 = vrot.slane %v5849_v17, 5  ;;  %v6475_v63 = vsel %vm2432_vm0, %v6428_v27, %v6395_v7  ;;  %v13455_v47 = vrot.slane %v5597_v50, 11  ;;  %14422 = vmatprep.mubr.msk.bf16.mxu1 %vm3211_vm1, %v4316_v11  ;;  %v5600_v15 = vld [vmem:[#allocation2 + $0x230] sm:$0x8] }
 0x249   : > { %v4272_v5 = vsel %vm1257_vm5, %v13294_v42, %v4142_v34  ;;  %v6210_v3 = vsel %vm16535_vm7, %v6208_v20, %v6209_v4  ;;  %v5699_v30 = vrot.slane %v5598_v9, 7  ;;  %v5702_v57 = vrot.slane %v5599_v37, 7  ;;  %14456 = vmatprep.mubr.msk.bf16.mxu0 %vm3211_vm1, %v6475_v63  ;;  %v4238_v51 = vpop.permute.xlu0 %4237  ;;  %v5602_v10 = vld [vmem:[#allocation2 + $0x238] sm:$0x7]  ;;  %v3617_v23 = vld [vmem:[#allocation2 + $0x2dc] sm:$0xc] }
 0x24a   : > { %v13548_v2 = vcombine.low %v6207_v45, %v6210_v3  ;;  %v6006_v41 = vsel %vm16671_vm10, %v13485_v21, %v6005_v8  ;;  %v6007_v58 = vrot.slane %v6005_v8, 4  ;;  %v13501_v35 = vrot.slane %v6055_v59, 11  ;;  %v3618_v37 = vld [vmem:[#allocation2 + $0x2e0] sm:$0xf]  ;;  %v3619_v11 = vld [vmem:[#allocation2 + $0x2e4] sm:$0x3] }
 0x24b   : > { %v5700_v13 = vsel %vm16535_vm7, %v13455_v47, %v5699_v30  ;;  %v5701_v34 = vrot.slane %v5699_v30, 4  ;;  %v6213_v25 = vrot.slane %v6056_v62, 7  ;;  %v6216_v27 = vrot.slane %v6057_v46, 7  ;;  %v18793_v0 = vpop.permute.xlu1 %6318  ;;  %v5096_v8 = vld [vmem:[#allocation2 + $0xb4] sm:$0x8] }
 0x24c   : > { %6422 = vrot.lane.b32.xlu1 %v13548_v2, %s15592_s12  ;;  %v6009_v39 = vsel %vm16671_vm10, %v6007_v58, %v6008_v36  ;;  %v13340_v55 = vcombine.low %v18727_v1, %v18774_v14  ;;  %v6547_v54 = vsel %vm3244_vm14, %v18630_v33, 0  ;;  %v18790_v26 = vsel %vm2432_vm0, %v4272_v5, %v4238_v51  ;;  %v5601_v33 = vld [vmem:[#allocation2 + $0x234] sm:$0xf]  ;;  %v5097_v36 = vld [vmem:[#allocation2 + $0xb8] sm:$0xf] }
 0x24d   : > { %v13533_v19 = vcombine.low %v6006_v41, %v6009_v39  ;;  %v5703_v43 = vsel %vm16535_vm7, %v5701_v34, %v5702_v57  ;;  %v6214_v38 = vsel %vm16535_vm7, %v13501_v35, %v6213_v25  ;;  %v6215_v1 = vrot.slane %v6213_v25, 4  ;;  %14455 = vmatpush3.bf16.msra.mxu0 %v6547_v54  ;;  %v18799_v53 = vpop.permute.xlu0 %4143  ;;  %v5098_v5 = vld [vmem:[#allocation2 + $0xbc] sm:$0x7]  ;;  %v4892_v2 = vld [vmem:[#allocation2 + $0xd0] sm:$0xf] }
 0x24e   : > { %v13503_v22 = vcombine.low %v5700_v13, %v5703_v43  ;;  %v13777_v7 = vrot.slane %v8958_v44, 9  ;;  %v9056_v29 = vrot.slane %v8959_v60, 5  ;;  %v9059_v56 = vrot.slane %v8960_v61, 5  ;;  %v4891_v44 = vld [vmem:[#allocation2 + $0xcc] sm:$0xe] }
 0x24f   : > { %6344 = vrot.lane.b32.xlu0 %v13533_v19, %s15593_s17  ;;  %v6217_v32 = vsel %vm16535_vm7, %v6215_v1, %v6216_v27  ;;  %v13374_v31 = vrot.slane %v4888_v16, 9  ;;  %v4986_v17 = vrot.slane %v4889_v48, 5  ;;  %v4989_v50 = vrot.slane %v4890_v6, 5  ;;  %v18808_v42 = vpop.permute.xlu1 %4239  ;;  %v4893_v60 = vld [vmem:[#allocation2 + $0xd4] sm:$0x1] }
 0x250   : > { %v6431_v40 = vsel %vm1257_vm5, %v13503_v22, %v18762_v24  ;;  %v13549_v4 = vcombine.low %v6214_v38, %v6217_v32  ;;  %v9057_v21 = vsel %vm16671_vm10, %v13777_v7, %v9056_v29  ;;  %v9058_v9 = vrot.slane %v9056_v29, 4  ;;  %v3620_v16 = vld [vmem:[#allocation2 + $0x2f8] sm:$0xc]  ;;  %v3621_v6 = vld [vmem:[#allocation2 + $0x2fc] sm:$0xf] }
 0x251   : > { %v6477_v45 = vsel %vm2432_vm0, %v6431_v40, %v6397_v28  ;;  %v4987_v20 = vsel %vm16671_vm10, %v13374_v31, %v4986_v17  ;;  %v4988_v59 = vrot.slane %v4986_v17, 4  ;;  %v13456_v62 = vrot.slane %v5600_v15, 11  ;;  %v18817_v3 = vpop.permute.xlu0 %4145  ;;  %v3622_v15 = vld [vmem:[#allocation2 + $0x300] sm:$0x3]  ;;  %v9168_v40 = vld [vmem:[#allocation2 + $0x210] sm:$0x3] }
 0x252   : > { %6424 = vrot.lane.b32.xlu1 %v13549_v4, %s15592_s12  ;;  %v9060_v24 = vsel %vm16671_vm10, %v9058_v9, %v9059_v56  ;;  %14457 = vmatmul.mubr.msk.bf16.vlgmr.msra.gmra.mrb[4].mxu0 %vm3211_vm1, %v6477_v45  ;;  %v5706_v63 = vrot.slane %v5601_v33, 7  ;;  %v5709_v47 = vrot.slane %v5602_v10, 7  ;;  %v13263_v46 = vrot.slane %v3617_v23, 10  ;;  %v9166_v56 = vld [vmem:[#allocation2 + $0x208] sm:$0xc] }
 0x253   : > { %4265 = vrot.lane.b32.xlu0 %v13340_v55, %s15592_s12  ;;  %v13825_v28 = vcombine.low %v9057_v21, %v9060_v24  ;;  %v4990_v30 = vsel %vm16671_vm10, %v4988_v59, %v4989_v50  ;;  %v3723_v57 = vrot.slane %v3618_v37, 6  ;;  %v3726_v14 = vrot.slane %v3619_v11, 6  ;;  %v6399_v61 = vpop.permute.xlu1 %6398  ;;  %v9167_v10 = vld [vmem:[#allocation2 + $0x20c] sm:$0xf]  ;;  %v8961_v4 = vld [vmem:[#allocation2 + $0x21c] sm:$0xe] }
 0x254   : > { %v13422_v41 = vcombine.low %v4987_v20, %v4990_v30  ;;  %v5707_v58 = vsel %vm16535_vm7, %v13456_v62, %v5706_v63  ;;  %v5708_v35 = vrot.slane %v5706_v63, 4  ;;  %v4388_v51 = vsel %vm3244_vm14, %v18668_v49, 0  ;;  %v8962_v11 = vld [vmem:[#allocation2 + $0x220] sm:$0xf]  ;;  %v8963_v45 = vld [vmem:[#allocation2 + $0x224] sm:$0x1] }
 0x255   : > { %v3724_v13 = vsel %vm17490_vm13, %v13263_v46, %v3723_v57  ;;  %v3725_v34 = vrot.slane %v3723_v57, 4  ;;  %14421 = vmatpush3.bf16.msra.mxu1 %v4388_v51  ;;  %v13390_v25 = vrot.slane %v5096_v8, 11  ;;  %v5194_v27 = vrot.slane %v5097_v36, 7  ;;  %v18831_v49 = vpop.permute.xlu0 %6320  ;;  %v5603_v36 = vld [vmem:[#allocation2 + $0x24c] sm:$0x8] }
 0x256   : > { %9502 = vrot.lane.b32.xlu1 %v13825_v28, %s15593_s17  ;;  %v5710_v39 = vsel %vm16535_vm7, %v5708_v35, %v5709_v47  ;;  %v5197_v55 = vrot.slane %v5098_v5, 7  ;;  %v13375_v54 = vrot.slane %v4891_v44, 9  ;;  %v4993_v48 = vrot.slane %v4892_v2, 5  ;;  %v5604_v24 = vld [vmem:[#allocation2 + $0x250] sm:$0xf] }
 0x257   : > { %5400 = vrot.lane.b32.xlu0 %v13422_v41, %s15593_s17  ;;  %v13504_v19 = vcombine.low %v5707_v58, %v5710_v39  ;;  %v3727_v43 = vsel %vm17490_vm13, %v3725_v34, %v3726_v14  ;;  %v5195_v38 = vsel %vm16535_vm7, %v13390_v25, %v5194_v27  ;;  %v5196_v1 = vrot.slane %v5194_v27, 4  ;;  %v18842_v32 = vpop.permute.xlu1 %6400  ;;  %v5605_v5 = vld [vmem:[#allocation2 + $0x254] sm:$0x7]  ;;  %v9169_v44 = vld [vmem:[#allocation2 + $0x224] sm:$0xc] }
 0x258   : > { %v13295_v33 = vcombine.low %v3724_v13, %v3727_v43  ;;  %v4994_v22 = vsel %vm16671_vm10, %v13375_v54, %v4993_v48  ;;  %v4995_v7 = vrot.slane %v4993_v48, 4  ;;  %v4996_v29 = vrot.slane %v4893_v60, 5  ;;  %14423 = vmatmul.mubr.msk.bf16.vlgmr.msra.gmra.mrb[32].mxu1 %vm3211_vm1, %v18790_v26  ;;  %v9170_v2 = vld [vmem:[#allocation2 + $0x228] sm:$0xf]  ;;  %v9171_v60 = vld [vmem:[#allocation2 + $0x22c] sm:$0x3] }
 0x259   : > { %v6434_v31 = vsel %vm1257_vm5, %v13504_v19, %v18793_v0  ;;  %v5198_v17 = vsel %vm16535_vm7, %v5196_v1, %v5197_v55  ;;  %v13264_v50 = vrot.slane %v3620_v16, 10  ;;  %v3730_v23 = vrot.slane %v3621_v6, 6  ;;  %v5100_v6 = vld [vmem:[#allocation2 + $0xd4] sm:$0xf]  ;;  %v5101_v19 = vld [vmem:[#allocation2 + $0xd8] sm:$0x7] }
 0x25a   : > { %v4275_v21 = vsel %vm1257_vm5, %v13295_v33, %v18799_v53  ;;  %v13438_v9 = vcombine.low %v5195_v38, %v5198_v17  ;;  %v4997_v26 = vsel %vm16671_vm10, %v4995_v7, %v4996_v29  ;;  %v3733_v37 = vrot.slane %v3622_v15, 6  ;;  %v18852_v20 = vpop.permute.xlu0 %4241  ;;  %v8965_v7 = vld [vmem:[#allocation2 + $0x23c] sm:$0xf]  ;;  %v4894_v17 = vld [vmem:[#allocation2 + $0xe8] sm:$0xe] }
 0x25b   : > { %v13423_v0 = vcombine.low %v4994_v22, %v4997_v26  ;;  %v4320_v59 = vsel %vm2432_vm0, %v4275_v21, %v18808_v42  ;;  %v3731_v62 = vsel %vm17490_vm13, %v13264_v50, %v3730_v23  ;;  %v3732_v8 = vrot.slane %v3730_v23, 4  ;;  %v8964_v22 = vld [vmem:[#allocation2 + $0x238] sm:$0xe] }
 0x25c   : > { %5480 = vrot.lane.b32.xlu1 %v13438_v9, %s15592_s12  ;;  %14426 = vmatprep.mubr.msk.bf16.mxu1 %vm3211_vm1, %v4320_v59  ;;  %v13793_v53 = vrot.slane %v9166_v56, 10  ;;  %v9264_v63 = vrot.slane %v9167_v10, 6  ;;  %v9267_v47 = vrot.slane %v9168_v40, 6  ;;  %v13778_v46 = vrot.slane %v8961_v4, 9  ;;  %v18860_v28 = vpop.permute.xlu1 %6322  ;;  %v4895_v9 = vld [vmem:[#allocation2 + $0xec] sm:$0xf] }
 0x25d   : > { %5402 = vrot.lane.b32.xlu0 %v13423_v0, %s15593_s17  ;;  %v3734_v42 = vsel %vm17490_vm13, %v3732_v8, %v3733_v37  ;;  %v9063_v30 = vrot.slane %v8962_v11, 5  ;;  %v9066_v57 = vrot.slane %v8963_v45, 5  ;;  %v6479_v14 = vsel %vm2432_vm0, %v6434_v31, %v6399_v61  ;;  %v5099_v61 = vld [vmem:[#allocation2 + $0xd0] sm:$0x8]  ;;  %v8966_v31 = vld [vmem:[#allocation2 + $0x240] sm:$0x1] }
 0x25e   : > { %v13296_v41 = vcombine.low %v3731_v62, %v3734_v42  ;;  %v9265_v58 = vsel %vm17490_vm13, %v13793_v53, %v9264_v63  ;;  %v9266_v35 = vrot.slane %v9264_v63, 4  ;;  %v13457_v51 = vrot.slane %v5603_v36, 11  ;;  %14460 = vmatprep.mubr.msk.bf16.mxu0 %vm3211_vm1, %v6479_v14  ;;  %v18869_v13 = vpop.permute.xlu0 %4147  ;;  %v4896_v0 = vld [vmem:[#allocation2 + $0xf0] sm:$0x1]  ;;  %v5606_v59 = vld [vmem:[#allocation2 + $0x268] sm:$0x8] }
 0x25f   : > { %v9064_v34 = vsel %vm16671_vm10, %v13778_v46, %v9063_v30  ;;  %v9065_v25 = vrot.slane %v9063_v30, 4  ;;  %v5713_v27 = vrot.slane %v5604_v24, 7  ;;  %v5716_v16 = vrot.slane %v5605_v5, 7  ;;  %v5607_v63 = vld [vmem:[#allocation2 + $0x26c] sm:$0xf] }
 0x260   : > { %v4278_v39 = vsel %vm1257_vm5, %v13296_v41, %v18817_v3  ;;  %v9268_v55 = vsel %vm17490_vm13, %v9266_v35, %v9267_v47  ;;  %v13794_v54 = vrot.slane %v9169_v44, 10  ;;  %v9271_v48 = vrot.slane %v9170_v2, 6  ;;  %v5608_v47 = vld [vmem:[#allocation2 + $0x270] sm:$0x7]  ;;  %v3623_v30 = vld [vmem:[#allocation2 + $0x314] sm:$0xc] }
 0x261   : > { %v18877_v43 = vpop.permute.xlu1 %4243  ;;  %v13841_v38 = vcombine.low %v9265_v58, %v9268_v55  ;;  %v9067_v1 = vsel %vm16671_vm10, %v9065_v25, %v9066_v57  ;;  %v5714_v15 = vsel %vm16535_vm7, %v13457_v51, %v5713_v27  ;;  %v5715_v33 = vrot.slane %v5713_v27, 4  ;;  %v3624_v58 = vld [vmem:[#allocation2 + $0x318] sm:$0xf]  ;;  %v5102_v25 = vld [vmem:[#allocation2 + $0xec] sm:$0x8] }
 0x262   : > { %v13826_v3 = vcombine.low %v9064_v34, %v9067_v1  ;;  %v9272_v29 = vsel %vm17490_vm13, %v13794_v54, %v9271_v48  ;;  %v9273_v56 = vrot.slane %v9271_v48, 4  ;;  %v9274_v10 = vrot.slane %v9171_v60, 6  ;;  %v5103_v27 = vld [vmem:[#allocation2 + $0xf0] sm:$0xf]  ;;  %v5104_v54 = vld [vmem:[#allocation2 + $0xf4] sm:$0x7] }
 0x263   : > { %v18885_v50 = vpop.permute.xlu0 %4149  ;;  %9582 = vrot.lane.b32.xlu1 %v13841_v38, %s15592_s12  ;;  %v5717_v23 = vsel %vm16535_vm7, %v5715_v33, %v5716_v16  ;;  %v13391_v40 = vrot.slane %v5099_v61, 11  ;;  %v5201_v4 = vrot.slane %v5100_v6, 7  ;;  %v5204_v21 = vrot.slane %v5101_v19, 7  ;;  %v4897_v1 = vld [vmem:[#allocation2 + $0x104] sm:$0xe] }
 0x264   : > { %9504 = vrot.lane.b32.xlu0 %v13826_v3, %s15593_s17  ;;  %v13505_v26 = vcombine.low %v5714_v15, %v5717_v23  ;;  %v9275_v37 = vsel %vm17490_vm13, %v9273_v56, %v9274_v10  ;;  %v4322_v11 = vsel %vm2432_vm0, %v4278_v39, %v18852_v20  ;;  %v13779_v45 = vrot.slane %v8964_v22, 9  ;;  %v4898_v15 = vld [vmem:[#allocation2 + $0x108] sm:$0xf]  ;;  %v4899_v56 = vld [vmem:[#allocation2 + $0x10c] sm:$0x1] }
 0x265   : > { %v18895_v62 = vpop.permute.xlu1 %6402  ;;  %v13842_v8 = vcombine.low %v9272_v29, %v9275_v37  ;;  %v5202_v36 = vsel %vm16535_vm7, %v13391_v40, %v5201_v4  ;;  %v5203_v24 = vrot.slane %v5201_v4, 4  ;;  %14427 = vmatmul.mubr.msk.bf16.gmra.mrb[36].mxu1 %vm3211_vm1, %v4322_v11  ;;  %v9070_v53 = vrot.slane %v8965_v7, 5  ;;  %v3626_v40 = vld [vmem:[#allocation2 + $0x330] sm:$0xc]  ;;  %v3627_v11 = vld [vmem:[#allocation2 + $0x334] sm:$0xf] }
 0x266   : > { %v6437_v46 = vsel %vm1257_vm5, %v13505_v26, %v18831_v49  ;;  %v9073_v5 = vrot.slane %v8966_v31, 5  ;;  %v13376_v20 = vrot.slane %v4894_v17, 9  ;;  %v5000_v42 = vrot.slane %v4895_v9, 5  ;;  %v3625_v49 = vld [vmem:[#allocation2 + $0x31c] sm:$0x3] }
 0x267   : > { %v18902_v57 = vpop.permute.xlu0 %6324  ;;  %9584 = vrot.lane.b32.xlu1 %v13842_v8, %s15592_s12  ;;  %v5205_v14 = vsel %vm16535_vm7, %v5203_v24, %v5204_v21  ;;  %v6481_v44 = vsel %vm2432_vm0, %v6437_v46, %v18842_v32  ;;  %v9071_v2 = vsel %vm16671_vm10, %v13779_v45, %v9070_v53  ;;  %v9072_v41 = vrot.slane %v9070_v53, 4 }
 0x268   : > { %v13439_v35 = vcombine.low %v5202_v36, %v5205_v14  ;;  %14461 = vmatmul.mubr.msk.bf16.gmra.mrb[8].mxu0 %vm3211_vm1, %v6481_v44  ;;  %v5001_v51 = vsel %vm16671_vm10, %v13376_v20, %v5000_v42  ;;  %v5002_v60 = vrot.slane %v5000_v42, 4  ;;  %v5003_v34 = vrot.slane %v4896_v0, 5  ;;  %v3628_v36 = vld [vmem:[#allocation2 + $0x338] sm:$0x3]  ;;  %v9173_v20 = vld [vmem:[#allocation2 + $0x244] sm:$0xf] }
 0x269   : > { %v18914_v16 = vpop.permute.xlu1 %6404  ;;  %v9074_v32 = vsel %vm16671_vm10, %v9072_v41, %v9073_v5  ;;  %v13458_v61 = vrot.slane %v5606_v59, 11  ;;  %v5720_v39 = vrot.slane %v5607_v63, 7  ;;  %v5723_v55 = vrot.slane %v5608_v47, 7  ;;  %v9172_v5 = vld [vmem:[#allocation2 + $0x240] sm:$0xc] }
 0x26a   : > { %5482 = vrot.lane.b32.xlu0 %v13439_v35, %s15592_s12  ;;  %v13827_v48 = vcombine.low %v9071_v2, %v9074_v32  ;;  %v5004_v6 = vsel %vm16671_vm10, %v5002_v60, %v5003_v34  ;;  %v13265_v19 = vrot.slane %v3623_v30, 10  ;;  %v3737_v38 = vrot.slane %v3624_v58, 6  ;;  %v9174_v2 = vld [vmem:[#allocation2 + $0x248] sm:$0x3]  ;;  %v8967_v41 = vld [vmem:[#allocation2 + $0x254] sm:$0xe] }
 0x26b   : > { %v18921_v33 = vpop.permute.xlu0 %4245  ;;  %v13424_v22 = vcombine.low %v5001_v51, %v5004_v6  ;;  %v5721_v7 = vsel %vm16535_vm7, %v13458_v61, %v5720_v39  ;;  %v5722_v3 = vrot.slane %v5720_v39, 4  ;;  %v3740_v29 = vrot.slane %v3625_v49, 6  ;;  %v8968_v34 = vld [vmem:[#allocation2 + $0x258] sm:$0xf]  ;;  %v5609_v39 = vld [vmem:[#allocation2 + $0x284] sm:$0x8] }
 0x26c   : > { %9506 = vrot.lane.b32.xlu1 %v13827_v48, %s15593_s17  ;;  %v3738_v10 = vsel %vm17490_vm13, %v13265_v19, %v3737_v38  ;;  %v3739_v31 = vrot.slane %v3737_v38, 4  ;;  %v13392_v17 = vrot.slane %v5102_v25, 11  ;;  %v5208_v23 = vrot.slane %v5103_v27, 7  ;;  %v8969_v25 = vld [vmem:[#allocation2 + $0x25c] sm:$0x1] }
 0x26d   : > { %v18928_v4 = vpop.permute.xlu1 %6326  ;;  %v5724_v21 = vsel %vm16535_vm7, %v5722_v3, %v5723_v55  ;;  %v5211_v9 = vrot.slane %v5104_v54, 7  ;;  %v13377_v26 = vrot.slane %v4897_v1, 9  ;;  %v5007_v37 = vrot.slane %v4898_v15, 5  ;;  %v5610_v55 = vld [vmem:[#allocation2 + $0x288] sm:$0xf] }
 0x26e   : > { %5404 = vrot.lane.b32.xlu0 %v13424_v22, %s15593_s17  ;;  %v13506_v45 = vcombine.low %v5721_v7, %v5724_v21  ;;  %v3741_v0 = vsel %vm17490_vm13, %v3739_v31, %v3740_v29  ;;  %v5209_v59 = vsel %vm16535_vm7, %v13392_v17, %v5208_v23  ;;  %v5210_v8 = vrot.slane %v5208_v23, 4  ;;  %v5611_v38 = vld [vmem:[#allocation2 + $0x28c] sm:$0x7]  ;;  %v9175_v7 = vld [vmem:[#allocation2 + $0x25c] sm:$0xc] }
 0x26f   : > { %v18937_v24 = vpop.permute.xlu0 %4151  ;;  %v13297_v53 = vcombine.low %v3738_v10, %v3741_v0  ;;  %v5008_v63 = vsel %vm16671_vm10, %v13377_v26, %v5007_v37  ;;  %v5009_v47 = vrot.slane %v5007_v37, 4  ;;  %v5010_v46 = vrot.slane %v4899_v56, 5  ;;  %v9176_v3 = vld [vmem:[#allocation2 + $0x260] sm:$0xf]  ;;  %v9177_v23 = vld [vmem:[#allocation2 + $0x264] sm:$0x3] }
 0x270   : > { %v6440_v42 = vsel %vm1257_vm5, %v13506_v45, %v18860_v28  ;;  %v5212_v30 = vsel %vm16535_vm7, %v5210_v8, %v5211_v9  ;;  %v13266_v14 = vrot.slane %v3626_v40, 10  ;;  %v3744_v44 = vrot.slane %v3627_v11, 6  ;;  %v5106_v8 = vld [vmem:[#allocation2 + $0x10c] sm:$0xf] }
 0x271   : > { %v18945_v58 = vpop.permute.xlu1 %4247  ;;  %v4281_v49 = vsel %vm1257_vm5, %v13297_v53, %v18869_v13  ;;  %v13440_v35 = vcombine.low %v5209_v59, %v5212_v30  ;;  %v5011_v51 = vsel %vm16671_vm10, %v5009_v47, %v5010_v46  ;;  %v3747_v60 = vrot.slane %v3628_v36, 6  ;;  %v5107_v36 = vld [vmem:[#allocation2 + $0x110] sm:$0x7] }
 0x272   : > { %v13425_v28 = vcombine.low %v5008_v63, %v5011_v51  ;;  %v4324_v27 = vsel %vm2432_vm0, %v4281_v49, %v18877_v43  ;;  %v3745_v32 = vsel %vm17490_vm13, %v13266_v14, %v3744_v44  ;;  %v3746_v61 = vrot.slane %v3744_v44, 4 }
 0x273   : > { %v18955_v54 = vpop.permute.xlu0 %4153  ;;  %5484 = vrot.lane.b32.xlu1 %v13440_v35, %s15592_s12  ;;  %14430 = vmatprep.mubr.msk.bf16.mxu1 %vm3211_vm1, %v4324_v27  ;;  %v13795_v13 = vrot.slane %v9172_v5, 10  ;;  %v9278_v48 = vrot.slane %v9173_v20, 6  ;;  %v9281_v6 = vrot.slane %v9174_v2, 6  ;;  %v13780_v19 = vrot.slane %v8967_v41, 9  ;;  %v8970_v5 = vld [vmem:[#allocation2 + $0x270] sm:$0xe] }
 0x274   : > { %5406 = vrot.lane.b32.xlu0 %v13425_v28, %s15593_s17  ;;  %v3748_v43 = vsel %vm17490_vm13, %v3746_v61, %v3747_v60  ;;  %v9077_v1 = vrot.slane %v8968_v34, 5  ;;  %v9080_v15 = vrot.slane %v8969_v25, 5  ;;  %v6483_v22 = vsel %vm2432_vm0, %v6440_v42, %v18895_v62  ;;  %v5105_v62 = vld [vmem:[#allocation2 + $0x108] sm:$0x8]  ;;  %v8971_v20 = vld [vmem:[#allocation2 + $0x274] sm:$0xf] }
 0x275   : > { %v18964_v29 = vpop.permute.xlu1 %6406  ;;  %v13298_v56 = vcombine.low %v3745_v32, %v3748_v43  ;;  %v9279_v10 = vsel %vm17490_vm13, %v13795_v13, %v9278_v48  ;;  %v9280_v31 = vrot.slane %v9278_v48, 4  ;;  %v13459_v17 = vrot.slane %v5609_v39, 11  ;;  %14464 = vmatprep.mubr.msk.bf16.mxu0 %vm3211_vm1, %v6483_v22  ;;  %v8972_v2 = vld [vmem:[#allocation2 + $0x278] sm:$0x1]  ;;  %v4900_v41 = vld [vmem:[#allocation2 + $0x120] sm:$0xe] }
 0x276   : > { %v9078_v40 = vsel %vm16671_vm10, %v13780_v19, %v9077_v1  ;;  %v9079_v21 = vrot.slane %v9077_v1, 4  ;;  %v5727_v9 = vrot.slane %v5610_v55, 7  ;;  %v5730_v26 = vrot.slane %v5611_v38, 7  ;;  %v4901_v34 = vld [vmem:[#allocation2 + $0x124] sm:$0xf] }
 0x277   : > { %v18971_v37 = vpop.permute.xlu0 %6328  ;;  %v4284_v11 = vsel %vm1257_vm5, %v13298_v56, %v18885_v50  ;;  %v9282_v45 = vsel %vm17490_vm13, %v9280_v31, %v9281_v6  ;;  %v13796_v0 = vrot.slane %v9175_v7, 10  ;;  %v9285_v59 = vrot.slane %v9176_v3, 6  ;;  %v4902_v39 = vld [vmem:[#allocation2 + $0x128] sm:$0x1]  ;;  %v5612_v55 = vld [vmem:[#allocation2 + $0x2a0] sm:$0x8] }
 0x278   : > { %v13843_v53 = vcombine.low %v9279_v10, %v9282_v45  ;;  %v9081_v63 = vsel %vm16671_vm10, %v9079_v21, %v9080_v15  ;;  %v5728_v47 = vsel %vm16535_vm7, %v13459_v17, %v5727_v9  ;;  %v5729_v46 = vrot.slane %v5727_v9, 4  ;;  %v5613_v38 = vld [vmem:[#allocation2 + $0x2a4] sm:$0xf]  ;;  %v5614_v43 = vld [vmem:[#allocation2 + $0x2a8] sm:$0x7] }
 0x279   : > { %v18981_v42 = vpop.permute.xlu1 %6408  ;;  %v13828_v50 = vcombine.low %v9078_v40, %v9081_v63  ;;  %v9286_v30 = vsel %vm17490_vm13, %v13796_v0, %v9285_v59  ;;  %v9287_v14 = vrot.slane %v9285_v59, 4  ;;  %v9288_v44 = vrot.slane %v9177_v23, 6  ;;  %v3629_v3 = vld [vmem:[#allocation2 + $0x34c] sm:$0xc]  ;;  %v3630_v23 = vld [vmem:[#allocation2 + $0x350] sm:$0xf] }
 0x27a   : > { %9586 = vrot.lane.b32.xlu1 %v13843_v53, %s15592_s12  ;;  %v5731_v49 = vsel %vm16535_vm7, %v5729_v46, %v5730_v26  ;;  %v13393_v35 = vrot.slane %v5105_v62, 11  ;;  %v5215_v51 = vrot.slane %v5106_v8, 7  ;;  %v5218_v60 = vrot.slane %v5107_v36, 7  ;;  %v3631_v40 = vld [vmem:[#allocation2 + $0x354] sm:$0x3] }
 0x27b   : > { %v18988_v25 = vpop.permute.xlu0 %4249  ;;  %9508 = vrot.lane.b32.xlu0 %v13828_v50, %s15593_s17  ;;  %v13507_v28 = vcombine.low %v5728_v47, %v5731_v49  ;;  %v9289_v27 = vsel %vm17490_vm13, %v9287_v14, %v9288_v44  ;;  %v4326_v32 = vsel %vm2432_vm0, %v4284_v11, %v18921_v33  ;;  %v13781_v61 = vrot.slane %v8970_v5, 9  ;;  %v5108_v11 = vld [vmem:[#allocation2 + $0x124] sm:$0x8]  ;;  %v5109_v45 = vld [vmem:[#allocation2 + $0x128] sm:$0xf] }
 0x27c   : > { %v13844_v13 = vcombine.low %v9286_v30, %v9289_v27  ;;  %v5216_v48 = vsel %vm16535_vm7, %v13393_v35, %v5215_v51  ;;  %v5217_v6 = vrot.slane %v5215_v51, 4  ;;  %14431 = vmatmul.mubr.msk.bf16.gmra.mrb[40].mxu1 %vm3211_vm1, %v4326_v32  ;;  %v9084_v19 = vrot.slane %v8971_v20, 5  ;;  %v5110_v36 = vld [vmem:[#allocation2 + $0x12c] sm:$0x7]  ;;  %v4903_v20 = vld [vmem:[#allocation2 + $0x13c] sm:$0xe] }
 0x27d   : > { %v18998_v1 = vpop.permute.xlu1 %6330  ;;  %v6443_v15 = vsel %vm1257_vm5, %v13507_v28, %v18902_v57  ;;  %v9087_v22 = vrot.slane %v8972_v2, 5  ;;  %v13378_v33 = vrot.slane %v4900_v41, 9  ;;  %v5014_v7 = vrot.slane %v4901_v34, 5  ;;  %v4904_v50 = vld [vmem:[#allocation2 + $0x140] sm:$0xf] }
 0x27e   : > { %9588 = vrot.lane.b32.xlu1 %v13844_v13, %s15592_s12  ;;  %v5219_v56 = vsel %vm16535_vm7, %v5217_v6, %v5218_v60  ;;  %v6485_v10 = vsel %vm2432_vm0, %v6443_v15, %v18914_v16  ;;  %v9085_v31 = vsel %vm16671_vm10, %v13781_v61, %v9084_v19  ;;  %v9086_v17 = vrot.slane %v9084_v19, 4  ;;  %v4905_v41 = vld [vmem:[#allocation2 + $0x144] sm:$0x1]  ;;  %v3632_v28 = vld [vmem:[#allocation2 + $0x368] sm:$0xc] }
 0x27f   : > { %v19009_v21 = vpop.permute.xlu0 %4155  ;;  %v13441_v57 = vcombine.low %v5216_v48, %v5219_v56  ;;  %14465 = vmatmul.mubr.msk.bf16.gmra.mrb[12].mxu0 %vm3211_vm1, %v6485_v10  ;;  %v5015_v9 = vsel %vm16671_vm10, %v13378_v33, %v5014_v7  ;;  %v5016_v26 = vrot.slane %v5014_v7, 4  ;;  %v5017_v62 = vrot.slane %v4902_v39, 5  ;;  %v9179_v56 = vld [vmem:[#allocation2 + $0x27c] sm:$0xf] }
 0x280   : > { %v9088_v16 = vsel %vm16671_vm10, %v9086_v17, %v9087_v22  ;;  %v13460_v0 = vrot.slane %v5612_v55, 11  ;;  %v5734_v59 = vrot.slane %v5613_v38, 7  ;;  %v5737_v8 = vrot.slane %v5614_v43, 7  ;;  %v3633_v55 = vld [vmem:[#allocation2 + $0x36c] sm:$0xf] }
 0x281   : > { %v19016_v53 = vpop.permute.xlu1 %4251  ;;  %5486 = vrot.lane.b32.xlu0 %v13441_v57, %s15592_s12  ;;  %v13829_v63 = vcombine.low %v9085_v31, %v9088_v16  ;;  %v5018_v47 = vsel %vm16671_vm10, %v5016_v26, %v5017_v62  ;;  %v13267_v46 = vrot.slane %v3629_v3, 10  ;;  %v3751_v5 = vrot.slane %v3630_v23, 6  ;;  %v3634_v43 = vld [vmem:[#allocation2 + $0x370] sm:$0x3]  ;;  %v9178_v3 = vld [vmem:[#allocation2 + $0x278] sm:$0xc] }
 0x282   : > { %v13426_v30 = vcombine.low %v5015_v9, %v5018_v47  ;;  %v5735_v14 = vsel %vm16535_vm7, %v13460_v0, %v5734_v59  ;;  %v5736_v44 = vrot.slane %v5734_v59, 4  ;;  %v3754_v2 = vrot.slane %v3631_v40, 6  ;;  %v9180_v57 = vld [vmem:[#allocation2 + $0x280] sm:$0x3]  ;;  %v8973_v9 = vld [vmem:[#allocation2 + $0x28c] sm:$0xe] }
 0x283   : > { %v19023_v49 = vpop.permute.xlu0 %4157  ;;  %9510 = vrot.lane.b32.xlu1 %v13829_v63, %s15593_s17  ;;  %v3752_v35 = vsel %vm17490_vm13, %v13267_v46, %v3751_v5  ;;  %v3753_v51 = vrot.slane %v3751_v5, 4  ;;  %v13394_v60 = vrot.slane %v5108_v11, 11  ;;  %v5222_v34 = vrot.slane %v5109_v45, 7  ;;  %v8974_v16 = vld [vmem:[#allocation2 + $0x290] sm:$0xf] }
 0x284   : > { %v5738_v27 = vsel %vm16535_vm7, %v5736_v44, %v5737_v8  ;;  %v5225_v32 = vrot.slane %v5110_v36, 7  ;;  %v13379_v61 = vrot.slane %v4903_v20, 9  ;;  %v5021_v39 = vrot.slane %v4904_v50, 5  ;;  %v8975_v0 = vld [vmem:[#allocation2 + $0x294] sm:$0x1] }
 0x285   : > { %v19030_v13 = vpop.permute.xlu1 %6410  ;;  %5408 = vrot.lane.b32.xlu0 %v13426_v30, %s15593_s17  ;;  %v13508_v48 = vcombine.low %v5735_v14, %v5738_v27  ;;  %v3755_v6 = vsel %vm17490_vm13, %v3753_v51, %v3754_v2  ;;  %v5223_v19 = vsel %vm16535_vm7, %v13394_v60, %v5222_v34  ;;  %v5224_v38 = vrot.slane %v5222_v34, 4  ;;  %v5615_v47 = vld [vmem:[#allocation2 + $0x2bc] sm:$0x8]  ;;  %v5616_v46 = vld [vmem:[#allocation2 + $0x2c0] sm:$0xf] }
 0x286   : > { %v13299_v15 = vcombine.low %v3752_v35, %v3755_v6  ;;  %v5022_v22 = vsel %vm16671_vm10, %v13379_v61, %v5021_v39  ;;  %v5023_v33 = vrot.slane %v5021_v39, 4  ;;  %v5024_v7 = vrot.slane %v4905_v41, 5  ;;  %v5617_v30 = vld [vmem:[#allocation2 + $0x2c4] sm:$0x7]  ;;  %v9181_v35 = vld [vmem:[#allocation2 + $0x294] sm:$0xc] }
 0x287   : > { %v19039_v10 = vpop.permute.xlu0 %6332  ;;  %v6446_v31 = vsel %vm1257_vm5, %v13508_v48, %v18928_v4  ;;  %v5226_v17 = vsel %vm16535_vm7, %v5224_v38, %v5225_v32  ;;  %v13268_v23 = vrot.slane %v3632_v28, 10  ;;  %v3758_v40 = vrot.slane %v3633_v55, 6  ;;  %v9182_v51 = vld [vmem:[#allocation2 + $0x298] sm:$0xf]  ;;  %v9183_v32 = vld [vmem:[#allocation2 + $0x29c] sm:$0x3] }
 0x288   : > { %v4287_v26 = vsel %vm1257_vm5, %v13299_v15, %v18937_v24  ;;  %v13442_v62 = vcombine.low %v5223_v19, %v5226_v17  ;;  %v5025_v11 = vsel %vm16671_vm10, %v5023_v33, %v5024_v7  ;;  %v3761_v45 = vrot.slane %v3634_v43, 6  ;;  %v5113_v33 = vld [vmem:[#allocation2 + $0x148] sm:$0x7] }
 0x289   : > { %v19049_v59 = vpop.permute.xlu1 %6412  ;;  %v13427_v4 = vcombine.low %v5022_v22, %v5025_v11  ;;  %v4328_v8 = vsel %vm2432_vm0, %v4287_v26, %v18945_v58  ;;  %v3759_v36 = vsel %vm17490_vm13, %v13268_v23, %v3758_v40  ;;  %v3760_v63 = vrot.slane %v3758_v40, 4  ;;  %v5112_v22 = vld [vmem:[#allocation2 + $0x144] sm:$0xf]  ;;  %v8976_v23 = vld [vmem:[#allocation2 + $0x2a8] sm:$0xe] }
 0x28a   : > { %5488 = vrot.lane.b32.xlu1 %v13442_v62, %s15592_s12  ;;  %14434 = vmatprep.mubr.msk.bf16.mxu1 %vm3211_vm1, %v4328_v8  ;;  %v13797_v24 = vrot.slane %v9178_v3, 10  ;;  %v9292_v5 = vrot.slane %v9179_v56, 6  ;;  %v9295_v20 = vrot.slane %v9180_v57, 6  ;;  %v13782_v50 = vrot.slane %v8973_v9, 9  ;;  %v8977_v40 = vld [vmem:[#allocation2 + $0x2ac] sm:$0xf] }
 0x28b   : > { %v19057_v14 = vpop.permute.xlu0 %4253  ;;  %5410 = vrot.lane.b32.xlu0 %v13427_v4, %s15593_s17  ;;  %v3762_v58 = vsel %vm17490_vm13, %v3760_v63, %v3761_v45  ;;  %v9091_v44 = vrot.slane %v8974_v16, 5  ;;  %v9094_v2 = vrot.slane %v8975_v0, 5  ;;  %v6487_v41 = vsel %vm2432_vm0, %v6446_v31, %v18964_v29  ;;  %v5111_v29 = vld [vmem:[#allocation2 + $0x140] sm:$0x8]  ;;  %v8978_v62 = vld [vmem:[#allocation2 + $0x2b0] sm:$0x1] }
 0x28c   : > { %v13300_v60 = vcombine.low %v3759_v36, %v3762_v58  ;;  %v9293_v34 = vsel %vm17490_vm13, %v13797_v24, %v9292_v5  ;;  %v9294_v28 = vrot.slane %v9292_v5, 4  ;;  %v13461_v27 = vrot.slane %v5615_v47, 11  ;;  %14468 = vmatprep.mubr.msk.bf16.mxu0 %vm3211_vm1, %v6487_v41  ;;  %v4906_v11 = vld [vmem:[#allocation2 + $0x158] sm:$0xe]  ;;  %v4907_v36 = vld [vmem:[#allocation2 + $0x15c] sm:$0xf] }
 0x28d   : > { %v19067_v61 = vpop.permute.xlu1 %6334  ;;  %v9092_v39 = vsel %vm16671_vm10, %v13782_v50, %v9091_v44  ;;  %v9093_v55 = vrot.slane %v9091_v44, 4  ;;  %v5741_v48 = vrot.slane %v5616_v46, 7  ;;  %v5744_v6 = vrot.slane %v5617_v30, 7  ;;  %v4908_v5 = vld [vmem:[#allocation2 + $0x160] sm:$0x1] }
 0x28e   : > { %v4290_v19 = vsel %vm1257_vm5, %v13300_v60, %v18955_v54  ;;  %v9296_v38 = vsel %vm17490_vm13, %v9294_v28, %v9295_v20  ;;  %v13798_v43 = vrot.slane %v9181_v35, 10  ;;  %v9299_v15 = vrot.slane %v9182_v51, 6  ;;  %v5618_v20 = vld [vmem:[#allocation2 + $0x2d8] sm:$0x8]  ;;  %v5619_v41 = vld [vmem:[#allocation2 + $0x2dc] sm:$0xf] }
 0x28f   : > { %v19075_v7 = vpop.permute.xlu0 %4159  ;;  %v13845_v3 = vcombine.low %v9293_v34, %v9296_v38  ;;  %v9095_v56 = vsel %vm16671_vm10, %v9093_v55, %v9094_v2  ;;  %v5742_v31 = vsel %vm16535_vm7, %v13461_v27, %v5741_v48  ;;  %v5743_v17 = vrot.slane %v5741_v48, 4  ;;  %v5620_v35 = vld [vmem:[#allocation2 + $0x2e0] sm:$0x7]  ;;  %v3635_v28 = vld [vmem:[#allocation2 + $0x384] sm:$0xc] }
 0x290   : > { %v13830_v54 = vcombine.low %v9092_v39, %v9095_v56  ;;  %v9300_v57 = vsel %vm17490_vm13, %v13798_v43, %v9299_v15  ;;  %v9301_v9 = vrot.slane %v9299_v15, 4  ;;  %v9302_v26 = vrot.slane %v9183_v32, 6  ;;  %v3636_v48 = vld [vmem:[#allocation2 + $0x388] sm:$0xf]  ;;  %v5114_v15 = vld [vmem:[#allocation2 + $0x15c] sm:$0x8] }
 0x291   : > { %v19083_v45 = vpop.permute.xlu1 %4255  ;;  %9590 = vrot.lane.b32.xlu1 %v13845_v3, %s15592_s12  ;;  %v5745_v16 = vsel %vm16535_vm7, %v5743_v17, %v5744_v6  ;;  %v13395_v0 = vrot.slane %v5111_v29, 11  ;;  %v5229_v4 = vrot.slane %v5112_v22, 7  ;;  %v5232_v8 = vrot.slane %v5113_v33, 7  ;;  %v3637_v6 = vld [vmem:[#allocation2 + $0x38c] sm:$0x3] }
 0x292   : > { %9512 = vrot.lane.b32.xlu0 %v13830_v54, %s15593_s17  ;;  %v13509_v63 = vcombine.low %v5742_v31, %v5745_v16  ;;  %v9303_v47 = vsel %vm17490_vm13, %v9301_v9, %v9302_v26  ;;  %v4330_v46 = vsel %vm2432_vm0, %v4290_v19, %v18988_v25  ;;  %v13783_v24 = vrot.slane %v8976_v23, 9  ;;  %v5115_v22 = vld [vmem:[#allocation2 + $0x160] sm:$0xf]  ;;  %v5116_v17 = vld [vmem:[#allocation2 + $0x164] sm:$0x7] }
 0x293   : > { %v19093_v50 = vpop.permute.xlu0 %4161  ;;  %v13846_v30 = vcombine.low %v9300_v57, %v9303_v47  ;;  %v5230_v58 = vsel %vm16535_vm7, %v13395_v0, %v5229_v4  ;;  %v5231_v44 = vrot.slane %v5229_v4, 4  ;;  %14435 = vmatmul.mubr.msk.bf16.gmra.mrb[44].mxu1 %vm3211_vm1, %v4330_v46  ;;  %v9098_v2 = vrot.slane %v8977_v40, 5  ;;  %v4909_v9 = vld [vmem:[#allocation2 + $0x174] sm:$0xe]  ;;  %v4910_v26 = vld [vmem:[#allocation2 + $0x178] sm:$0xf] }
 0x294   : > { %v6449_v51 = vsel %vm1257_vm5, %v13509_v63, %v18971_v37  ;;  %v9101_v60 = vrot.slane %v8978_v62, 5  ;;  %v13380_v25 = vrot.slane %v4906_v11, 9  ;;  %v5028_v34 = vrot.slane %v4907_v36, 5  ;;  %v4911_v4 = vld [vmem:[#allocation2 + $0x17c] sm:$0x1] }
 0x295   : > { %9592 = vrot.lane.b32.xlu1 %v13846_v30, %s15592_s12  ;;  %v5233_v27 = vsel %vm16535_vm7, %v5231_v44, %v5232_v8  ;;  %v6489_v32 = vsel %vm2432_vm0, %v6449_v51, %v18981_v42  ;;  %v9099_v39 = vsel %vm16671_vm10, %v13783_v24, %v9098_v2  ;;  %v9100_v55 = vrot.slane %v9098_v2, 4  ;;  %v19107_v29 = vpop.permute.xlu1 %6414  ;;  %v3638_v46 = vld [vmem:[#allocation2 + $0x3a0] sm:$0xc]  ;;  %v3639_v44 = vld [vmem:[#allocation2 + $0x3a4] sm:$0xf] }
 0x296   : > { %v13443_v37 = vcombine.low %v5230_v58, %v5233_v27  ;;  %14469 = vmatmul.mubr.msk.bf16.gmra.mrb[16].mxu0 %vm3211_vm1, %v6489_v32  ;;  %v5029_v19 = vsel %vm16671_vm10, %v13380_v25, %v5028_v34  ;;  %v5030_v38 = vrot.slane %v5028_v34, 4  ;;  %v5031_v43 = vrot.slane %v4908_v5, 5  ;;  %v3640_v25 = vld [vmem:[#allocation2 + $0x3a8] sm:$0x3] }
 0x297   : > { %v19112_v33 = vpop.permute.xlu0 %6336  ;;  %v9102_v42 = vsel %vm16671_vm10, %v9100_v55, %v9101_v60  ;;  %v13462_v3 = vrot.slane %v5618_v20, 11  ;;  %v5748_v56 = vrot.slane %v5619_v41, 7  ;;  %v5751_v31 = vrot.slane %v5620_v35, 7  ;;  %v9185_v55 = vld [vmem:[#allocation2 + $0x2b4] sm:$0xf] }
 0x298   : > { %5490 = vrot.lane.b32.xlu0 %v13443_v37, %s15592_s12  ;;  %v13831_v23 = vcombine.low %v9099_v39, %v9102_v42  ;;  %v5032_v40 = vsel %vm16671_vm10, %v5030_v38, %v5031_v43  ;;  %v13269_v54 = vrot.slane %v3635_v28, 10  ;;  %v3765_v57 = vrot.slane %v3636_v48, 6  ;;  %v9184_v39 = vld [vmem:[#allocation2 + $0x2b0] sm:$0xc]  ;;  %v9186_v38 = vld [vmem:[#allocation2 + $0x2b8] sm:$0x3] }
 0x299   : > { %v13428_v62 = vcombine.low %v5029_v19, %v5032_v40  ;;  %v5749_v11 = vsel %vm16535_vm7, %v13462_v3, %v5748_v56  ;;  %v5750_v16 = vrot.slane %v5748_v56, 4  ;;  %v3768_v0 = vrot.slane %v3637_v6, 6  ;;  %v8979_v43 = vld [vmem:[#allocation2 + $0x2c4] sm:$0xe]  ;;  %v8980_v56 = vld [vmem:[#allocation2 + $0x2c8] sm:$0xf] }
 0x29a   : > { %9514 = vrot.lane.b32.xlu1 %v13831_v23, %s15593_s17  ;;  %v3766_v8 = vsel %vm17490_vm13, %v13269_v54, %v3765_v57  ;;  %v3767_v36 = vrot.slane %v3765_v57, 4  ;;  %v13396_v63 = vrot.slane %v5114_v15, 11  ;;  %v5236_v47 = vrot.slane %v5115_v22, 7 }
 0x29b   : > { %v19124_v24 = vpop.permute.xlu0 %4257  ;;  %v5752_v5 = vsel %vm16535_vm7, %v5750_v16, %v5751_v31  ;;  %v5239_v20 = vrot.slane %v5116_v17, 7  ;;  %v13381_v30 = vrot.slane %v4909_v9, 9  ;;  %v5035_v58 = vrot.slane %v4910_v26, 5  ;;  %v19128_v2 = vpop.permute.xlu1 %6416  ;;  %v8981_v31 = vld [vmem:[#allocation2 + $0x2cc] sm:$0x1] }
 0x29c   : > { %5412 = vrot.lane.b32.xlu0 %v13428_v62, %s15593_s17  ;;  %v13510_v41 = vcombine.low %v5749_v11, %v5752_v5  ;;  %v3769_v35 = vsel %vm17490_vm13, %v3767_v36, %v3768_v0  ;;  %v5237_v51 = vsel %vm16535_vm7, %v13396_v63, %v5236_v47  ;;  %v5238_v60 = vrot.slane %v5236_v47, 4  ;;  %v5622_v9 = vld [vmem:[#allocation2 + $0x2f8] sm:$0xf]  ;;  %v5623_v0 = vld [vmem:[#allocation2 + $0x2fc] sm:$0x7] }
 0x29d   : > { %v13301_v34 = vcombine.low %v3766_v8, %v3769_v35  ;;  %v5036_v28 = vsel %vm16671_vm10, %v13381_v30, %v5035_v58  ;;  %v5037_v27 = vrot.slane %v5035_v58, 4  ;;  %v5038_v32 = vrot.slane %v4911_v4, 5  ;;  %v9187_v63 = vld [vmem:[#allocation2 + $0x2cc] sm:$0xc]  ;;  %v9188_v47 = vld [vmem:[#allocation2 + $0x2d0] sm:$0xf] }
 0x29e   : > { %v6452_v48 = vsel %vm1257_vm5, %v13510_v41, %v18998_v1  ;;  %v5240_v6 = vsel %vm16535_vm7, %v5238_v60, %v5239_v20  ;;  %v13270_v37 = vrot.slane %v3638_v46, 10  ;;  %v3772_v19 = vrot.slane %v3639_v44, 6  ;;  %v9189_v58 = vld [vmem:[#allocation2 + $0x2d4] sm:$0x3] }
 0x29f   : > { %v4293_v15 = vsel %vm1257_vm5, %v13301_v34, %v19009_v21  ;;  %v13444_v22 = vcombine.low %v5237_v51, %v5240_v6  ;;  %v5039_v42 = vsel %vm16671_vm10, %v5037_v27, %v5038_v32  ;;  %v3775_v3 = vrot.slane %v3640_v25, 6  ;;  %v19145_v17 = vpop.permute.xlu1 %6338  ;;  %v19147_v1 = vpop.permute.xlu0 %4163  ;;  %v5621_v21 = vld [vmem:[#allocation2 + $0x2f4] sm:$0x8]  ;;  %v5118_v32 = vld [vmem:[#allocation2 + $0x17c] sm:$0xf] }
 0x2a0   : > { %v13429_v23 = vcombine.low %v5036_v28, %v5039_v42  ;;  %v4332_v40 = vsel %vm2432_vm0, %v4293_v15, %v19016_v53  ;;  %v3773_v54 = vsel %vm17490_vm13, %v13270_v37, %v3772_v19  ;;  %v3774_v57 = vrot.slane %v3772_v19, 4 }
 0x2a1   : > { %5492 = vrot.lane.b32.xlu1 %v13444_v22, %s15592_s12  ;;  %14438 = vmatprep.mubr.msk.bf16.mxu1 %vm3211_vm1, %v4332_v40  ;;  %v13799_v26 = vrot.slane %v9184_v39, 10  ;;  %v9306_v62 = vrot.slane %v9185_v55, 6  ;;  %v9309_v11 = vrot.slane %v9186_v38, 6  ;;  %v13784_v16 = vrot.slane %v8979_v43, 9  ;;  %v5119_v39 = vld [vmem:[#allocation2 + $0x180] sm:$0x7] }
 0x2a2   : > { %5414 = vrot.lane.b32.xlu0 %v13429_v23, %s15593_s17  ;;  %v3776_v53 = vsel %vm17490_vm13, %v3774_v57, %v3775_v3  ;;  %v9105_v4 = vrot.slane %v8980_v56, 5  ;;  %v9108_v8 = vrot.slane %v8981_v31, 5  ;;  %v6491_v36 = vsel %vm2432_vm0, %v6452_v48, %v19030_v13  ;;  %v5117_v13 = vld [vmem:[#allocation2 + $0x178] sm:$0x8]  ;;  %v8982_v38 = vld [vmem:[#allocation2 + $0x2e0] sm:$0xe] }
 0x2a3   : > { %v13302_v46 = vcombine.low %v3773_v54, %v3776_v53  ;;  %v9307_v5 = vsel %vm17490_vm13, %v13799_v26, %v9306_v62  ;;  %v9308_v20 = vrot.slane %v9306_v62, 4  ;;  %v13463_v30 = vrot.slane %v5621_v21, 11  ;;  %14472 = vmatprep.mubr.msk.bf16.mxu0 %vm3211_vm1, %v6491_v36  ;;  %v19163_v44 = vpop.permute.xlu1 %4259  ;;  %v8983_v43 = vld [vmem:[#allocation2 + $0x2e4] sm:$0xf]  ;;  %v8984_v3 = vld [vmem:[#allocation2 + $0x2e8] sm:$0x1] }
 0x2a4   : > { %v9106_v41 = vsel %vm16671_vm10, %v13784_v16, %v9105_v4  ;;  %v9107_v35 = vrot.slane %v9105_v4, 4  ;;  %v5755_v51 = vrot.slane %v5622_v9, 7  ;;  %v5758_v60 = vrot.slane %v5623_v0, 7  ;;  %v4912_v56 = vld [vmem:[#allocation2 + $0x190] sm:$0xe] }
 0x2a5   : > { %v4296_v25 = vsel %vm1257_vm5, %v13302_v46, %v19023_v49  ;;  %v9310_v34 = vsel %vm17490_vm13, %v9308_v20, %v9309_v11  ;;  %v13800_v28 = vrot.slane %v9187_v63, 10  ;;  %v9313_v27 = vrot.slane %v9188_v47, 6  ;;  %v19171_v55 = vpop.permute.xlu0 %4165  ;;  %v4913_v57 = vld [vmem:[#allocation2 + $0x194] sm:$0xf]  ;;  %v4914_v11 = vld [vmem:[#allocation2 + $0x198] sm:$0x1] }
 0x2a6   : > { %v13847_v48 = vcombine.low %v9307_v5, %v9310_v34  ;;  %v9109_v6 = vsel %vm16671_vm10, %v9107_v35, %v9108_v8  ;;  %v5756_v37 = vsel %vm16535_vm7, %v13463_v30, %v5755_v51  ;;  %v5757_v19 = vrot.slane %v5755_v51, 4  ;;  %v5624_v16 = vld [vmem:[#allocation2 + $0x310] sm:$0x8]  ;;  %v5625_v63 = vld [vmem:[#allocation2 + $0x314] sm:$0xf] }
 0x2a7   : > { %v13832_v49 = vcombine.low %v9106_v41, %v9109_v6  ;;  %v9314_v15 = vsel %vm17490_vm13, %v13800_v28, %v9313_v27  ;;  %v9315_v22 = vrot.slane %v9313_v27, 4  ;;  %v9316_v42 = vrot.slane %v9189_v58, 6  ;;  %v19187_v0 = vpop.permute.xlu1 %6418  ;;  %v5626_v47 = vld [vmem:[#allocation2 + $0x318] sm:$0x7]  ;;  %v3641_v58 = vld [vmem:[#allocation2 + $0x3bc] sm:$0xc] }
 0x2a8   : > { %9594 = vrot.lane.b32.xlu1 %v13847_v48, %s15592_s12  ;;  %v5759_v31 = vsel %vm16535_vm7, %v5757_v19, %v5758_v60  ;;  %v13397_v23 = vrot.slane %v5117_v13, 11  ;;  %v5243_v40 = vrot.slane %v5118_v32, 7  ;;  %v5246_v54 = vrot.slane %v5119_v39, 7  ;;  %v3642_v13 = vld [vmem:[#allocation2 + $0x3c0] sm:$0xf] }
 0x2a9   : > { %9516 = vrot.lane.b32.xlu0 %v13832_v49, %s15593_s17  ;;  %v13511_v21 = vcombine.low %v5756_v37, %v5759_v31  ;;  %v9317_v9 = vsel %vm17490_vm13, %v9315_v22, %v9316_v42  ;;  %v4334_v26 = vsel %vm2432_vm0, %v4296_v25, %v19057_v14  ;;  %v13785_v62 = vrot.slane %v8982_v38, 9  ;;  %v3643_v25 = vld [vmem:[#allocation2 + $0x3c4] sm:$0x3]  ;;  %v5120_v32 = vld [vmem:[#allocation2 + $0x194] sm:$0x8] }
 0x2aa   : > { %v13848_v53 = vcombine.low %v9314_v15, %v9317_v9  ;;  %v5244_v4 = vsel %vm16535_vm7, %v13397_v23, %v5243_v40  ;;  %v5245_v8 = vrot.slane %v5243_v40, 4  ;;  %14439 = vmatmul.mubr.msk.bf16.gmra.mrb[48].mxu1 %vm3211_vm1, %v4334_v26  ;;  %v9112_v36 = vrot.slane %v8983_v43, 5  ;;  %v19192_v46 = vpop.permute.xlu0 %6340  ;;  %v5121_v39 = vld [vmem:[#allocation2 + $0x198] sm:$0xf]  ;;  %v5122_v19 = vld [vmem:[#allocation2 + $0x19c] sm:$0x7] }
 0x2ab   : > { %v6455_v14 = vsel %vm1257_vm5, %v13511_v21, %v19039_v10  ;;  %v9115_v5 = vrot.slane %v8984_v3, 5  ;;  %v13382_v20 = vrot.slane %v4912_v56, 9  ;;  %v5042_v30 = vrot.slane %v4913_v57, 5  ;;  %v4915_v22 = vld [vmem:[#allocation2 + $0x1ac] sm:$0xe] }
 0x2ac   : > { %9596 = vrot.lane.b32.xlu1 %v13848_v53, %s15592_s12  ;;  %v5247_v41 = vsel %vm16535_vm7, %v5245_v8, %v5246_v54  ;;  %v6493_v35 = vsel %vm2432_vm0, %v6455_v14, %v19049_v59  ;;  %v9113_v51 = vsel %vm16671_vm10, %v13785_v62, %v9112_v36  ;;  %v9114_v60 = vrot.slane %v9112_v36, 4  ;;  %v4916_v42 = vld [vmem:[#allocation2 + $0x1b0] sm:$0xf]  ;;  %v4917_v57 = vld [vmem:[#allocation2 + $0x1b4] sm:$0x1] }
 0x2ad   : > { %v13445_v34 = vcombine.low %v5244_v4, %v5247_v41  ;;  %14473 = vmatmul.mubr.msk.bf16.gmra.mrb[20].mxu0 %vm3211_vm1, %v6493_v35  ;;  %v5043_v10 = vsel %vm16671_vm10, %v13382_v20, %v5042_v30  ;;  %v5044_v28 = vrot.slane %v5042_v30, 4  ;;  %v5045_v27 = vrot.slane %v4914_v11, 5  ;;  %v3644_v11 = vld [vmem:[#allocation2 + $0x3d8] sm:$0xc]  ;;  %v3645_v36 = vld [vmem:[#allocation2 + $0x3dc] sm:$0xf] }
 0x2ae   : > { %v9116_v48 = vsel %vm16671_vm10, %v9114_v60, %v9115_v5  ;;  %v13464_v59 = vrot.slane %v5624_v16, 11  ;;  %v5762_v6 = vrot.slane %v5625_v63, 7  ;;  %v5765_v37 = vrot.slane %v5626_v47, 7  ;;  %v19213_v56 = vpop.permute.xlu0 %4261  ;;  %v3646_v20 = vld [vmem:[#allocation2 + $0x3e0] sm:$0x3] }
 0x2af   : > { %5494 = vrot.lane.b32.xlu0 %v13445_v34, %s15592_s12  ;;  %v13833_v38 = vcombine.low %v9113_v51, %v9116_v48  ;;  %v5046_v43 = vsel %vm16671_vm10, %v5044_v28, %v5045_v27  ;;  %v13271_v49 = vrot.slane %v3641_v58, 10  ;;  %v3779_v15 = vrot.slane %v3642_v13, 6  ;;  %v19211_v3 = vpop.permute.xlu1 %6420  ;;  %v9190_v60 = vld [vmem:[#allocation2 + $0x2e8] sm:$0xc]  ;;  %v9191_v13 = vld [vmem:[#allocation2 + $0x2ec] sm:$0xf] }
 0x2b0   : > { %v13430_v31 = vcombine.low %v5043_v10, %v5046_v43  ;;  %v5763_v23 = vsel %vm16535_vm7, %v13464_v59, %v5762_v6  ;;  %v5764_v40 = vrot.slane %v5762_v6, 4  ;;  %v3782_v54 = vrot.slane %v3643_v25, 6  ;;  %v9192_v27 = vld [vmem:[#allocation2 + $0x2f0] sm:$0x3] }
 0x2b1   : > { %9518 = vrot.lane.b32.xlu1 %v13833_v38, %s15593_s17  ;;  %v3780_v21 = vsel %vm17490_vm13, %v13271_v49, %v3779_v15  ;;  %v3781_v9 = vrot.slane %v3779_v15, 4  ;;  %v13398_v26 = vrot.slane %v5120_v32, 11  ;;  %v5250_v62 = vrot.slane %v5121_v39, 7  ;;  %v8985_v32 = vld [vmem:[#allocation2 + $0x2fc] sm:$0xe] }
 0x2b2   : > { %v5766_v16 = vsel %vm16535_vm7, %v5764_v40, %v5765_v37  ;;  %v5253_v53 = vrot.slane %v5122_v19, 7  ;;  %v13383_v4 = vrot.slane %v4915_v22, 9  ;;  %v5049_v8 = vrot.slane %v4916_v42, 5  ;;  %v8986_v19 = vld [vmem:[#allocation2 + $0x300] sm:$0xf] }
 0x2b3   : > { %5416 = vrot.lane.b32.xlu0 %v13430_v31, %s15593_s17  ;;  %v13512_v63 = vcombine.low %v5763_v23, %v5766_v16  ;;  %v3783_v47 = vsel %vm17490_vm13, %v3781_v9, %v3782_v54  ;;  %v5251_v14 = vsel %vm16535_vm7, %v13398_v26, %v5250_v62  ;;  %v5252_v5 = vrot.slane %v5250_v62, 4  ;;  %v19227_v30 = vpop.permute.xlu1 %6342  ;;  %v8987_v38 = vld [vmem:[#allocation2 + $0x304] sm:$0x1]  ;;  %v5627_v22 = vld [vmem:[#allocation2 + $0x32c] sm:$0x8] }
 0x2b4   : > { %v13303_v58 = vcombine.low %v3780_v21, %v3783_v47  ;;  %v5050_v41 = vsel %vm16671_vm10, %v13383_v4, %v5049_v8  ;;  %v5051_v35 = vrot.slane %v5049_v8, 4  ;;  %v5052_v51 = vrot.slane %v4917_v57, 5  ;;  %v19235_v39 = vpop.permute.xlu0 %4167  ;;  %v5628_v42 = vld [vmem:[#allocation2 + $0x330] sm:$0xf]  ;;  %v5629_v54 = vld [vmem:[#allocation2 + $0x334] sm:$0x7] }
 0x2b5   : > { %v6458_v25 = vsel %vm1257_vm5, %v13512_v63, %v19067_v61  ;;  %v5254_v34 = vsel %vm16535_vm7, %v5252_v5, %v5253_v53  ;;  %v13272_v10 = vrot.slane %v3644_v11, 10  ;;  %v3786_v28 = vrot.slane %v3645_v36, 6  ;;  %v9193_v62 = vld [vmem:[#allocation2 + $0x304] sm:$0xc]  ;;  %v9194_v11 = vld [vmem:[#allocation2 + $0x308] sm:$0xf] }
 0x2b6   : > { %v4299_v48 = vsel %vm1257_vm5, %v13303_v58, %v19075_v7  ;;  %v13446_v59 = vcombine.low %v5251_v14, %v5254_v34  ;;  %v5053_v6 = vsel %vm16671_vm10, %v5051_v35, %v5052_v51  ;;  %v3789_v37 = vrot.slane %v3646_v20, 6  ;;  %v9195_v36 = vld [vmem:[#allocation2 + $0x30c] sm:$0x3]  ;;  %v5123_v63 = vld [vmem:[#allocation2 + $0x1b0] sm:$0x8] }
 0x2b7   : > { %v13431_v61 = vcombine.low %v5050_v41, %v5053_v6  ;;  %v4336_v43 = vsel %vm2432_vm0, %v4299_v48, %v19083_v45  ;;  %v3787_v49 = vsel %vm17490_vm13, %v13272_v10, %v3786_v28  ;;  %v3788_v15 = vrot.slane %v3786_v28, 4  ;;  %v19247_v57 = vpop.permute.xlu1 %4263  ;;  %v5124_v58 = vld [vmem:[#allocation2 + $0x1b4] sm:$0xf]  ;;  %v8990_v48 = vld [vmem:[#allocation2 + $0x320] sm:$0x1] }
 0x2b8   : > { %5496 = vrot.lane.b32.xlu1 %v13446_v59, %s15592_s12  ;;  %14442 = vmatprep.mubr.msk.bf16.mxu1 %vm3211_vm1, %v4336_v43  ;;  %v13801_v7 = vrot.slane %v9190_v60, 10  ;;  %v9320_v31 = vrot.slane %v9191_v13, 6  ;;  %v9323_v23 = vrot.slane %v9192_v27, 6  ;;  %v13786_v40 = vrot.slane %v8985_v32, 9  ;;  %v5125_v13 = vld [vmem:[#allocation2 + $0x1b8] sm:$0x7] }
 0x2b9   : > { %5418 = vrot.lane.b32.xlu0 %v13431_v61, %s15593_s17  ;;  %v3790_v45 = vsel %vm17490_vm13, %v3788_v15, %v3789_v37  ;;  %v9119_v21 = vrot.slane %v8986_v19, 5  ;;  %v9122_v9 = vrot.slane %v8987_v38, 5  ;;  %v6495_v26 = vsel %vm2432_vm0, %v6458_v25, %v19107_v29  ;;  %v19259_v29 = vpop.permute.xlu0 %4169  ;;  %v8988_v25 = vld [vmem:[#allocation2 + $0x318] sm:$0xe]  ;;  %v8989_v32 = vld [vmem:[#allocation2 + $0x31c] sm:$0xf] }
 0x2ba   : > { %v13304_v16 = vcombine.low %v3787_v49, %v3790_v45  ;;  %v9321_v53 = vsel %vm17490_vm13, %v13801_v7, %v9320_v31  ;;  %v9322_v4 = vrot.slane %v9320_v31, 4  ;;  %v13465_v8 = vrot.slane %v5627_v22, 11  ;;  %14476 = vmatprep.mubr.msk.bf16.mxu0 %vm3211_vm1, %v6495_v26  ;;  %v4918_v19 = vld [vmem:[#allocation2 + $0x1c8] sm:$0xe]  ;;  %v4919_v38 = vld [vmem:[#allocation2 + $0x1cc] sm:$0xf] }
 0x2bb   : > { %v9120_v47 = vsel %vm16671_vm10, %v13786_v40, %v9119_v21  ;;  %v9121_v14 = vrot.slane %v9119_v21, 4  ;;  %v5769_v5 = vrot.slane %v5628_v42, 7  ;;  %v5772_v20 = vrot.slane %v5629_v54, 7  ;;  %v4920_v42 = vld [vmem:[#allocation2 + $0x1d0] sm:$0x1] }
 0x2bc   : > { %v4302_v41 = vsel %vm1257_vm5, %v13304_v16, %v19093_v50  ;;  %v9324_v35 = vsel %vm17490_vm13, %v9322_v4, %v9323_v23  ;;  %v13802_v51 = vrot.slane %v9193_v62, 10  ;;  %v9327_v60 = vrot.slane %v9194_v11, 6  ;;  %v5630_v54 = vld [vmem:[#allocation2 + $0x348] sm:$0x8]  ;;  %v5631_v45 = vld [vmem:[#allocation2 + $0x34c] sm:$0xf] }
 0x2bd   : > { %v13849_v34 = vcombine.low %v9321_v53, %v9324_v35  ;;  %v9123_v10 = vsel %vm16671_vm10, %v9121_v14, %v9122_v9  ;;  %v5770_v28 = vsel %vm16535_vm7, %v13465_v8, %v5769_v5  ;;  %v5771_v27 = vrot.slane %v5769_v5, 4  ;;  %v5632_v21 = vld [vmem:[#allocation2 + $0x350] sm:$0x7]  ;;  %v3647_v16 = vld [vmem:[#allocation2 + $0x3f4] sm:$0xc] }
 0x2be   : > { %v13834_v59 = vcombine.low %v9120_v47, %v9123_v10  ;;  %v9328_v50 = vsel %vm17490_vm13, %v13802_v51, %v9327_v60  ;;  %v9329_v6 = vrot.slane %v9327_v60, 4  ;;  %v9330_v37 = vrot.slane %v9195_v36, 6  ;;  %v19271_v61 = vpop.permute.xlu1 %6422  ;;  %v3648_v53 = vld [vmem:[#allocation2 + $0x3f8] sm:$0xf]  ;;  %v3649_v47 = vld [vmem:[#allocation2 + $0x3fc] sm:$0x3] }
 0x2bf   : > { %9598 = vrot.lane.b32.xlu1 %v13849_v34, %s15592_s12  ;;  %v5773_v43 = vsel %vm16535_vm7, %v5771_v27, %v5772_v20  ;;  %v13399_v49 = vrot.slane %v5123_v63, 11  ;;  %v5257_v15 = vrot.slane %v5124_v58, 7  ;;  %v5260_v22 = vrot.slane %v5125_v13, 7  ;;  %v5127_v13 = vld [vmem:[#allocation2 + $0x1d0] sm:$0xf] }
 0x2c0   : > { %9520 = vrot.lane.b32.xlu0 %v13834_v59, %s15593_s17  ;;  %v13513_v7 = vcombine.low %v5770_v28, %v5773_v43  ;;  %v9331_v31 = vsel %vm17490_vm13, %v9329_v6, %v9330_v37  ;;  %v4338_v23 = vsel %vm2432_vm0, %v4302_v41, %v19124_v24  ;;  %v13787_v40 = vrot.slane %v8988_v25, 9  ;;  %v5126_v41 = vld [vmem:[#allocation2 + $0x1cc] sm:$0x8]  ;;  %v5128_v27 = vld [vmem:[#allocation2 + $0x1d4] sm:$0x7] }
 0x2c1   : > { %v13850_v9 = vcombine.low %v9328_v50, %v9331_v31  ;;  %v5258_v26 = vsel %vm16535_vm7, %v13399_v49, %v5257_v15  ;;  %v5259_v62 = vrot.slane %v5257_v15, 4  ;;  %14443 = vmatmul.mubr.msk.bf16.gmra.mrb[52].mxu1 %vm3211_vm1, %v4338_v23  ;;  %v9126_v11 = vrot.slane %v8989_v32, 5  ;;  %v19284_v4 = vpop.permute.xlu0 %6344  ;;  %v4921_v37 = vld [vmem:[#allocation2 + $0x1e4] sm:$0xe] }
 0x2c2   : > { %v6461_v8 = vsel %vm1257_vm5, %v13513_v7, %v19112_v33  ;;  %v9129_v24 = vrot.slane %v8990_v48, 5  ;;  %v13384_v36 = vrot.slane %v4918_v19, 9  ;;  %v5056_v63 = vrot.slane %v4919_v38, 5  ;;  %v4922_v19 = vld [vmem:[#allocation2 + $0x1e8] sm:$0xf] }
 0x2c3   : > { %9600 = vrot.lane.b32.xlu1 %v13850_v9, %s15592_s12  ;;  %v5261_v14 = vsel %vm16535_vm7, %v5259_v62, %v5260_v22  ;;  %v6497_v5 = vsel %vm2432_vm0, %v6461_v8, %v19128_v2  ;;  %v9127_v20 = vsel %vm16671_vm10, %v13787_v40, %v9126_v11  ;;  %v9128_v58 = vrot.slane %v9126_v11, 4  ;;  %v4923_v22 = vld [vmem:[#allocation2 + $0x1ec] sm:$0x1]  ;;  %v3652_v62 = vld [vmem:[#allocation2 + $0x418] sm:$0x3] }
 0x2c4   : > { %v13447_v35 = vcombine.low %v5258_v26, %v5261_v14  ;;  %14477 = vmatmul.mubr.msk.bf16.gmra.mrb[24].mxu0 %vm3211_vm1, %v6497_v5  ;;  %v5057_v33 = vsel %vm16671_vm10, %v13384_v36, %v5056_v63  ;;  %v5058_v51 = vrot.slane %v5056_v63, 4  ;;  %v5059_v60 = vrot.slane %v4920_v42, 5  ;;  %v19298_v25 = vpop.permute.xlu1 %6424  ;;  %v3650_v42 = vld [vmem:[#allocation2 + $0x410] sm:$0xc]  ;;  %v9196_v36 = vld [vmem:[#allocation2 + $0x320] sm:$0xc] }
 0x2c5   : > { %v9130_v34 = vsel %vm16671_vm10, %v9128_v58, %v9129_v24  ;;  %v13466_v2 = vrot.slane %v5630_v54, 11  ;;  %v5776_v10 = vrot.slane %v5631_v45, 7  ;;  %v5779_v28 = vrot.slane %v5632_v21, 7  ;;  %v19302_v32 = vpop.permute.xlu0 %4265  ;;  %v3651_v54 = vld [vmem:[#allocation2 + $0x414] sm:$0xf] }
 0x2c6   : > { %5498 = vrot.lane.b32.xlu0 %v13447_v35, %s15592_s12  ;;  %v13835_v48 = vcombine.low %v9127_v20, %v9130_v34  ;;  %v5060_v59 = vsel %vm16671_vm10, %v5058_v51, %v5059_v60  ;;  %v13273_v50 = vrot.slane %v3647_v16, 10  ;;  %v3793_v6 = vrot.slane %v3648_v53, 6  ;;  %v9197_v63 = vld [vmem:[#allocation2 + $0x324] sm:$0xf]  ;;  %v8991_v35 = vld [vmem:[#allocation2 + $0x334] sm:$0xe] }
 0x2c7   : > { %v13432_v38 = vcombine.low %v5057_v33, %v5060_v59  ;;  %v5777_v43 = vsel %vm16535_vm7, %v13466_v2, %v5776_v10  ;;  %v5778_v49 = vrot.slane %v5776_v10, 4  ;;  %v3796_v15 = vrot.slane %v3649_v47, 6  ;;  %v9198_v47 = vld [vmem:[#allocation2 + $0x328] sm:$0x3]  ;;  %v8992_v33 = vld [vmem:[#allocation2 + $0x338] sm:$0xf] }
 0x2c8   : > { %9522 = vrot.lane.b32.xlu1 %v13835_v48, %s15593_s17  ;;  %v3794_v7 = vsel %vm17490_vm13, %v13273_v50, %v3793_v6  ;;  %v3795_v31 = vrot.slane %v3793_v6, 4  ;;  %v13400_v23 = vrot.slane %v5126_v41, 11  ;;  %v5264_v40 = vrot.slane %v5127_v13, 7  ;;  %v19314_v11 = vpop.permute.xlu1 %9502  ;;  %v8993_v2 = vld [vmem:[#allocation2 + $0x33c] sm:$0x1] }
 0x2c9   : > { %v5780_v45 = vsel %vm16535_vm7, %v5778_v49, %v5779_v28  ;;  %v5267_v21 = vrot.slane %v5128_v27, 7  ;;  %v13385_v9 = vrot.slane %v4921_v37, 9  ;;  %v5063_v26 = vrot.slane %v4922_v19, 5  ;;  %v19321_v14 = vpop.permute.xlu0 %5400  ;;  %v5633_v10 = vld [vmem:[#allocation2 + $0x364] sm:$0x8]  ;;  %v19333_v37 = vpop.f32.mrb[0].mxu1 }
 0x2ca   : > { %5420 = vrot.lane.b32.xlu0 %v13432_v38, %s15593_s17  ;;  %v13514_v16 = vcombine.low %v5777_v43, %v5780_v45  ;;  %v3797_v53 = vsel %vm17490_vm13, %v3795_v31, %v3796_v15  ;;  %v5265_v8 = vsel %vm16535_vm7, %v13400_v23, %v5264_v40  ;;  %v5266_v24 = vrot.slane %v5264_v40, 4  ;;  %v5634_v50 = vld [vmem:[#allocation2 + $0x368] sm:$0xf]  ;;  %v5635_v6 = vld [vmem:[#allocation2 + $0x36c] sm:$0x7] }
 0x2cb   : > { %v13305_v5 = vcombine.low %v3794_v7, %v3797_v53  ;;  %v5064_v20 = vsel %vm16671_vm10, %v13385_v9, %v5063_v26  ;;  %v5065_v58 = vrot.slane %v5063_v26, 4  ;;  %v5066_v41 = vrot.slane %v4923_v22, 5  ;;  %v9199_v49 = vld [vmem:[#allocation2 + $0x33c] sm:$0xc]  ;;  %v9200_v15 = vld [vmem:[#allocation2 + $0x340] sm:$0xf] }
 0x2cc   : > { %v6464_v51 = vsel %vm1257_vm5, %v13514_v16, %v19145_v17  ;;  %v5268_v60 = vsel %vm16535_vm7, %v5266_v24, %v5267_v21  ;;  %v13274_v13 = vrot.slane %v3650_v42, 10  ;;  %v3800_v34 = vrot.slane %v3651_v54, 6  ;;  %v9201_v45 = vld [vmem:[#allocation2 + $0x344] sm:$0x3]  ;;  %v5129_v53 = vld [vmem:[#allocation2 + $0x1e8] sm:$0x8] }
 0x2cd   : > { %v4305_v28 = vsel %vm1257_vm5, %v13305_v5, %v19147_v1  ;;  %v13448_v27 = vcombine.low %v5265_v8, %v5268_v60  ;;  %v5067_v48 = vsel %vm16671_vm10, %v5065_v58, %v5066_v41  ;;  %v3803_v59 = vrot.slane %v3652_v62, 6  ;;  %v5130_v8 = vld [vmem:[#allocation2 + $0x1ec] sm:$0xf]  ;;  %v5131_v24 = vld [vmem:[#allocation2 + $0x1f0] sm:$0x7] }
 0x2ce   : > { %v13433_v17 = vcombine.low %v5064_v20, %v5067_v48  ;;  %v4340_v19 = vsel %vm2432_vm0, %v4305_v28, %v19163_v44  ;;  %v3801_v38 = vsel %vm17490_vm13, %v13274_v13, %v3800_v34  ;;  %v3802_v43 = vrot.slane %v3800_v34, 4  ;;  %v19341_v31 = vpop.permute.xlu1 %5480  ;;  %v8994_v20 = vld [vmem:[#allocation2 + $0x350] sm:$0xe]  ;;  %v19369_v28 = vpop.f32.mrb[1].mxu1 }
 0x2cf   : > { %5500 = vrot.lane.b32.xlu1 %v13448_v27, %s15592_s12  ;;  %14446 = vmatprep.mubr.msk.bf16.mxu1 %vm3211_vm1, %v4340_v19  ;;  %v13803_v1 = vrot.slane %v9196_v36, 10  ;;  %v9334_v22 = vrot.slane %v9197_v63, 6  ;;  %v9337_v42 = vrot.slane %v9198_v47, 6  ;;  %v13788_v7 = vrot.slane %v8991_v35, 9  ;;  %v19348_v21 = vpop.permute.xlu0 %5402  ;;  %v19353_v36 = vld [vmem:[#allocation11] sm:$0x3f]  }
 0x2d0   : > { %5422 = vrot.lane.b32.xlu0 %v13433_v17, %s15593_s17  ;;  %v3804_v44 = vsel %vm17490_vm13, %v3802_v43, %v3803_v59  ;;  %v9133_v23 = vrot.slane %v8992_v33, 5  ;;  %v9136_v40 = vrot.slane %v8993_v2, 5  ;;  %v6499_v54 = vsel %vm2432_vm0, %v6464_v51, %v19187_v0  ;;  %15166 = vmatprep.subr.msk.bf16.mxu0 %vm3244_vm14, %v19353_v36  ;;  %v19363_v51 = vld [vmem:[#allocation13 + $0x8] sm:$0x3f]   ;;  %v4925_v17 = vld [vmem:[#allocation2 + $0x204] sm:$0xf] }
 0x2d1   : > { %v13306_v9 = vcombine.low %v3801_v38, %v3804_v44  ;;  %v9335_v26 = vsel %vm17490_vm13, %v13803_v1, %v9334_v22  ;;  %v9336_v62 = vrot.slane %v9334_v22, 4  ;;  %v13467_v16 = vrot.slane %v5633_v10, 11  ;;  %14480 = vmatprep.mubr.msk.bf16.mxu0 %vm3211_vm1, %v6499_v54  ;;  %v8995_v10 = vld [vmem:[#allocation2 + $0x354] sm:$0xf]  ;;  %15168 = vmatprep.subr.msk.bf16.mxu1 %vm3244_vm14, %v19363_v51  ;;  %v4926_v1 = vld [vmem:[#allocation2 + $0x208] sm:$0x1] }
 0x2d2   : > { %v9134_v63 = vsel %vm16671_vm10, %v13788_v7, %v9133_v23  ;;  %v9135_v0 = vrot.slane %v9133_v23, 4  ;;  %v5783_v47 = vrot.slane %v5634_v50, 7  ;;  %v5786_v5 = vrot.slane %v5635_v6, 7  ;;  %v4924_v6 = vld [vmem:[#allocation2 + $0x200] sm:$0xe] }
 0x2d3   : > { %v4308_v58 = vsel %vm1257_vm5, %v13306_v9, %v19171_v55  ;;  %v9338_v41 = vsel %vm17490_vm13, %v9336_v62, %v9337_v42  ;;  %v13804_v35 = vrot.slane %v9199_v49, 10  ;;  %v9341_v33 = vrot.slane %v9200_v15, 6  ;;  %v8996_v55 = vld [vmem:[#allocation2 + $0x358] sm:$0x1]  ;;  %v19382_v42 = vpop.f32.mrb[2].mxu1 }
 0x2d4   : > { %v13851_v60 = vcombine.low %v9335_v26, %v9338_v41  ;;  %v9137_v13 = vsel %vm16671_vm10, %v9135_v0, %v9136_v40  ;;  %v5784_v34 = vsel %vm16535_vm7, %v13467_v16, %v5783_v47  ;;  %v5785_v2 = vrot.slane %v5783_v47, 4  ;;  %v5636_v54 = vld [vmem:[#allocation2 + $0x380] sm:$0x8]  ;;  %v5638_v9 = vld [vmem:[#allocation2 + $0x388] sm:$0x7] }
 0x2d5   : > { %v13836_v27 = vcombine.low %v9134_v63, %v9137_v13  ;;  %v9342_v48 = vsel %vm17490_vm13, %v13804_v35, %v9341_v33  ;;  %v9343_v59 = vrot.slane %v9341_v33, 4  ;;  %v9344_v50 = vrot.slane %v9201_v45, 6  ;;  %v19373_v19 = vpop.permute.xlu1 %9582  ;;  %v5637_v45 = vld [vmem:[#allocation2 + $0x384] sm:$0xf] }
 0x2d6   : > { %9602 = vrot.lane.b32.xlu1 %v13851_v60, %s15592_s12  ;;  %v5787_v38 = vsel %vm16535_vm7, %v5785_v2, %v5786_v5  ;;  %v13401_v43 = vrot.slane %v5129_v53, 11  ;;  %v5271_v49 = vrot.slane %v5130_v8, 7  ;;  %v5274_v15 = vrot.slane %v5131_v24, 7  ;;  %v19380_v22 = vpop.permute.xlu0 %9504  ;;  %v3653_v8 = vld [vmem:[#allocation2 + $0x42c] sm:$0xc] }
 0x2d7   : > { %9524 = vrot.lane.b32.xlu0 %v13836_v27, %s15593_s17  ;;  %v13515_v7 = vcombine.low %v5784_v34, %v5787_v38  ;;  %v9345_v44 = vsel %vm17490_vm13, %v9343_v59, %v9344_v50  ;;  %v4342_v23 = vsel %vm2432_vm0, %v4308_v58, %v19213_v56  ;;  %v13789_v40 = vrot.slane %v8994_v20, 9  ;;  %v3654_v24 = vld [vmem:[#allocation2 + $0x430] sm:$0xf]  ;;  %v3655_v5 = vld [vmem:[#allocation2 + $0x434] sm:$0x3]  ;;  %v19394_v20 = vpop.f32.mrb[3].mxu1 }
 0x2d8   : > { %v13852_v26 = vcombine.low %v9342_v48, %v9345_v44  ;;  %v5272_v62 = vsel %vm16535_vm7, %v13401_v43, %v5271_v49  ;;  %v5273_v16 = vrot.slane %v5271_v49, 4  ;;  %14447 = vmatmul.mubr.msk.bf16.gmra.mrb[56].mxu1 %vm3211_vm1, %v4342_v23  ;;  %v9140_v53 = vrot.slane %v8995_v10, 5  ;;  %v5132_v60 = vld [vmem:[#allocation2 + $0x204] sm:$0x8]  ;;  %v19405_v34 = vpop.f32.mrb[4].mxu1 }
 0x2d9   : > { %v6467_v63 = vsel %vm1257_vm5, %v13515_v7, %v19192_v46  ;;  %v9143_v0 = vrot.slane %v8996_v55, 5  ;;  %v13386_v47 = vrot.slane %v4924_v6, 9  ;;  %v5070_v56 = vrot.slane %v4925_v17, 5  ;;  %v5133_v46 = vld [vmem:[#allocation2 + $0x208] sm:$0xf]  ;;  %v19403_v13 = vpop.permute.xlu1 %9584  ;;  %v19414_v38 = vpop.f32.mrb[5].mxu1 }
 0x2da   : > { %9604 = vrot.lane.b32.xlu1 %v13852_v26, %s15592_s12  ;;  %v5275_v58 = vsel %vm16535_vm7, %v5273_v16, %v5274_v15  ;;  %v6501_v41 = vsel %vm2432_vm0, %v6467_v63, %v19211_v3  ;;  %v9141_v35 = vsel %vm16671_vm10, %v13789_v40, %v9140_v53  ;;  %v9142_v33 = vrot.slane %v9140_v53, 4  ;;  %v5134_v6 = vld [vmem:[#allocation2 + $0x20c] sm:$0x7]  ;;  %v4928_v44 = vld [vmem:[#allocation2 + $0x220] sm:$0xf] }
 0x2db   : > { %v13449_v2 = vcombine.low %v5272_v62, %v5275_v58  ;;  %14481 = vmatmul.mubr.msk.bf16.gmra.mrb[28].mxu0 %vm3211_vm1, %v6501_v41  ;;  %v5071_v10 = vsel %vm16671_vm10, %v13386_v47, %v5070_v56  ;;  %v5072_v55 = vrot.slane %v5070_v56, 4  ;;  %v5073_v27 = vrot.slane %v4926_v1, 5  ;;  %v4927_v1 = vld [vmem:[#allocation2 + $0x21c] sm:$0xe]  ;;  %v3656_v26 = vld [vmem:[#allocation2 + $0x448] sm:$0xc] }
 0x2dc   : > { %v9144_v3 = vsel %vm16671_vm10, %v9142_v33, %v9143_v0  ;;  %v13468_v48 = vrot.slane %v5636_v54, 11  ;;  %v5790_v59 = vrot.slane %v5637_v45, 7  ;;  %v5793_v50 = vrot.slane %v5638_v9, 7  ;;  %v19412_v17 = vpop.permute.xlu0 %5482  ;;  %v4929_v9 = vld [vmem:[#allocation2 + $0x224] sm:$0x1] }
 0x2dd   : > { %5502 = vrot.lane.b32.xlu0 %v13449_v2, %s15592_s12  ;;  %v13837_v43 = vcombine.low %v9141_v35, %v9144_v3  ;;  %v5074_v49 = vsel %vm16671_vm10, %v5072_v55, %v5073_v27  ;;  %v13275_v15 = vrot.slane %v3653_v8, 10  ;;  %v3807_v7 = vrot.slane %v3654_v24, 6  ;;  %v3657_v8 = vld [vmem:[#allocation2 + $0x44c] sm:$0xf]  ;;  %v19424_v24 = vpop.f32.mrb[6].mxu1 }
 0x2de   : > { %v13434_v23 = vcombine.low %v5071_v10, %v5074_v49  ;;  %v5791_v40 = vsel %vm16535_vm7, %v13468_v48, %v5790_v59  ;;  %v5792_v54 = vrot.slane %v5790_v59, 4  ;;  %v3810_v45 = vrot.slane %v3655_v5, 6  ;;  %v3658_v5 = vld [vmem:[#allocation2 + $0x450] sm:$0x3]  ;;  %v19428_v41 = vpop.permute.xlu1 %9506  ;;  %v19430_v35 = vpop.f32.mrb[7].mxu1 }
 0x2df   : > { %9526 = vrot.lane.b32.xlu1 %v13837_v43, %s15593_s17  ;;  %v3808_v62 = vsel %vm17490_vm13, %v13275_v15, %v3807_v7  ;;  %v3809_v16 = vrot.slane %v3807_v7, 4  ;;  %v13402_v53 = vrot.slane %v5132_v60, 11  ;;  %v5278_v63 = vrot.slane %v5133_v46, 7  ;;  %v9202_v10 = vld [vmem:[#allocation2 + $0x358] sm:$0xc]  ;;  %v19439_v3 = vpop.f32.mrb[8].mxu1 }
 0x2e0   : > { %v5794_v0 = vsel %vm16535_vm7, %v5792_v54, %v5793_v50  ;;  %v5281_v47 = vrot.slane %v5134_v6, 7  ;;  %v13387_v56 = vrot.slane %v4927_v1, 9  ;;  %v5077_v58 = vrot.slane %v4928_v44, 5  ;;  %v9203_v55 = vld [vmem:[#allocation2 + $0x35c] sm:$0xf]  ;;  %v19437_v27 = vpop.permute.xlu0 %5404 }
 0x2e1   : > { %5424 = vrot.lane.b32.xlu0 %v13434_v23, %s15593_s17  ;;  %v13516_v33 = vcombine.low %v5791_v40, %v5794_v0  ;;  %v3811_v60 = vsel %vm17490_vm13, %v3809_v16, %v3810_v45  ;;  %v5279_v46 = vsel %vm16535_vm7, %v13402_v53, %v5278_v63  ;;  %v5280_v2 = vrot.slane %v5278_v63, 4  ;;  %v9204_v43 = vld [vmem:[#allocation2 + $0x360] sm:$0x3]  ;;  %v8997_v49 = vld [vmem:[#allocation2 + $0x36c] sm:$0xe]  ;;  %v19451_v63 = vpop.f32.mrb[9].mxu1 }
 0x2e2   : > { %v13307_v48 = vcombine.low %v3808_v62, %v3811_v60  ;;  %v5078_v59 = vsel %vm16671_vm10, %v13387_v56, %v5077_v58  ;;  %v5079_v50 = vrot.slane %v5077_v58, 4  ;;  %v5080_v6 = vrot.slane %v4929_v9, 5  ;;  %v8998_v23 = vld [vmem:[#allocation2 + $0x370] sm:$0xf]  ;;  %v8999_v40 = vld [vmem:[#allocation2 + $0x374] sm:$0x1] }
 0x2e3   : > { %v6470_v15 = vsel %vm1257_vm5, %v13516_v33, %v19227_v30  ;;  %v5282_v7 = vsel %vm16535_vm7, %v5280_v2, %v5281_v47  ;;  %v13276_v1 = vrot.slane %v3656_v26, 10  ;;  %v3814_v44 = vrot.slane %v3657_v8, 6  ;;  %v5639_v16 = vld [vmem:[#allocation2 + $0x39c] sm:$0x8]  ;;  %v5640_v53 = vld [vmem:[#allocation2 + $0x3a0] sm:$0xf] }
 0x2e4   : > { %v4311_v54 = vsel %vm1257_vm5, %v13307_v48, %v19235_v39  ;;  %v13450_v45 = vcombine.low %v5279_v46, %v5282_v7  ;;  %v5081_v62 = vsel %vm16671_vm10, %v5079_v50, %v5080_v6  ;;  %v3817_v9 = vrot.slane %v3658_v5, 6  ;;  %v5641_v47 = vld [vmem:[#allocation2 + $0x3a4] sm:$0x7]  ;;  %v9205_v56 = vld [vmem:[#allocation2 + $0x374] sm:$0xc]  ;;  %v19457_v39 = vpop.f32.mrb[10].mxu1 }
 0x2e5   : > { %v13435_v30 = vcombine.low %v5078_v59, %v5081_v62  ;;  %v4344_v0 = vsel %vm2432_vm0, %v4311_v54, %v19247_v57  ;;  %v3815_v26 = vsel %vm17490_vm13, %v13276_v1, %v3814_v44  ;;  %v3816_v8 = vrot.slane %v3814_v44, 4  ;;  %v9206_v46 = vld [vmem:[#allocation2 + $0x378] sm:$0xf]  ;;  %v19461_v2 = vpop.permute.xlu1 %5484  ;;  %v5135_v1 = vld [vmem:[#allocation2 + $0x220] sm:$0x8] }
 0x2e6   : > { %5504 = vrot.lane.b32.xlu1 %v13450_v45, %s15592_s12  ;;  %14450 = vmatprep.mubr.msk.bf16.mxu1 %vm3211_vm1, %v4344_v0  ;;  %v13805_v58 = vrot.slane %v9202_v10, 10  ;;  %v9348_v5 = vrot.slane %v9203_v55, 6  ;;  %v9351_v33 = vrot.slane %v9204_v43, 6  ;;  %v13790_v60 = vrot.slane %v8997_v49, 9  ;;  %v19468_v6 = vpop.permute.xlu0 %5406  ;;  %v9207_v49 = vld [vmem:[#allocation2 + $0x37c] sm:$0x3] }
 0x2e7   : > { %5426 = vrot.lane.b32.xlu0 %v13435_v30, %s15593_s17  ;;  %v3818_v57 = vsel %vm17490_vm13, %v3816_v8, %v3817_v9  ;;  %v9147_v48 = vrot.slane %v8998_v23, 5  ;;  %v9150_v59 = vrot.slane %v8999_v40, 5  ;;  %v6503_v50 = vsel %vm2432_vm0, %v6470_v15, %v19271_v61  ;;  %v5136_v45 = vld [vmem:[#allocation2 + $0x224] sm:$0xf]  ;;  %v9000_v30 = vld [vmem:[#allocation2 + $0x388] sm:$0xe] }
 0x2e8   : > { %v13308_v7 = vcombine.low %v3815_v26, %v3818_v57  ;;  %v9349_v10 = vsel %vm17490_vm13, %v13805_v58, %v9348_v5  ;;  %v9350_v55 = vrot.slane %v9348_v5, 4  ;;  %v13469_v43 = vrot.slane %v5639_v16, 11  ;;  %14484 = vmatprep.mubr.msk.bf16.mxu0 %vm3211_vm1, %v6503_v50  ;;  %v5137_v16 = vld [vmem:[#allocation2 + $0x228] sm:$0x7]  ;;  %v9002_v58 = vld [vmem:[#allocation2 + $0x390] sm:$0x1] }
 0x2e9   : > { %v9148_v44 = vsel %vm16671_vm10, %v13790_v60, %v9147_v48  ;;  %v9149_v23 = vrot.slane %v9147_v48, 4  ;;  %v5797_v40 = vrot.slane %v5640_v53, 7  ;;  %v5800_v54 = vrot.slane %v5641_v47, 7  ;;  %v9001_v47 = vld [vmem:[#allocation2 + $0x38c] sm:$0xf]  ;;  %v19483_v5 = vpop.f32.mrb[11].mxu1 }
 0x2ea   : > { %v4314_v61 = vsel %vm1257_vm5, %v13308_v7, %v19259_v29  ;;  %v9352_v15 = vsel %vm17490_vm13, %v9350_v55, %v9351_v33  ;;  %v13806_v62 = vrot.slane %v9205_v56, 10  ;;  %v9355_v9 = vrot.slane %v9206_v46, 6  ;;  %v4930_v46 = vld [vmem:[#allocation2 + $0x238] sm:$0xe]  ;;  %v4931_v57 = vld [vmem:[#allocation2 + $0x23c] sm:$0xf] }
 0x2eb   : > { %v13853_v0 = vcombine.low %v9349_v10, %v9352_v15  ;;  %v9151_v26 = vsel %vm16671_vm10, %v9149_v23, %v9150_v59  ;;  %v5798_v8 = vsel %vm16535_vm7, %v13469_v43, %v5797_v40  ;;  %v5799_v53 = vrot.slane %v5797_v40, 4  ;;  %v4932_v55 = vld [vmem:[#allocation2 + $0x240] sm:$0x1]  ;;  %v15314_v43 = vld [vmem:[#allocation2 + $0x1f8] sm:$0xff]   ;;  %v19494_v23 = vpop.f32.mrb[12].mxu1 }
 0x2ec   : > { %v13838_v29 = vcombine.low %v9148_v44, %v9151_v26  ;;  %v9356_v33 = vsel %vm17490_vm13, %v13806_v62, %v9355_v9  ;;  %v9357_v56 = vrot.slane %v9355_v9, 4  ;;  %v9358_v60 = vrot.slane %v9207_v49, 6  ;;  %v19487_v48 = vpop.permute.xlu1 %9586 }
 0x2ed   : > { %9606 = vrot.lane.b32.xlu1 %v13853_v0, %s15592_s12  ;;  %v5801_v59 = vsel %vm16535_vm7, %v5799_v53, %v5800_v54  ;;  %v13403_v50 = vrot.slane %v5135_v1, 11  ;;  %v5285_v7 = vrot.slane %v5136_v45, 7  ;;  %v5288_v10 = vrot.slane %v5137_v16, 7  ;;  %v19492_v44 = vpop.permute.xlu0 %9508  ;;  %v4680_v54 = vld [vmem:[#allocation2 + $0xa8] sm:$0x8]  ;;  %v19501_v45 = vpop.f32.mrb[13].mxu1 }
 0x2ee   : > { %9528 = vrot.lane.b32.xlu0 %v13838_v29, %s15593_s17  ;;  %v13517_v49 = vcombine.low %v5798_v8, %v5801_v59  ;;  %v9359_v40 = vsel %vm17490_vm13, %v9357_v56, %v9358_v60  ;;  %v4346_v15 = vsel %vm2432_vm0, %v4314_v61, %v19302_v32  ;;  %v13791_v62 = vrot.slane %v9000_v30, 9  ;;  %v4681_v1 = vld [vmem:[#allocation2 + $0xac] sm:$0xf]  ;;  %v4682_v32 = vld [vmem:[#allocation2 + $0xb0] sm:$0x7]  ;;  %v19508_v61 = vpop.f32.mrb[14].mxu1 }
 0x2ef   : > { %v13854_v9 = vcombine.low %v9356_v33, %v9359_v40  ;;  %v5286_v16 = vsel %vm16535_vm7, %v13403_v50, %v5285_v7  ;;  %v5287_v0 = vrot.slane %v5285_v7, 4  ;;  %14451 = vmatmul.mubr.msk.bf16.gmra.mrb[60].mxu1 %vm3211_vm1, %v4346_v15  ;;  %v9154_v26 = vrot.slane %v9001_v47, 5  ;;  %21803 = vst [vmem:[#allocation42_spill] sm:$0xff] %v19508_v61  ;;  %v5138_v59 = vld [vmem:[#allocation2 + $0x23c] sm:$0x8] }
 0x2f0   : > { %v6473_v8 = vsel %vm1257_vm5, %v13517_v49, %v19284_v4  ;;  %v9157_v53 = vrot.slane %v9002_v58, 5  ;;  %v13388_v29 = vrot.slane %v4930_v46, 9  ;;  %v5084_v56 = vrot.slane %v4931_v57, 5  ;;  %v5139_v4 = vld [vmem:[#allocation2 + $0x240] sm:$0xf]  ;;  %v19517_v58 = vpop.permute.xlu1 %9588  ;;  %v19519_v46 = vpop.f32.mrb[15].mxu1 }
 0x2f1   : > { %9608 = vrot.lane.b32.xlu1 %v13854_v9, %s15592_s12  ;;  %v5289_v30 = vsel %vm16535_vm7, %v5287_v0, %v5288_v10  ;;  %v6505_v33 = vsel %vm2432_vm0, %v6473_v8, %v19298_v25  ;;  %v9155_v47 = vsel %vm16671_vm10, %v13791_v62, %v9154_v26  ;;  %v9156_v60 = vrot.slane %v9154_v26, 4  ;;  %21804 = vst [vmem:[#allocation41_spill] sm:$0xff] %v19519_v46  ;;  %v5140_v49 = vld [vmem:[#allocation2 + $0x244] sm:$0x7]  ;;  %v4933_v25 = vld [vmem:[#allocation2 + $0x254] sm:$0xe] }
 0x2f2   : > { %v13451_v57 = vcombine.low %v5286_v16, %v5289_v30  ;;  %14485 = vmatmul.mubr.msk.bf16.gmra.mrb[32].mxu0 %vm3211_vm1, %v6505_v33  ;;  %v5085_v50 = vsel %vm16671_vm10, %v13388_v29, %v5084_v56  ;;  %v5086_v7 = vrot.slane %v5084_v56, 4  ;;  %v5087_v10 = vrot.slane %v4932_v55, 5  ;;  %v4934_v0 = vld [vmem:[#allocation2 + $0x258] sm:$0xf]  ;;  %v4935_v16 = vld [vmem:[#allocation2 + $0x25c] sm:$0x1] }
 0x2f3   : > { %v9158_v40 = vsel %vm16671_vm10, %v9156_v60, %v9157_v53  ;;  %v19528_v15 = vsel %vm1257_vm5, %v15314_v43, %v19314_v11  ;;  %v13358_v62 = vrot.slane %v4680_v54, 11  ;;  %v4778_v9 = vrot.slane %v4681_v1, 7  ;;  %v19530_v26 = vpop.permute.xlu0 %5486  ;;  %v4683_v30 = vld [vmem:[#allocation2 + $0xc4] sm:$0x8]  ;;  %v4684_v53 = vld [vmem:[#allocation2 + $0xc8] sm:$0xf] }
 0x2f4   : > { %5506 = vrot.lane.b32.xlu0 %v13451_v57, %s15592_s12  ;;  %v13839_v8 = vcombine.low %v9155_v47, %v9158_v40  ;;  %v5088_v55 = vsel %vm16671_vm10, %v5086_v7, %v5087_v10  ;;  %v4781_v29 = vrot.slane %v4682_v32, 7  ;;  %v13404_v56 = vrot.slane %v5138_v59, 11  ;;  %v4685_v1 = vld [vmem:[#allocation2 + $0xcc] sm:$0x7]  ;;  %v9208_v60 = vld [vmem:[#allocation2 + $0x390] sm:$0xc] }
 0x2f5   : > { %v13436_v33 = vcombine.low %v5085_v50, %v5088_v55  ;;  %v4779_v11 = vsel %vm16535_vm7, %v13358_v62, %v4778_v9  ;;  %v4780_v43 = vrot.slane %v4778_v9, 4  ;;  %v5292_v54 = vrot.slane %v5139_v4, 7  ;;  %v9209_v61 = vld [vmem:[#allocation2 + $0x394] sm:$0xf]  ;;  %v19542_v62 = vpop.permute.xlu1 %9510 }
 0x2f6   : > { %9530 = vrot.lane.b32.xlu1 %v13839_v8, %s15593_s17  ;;  %v5295_v46 = vrot.slane %v5140_v49, 7  ;;  %v13389_v57 = vrot.slane %v4933_v25, 9  ;;  %v5091_v47 = vrot.slane %v4934_v0, 5  ;;  %v5094_v40 = vrot.slane %v4935_v16, 5  ;;  %v15315_v10 = vld [vmem:[#allocation2 + $0x214] sm:$0xff]  }
 0x2f7   : > { %v4782_v32 = vsel %vm16535_vm7, %v4780_v43, %v4781_v29  ;;  %v5293_v59 = vsel %vm16535_vm7, %v13404_v56, %v5292_v54  ;;  %v5294_v50 = vrot.slane %v5292_v54, 4  ;;  %v13359_v7 = vrot.slane %v4683_v30, 11  ;;  %v9210_v0 = vld [vmem:[#allocation2 + $0x398] sm:$0x3]  ;;  %v9003_v16 = vld [vmem:[#allocation2 + $0x3a4] sm:$0xe]  ;;  %v19547_v8 = vpop.permute.xlu0 %5408 }
 0x2f8   : > { %5428 = vrot.lane.b32.xlu0 %v13436_v33, %s15593_s17  ;;  %v13406_v4 = vcombine.low %v4779_v11, %v4782_v32  ;;  %v5092_v49 = vsel %vm16671_vm10, %v13389_v57, %v5091_v47  ;;  %v5093_v25 = vrot.slane %v5091_v47, 4  ;;  %v4785_v9 = vrot.slane %v4684_v53, 7  ;;  %v9004_v43 = vld [vmem:[#allocation2 + $0x3a8] sm:$0xf]  ;;  %v19551_v54 = vpop.f32.mrb[16].mxu1 }
 0x2f9   : > { %v5296_v55 = vsel %vm16535_vm7, %v5294_v50, %v5295_v46  ;;  %v4788_v29 = vrot.slane %v4685_v1, 7  ;;  %v13807_v56 = vrot.slane %v9208_v60, 10  ;;  %v9362_v30 = vrot.slane %v9209_v61, 6  ;;  %21805 = vst [vmem:[#allocation45_spill] sm:$0xff] %v19551_v54  ;;  %v9005_v47 = vld [vmem:[#allocation2 + $0x3ac] sm:$0x1] }
 0x2fa   : > { %v5514_v33 = vsel %vm1257_vm5, %v13406_v4, %v19321_v14  ;;  %v13452_v11 = vcombine.low %v5293_v59, %v5296_v55  ;;  %v5095_v53 = vsel %vm16671_vm10, %v5093_v25, %v5094_v40  ;;  %v4786_v57 = vsel %vm16535_vm7, %v13359_v7, %v4785_v9  ;;  %v9211_v60 = vld [vmem:[#allocation2 + $0x3ac] sm:$0xc]  ;;  %v9212_v50 = vld [vmem:[#allocation2 + $0x3b0] sm:$0xf]  ;;  %v19563_v54 = vpop.f32.mrb[17].mxu1 }
 0x2fb   : > { %v13437_v32 = vcombine.low %v5092_v49, %v5095_v53  ;;  %v5561_v46 = vsel %vm2432_vm0, %v5514_v33, %v19341_v31  ;;  %v4787_v1 = vrot.slane %v4785_v9, 4  ;;  %v9363_v61 = vsel %vm17490_vm13, %v13807_v56, %v9362_v30  ;;  %v9213_v7 = vld [vmem:[#allocation2 + $0x3b4] sm:$0x3]  ;;  %v5141_v55 = vld [vmem:[#allocation2 + $0x258] sm:$0x8]  ;;  %v19577_v56 = vpop.f32.mrb[18].mxu1 }
 0x2fc   : > { %5508 = vrot.lane.b32.xlu1 %v13452_v11, %s15592_s12  ;;  %v9364_v14 = vrot.slane %v9362_v30, 4  ;;  %v9365_v40 = vrot.slane %v9210_v0, 6  ;;  %v13792_v59 = vrot.slane %v9003_v16, 9  ;;  %v9161_v4 = vrot.slane %v9004_v43, 5  ;;  %14490 = vmatprep.mubr.msk.bf16.mxu0 %vm3211_vm1, %v5561_v46  ;;  %v5142_v0 = vld [vmem:[#allocation2 + $0x25c] sm:$0xf]  ;;  %v19575_v16 = vpop.permute.xlu1 %5488 }
 0x2fd   : > { %5430 = vrot.lane.b32.xlu0 %v13437_v32, %s15593_s17  ;;  %v4789_v31 = vsel %vm16535_vm7, %v4787_v1, %v4788_v29  ;;  %v9164_v49 = vrot.slane %v9005_v47, 5  ;;  %v9663_v25 = vsel %vm2432_vm0, %v19528_v15, %v19373_v19  ;;  %v9619_v9 = vsel %vm1257_vm5, %v15315_v10, %v19380_v22  ;;  %v5143_v19 = vld [vmem:[#allocation2 + $0x260] sm:$0x7]  ;;  %v7120_v15 = vld [vmem:[#allocation2 + $0x350] sm:$0xe]  ;;  %v19584_v11 = vpop.permute.xlu0 %5410 }
 0x2fe   : > { %v13407_v30 = vcombine.low %v4786_v57, %v4789_v31  ;;  %v9366_v43 = vsel %vm17490_vm13, %v9364_v14, %v9365_v40  ;;  %v9162_v29 = vsel %vm16671_vm10, %v13792_v59, %v9161_v4  ;;  %v9163_v33 = vrot.slane %v9161_v4, 4  ;;  %14558 = vmatprep.mubr.msk.bf16.mxu1 %vm3211_vm1, %v9663_v25  ;;  %v7121_v32 = vld [vmem:[#allocation2 + $0x354] sm:$0xf]  ;;  %v19586_v46 = vld [vmem:[#allocation2 + $0x358] sm:$0x1]  ;;  %v19588_v57 = vpop.f32.mrb[19].mxu1 }
 0x2ff   : > { %v13855_v22 = vcombine.low %v9363_v61, %v9366_v43  ;;  %v13808_v10 = vrot.slane %v9211_v60, 10  ;;  %v9369_v53 = vrot.slane %v9212_v50, 6  ;;  %v9372_v47 = vrot.slane %v9213_v7, 6  ;;  %21806 = vst [vmem:[#allocation23_spill] sm:$0xff] %v19588_v57  ;;  %v8188_v4 = vld [vmem:[#allocation2 + $0x8] sm:$0xe] }
 0x300   : > { %v5517_v1 = vsel %vm1257_vm5, %v13407_v30, %v19348_v21  ;;  %v9165_v14 = vsel %vm16671_vm10, %v9163_v33, %v9164_v49  ;;  %v13405_v40 = vrot.slane %v5141_v55, 11  ;;  %v5299_v59 = vrot.slane %v5142_v0, 7  ;;  %v8189_v31 = vld [vmem:[#allocation2 + $0xc] sm:$0xf]  ;;  %v15318_v25 = vld [vmem:[#allocation2 + $0x230] sm:$0xff]   ;;  %v19603_v33 = vpop.f32.mrb[20].mxu1 }
 0x301   : > { %9610 = vrot.lane.b32.xlu1 %v13855_v22, %s15592_s12  ;;  %v13840_v61 = vcombine.low %v9162_v29, %v9165_v14  ;;  %v9370_v60 = vsel %vm17490_vm13, %v13808_v10, %v9369_v53  ;;  %v9371_v50 = vrot.slane %v9369_v53, 4  ;;  %v5302_v7 = vrot.slane %v5143_v19, 7  ;;  %v8190_v43 = vld [vmem:[#allocation2 + $0x10] sm:$0x1]  ;;  %v4686_v57 = vld [vmem:[#allocation2 + $0xe0] sm:$0x8] }
 0x302   : > { %v5300_v21 = vsel %vm16535_vm7, %v13405_v40, %v5299_v59  ;;  %v5301_v30 = vrot.slane %v5299_v59, 4  ;;  %v6748_v49 = vsel %vm3244_vm14, %v19353_v36, 0  ;;  %v9735_v55 = vsel %vm3244_vm14, %v19363_v51, 0  ;;  %v4687_v0 = vld [vmem:[#allocation2 + $0xe4] sm:$0xf]  ;;  %21807 = vst [vmem:[#allocation48_spill] sm:$0xff] %v19603_v33 }
 0x303   : > { %9532 = vrot.lane.b32.xlu0 %v13840_v61, %s15593_s17  ;;  %v9373_v29 = vsel %vm17490_vm13, %v9371_v50, %v9372_v47  ;;  %14489 = vmatpush3.bf16.msra.mxu0 %v6748_v49  ;;  %v9665_v19 = vsel %vm2432_vm0, %v9619_v9, %v19403_v13  ;;  %v5563_v22 = vsel %vm2432_vm0, %v5517_v1, %v19412_v17  ;;  %v13600_v10 = vrot.slane %v7120_v15, 9  ;;  %v4688_v36 = vld [vmem:[#allocation2 + $0xe8] sm:$0x7]  ;;  %v19612_v53 = vpop.permute.xlu1 %9590  ;;  %v19614_v51 = vpop.f32.mrb[21].mxu1  ;;  %v7123_v61 = vld [vmem:[#allocation2 + $0x36c] sm:$0xe] }
 0x304   : > { %v13856_v14 = vcombine.low %v9370_v60, %v9373_v29  ;;  %v5303_v40 = vsel %vm16535_vm7, %v5301_v30, %v5302_v7  ;;  %14557 = vmatpush3.bf16.msra.mxu1 %v9735_v55  ;;  %v7218_v59 = vrot.slane %v7121_v32, 5  ;;  %v7221_v47 = vrot.slane %v19586_v46, 5  ;;  %v7124_v50 = vld [vmem:[#allocation2 + $0x370] sm:$0xf]  ;;  %v19619_v13 = vpop.permute.xlu0 %9512  ;;  %v7125_v49 = vld [vmem:[#allocation2 + $0x374] sm:$0x1] }
 0x305   : > { %v13453_v9 = vcombine.low %v5300_v21, %v5303_v40  ;;  %v13697_v17 = vrot.slane %v8188_v4, 9  ;;  %v8286_v15 = vrot.slane %v8189_v31, 5  ;;  %v8289_v1 = vrot.slane %v8190_v43, 5  ;;  %v19621_v33 = vpop.f32.mrb[22].mxu1  ;;  %v7328_v21 = vld [vmem:[#allocation2 + $0x354] sm:$0x8] }
 0x306   : > { %21808 = vst [vmem:[#allocation50_spill] sm:$0xff] %v19621_v33  ;;  %9612 = vrot.lane.b32.xlu1 %v13856_v14, %s15592_s12  ;;  %v7219_v60 = vsel %vm16671_vm10, %v13600_v10, %v7218_v59  ;;  %v7220_v7 = vrot.slane %v7218_v59, 4  ;;  %14491 = vmatmul.mubr.msk.bf16.vlgmr.msra.gmra.mrb[4].mxu0 %vm3211_vm1, %v5563_v22  ;;  %v19629_v32 = vsel %vm1257_vm5, %v15318_v25, %v19428_v41  ;;  %v13360_v46 = vrot.slane %v4686_v57, 11  ;;  %v7329_v4 = vld [vmem:[#allocation2 + $0x358] sm:$0xf]  ;;  %v19635_v10 = vpop.f32.mrb[23].mxu1 }
 0x307   : > { %5510 = vrot.lane.b32.xlu0 %v13453_v9, %s15592_s12  ;;  %14559 = vmatmul.mubr.msk.bf16.vlgmr.msra.gmra.mrb[64].mxu1 %vm3211_vm1, %v9665_v19  ;;  %v8287_v31 = vsel %vm16671_vm10, %v13697_v17, %v8286_v15  ;;  %v8288_v43 = vrot.slane %v8286_v15, 4  ;;  %v4792_v30 = vrot.slane %v4687_v0, 7  ;;  %v4795_v55 = vrot.slane %v4688_v36, 7  ;;  %v7330_v29 = vld [vmem:[#allocation2 + $0x35c] sm:$0x7]  ;;  %21809 = vst [vmem:[#allocation43_spill] sm:$0xff] %v19635_v10  ;;  %v19639_v40 = vpop.permute.xlu1 %9592 }
 0x308   : > { %v7222_v41 = vsel %vm16671_vm10, %v7220_v7, %v7221_v47  ;;  %v13601_v25 = vrot.slane %v7123_v61, 9  ;;  %v7225_v57 = vrot.slane %v7124_v50, 5  ;;  %v7228_v22 = vrot.slane %v7125_v49, 5  ;;  %v4689_v14 = vld [vmem:[#allocation2 + $0xfc] sm:$0x8]  ;;  %v19641_v59 = vpop.f32.mrb[24].mxu1 }
 0x309   : > { %21810 = vst [vmem:[#allocation47_spill] sm:$0xff] %v19641_v59  ;;  %v13648_v19 = vcombine.low %v7219_v60, %v7222_v41  ;;  %v8290_v9 = vsel %vm16671_vm10, %v8288_v43, %v8289_v1  ;;  %v4793_v0 = vsel %vm16535_vm7, %v13360_v46, %v4792_v30  ;;  %v4794_v36 = vrot.slane %v4792_v30, 4  ;;  %v4690_v17 = vld [vmem:[#allocation2 + $0x100] sm:$0xf]  ;;  %v4691_v15 = vld [vmem:[#allocation2 + $0x104] sm:$0x7] }
 0x30a   : > { %v19647_v10 = vpop.f32.mrb[25].mxu1  ;;  %v13745_v47 = vcombine.low %v8287_v31, %v8290_v9  ;;  %v7226_v61 = vsel %vm16671_vm10, %v13601_v25, %v7225_v57  ;;  %v7227_v50 = vrot.slane %v7225_v57, 4  ;;  %v13616_v49 = vrot.slane %v7328_v21, 11  ;;  %v8191_v7 = vld [vmem:[#allocation2 + $0x24] sm:$0xe]  ;;  %v19651_v59 = vpop.permute.xlu0 %5490 }
 0x30b   : > { %21811 = vst [vmem:[#allocation44_spill] sm:$0xff] %v19647_v10  ;;  %7632 = vrot.lane.b32.xlu0 %v13648_v19, %s15593_s17  ;;  %v4796_v1 = vsel %vm16535_vm7, %v4794_v36, %v4795_v55  ;;  %v7426_v60 = vrot.slane %v7329_v4, 7  ;;  %v7429_v46 = vrot.slane %v7330_v29, 7  ;;  %v13361_v43 = vrot.slane %v4689_v14, 11  ;;  %v8192_v30 = vld [vmem:[#allocation2 + $0x28] sm:$0xf] }
 0x30c   : > { %v19656_v41 = vpop.f32.mrb[26].mxu1  ;;  %8732 = vrot.lane.b32.xlu1 %v13745_v47, %s15593_s17  ;;  %v13408_v31 = vcombine.low %v4793_v0, %v4796_v1  ;;  %v7229_v21 = vsel %vm16671_vm10, %v7227_v50, %v7228_v22  ;;  %v4799_v25 = vrot.slane %v4690_v17, 7  ;;  %v4802_v57 = vrot.slane %v4691_v15, 7  ;;  %v8193_v9 = vld [vmem:[#allocation2 + $0x2c] sm:$0x1]  ;;  %v19667_v50 = vpop.permute.xlu1 %9514 }
 0x30d   : > { %v8396_v10 = vld [vmem:[#allocation2 + $0x10] sm:$0xc]  ;;  %v13649_v33 = vcombine.low %v7226_v61, %v7229_v21  ;;  %v7427_v4 = vsel %vm16535_vm7, %v13616_v49, %v7426_v60  ;;  %v7428_v55 = vrot.slane %v7426_v60, 4  ;;  %v13698_v29 = vrot.slane %v8191_v7, 9  ;;  %v8397_v14 = vld [vmem:[#allocation2 + $0x14] sm:$0xf] }
 0x30e   : > { %v15319_v19 = vld [vmem:[#allocation2 + $0x24c] sm:$0xff]   ;;  %v8398_v36 = vld [vmem:[#allocation2 + $0x18] sm:$0x3]  ;;  %v5520_v47 = vsel %vm1257_vm5, %v13408_v31, %v19437_v27  ;;  %v4800_v0 = vsel %vm16535_vm7, %v13361_v43, %v4799_v25  ;;  %v4801_v22 = vrot.slane %v4799_v25, 4  ;;  %v8293_v17 = vrot.slane %v8192_v30, 5  ;;  %v19674_v27 = vpop.permute.xlu0 %5412 }
 0x30f   : > { %v7331_v15 = vld [vmem:[#allocation2 + $0x370] sm:$0x8]  ;;  %7634 = vrot.lane.b32.xlu0 %v13649_v33, %s15593_s17  ;;  %v7430_v61 = vsel %vm16535_vm7, %v7428_v55, %v7429_v46  ;;  %v5565_v49 = vsel %vm2432_vm0, %v5520_v47, %v19461_v2  ;;  %v8296_v7 = vrot.slane %v8193_v9, 5  ;;  %v13713_v1 = vrot.slane %v8396_v10, 10  ;;  %v7332_v60 = vld [vmem:[#allocation2 + $0x374] sm:$0xf] }
 0x310   : > { %v13664_v31 = vcombine.low %v7427_v4, %v7430_v61  ;;  %v4803_v43 = vsel %vm16535_vm7, %v4801_v22, %v4802_v57  ;;  %14494 = vmatprep.mubr.msk.bf16.mxu0 %vm3211_vm1, %v5565_v49  ;;  %v8294_v33 = vsel %vm16671_vm10, %v13698_v29, %v8293_v17  ;;  %v8295_v30 = vrot.slane %v8293_v17, 4  ;;  %v7333_v21 = vld [vmem:[#allocation2 + $0x378] sm:$0x7]  ;;  %v8399_v46 = vld [vmem:[#allocation2 + $0x2c] sm:$0xc] }
 0x311   : > { %v13409_v25 = vcombine.low %v4800_v0, %v4803_v43  ;;  %v8494_v55 = vrot.slane %v8397_v14, 6  ;;  %v8497_v2 = vrot.slane %v8398_v36, 6  ;;  %v9667_v10 = vsel %vm2432_vm0, %v19629_v32, %v19487_v48  ;;  %v8400_v9 = vld [vmem:[#allocation2 + $0x30] sm:$0xf]  ;;  %v8401_v4 = vld [vmem:[#allocation2 + $0x34] sm:$0x3] }
 0x312   : > { %7712 = vrot.lane.b32.xlu1 %v13664_v31, %s15592_s12  ;;  %v8297_v57 = vsel %vm16671_vm10, %v8295_v30, %v8296_v7  ;;  %v9625_v29 = vsel %vm1257_vm5, %v15319_v19, %v19492_v44  ;;  %14562 = vmatprep.mubr.msk.bf16.mxu1 %vm3211_vm1, %v9667_v10  ;;  %v13617_v47 = vrot.slane %v7331_v15, 11  ;;  %v7433_v0 = vrot.slane %v7332_v60, 7  ;;  %v7126_v14 = vld [vmem:[#allocation2 + $0x388] sm:$0xe]  ;;  %v7127_v36 = vld [vmem:[#allocation2 + $0x38c] sm:$0xf] }
 0x313   : > { %v5523_v22 = vsel %vm1257_vm5, %v13409_v25, %v19468_v6  ;;  %v13746_v48 = vcombine.low %v8294_v33, %v8297_v57  ;;  %v8495_v32 = vsel %vm17490_vm13, %v13713_v1, %v8494_v55  ;;  %v8496_v17 = vrot.slane %v8494_v55, 4  ;;  %v7128_v61 = vld [vmem:[#allocation2 + $0x390] sm:$0x1]  ;;  %v8194_v49 = vld [vmem:[#allocation2 + $0x40] sm:$0xe]  ;;  %v15320_v7 = vld [vmem:[#allocation2 + $0x268] sm:$0xff]   ;;  %v19698_v30 = vpop.permute.xlu1 %5492 }
 0x314   : > { %v19694_v31 = vpop.f32.mrb[27].mxu1  ;;  %v7434_v44 = vsel %vm16535_vm7, %v13617_v47, %v7433_v0  ;;  %v7435_v19 = vrot.slane %v7433_v0, 4  ;;  %v7436_v15 = vrot.slane %v7333_v21, 7  ;;  %v13714_v60 = vrot.slane %v8399_v46, 10  ;;  %v8195_v43 = vld [vmem:[#allocation2 + $0x44] sm:$0xf]  ;;  %v19707_v47 = vpop.permute.xlu0 %5414 }
 0x315   : > { %21812 = vst [vmem:[#allocation49_spill] sm:$0xff] %v19694_v31  ;;  %v19700_v6 = vpop.f32.mrb[28].mxu1  ;;  %8734 = vrot.lane.b32.xlu0 %v13746_v48, %s15593_s17  ;;  %v8498_v1 = vsel %vm17490_vm13, %v8496_v17, %v8497_v2  ;;  %v8501_v33 = vrot.slane %v8400_v9, 6  ;;  %v8504_v25 = vrot.slane %v8401_v4, 6  ;;  %v9669_v55 = vsel %vm2432_vm0, %v9625_v29, %v19517_v58  ;;  %v8196_v10 = vld [vmem:[#allocation2 + $0x48] sm:$0x1] }
 0x316   : > { %21813 = vst [vmem:[#allocation29_spill] sm:$0xff] %v19700_v6  ;;  %v4692_v57 = vld [vmem:[#allocation2 + $0x118] sm:$0x8]  ;;  %v13761_v21 = vcombine.low %v8495_v32, %v8498_v1  ;;  %v7437_v46 = vsel %vm16535_vm7, %v7435_v19, %v7436_v15  ;;  %v5567_v0 = vsel %vm2432_vm0, %v5523_v22, %v19530_v26  ;;  %14563 = vmatmul.mubr.msk.bf16.gmra.mrb[68].mxu1 %vm3211_vm1, %v9669_v55  ;;  %v13602_v48 = vrot.slane %v7126_v14, 9  ;;  %v4693_v2 = vld [vmem:[#allocation2 + $0x11c] sm:$0xf] }
 0x317   : > { %v14350_v9 = vpop.f32.mrb[29].mxu1  ;;  %v13665_v4 = vcombine.low %v7434_v44, %v7437_v46  ;;  %v8502_v58 = vsel %vm17490_vm13, %v13714_v60, %v8501_v33  ;;  %v8503_v29 = vrot.slane %v8501_v33, 4  ;;  %14495 = vmatmul.mubr.msk.bf16.gmra.mrb[8].mxu0 %vm3211_vm1, %v5567_v0  ;;  %v7232_v17 = vrot.slane %v7127_v36, 5  ;;  %v4694_v32 = vld [vmem:[#allocation2 + $0x120] sm:$0x7] }
 0x318   : > { %v7129_v1 = vld [vmem:[#allocation2 + $0x3a4] sm:$0xe]  ;;  %8812 = vrot.lane.b32.xlu1 %v13761_v21, %s15592_s12  ;;  %v7235_v19 = vrot.slane %v7128_v61, 5  ;;  %v13699_v15 = vrot.slane %v8194_v49, 9  ;;  %v8300_v26 = vrot.slane %v8195_v43, 5  ;;  %v8303_v22 = vrot.slane %v8196_v10, 5 }
 0x319   : > { %v7130_v55 = vld [vmem:[#allocation2 + $0x3a8] sm:$0xf]  ;;  %7714 = vrot.lane.b32.xlu0 %v13665_v4, %s15592_s12  ;;  %v8505_v14 = vsel %vm17490_vm13, %v8503_v29, %v8504_v25  ;;  %v7233_v44 = vsel %vm16671_vm10, %v13602_v48, %v7232_v17  ;;  %v7234_v60 = vrot.slane %v7232_v17, 4  ;;  %v19725_v36 = vsel %vm1257_vm5, %v15320_v7, %v19542_v62  ;;  %v7131_v33 = vld [vmem:[#allocation2 + $0x3ac] sm:$0x1]  ;;  %v1684_v61 = vpop.f32.mrb[30].mxu1 }
 0x31a   : > { %v7334_v21 = vld [vmem:[#allocation2 + $0x38c] sm:$0x8]  ;;  %v13762_v49 = vcombine.low %v8502_v58, %v8505_v14  ;;  %v8301_v43 = vsel %vm16671_vm10, %v13699_v15, %v8300_v26  ;;  %v8302_v10 = vrot.slane %v8300_v26, 4  ;;  %v13362_v46 = vrot.slane %v4692_v57, 11  ;;  %v7335_v0 = vld [vmem:[#allocation2 + $0x390] sm:$0xf]  ;;  %v19729_v25 = vpop.permute.xlu1 %9594 }
 0x31b   : > { %v7336_v9 = vld [vmem:[#allocation2 + $0x394] sm:$0x7]  ;;  %v7236_v48 = vsel %vm16671_vm10, %v7234_v60, %v7235_v19  ;;  %v4806_v4 = vrot.slane %v4693_v2, 7  ;;  %v4809_v29 = vrot.slane %v4694_v32, 7  ;;  %v13603_v62 = vrot.slane %v7129_v1, 9  ;;  %v19733_v17 = vpop.permute.xlu0 %9516  ;;  %v14351_v61 = vpop.f32.mrb[31].mxu1 }
 0x31c   : > { %v4695_v7 = vld [vmem:[#allocation2 + $0x134] sm:$0x8]  ;;  %8814 = vrot.lane.b32.xlu1 %v13762_v49, %s15592_s12  ;;  %v13650_v58 = vcombine.low %v7233_v44, %v7236_v48  ;;  %v8304_v57 = vsel %vm16671_vm10, %v8302_v10, %v8303_v22  ;;  %v7239_v15 = vrot.slane %v7130_v55, 5  ;;  %v7242_v26 = vrot.slane %v7131_v33, 5  ;;  %v4696_v14 = vld [vmem:[#allocation2 + $0x138] sm:$0xf] }
 0x31d   : > { %v4697_v6 = vld [vmem:[#allocation2 + $0x13c] sm:$0x7]  ;;  %v13747_v31 = vcombine.low %v8301_v43, %v8304_v57  ;;  %v4807_v2 = vsel %vm16535_vm7, %v13362_v46, %v4806_v4  ;;  %v4808_v32 = vrot.slane %v4806_v4, 4  ;;  %v13618_v1 = vrot.slane %v7334_v21, 11  ;;  %v8198_v22 = vld [vmem:[#allocation2 + $0x60] sm:$0xf] }
 0x31e   : > { %v8197_v19 = vld [vmem:[#allocation2 + $0x5c] sm:$0xe]  ;;  %7636 = vrot.lane.b32.xlu0 %v13650_v58, %s15593_s17  ;;  %v7240_v60 = vsel %vm16671_vm10, %v13603_v62, %v7239_v15  ;;  %v7241_v44 = vrot.slane %v7239_v15, 4  ;;  %v7440_v49 = vrot.slane %v7335_v0, 7  ;;  %v7443_v48 = vrot.slane %v7336_v9, 7  ;;  %v19745_v46 = vpop.permute.xlu1 %9596  ;;  %v15321_v57 = vld [vmem:[#allocation2 + $0x284] sm:$0xff]  }
 0x31f   : > { %v4810_v55 = vsel %vm16535_vm7, %v4808_v32, %v4809_v29  ;;  %v13363_v33 = vrot.slane %v4695_v7, 11  ;;  %v4813_v43 = vrot.slane %v4696_v14, 7  ;;  %v4816_v10 = vrot.slane %v4697_v6, 7  ;;  %v8199_v61 = vld [vmem:[#allocation2 + $0x64] sm:$0x1] }
 0x320   : > { %8736 = vrot.lane.b32.xlu1 %v13747_v31, %s15593_s17  ;;  %v13410_v21 = vcombine.low %v4807_v2, %v4810_v55  ;;  %v7243_v4 = vsel %vm16671_vm10, %v7241_v44, %v7242_v26  ;;  %v7441_v0 = vsel %vm16535_vm7, %v13618_v1, %v7440_v49  ;;  %v7442_v9 = vrot.slane %v7440_v49, 4  ;;  %v8402_v62 = vld [vmem:[#allocation2 + $0x48] sm:$0xc]  ;;  %v8403_v58 = vld [vmem:[#allocation2 + $0x4c] sm:$0xf] }
 0x321   : > { %v13651_v29 = vcombine.low %v7240_v60, %v7243_v4  ;;  %v4814_v6 = vsel %vm16535_vm7, %v13363_v33, %v4813_v43  ;;  %v4815_v7 = vrot.slane %v4813_v43, 4  ;;  %v13700_v15 = vrot.slane %v8197_v19, 9  ;;  %v8404_v14 = vld [vmem:[#allocation2 + $0x50] sm:$0x3]  ;;  %v7337_v32 = vld [vmem:[#allocation2 + $0x3a8] sm:$0x8]  ;;  %v19754_v31 = vpop.permute.xlu0 %5494 }
 0x322   : > { %v5526_v26 = vsel %vm1257_vm5, %v13410_v21, %v19547_v8  ;;  %v7444_v2 = vsel %vm16535_vm7, %v7442_v9, %v7443_v48  ;;  %v8307_v1 = vrot.slane %v8198_v22, 5  ;;  %v8310_v44 = vrot.slane %v8199_v61, 5  ;;  %v7338_v49 = vld [vmem:[#allocation2 + $0x3ac] sm:$0xf]  ;;  %v7339_v43 = vld [vmem:[#allocation2 + $0x3b0] sm:$0x7] }
 0x323   : > { %7638 = vrot.lane.b32.xlu0 %v13651_v29, %s15593_s17  ;;  %v13666_v60 = vcombine.low %v7441_v0, %v7444_v2  ;;  %v5569_v55 = vsel %vm2432_vm0, %v5526_v26, %v19575_v16  ;;  %v4817_v19 = vsel %vm16535_vm7, %v4815_v7, %v4816_v10  ;;  %v13715_v33 = vrot.slane %v8402_v62, 10  ;;  %v8405_v61 = vld [vmem:[#allocation2 + $0x64] sm:$0xc]  ;;  %v8406_v21 = vld [vmem:[#allocation2 + $0x68] sm:$0xf] }
 0x324   : > { %v13411_v4 = vcombine.low %v4814_v6, %v4817_v19  ;;  %14498 = vmatprep.mubr.msk.bf16.mxu0 %vm3211_vm1, %v5569_v55  ;;  %v8308_v8 = vsel %vm16671_vm10, %v13700_v15, %v8307_v1  ;;  %v8309_v48 = vrot.slane %v8307_v1, 4  ;;  %v8508_v22 = vrot.slane %v8403_v58, 6  ;;  %v8407_v62 = vld [vmem:[#allocation2 + $0x6c] sm:$0x3]  ;;  %v7132_v29 = vld [vmem:[#allocation2 + $0x3c0] sm:$0xe]  ;;  %v19774_v6 = vpop.permute.xlu1 %9518 }
 0x325   : > { %7716 = vrot.lane.b32.xlu1 %v13666_v60, %s15592_s12  ;;  %v8511_v0 = vrot.slane %v8404_v14, 6  ;;  %v9671_v16 = vsel %vm2432_vm0, %v19725_v36, %v19612_v53  ;;  %v9631_v10 = vsel %vm1257_vm5, %v15321_v57, %v19619_v13  ;;  %v13619_v9 = vrot.slane %v7337_v32, 11  ;;  %v7133_v53 = vld [vmem:[#allocation2 + $0x3c4] sm:$0xf]  ;;  %v7134_v36 = vld [vmem:[#allocation2 + $0x3c8] sm:$0x1]  ;;  %v19783_v13 = vpop.permute.xlu0 %5416 }
 0x326   : > { %v5529_v58 = vsel %vm1257_vm5, %v13411_v4, %v19584_v11  ;;  %v8311_v7 = vsel %vm16671_vm10, %v8309_v48, %v8310_v44  ;;  %v8509_v15 = vsel %vm17490_vm13, %v13715_v33, %v8508_v22  ;;  %v8510_v14 = vrot.slane %v8508_v22, 4  ;;  %14566 = vmatprep.mubr.msk.bf16.mxu1 %vm3211_vm1, %v9671_v16  ;;  %v8200_v1 = vld [vmem:[#allocation2 + $0x78] sm:$0xe]  ;;  %v8201_v19 = vld [vmem:[#allocation2 + $0x7c] sm:$0xf]  ;;  %v15322_v16 = vld [vmem:[#allocation2 + $0x2a0] sm:$0xff]  }
 0x327   : > { %v13748_v57 = vcombine.low %v8308_v8, %v8311_v7  ;;  %v7447_v32 = vrot.slane %v7338_v49, 7  ;;  %v7450_v26 = vrot.slane %v7339_v43, 7  ;;  %v13716_v2 = vrot.slane %v8405_v61, 10  ;;  %v8202_v33 = vld [vmem:[#allocation2 + $0x80] sm:$0x1] }
 0x328   : > { %v8512_v11 = vsel %vm17490_vm13, %v8510_v14, %v8511_v0  ;;  %v8515_v60 = vrot.slane %v8406_v21, 6  ;;  %v8518_v44 = vrot.slane %v8407_v62, 6  ;;  %v9673_v55 = vsel %vm2432_vm0, %v9631_v10, %v19639_v40  ;;  %v4698_v48 = vld [vmem:[#allocation2 + $0x150] sm:$0x8]  ;;  %v4699_v22 = vld [vmem:[#allocation2 + $0x154] sm:$0xf] }
 0x329   : > { %8738 = vrot.lane.b32.xlu0 %v13748_v57, %s15593_s17  ;;  %v13763_v4 = vcombine.low %v8509_v15, %v8512_v11  ;;  %v7448_v8 = vsel %vm16535_vm7, %v13619_v9, %v7447_v32  ;;  %v7449_v49 = vrot.slane %v7447_v32, 4  ;;  %v5571_v43 = vsel %vm2432_vm0, %v5529_v58, %v19651_v59  ;;  %14567 = vmatmul.mubr.msk.bf16.gmra.mrb[72].mxu1 %vm3211_vm1, %v9673_v55  ;;  %v4700_v10 = vld [vmem:[#allocation2 + $0x158] sm:$0x7]  ;;  %v7135_v32 = vld [vmem:[#allocation2 + $0x3dc] sm:$0xe] }
 0x32a   : > { %v8516_v61 = vsel %vm17490_vm13, %v13716_v2, %v8515_v60  ;;  %v8517_v40 = vrot.slane %v8515_v60, 4  ;;  %14499 = vmatmul.mubr.msk.bf16.gmra.mrb[12].mxu0 %vm3211_vm1, %v5571_v43  ;;  %v13604_v21 = vrot.slane %v7132_v29, 9  ;;  %v7246_v0 = vrot.slane %v7133_v53, 5  ;;  %v19801_v7 = vpop.permute.xlu1 %5496  ;;  %v7136_v2 = vld [vmem:[#allocation2 + $0x3e0] sm:$0xf] }
 0x32b   : > { %8816 = vrot.lane.b32.xlu1 %v13763_v4, %s15592_s12  ;;  %v7451_v9 = vsel %vm16535_vm7, %v7449_v49, %v7450_v26  ;;  %v7249_v59 = vrot.slane %v7134_v36, 5  ;;  %v13701_v62 = vrot.slane %v8200_v1, 9  ;;  %v8314_v58 = vrot.slane %v8201_v19, 5  ;;  %v19803_v15 = vpop.f32.mrb[32].mxu1  ;;  %v19809_v11 = vpop.permute.xlu0 %5418  ;;  %v7137_v19 = vld [vmem:[#allocation2 + $0x3e4] sm:$0x1] }
 0x32c   : > { %21814 = vst [vmem:[#allocation31_spill] sm:$0xff] %v19803_v15  ;;  %v13667_v14 = vcombine.low %v7448_v8, %v7451_v9  ;;  %v8519_v57 = vsel %vm17490_vm13, %v8517_v40, %v8518_v44  ;;  %v7247_v29 = vsel %vm16671_vm10, %v13604_v21, %v7246_v0  ;;  %v7248_v53 = vrot.slane %v7246_v0, 4  ;;  %v19811_v26 = vpop.f32.mrb[33].mxu1  ;;  %v7340_v4 = vld [vmem:[#allocation2 + $0x3c4] sm:$0x8] }
 0x32d   : > { %21815 = vst [vmem:[#allocation33_spill] sm:$0xff] %v19811_v26  ;;  %v13764_v36 = vcombine.low %v8516_v61, %v8519_v57  ;;  %v8315_v1 = vsel %vm16671_vm10, %v13701_v62, %v8314_v58  ;;  %v8316_v60 = vrot.slane %v8314_v58, 4  ;;  %v8317_v55 = vrot.slane %v8202_v33, 5  ;;  %v7341_v40 = vld [vmem:[#allocation2 + $0x3c8] sm:$0xf] }
 0x32e   : > { %7718 = vrot.lane.b32.xlu0 %v13667_v14, %s15592_s12  ;;  %v7250_v44 = vsel %vm16671_vm10, %v7248_v53, %v7249_v59  ;;  %v19820_v8 = vsel %vm1257_vm5, %v15322_v16, %v19667_v50  ;;  %v13364_v49 = vrot.slane %v4698_v48, 11  ;;  %v4820_v43 = vrot.slane %v4699_v22, 7  ;;  %v7342_v61 = vld [vmem:[#allocation2 + $0x3cc] sm:$0x7]  ;;  %v4701_v62 = vld [vmem:[#allocation2 + $0x16c] sm:$0x8] }
 0x32f   : > { %8818 = vrot.lane.b32.xlu1 %v13764_v36, %s15592_s12  ;;  %v13652_v21 = vcombine.low %v7247_v29, %v7250_v44  ;;  %v8318_v33 = vsel %vm16671_vm10, %v8316_v60, %v8317_v55  ;;  %v4823_v0 = vrot.slane %v4700_v10, 7  ;;  %v13605_v9 = vrot.slane %v7135_v32, 9  ;;  %v4702_v58 = vld [vmem:[#allocation2 + $0x170] sm:$0xf]  ;;  %v4703_v48 = vld [vmem:[#allocation2 + $0x174] sm:$0x7] }
 0x330   : > { %v13749_v14 = vcombine.low %v8315_v1, %v8318_v33  ;;  %v4821_v59 = vsel %vm16535_vm7, %v13364_v49, %v4820_v43  ;;  %v4822_v50 = vrot.slane %v4820_v43, 4  ;;  %v7253_v16 = vrot.slane %v7136_v2, 5  ;;  %v8203_v22 = vld [vmem:[#allocation2 + $0x94] sm:$0xe]  ;;  %v8204_v29 = vld [vmem:[#allocation2 + $0x98] sm:$0xf] }
 0x331   : > { %v7256_v57 = vrot.slane %v7137_v19, 5  ;;  %v13620_v53 = vrot.slane %v7340_v4, 11  ;;  %v7454_v26 = vrot.slane %v7341_v40, 7  ;;  %v7457_v36 = vrot.slane %v7342_v61, 7  ;;  %v19827_v44 = vpop.permute.xlu1 %9598  ;;  %v8205_v2 = vld [vmem:[#allocation2 + $0x9c] sm:$0x1] }
 0x332   : > { %7640 = vrot.lane.b32.xlu0 %v13652_v21, %s15593_s17  ;;  %v4824_v10 = vsel %vm16535_vm7, %v4822_v50, %v4823_v0  ;;  %v7254_v32 = vsel %vm16671_vm10, %v13605_v9, %v7253_v16  ;;  %v7255_v1 = vrot.slane %v7253_v16, 4  ;;  %v13365_v60 = vrot.slane %v4701_v62, 11  ;;  %v15323_v55 = vld [vmem:[#allocation2 + $0x2bc] sm:$0xff]   ;;  %v19834_v49 = vpop.permute.xlu0 %9520  ;;  %v8409_v21 = vld [vmem:[#allocation2 + $0x84] sm:$0xf]  ;;  %v19841_v16 = vpop.f32.mrb[34].mxu1 }
 0x333   : > { %8740 = vrot.lane.b32.xlu1 %v13749_v14, %s15593_s17  ;;  %v13412_v19 = vcombine.low %v4821_v59, %v4824_v10  ;;  %v7455_v4 = vsel %vm16535_vm7, %v13620_v53, %v7454_v26  ;;  %v7456_v43 = vrot.slane %v7454_v26, 4  ;;  %v4827_v40 = vrot.slane %v4702_v58, 7  ;;  %v8408_v61 = vld [vmem:[#allocation2 + $0x80] sm:$0xc]  ;;  %v8410_v50 = vld [vmem:[#allocation2 + $0x88] sm:$0x3] }
 0x334   : > { %v7257_v33 = vsel %vm16671_vm10, %v7255_v1, %v7256_v57  ;;  %v4830_v0 = vrot.slane %v4703_v48, 7  ;;  %v13702_v9 = vrot.slane %v8203_v22, 9  ;;  %v8321_v62 = vrot.slane %v8204_v29, 5  ;;  %v7343_v58 = vld [vmem:[#allocation2 + $0x3e0] sm:$0x8] }
 0x335   : > { %v5532_v14 = vsel %vm1257_vm5, %v13412_v19, %v19674_v27  ;;  %v13653_v59 = vcombine.low %v7254_v32, %v7257_v33  ;;  %v7458_v53 = vsel %vm16535_vm7, %v7456_v43, %v7457_v36  ;;  %v4828_v26 = vsel %vm16535_vm7, %v13365_v60, %v4827_v40  ;;  %v7344_v10 = vld [vmem:[#allocation2 + $0x3e4] sm:$0xf]  ;;  %v7345_v29 = vld [vmem:[#allocation2 + $0x3e8] sm:$0x7]  ;;  %v19853_v1 = vpop.permute.xlu1 %9600  ;;  %v19855_v27 = vpop.f32.mrb[35].mxu1 }
 0x336   : > { %v13668_v15 = vcombine.low %v7455_v4, %v7458_v53  ;;  %v5573_v48 = vsel %vm2432_vm0, %v5532_v14, %v19698_v30  ;;  %v4829_v22 = vrot.slane %v4827_v40, 4  ;;  %v8322_v57 = vsel %vm16671_vm10, %v13702_v9, %v8321_v62  ;;  %v8411_v4 = vld [vmem:[#allocation2 + $0x9c] sm:$0xc]  ;;  %v8412_v9 = vld [vmem:[#allocation2 + $0xa0] sm:$0xf] }
 0x337   : > { %7642 = vrot.lane.b32.xlu0 %v13653_v59, %s15593_s17  ;;  %14502 = vmatprep.mubr.msk.bf16.mxu0 %vm3211_vm1, %v5573_v48  ;;  %v8323_v36 = vrot.slane %v8321_v62, 4  ;;  %v8324_v32 = vrot.slane %v8205_v2, 5  ;;  %v13717_v60 = vrot.slane %v8408_v61, 10  ;;  %v8522_v19 = vrot.slane %v8409_v21, 6  ;;  %v8413_v14 = vld [vmem:[#allocation2 + $0xa4] sm:$0x3] }
 0x338   : > { %7720 = vrot.lane.b32.xlu1 %v13668_v15, %s15592_s12  ;;  %v4831_v30 = vsel %vm16535_vm7, %v4829_v22, %v4830_v0  ;;  %v8525_v43 = vrot.slane %v8410_v50, 6  ;;  %v9675_v40 = vsel %vm2432_vm0, %v19820_v8, %v19729_v25  ;;  %v9637_v33 = vsel %vm1257_vm5, %v15323_v55, %v19733_v17  ;;  %v19867_v62 = vpop.permute.xlu0 %5498  ;;  %v19869_v2 = vpop.f32.mrb[36].mxu1  ;;  %v7138_v25 = vld [vmem:[#allocation2 + $0x3f8] sm:$0xe]  ;;  %v7139_v8 = vld [vmem:[#allocation2 + $0x3fc] sm:$0xf] }
 0x339   : > { %v13413_v61 = vcombine.low %v4828_v26, %v4831_v30  ;;  %v8325_v15 = vsel %vm16671_vm10, %v8323_v36, %v8324_v32  ;;  %v8523_v21 = vsel %vm17490_vm13, %v13717_v60, %v8522_v19  ;;  %v8524_v0 = vrot.slane %v8522_v19, 4  ;;  %14570 = vmatprep.mubr.msk.bf16.mxu1 %vm3211_vm1, %v9675_v40  ;;  %v19876_v50 = vpop.f32.mrb[37].mxu1  ;;  %v7140_v48 = vld [vmem:[#allocation2 + $0x400] sm:$0x1]  ;;  %v8206_v19 = vld [vmem:[#allocation2 + $0xb0] sm:$0xe] }
 0x33a   : > { %21816 = vst [vmem:[#allocation27_spill] sm:$0xff] %v19876_v50  ;;  %v13750_v17 = vcombine.low %v8322_v57, %v8325_v15  ;;  %v13621_v55 = vrot.slane %v7343_v58, 11  ;;  %v7461_v59 = vrot.slane %v7344_v10, 7  ;;  %v7464_v53 = vrot.slane %v7345_v29, 7  ;;  %v19878_v22 = vpop.f32.mrb[38].mxu1  ;;  %v15324_v40 = vld [vmem:[#allocation2 + $0x2d8] sm:$0xff]   ;;  %v19887_v50 = vpop.permute.xlu1 %9522 }
 0x33b   : > { %21817 = vst [vmem:[#allocation25_spill] sm:$0xff] %v19878_v22  ;;  %v5535_v26 = vsel %vm1257_vm5, %v13413_v61, %v19707_v47  ;;  %v8526_v36 = vsel %vm17490_vm13, %v8524_v0, %v8525_v43  ;;  %v13718_v32 = vrot.slane %v8411_v4, 10  ;;  %v8529_v60 = vrot.slane %v8412_v9, 6  ;;  %v8207_v30 = vld [vmem:[#allocation2 + $0xb4] sm:$0xf] }
 0x33c   : > { %8742 = vrot.lane.b32.xlu0 %v13750_v17, %s15593_s17  ;;  %v13765_v57 = vcombine.low %v8523_v21, %v8526_v36  ;;  %v7462_v58 = vsel %vm16535_vm7, %v13621_v55, %v7461_v59  ;;  %v7463_v10 = vrot.slane %v7461_v59, 4  ;;  %v8532_v29 = vrot.slane %v8413_v14, 6  ;;  %v8208_v15 = vld [vmem:[#allocation2 + $0xb8] sm:$0x1]  ;;  %v4704_v22 = vld [vmem:[#allocation2 + $0x188] sm:$0x8]  ;;  %v19895_v0 = vpop.permute.xlu0 %5420 }
 0x33d   : > { %v8530_v47 = vsel %vm17490_vm13, %v13718_v32, %v8529_v60  ;;  %v8531_v4 = vrot.slane %v8529_v60, 4  ;;  %v9677_v43 = vsel %vm2432_vm0, %v9637_v33, %v19745_v46  ;;  %v5575_v9 = vsel %vm2432_vm0, %v5535_v26, %v19754_v31  ;;  %v4705_v61 = vld [vmem:[#allocation2 + $0x18c] sm:$0xf]  ;;  %v4706_v21 = vld [vmem:[#allocation2 + $0x190] sm:$0x7]  ;;  %v19897_v17 = vpop.f32.mrb[39].mxu1 }
 0x33e   : > { %21818 = vst [vmem:[#allocation30_spill] sm:$0xff] %v19897_v17  ;;  %8820 = vrot.lane.b32.xlu1 %v13765_v57, %s15592_s12  ;;  %v7465_v14 = vsel %vm16535_vm7, %v7463_v10, %v7464_v53  ;;  %14503 = vmatmul.mubr.msk.bf16.gmra.mrb[16].mxu0 %vm3211_vm1, %v5575_v9  ;;  %v13606_v55 = vrot.slane %v7138_v25, 9  ;;  %v7260_v59 = vrot.slane %v7139_v8, 5  ;;  %v7263_v36 = vrot.slane %v7140_v48, 5  ;;  %v7141_v32 = vld [vmem:[#allocation2 + $0x414] sm:$0xe] }
 0x33f   : > { %v13669_v46 = vcombine.low %v7462_v58, %v7465_v14  ;;  %v8533_v31 = vsel %vm17490_vm13, %v8531_v4, %v8532_v29  ;;  %14571 = vmatmul.mubr.msk.bf16.gmra.mrb[76].mxu1 %vm3211_vm1, %v9677_v43  ;;  %v13703_v33 = vrot.slane %v8206_v19, 9  ;;  %v8328_v26 = vrot.slane %v8207_v30, 5  ;;  %v7142_v60 = vld [vmem:[#allocation2 + $0x418] sm:$0xf]  ;;  %v7143_v9 = vld [vmem:[#allocation2 + $0x41c] sm:$0x1] }
 0x340   : > { %v13766_v17 = vcombine.low %v8530_v47, %v8533_v31  ;;  %v7261_v57 = vsel %vm16671_vm10, %v13606_v55, %v7260_v59  ;;  %v7262_v53 = vrot.slane %v7260_v59, 4  ;;  %v8331_v10 = vrot.slane %v8208_v15, 5  ;;  %v7346_v25 = vld [vmem:[#allocation2 + $0x3fc] sm:$0x8]  ;;  %v7347_v58 = vld [vmem:[#allocation2 + $0x400] sm:$0xf] }
 0x341   : > { %7722 = vrot.lane.b32.xlu0 %v13669_v46, %s15592_s12  ;;  %v8329_v8 = vsel %vm16671_vm10, %v13703_v33, %v8328_v26  ;;  %v8330_v48 = vrot.slane %v8328_v26, 4  ;;  %v19913_v19 = vsel %vm1257_vm5, %v15324_v40, %v19774_v6  ;;  %v13366_v30 = vrot.slane %v4704_v22, 11  ;;  %v7348_v29 = vld [vmem:[#allocation2 + $0x404] sm:$0x7]  ;;  %v4707_v14 = vld [vmem:[#allocation2 + $0x1a4] sm:$0x8]  ;;  %v19918_v55 = vpop.permute.xlu1 %5500 }
 0x342   : > { %8822 = vrot.lane.b32.xlu1 %v13766_v17, %s15592_s12  ;;  %v7264_v15 = vsel %vm16671_vm10, %v7262_v53, %v7263_v36  ;;  %v4834_v47 = vrot.slane %v4705_v61, 7  ;;  %v4837_v4 = vrot.slane %v4706_v21, 7  ;;  %v13607_v43 = vrot.slane %v7141_v32, 9  ;;  %v4708_v22 = vld [vmem:[#allocation2 + $0x1a8] sm:$0xf]  ;;  %v19922_v33 = vpop.permute.xlu0 %5422 }
 0x343   : > { %v13654_v59 = vcombine.low %v7261_v57, %v7264_v15  ;;  %v8332_v46 = vsel %vm16671_vm10, %v8330_v48, %v8331_v10  ;;  %v7267_v6 = vrot.slane %v7142_v60, 5  ;;  %v7270_v40 = vrot.slane %v7143_v9, 5  ;;  %v4709_v31 = vld [vmem:[#allocation2 + $0x1ac] sm:$0x7] }
 0x344   : > { %v13751_v17 = vcombine.low %v8329_v8, %v8332_v46  ;;  %v4835_v36 = vsel %vm16535_vm7, %v13366_v30, %v4834_v47  ;;  %v4836_v61 = vrot.slane %v4834_v47, 4  ;;  %v13622_v21 = vrot.slane %v7346_v25, 11  ;;  %v8209_v60 = vld [vmem:[#allocation2 + $0xcc] sm:$0xe]  ;;  %v8210_v30 = vld [vmem:[#allocation2 + $0xd0] sm:$0xf] }
 0x345   : > { %7644 = vrot.lane.b32.xlu0 %v13654_v59, %s15593_s17  ;;  %v7268_v26 = vsel %vm16671_vm10, %v13607_v43, %v7267_v6  ;;  %v7269_v32 = vrot.slane %v7267_v6, 4  ;;  %v7468_v57 = vrot.slane %v7347_v58, 7  ;;  %v7471_v53 = vrot.slane %v7348_v29, 7  ;;  %v8211_v6 = vld [vmem:[#allocation2 + $0xd4] sm:$0x1] }
 0x346   : > { %8744 = vrot.lane.b32.xlu1 %v13751_v17, %s15593_s17  ;;  %v4838_v10 = vsel %vm16535_vm7, %v4836_v61, %v4837_v4  ;;  %v13367_v9 = vrot.slane %v4707_v14, 11  ;;  %v4841_v8 = vrot.slane %v4708_v22, 7  ;;  %v4844_v48 = vrot.slane %v4709_v31, 7  ;;  %v8414_v4 = vld [vmem:[#allocation2 + $0xb8] sm:$0xc] }
 0x347   : > { %v13414_v15 = vcombine.low %v4835_v36, %v4838_v10  ;;  %v7271_v25 = vsel %vm16671_vm10, %v7269_v32, %v7270_v40  ;;  %v7469_v47 = vsel %vm16535_vm7, %v13622_v21, %v7468_v57  ;;  %v7470_v43 = vrot.slane %v7468_v57, 4  ;;  %v15325_v14 = vld [vmem:[#allocation2 + $0x2f4] sm:$0xff]   ;;  %v19947_v17 = vld [vmem:[%s21538_s7] sm:$0x3f]  ;;  %v8415_v21 = vld [vmem:[#allocation2 + $0xbc] sm:$0xf] }
 0x348   : > { %v13655_v58 = vcombine.low %v7268_v26, %v7271_v25  ;;  %v4842_v29 = vsel %vm16535_vm7, %v13367_v9, %v4841_v8  ;;  %v4843_v59 = vrot.slane %v4841_v8, 4  ;;  %v11204_v46 = vlaneseq  ;;  %v19938_v22 = vpop.permute.xlu1 %9602  ;;  %v8416_v26 = vld [vmem:[#allocation2 + $0xc0] sm:$0x3]  ;;  %v7349_v9 = vld [vmem:[#allocation2 + $0x418] sm:$0x8] }
 0x349   : > { %v5538_v31 = vsel %vm1257_vm5, %v13414_v15, %v19783_v13  ;;  %v7472_v40 = vsel %vm16535_vm7, %v7470_v43, %v7471_v53  ;;  %v13704_v36 = vrot.slane %v8209_v60, 9  ;;  %v8335_v61 = vrot.slane %v8210_v30, 5  ;;  %v19949_v32 = vpop.permute.xlu0 %9524  ;;  %v7350_v25 = vld [vmem:[#allocation2 + $0x41c] sm:$0xf]  ;;  %v7351_v43 = vld [vmem:[#allocation2 + $0x420] sm:$0x7] }
 0x34a   : > { %7646 = vrot.lane.b32.xlu0 %v13655_v58, %s15593_s17  ;;  %v13670_v57 = vcombine.low %v7469_v47, %v7472_v40  ;;  %v5577_v13 = vsel %vm2432_vm0, %v5538_v31, %v19801_v7  ;;  %v4845_v53 = vsel %vm16535_vm7, %v4843_v59, %v4844_v48  ;;  %v19956_v10 = vshrl.u32 %v11204_v46, 7  ;;  %v8417_v59 = vld [vmem:[#allocation2 + $0xd4] sm:$0xc] }
 0x34b   : > { %v13415_v8 = vcombine.low %v4842_v29, %v4845_v53  ;;  %14506 = vmatprep.mubr.msk.bf16.mxu0 %vm3211_vm1, %v5577_v13  ;;  %v8336_v60 = vsel %vm16671_vm10, %v13704_v36, %v8335_v61  ;;  %v8337_v30 = vrot.slane %v8335_v61, 4  ;;  %v8338_v15 = vrot.slane %v8211_v6, 5 }
 0x34c   : > { %21819 = vst [vmem:[#allocation32_spill] sm:$0xff] %v19956_v10  ;;  %7724 = vrot.lane.b32.xlu1 %v13670_v57, %s15592_s12  ;;  %v21601_v7 = vsub.s32 0, %v19956_v10  ;;  %v13719_v47 = vrot.slane %v8414_v4, 10  ;;  %v8536_v58 = vrot.slane %v8415_v21, 6  ;;  %v8539_v48 = vrot.slane %v8416_v26, 6  ;;  %v19972_v40 = vpop.permute.xlu1 %9604 }
 0x34d   : > { %v5541_v29 = vsel %vm1257_vm5, %v13415_v8, %v19809_v11  ;;  %v8339_v46 = vsel %vm16671_vm10, %v8337_v30, %v8338_v15  ;;  %v9679_v6 = vsel %vm2432_vm0, %v19913_v19, %v19827_v44  ;;  %v9643_v31 = vsel %vm1257_vm5, %v15325_v14, %v19834_v49  ;;  %v8419_v8 = vld [vmem:[#allocation2 + $0xdc] sm:$0x3] }
 0x34e   : > { %v19977_v4 = vrot.slane %v19947_v17, %v21601_v7  ;;  %v13752_v36 = vcombine.low %v8336_v60, %v8339_v46  ;;  %v8537_v11 = vsel %vm17490_vm13, %v13719_v47, %v8536_v58  ;;  %v8538_v61 = vrot.slane %v8536_v58, 4  ;;  %14574 = vmatprep.mubr.msk.bf16.mxu1 %vm3211_vm1, %v9679_v6 }
 0x34f   : > { %v13623_v21 = vrot.slane %v7349_v9, 11  ;;  %v7475_v26 = vrot.slane %v7350_v25, 7  ;;  %v7478_v44 = vrot.slane %v7351_v43, 7  ;;  %v13720_v19 = vrot.slane %v8417_v59, 10  ;;  %v19982_v57 = vpop.permute.xlu0 %5502  ;;  %v8418_v9 = vld [vmem:[#allocation2 + $0xd8] sm:$0xf] }
 0x350   : > { %21820 = vst [vmem:[#allocation28_spill] sm:$0xff] %v19977_v4  ;;  %v11214_v49 = vadd.f32 %v19333_v37, %v19977_v4  ;;  %8746 = vrot.lane.b32.xlu0 %v13752_v36, %s15593_s17  ;;  %v8540_v14 = vsel %vm17490_vm13, %v8538_v61, %v8539_v48  ;;  %v11212_v13 = vadd.f32 %v19977_v4, %v19369_v28  ;;  %v8543_v48 = vrot.slane %v8418_v9, 6  ;;  %v20016_v9 = vpop.f32.mrb[40].mxu1 }
 0x351   : > { %v11215_v53 = vadd.f32 %v19382_v42, %v19977_v4  ;;  %v13767_v60 = vcombine.low %v8537_v11, %v8540_v14  ;;  %v11213_v30 = vadd.f32 %v19977_v4, %v19394_v20  ;;  %v11218_v37 = vadd.f32 %v19405_v34, %v19977_v4  ;;  %v20000_v46 = vpop.permute.xlu1 %9526  ;;  %v7144_v11 = vld [vmem:[#allocation2 + $0x430] sm:$0xe] }
 0x352   : > { %v7476_v15 = vsel %vm16535_vm7, %v13623_v21, %v7475_v26  ;;  %v11246_v25 = vmax.f32 %v11214_v49, 0.0  ;;  %v11244_v43 = vmax.f32 %v11212_v13, 0.0  ;;  %v7477_v58 = vrot.slane %v7475_v26, 4  ;;  %v7145_v13 = vld [vmem:[#allocation2 + $0x434] sm:$0xf] }
 0x353   : > { %v11247_v47 = vmax.f32 %v11215_v53, 0.0  ;;  %8824 = vrot.lane.b32.xlu1 %v13767_v60, %s15592_s12  ;;  %v11245_v28 = vmax.f32 %v11213_v30, 0.0  ;;  %v11250_v42 = vmax.f32 %v11218_v37, 0.0  ;;  %v8546_v59 = vrot.slane %v8419_v8, 6  ;;  %v20010_v61 = vpop.permute.xlu0 %5424  ;;  %v7146_v53 = vld [vmem:[#allocation2 + $0x438] sm:$0x1] }
 0x354   : > { %v7479_v20 = vsel %vm16535_vm7, %v7477_v58, %v7478_v44  ;;  %v11216_v34 = vadd.f32 %v19977_v4, %v19414_v38  ;;  %v11219_v36 = vadd.f32 %v19424_v24, %v19977_v4  ;;  %v8544_v49 = vsel %vm17490_vm13, %v13720_v19, %v8543_v48  ;;  %v8212_v60 = vld [vmem:[#allocation2 + $0xe8] sm:$0xe]  ;;  %v8213_v30 = vld [vmem:[#allocation2 + $0xec] sm:$0xf]  ;;  %v15326_v58 = vld [vmem:[#allocation2 + $0x310] sm:$0xff]  }
 0x355   : > { %v20002_v6 = vpack.c.bf16 %v11247_v47, %v11246_v25  ;;  %v20012_v21 = vpack.c.bf16 %v11245_v28, %v11244_v43  ;;  %v13671_v26 = vcombine.low %v7476_v15, %v7479_v20  ;;  %v8545_v14 = vrot.slane %v8543_v48, 4  ;;  %v4710_v20 = vld [vmem:[#allocation2 + $0x1c0] sm:$0x8] }
 0x356   : > { %v11248_v44 = vmax.f32 %v11216_v34, 0.0  ;;  %v11251_v8 = vmax.f32 %v11219_v36, 0.0  ;;  %v9681_v38 = vsel %vm2432_vm0, %v9643_v31, %v19853_v1  ;;  %v5579_v24 = vsel %vm2432_vm0, %v5541_v29, %v19867_v62  ;;  %v8214_v1 = vld [vmem:[#allocation2 + $0xf0] sm:$0x1]  ;;  %v20030_v31 = vpop.f32.mrb[41].mxu1 }
 0x357   : > { %21821 = vst [vmem:[#allocation34_spill] sm:$0xff] %v20002_v6  ;;  %21822 = vst [vmem:[#allocation35_spill] sm:$0xff] %v20012_v21  ;;  %7726 = vrot.lane.b32.xlu0 %v13671_v26, %s15592_s12  ;;  %v8547_v19 = vsel %vm17490_vm13, %v8545_v14, %v8546_v59  ;;  %v11217_v37 = vadd.f32 %v19977_v4, %v19430_v35  ;;  %v11222_v15 = vadd.f32 %v19439_v3, %v19977_v4  ;;  %v4711_v26 = vld [vmem:[#allocation2 + $0x1c4] sm:$0xf]  ;;  %v7360_v21 = vld [vmem:[#allocation2 + $0x474] sm:$0x7] }
 0x358   : > { %14507 = vmatmul.mubr.msk.bf16.gmra.mrb[20].mxu0 %vm3211_vm1, %v5579_v24  ;;  %v13608_v25 = vrot.slane %v7144_v11, 9  ;;  %v13768_v62 = vcombine.low %v8544_v49, %v8547_v19  ;;  %v20032_v29 = vpack.c.bf16 %v11251_v8, %v11250_v42  ;;  %14575 = vmatmul.mubr.msk.bf16.gmra.mrb[80].mxu1 %vm3211_vm1, %v9681_v38  ;;  %v7274_v43 = vrot.slane %v7145_v13, 5  ;;  %v20035_v3 = vpop.permute.xlu1 %5504  ;;  %v4712_v49 = vld [vmem:[#allocation2 + $0x1c8] sm:$0x7]  ;;  %v7147_v24 = vld [vmem:[#allocation2 + $0x44c] sm:$0xe] }
 0x359   : > { %v7277_v47 = vrot.slane %v7146_v53, 5  ;;  %v11249_v28 = vmax.f32 %v11217_v37, 0.0  ;;  %v11254_v48 = vmax.f32 %v11222_v15, 0.0  ;;  %v13705_v35 = vrot.slane %v8212_v60, 9  ;;  %v20042_v14 = vpop.permute.xlu0 %5426  ;;  %v20050_v60 = vpop.f32.mrb[42].mxu1 }
 0x35a   : > { %21823 = vst [vmem:[#allocation26_spill] sm:$0xff] %v20032_v29  ;;  %v8342_v59 = vrot.slane %v8213_v30, 5  ;;  %8826 = vrot.lane.b32.xlu1 %v13768_v62, %s15592_s12  ;;  %v7275_v34 = vsel %vm16671_vm10, %v13608_v25, %v7274_v43  ;;  %v7276_v36 = vrot.slane %v7274_v43, 4  ;;  %v8345_v42 = vrot.slane %v8214_v1, 5  ;;  %v7148_v37 = vld [vmem:[#allocation2 + $0x450] sm:$0xf] }
 0x35b   : > { %v11220_v11 = vadd.f32 %v19977_v4, %v19451_v63  ;;  %v20044_v13 = vpack.c.bf16 %v11249_v28, %v11248_v44  ;;  %v11223_v38 = vadd.f32 %v19457_v39, %v19977_v4  ;;  %v20056_v19 = vsel %vm1257_vm5, %v15326_v58, %v19887_v50  ;;  %v7149_v39 = vld [vmem:[#allocation2 + $0x454] sm:$0x1]  ;;  %v7352_v43 = vld [vmem:[#allocation2 + $0x434] sm:$0x8]  ;;  %v7353_v50 = vld [vmem:[#allocation2 + $0x438] sm:$0xf] }
 0x35c   : > { %v8343_v53 = vsel %vm16671_vm10, %v13705_v35, %v8342_v59  ;;  %v8344_v8 = vrot.slane %v8342_v59, 4  ;;  %v7278_v30 = vsel %vm16671_vm10, %v7276_v36, %v7277_v47  ;;  %v13368_v44 = vrot.slane %v4710_v20, 11  ;;  %v7354_v58 = vld [vmem:[#allocation2 + $0x43c] sm:$0x7]  ;;  %v20064_v20 = vpop.f32.mrb[43].mxu1 }
 0x35d   : > { %21824 = vst [vmem:[#allocation24_spill] sm:$0xff] %v20044_v13  ;;  %v11252_v63 = vmax.f32 %v11220_v11, 0.0  ;;  %v13656_v15 = vcombine.low %v7275_v34, %v7278_v30  ;;  %v11255_v1 = vmax.f32 %v11223_v38, 0.0  ;;  %v4848_v62 = vrot.slane %v4711_v26, 7 }
 0x35e   : > { %v8346_v25 = vsel %vm16671_vm10, %v8344_v8, %v8345_v42  ;;  %v4851_v35 = vrot.slane %v4712_v49, 7  ;;  %v11221_v47 = vadd.f32 %v19977_v4, %v19483_v5  ;;  %v11226_v59 = vadd.f32 %v19494_v23, %v19977_v4  ;;  %v4713_v8 = vld [vmem:[#allocation2 + $0x1dc] sm:$0x8] }
 0x35f   : > { %v13753_v28 = vcombine.low %v8343_v53, %v8346_v25  ;;  %7648 = vrot.lane.b32.xlu0 %v13656_v15, %s15593_s17  ;;  %v20067_v34 = vpack.c.bf16 %v11255_v1, %v11254_v48  ;;  %v4849_v36 = vsel %vm16535_vm7, %v13368_v44, %v4848_v62  ;;  %v4850_v42 = vrot.slane %v4848_v62, 4  ;;  %v20071_v26 = vpop.permute.xlu1 %9606  ;;  %v4714_v44 = vld [vmem:[#allocation2 + $0x1e0] sm:$0xf] }
 0x360   : > { %v13609_v11 = vrot.slane %v7147_v24, 9  ;;  %v11253_v5 = vmax.f32 %v11221_v47, 0.0  ;;  %v11258_v49 = vmax.f32 %v11226_v59, 0.0  ;;  %v7281_v23 = vrot.slane %v7148_v37, 5  ;;  %v20074_v38 = vpop.permute.xlu0 %9528  ;;  %v4715_v47 = vld [vmem:[#allocation2 + $0x1e4] sm:$0x7] }
 0x361   : > { %21825 = vst [vmem:[#allocation38_spill] sm:$0xff] %v20067_v34  ;;  %8748 = vrot.lane.b32.xlu1 %v13753_v28, %s15593_s17  ;;  %v7284_v53 = vrot.slane %v7149_v39, 5  ;;  %v4852_v48 = vsel %vm16535_vm7, %v4850_v42, %v4851_v35  ;;  %v13624_v30 = vrot.slane %v7352_v43, 11  ;;  %v7482_v15 = vrot.slane %v7353_v50, 7  ;;  %v21827_v43 = vld [vmem:[#allocation42_spill] sm:$0xff] }
 0x362   : > { %v7485_v25 = vrot.slane %v7354_v58, 7  ;;  %v13416_v1 = vcombine.low %v4849_v36, %v4852_v48  ;;  %v20078_v24 = vpack.c.bf16 %v11253_v5, %v11252_v63  ;;  %v7282_v62 = vsel %vm16671_vm10, %v13609_v11, %v7281_v23  ;;  %v8215_v50 = vld [vmem:[#allocation2 + $0x104] sm:$0xe]  ;;  %v8216_v58 = vld [vmem:[#allocation2 + $0x108] sm:$0xf] }
 0x363   : > { %v7283_v28 = vrot.slane %v7281_v23, 4  ;;  %v7483_v37 = vsel %vm16535_vm7, %v13624_v30, %v7482_v15  ;;  %v7484_v39 = vrot.slane %v7482_v15, 4  ;;  %v11224_v59 = vadd.f32 %v19977_v4, %v19501_v45  ;;  %v20088_v36 = vpop.permute.xlu1 %9608  ;;  %v8217_v23 = vld [vmem:[#allocation2 + $0x10c] sm:$0x1]  ;;  %v8420_v48 = vld [vmem:[#allocation2 + $0xf0] sm:$0xc] }
 0x364   : > { %21826 = vst [vmem:[#allocation40_spill] sm:$0xff] %v20078_v24  ;;  %v11227_v35 = vadd.f32 %v21827_v43, %v19977_v4  ;;  %v5544_v63 = vsel %vm1257_vm5, %v13416_v1, %v19895_v0  ;;  %v13369_v11 = vrot.slane %v4713_v8, 11  ;;  %v4855_v5 = vrot.slane %v4714_v44, 7  ;;  %v8421_v24 = vld [vmem:[#allocation2 + $0xf4] sm:$0xf] }
 0x365   : > { %v7285_v42 = vsel %vm16671_vm10, %v7283_v28, %v7284_v53  ;;  %v7486_v45 = vsel %vm16535_vm7, %v7484_v39, %v7485_v25  ;;  %v11256_v15 = vmax.f32 %v11224_v59, 0.0  ;;  %v5581_v34 = vsel %vm2432_vm0, %v5544_v63, %v19918_v55  ;;  %v8422_v39 = vld [vmem:[#allocation2 + $0xf8] sm:$0x3] }
 0x366   : > { %v13657_v30 = vcombine.low %v7282_v62, %v7285_v42  ;;  %v11259_v43 = vmax.f32 %v11227_v35, 0.0  ;;  %v13672_v7 = vcombine.low %v7483_v37, %v7486_v45  ;;  %v4856_v0 = vsel %vm16535_vm7, %v13369_v11, %v4855_v5  ;;  %v20100_v53 = vpop.permute.xlu0 %5506  ;;  %v20102_v8 = vpop.f32.mrb[44].mxu1  ;;  %v21829_v62 = vld [vmem:[#allocation41_spill] sm:$0xff]  ;;  %14510 = vmatprep.mubr.msk.bf16.mxu0 %vm3211_vm1, %v5581_v34 }
 0x367   : > { %v4857_v1 = vrot.slane %v4855_v5, 4  ;;  %v4858_v25 = vrot.slane %v4715_v47, 7  ;;  %v11225_v28 = vadd.f32 %v19977_v4, %v21829_v62  ;;  %v21830_v37 = vld [vmem:[#allocation45_spill] sm:$0xff]  ;;  %v20112_v59 = vpop.f32.mrb[45].mxu1  ;;  %v13706_v35 = vrot.slane %v8215_v50, 9 }
 0x368   : > { %7650 = vrot.lane.b32.xlu0 %v13657_v30, %s15593_s17  ;;  %v20105_v44 = vpack.c.bf16 %v11259_v43, %v11258_v49  ;;  %v11230_v55 = vadd.f32 %v21830_v37, %v19977_v4  ;;  %7728 = vrot.lane.b32.xlu1 %v13672_v7, %s15592_s12  ;;  %v8349_v63 = vrot.slane %v8216_v58, 5  ;;  %v8352_v42 = vrot.slane %v8217_v23, 5  ;;  %v20115_v49 = vpop.permute.xlu1 %9530  ;;  %v15327_v43 = vld [vmem:[#allocation2 + $0x32c] sm:$0xff]   ;;  %v20119_v62 = vpop.f32.mrb[46].mxu1  ;;  %v7356_v23 = vld [vmem:[#allocation2 + $0x454] sm:$0xf] }
 0x369   : > { %v13721_v11 = vrot.slane %v8420_v48, 10  ;;  %v4859_v47 = vsel %vm16535_vm7, %v4857_v1, %v4858_v25  ;;  %v11257_v5 = vmax.f32 %v11225_v28, 0.0  ;;  %v8550_v45 = vrot.slane %v8421_v24, 6  ;;  %v7355_v58 = vld [vmem:[#allocation2 + $0x450] sm:$0x8]  ;;  %v20131_v28 = vpop.f32.mrb[47].mxu1 }
 0x36a   : > { %21828 = vst [vmem:[#allocation37_spill] sm:$0xff] %v20105_v44  ;;  %v11262_v30 = vmax.f32 %v11230_v55, 0.0  ;;  %v13417_v34 = vcombine.low %v4856_v0, %v4859_v47  ;;  %v8350_v37 = vsel %vm16671_vm10, %v13706_v35, %v8349_v63  ;;  %v8351_v7 = vrot.slane %v8349_v63, 4  ;;  %v7357_v48 = vld [vmem:[#allocation2 + $0x458] sm:$0x7]  ;;  %v20123_v29 = vpop.permute.xlu0 %5428  ;;  %21832 = vst [vmem:[#allocation46_spill] sm:$0xff] %v20131_v28 }
 0x36b   : > { %v8553_v50 = vrot.slane %v8422_v39, 6  ;;  %v8423_v44 = vld [vmem:[#allocation2 + $0x10c] sm:$0xc]  ;;  %v20125_v13 = vpack.c.bf16 %v11257_v5, %v11256_v15  ;;  %v8551_v24 = vsel %vm17490_vm13, %v13721_v11, %v8550_v45  ;;  %v8552_v1 = vrot.slane %v8550_v45, 4  ;;  %v8424_v25 = vld [vmem:[#allocation2 + $0x110] sm:$0xf] }
 0x36c   : > { %v11228_v0 = vadd.f32 %v19977_v4, %v19563_v54  ;;  %v5547_v55 = vsel %vm1257_vm5, %v13417_v34, %v19922_v33  ;;  %v8353_v39 = vsel %vm16671_vm10, %v8351_v7, %v8352_v42  ;;  %v11231_v15 = vadd.f32 %v19577_v56, %v19977_v4  ;;  %v20142_v63 = vld [vmem:[#allocation11 + $0x10] sm:$0x3f]   ;;  %v20149_v42 = vld [vmem:[#allocation13] sm:$0x3f]  }
 0x36d   : > { %21831 = vst [vmem:[#allocation36_spill] sm:$0xff] %v20125_v13  ;;  %v9683_v35 = vsel %vm2432_vm0, %v20056_v19, %v19938_v22  ;;  %v13754_v11 = vcombine.low %v8350_v37, %v8353_v39  ;;  %v8554_v54 = vsel %vm17490_vm13, %v8552_v1, %v8553_v50  ;;  %v9649_v33 = vsel %vm1257_vm5, %v15327_v43, %v19949_v32  ;;  %v21833_v45 = vld [vmem:[#allocation23_spill] sm:$0xff]  ;;  %v21834_v22 = vld [vmem:[#allocation48_spill] sm:$0xff]  ;;  %v8425_v37 = vld [vmem:[#allocation2 + $0x114] sm:$0x3] }
 0x36e   : > { %v11260_v47 = vmax.f32 %v11228_v0, 0.0  ;;  %14578 = vmatprep.mubr.msk.bf16.mxu1 %vm3211_vm1, %v9683_v35  ;;  %v13769_v5 = vcombine.low %v8551_v24, %v8554_v54  ;;  %v11263_v56 = vmax.f32 %v11231_v15, 0.0  ;;  %v11229_v34 = vadd.f32 %v19977_v4, %v21833_v45  ;;  %v20155_v7 = vpop.permute.xlu1 %5508  ;;  %15167 = vmatprep.subr.msk.bf16.mxu0 %vm3244_vm14, %v20142_v63 }
 0x36f   : > { %v11234_v19 = vadd.f32 %v21834_v22, %v19977_v4  ;;  %8750 = vrot.lane.b32.xlu0 %v13754_v11, %s15593_s17  ;;  %v13625_v32 = vrot.slane %v7355_v58, 11  ;;  %v7489_v43 = vrot.slane %v7356_v23, 7  ;;  %v7492_v50 = vrot.slane %v7357_v48, 7  ;;  %v20160_v24 = vpop.permute.xlu0 %5430  ;;  %15169 = vmatprep.subr.msk.bf16.mxu1 %vm3244_vm14, %v20149_v42  ;;  %v7150_v23 = vld [vmem:[#allocation2 + $0x468] sm:$0xe] }
 0x370   : > { %v13722_v1 = vrot.slane %v8423_v44, 10  ;;  %8828 = vrot.lane.b32.xlu1 %v13769_v5, %s15592_s12  ;;  %v20165_v0 = vpack.c.bf16 %v11263_v56, %v11262_v30  ;;  %v11261_v39 = vmax.f32 %v11229_v34, 0.0  ;;  %v8557_v35 = vrot.slane %v8424_v25, 6  ;;  %v7151_v48 = vld [vmem:[#allocation2 + $0x46c] sm:$0xf]  ;;  %v21837_v56 = vld [vmem:[#allocation50_spill] sm:$0xff] }
 0x371   : > { %v11266_v15 = vmax.f32 %v11234_v19, 0.0  ;;  %v7490_v54 = vsel %vm16535_vm7, %v13625_v32, %v7489_v43  ;;  %v7491_v11 = vrot.slane %v7489_v43, 4  ;;  %v8560_v58 = vrot.slane %v8425_v37, 6  ;;  %v7152_v37 = vld [vmem:[#allocation2 + $0x470] sm:$0x1] }
 0x372   : > { %21835 = vst [vmem:[#allocation39_spill] sm:$0xff] %v20165_v0  ;;  %v11232_v44 = vadd.f32 %v19977_v4, %v19614_v51  ;;  %v20171_v45 = vpack.c.bf16 %v11261_v39, %v11260_v47  ;;  %v8558_v5 = vsel %vm17490_vm13, %v13722_v1, %v8557_v35  ;;  %v8559_v30 = vrot.slane %v8557_v35, 4  ;;  %v8218_v47 = vld [vmem:[#allocation2 + $0x120] sm:$0xe]  ;;  %v21838_v35 = vld [vmem:[#allocation43_spill] sm:$0xff] }
 0x373   : > { %v11235_v34 = vadd.f32 %v21837_v56, %v19977_v4  ;;  %v7493_v25 = vsel %vm16535_vm7, %v7491_v11, %v7492_v50  ;;  %v9685_v19 = vsel %vm2432_vm0, %v9649_v33, %v19972_v40  ;;  %v5583_v51 = vsel %vm2432_vm0, %v5547_v55, %v19982_v57  ;;  %v20183_v32 = vpop.permute.xlu1 %9610  ;;  %v8219_v40 = vld [vmem:[#allocation2 + $0x124] sm:$0xf]  ;;  %v15328_v33 = vld [vmem:[#allocation2 + $0x348] sm:$0xff]   ;;  %v21839_v57 = vld [vmem:[#allocation47_spill] sm:$0xff] }
 0x374   : > { %21836 = vst [vmem:[#allocation42_spill] sm:$0xff] %v20171_v45  ;;  %v11264_v22 = vmax.f32 %v11232_v44, 0.0  ;;  %v13673_v43 = vcombine.low %v7490_v54, %v7493_v25  ;;  %v8561_v1 = vsel %vm17490_vm13, %v8559_v30, %v8560_v58  ;;  %v11233_v56 = vadd.f32 %v19977_v4, %v21838_v35  ;;  %14511 = vmatmul.mubr.msk.bf16.gmra.mrb[24].mxu0 %vm3211_vm1, %v5583_v51  ;;  %v8220_v54 = vld [vmem:[#allocation2 + $0x128] sm:$0x1]  ;;  %v4716_v25 = vld [vmem:[#allocation2 + $0x1f8] sm:$0x8] }
 0x375   : > { %v11267_v39 = vmax.f32 %v11235_v34, 0.0  ;;  %14579 = vmatmul.mubr.msk.bf16.gmra.mrb[84].mxu1 %vm3211_vm1, %v9685_v19  ;;  %v13770_v50 = vcombine.low %v8558_v5, %v8561_v1  ;;  %v11238_v55 = vadd.f32 %v21839_v57, %v19977_v4  ;;  %v13610_v11 = vrot.slane %v7150_v23, 9  ;;  %v20193_v0 = vpop.permute.xlu0 %9532  ;;  %v4717_v19 = vld [vmem:[#allocation2 + $0x1fc] sm:$0xf]  ;;  %v4718_v35 = vld [vmem:[#allocation2 + $0x200] sm:$0x7] }
 0x376   : > { %v7288_v44 = vrot.slane %v7151_v48, 5  ;;  %7730 = vrot.lane.b32.xlu0 %v13673_v43, %s15592_s12  ;;  %v11265_v30 = vmax.f32 %v11233_v56, 0.0  ;;  %v7291_v34 = vrot.slane %v7152_v37, 5  ;;  %v13707_v51 = vrot.slane %v8218_v47, 9  ;;  %v1638_v57 = vld [vmem:[#allocation7] sm:$0x1] }
 0x377   : > { %v20196_v58 = vpack.c.bf16 %v11267_v39, %v11266_v15  ;;  %8830 = vrot.lane.b32.xlu1 %v13770_v50, %s15592_s12  ;;  %v11270_v5 = vmax.f32 %v11238_v55, 0.0  ;;  %v8356_v1 = vrot.slane %v8219_v40, 5  ;;  %v8359_v13 = vrot.slane %v8220_v54, 5  ;;  %v21842_v43 = vld [vmem:[#allocation44_spill] sm:$0xff] }
 0x378   : > { %v7289_v23 = vsel %vm16671_vm10, %v13610_v11, %v7288_v44  ;;  %v7290_v48 = vrot.slane %v7288_v44, 4  ;;  %v20201_v45 = vpack.c.bf16 %v11265_v30, %v11264_v22  ;;  %v11236_v15 = vadd.f32 %v19977_v4, %v21842_v43  ;;  %v7153_v47 = vld [vmem:[#allocation2 + $0x484] sm:$0xe]  ;;  %v7154_v39 = vld [vmem:[#allocation2 + $0x488] sm:$0xf]  ;;  %v20207_v56 = vpop.permute.xlu1 %9612 }
 0x379   : > { %21840 = vst [vmem:[#allocation41_spill] sm:$0xff] %v20196_v58  ;;  %v11239_v37 = vadd.f32 %v19656_v41, %v19977_v4  ;;  %v8357_v40 = vsel %vm16671_vm10, %v13707_v51, %v8356_v1  ;;  %v8358_v55 = vrot.slane %v8356_v1, 4  ;;  %v20215_v22 = vsel %vm1257_vm5, %v15328_v33, %v20000_v46  ;;  %v7155_v11 = vld [vmem:[#allocation2 + $0x48c] sm:$0x1]  ;;  %v7358_v44 = vld [vmem:[#allocation2 + $0x46c] sm:$0x8]  ;;  %v20217_v54 = vpop.permute.xlu0 %5510 }
 0x37a   : > { %21841 = vst [vmem:[#allocation45_spill] sm:$0xff] %v20201_v45  ;;  %v7292_v50 = vsel %vm16671_vm10, %v7290_v48, %v7291_v34  ;;  %v11268_v30 = vmax.f32 %v11236_v15, 0.0  ;;  %v13370_v58 = vrot.slane %v4716_v25, 11  ;;  %v7359_v45 = vld [vmem:[#allocation2 + $0x470] sm:$0xf]  ;;  %v4862_v48 = vrot.slane %v4717_v19, 7 }
 0x37b   : > { %v13658_v41 = vcombine.low %v7289_v23, %v7292_v50  ;;  %v11271_v43 = vmax.f32 %v11239_v37, 0.0  ;;  %v8360_v34 = vsel %vm16671_vm10, %v8358_v55, %v8359_v13  ;;  %v4865_v6 = vrot.slane %v4718_v35, 7  ;;  %v21843_v51 = vld [vmem:[#allocation49_spill] sm:$0xff]  ;;  %v4719_v46 = vld [vmem:[#allocation2 + $0x214] sm:$0x8] }
 0x37c   : > { %v11237_v1 = vadd.f32 %v19977_v4, %v21843_v51  ;;  %v13755_v33 = vcombine.low %v8357_v40, %v8360_v34  ;;  %v21845_v23 = vld [vmem:[#allocation29_spill] sm:$0xff]  ;;  %v13611_v37 = vrot.slane %v7153_v47, 9  ;;  %v4863_v25 = vsel %vm16535_vm7, %v13370_v58, %v4862_v48  ;;  %v4720_v35 = vld [vmem:[#allocation2 + $0x218] sm:$0xf] }
 0x37d   : > { %7652 = vrot.lane.b32.xlu0 %v13658_v41, %s15593_s17  ;;  %v20224_v28 = vpack.c.bf16 %v11271_v43, %v11270_v5  ;;  %v1687_v15 = vadd.f32 %v21845_v23, %v1638_v57  ;;  %v4864_v50 = vrot.slane %v4862_v48, 4  ;;  %v7295_v19 = vrot.slane %v7154_v39, 5  ;;  %v20229_v55 = vpop.permute.xlu0 %7632  ;;  %v20231_v51 = vpop.f32.mrb[48].mxu1  ;;  %v4721_v57 = vld [vmem:[#allocation2 + $0x21c] sm:$0x7] }
 0x37e   : > { %v11269_v13 = vmax.f32 %v11237_v1, 0.0  ;;  %8752 = vrot.lane.b32.xlu1 %v13755_v33, %s15593_s17  ;;  %v7298_v40 = vrot.slane %v7155_v11, 5  ;;  %v13626_v5 = vrot.slane %v7358_v44, 11  ;;  %v7496_v41 = vrot.slane %v7359_v45, 7  ;;  %v20234_v47 = vpop.permute.xlu1 %8732  ;;  %v8221_v1 = vld [vmem:[#allocation2 + $0x13c] sm:$0xe] }
 0x37f   : > { %21844 = vst [vmem:[#allocation23_spill] sm:$0xff] %v20224_v28  ;;  %1688 = vst [vmem:[#allocation7] sm:$0x1] %v1687_v15  ;;  %v7499_v43 = vrot.slane %v7360_v21, 7  ;;  %v4866_v58 = vsel %vm16535_vm7, %v4864_v50, %v4865_v6  ;;  %v7296_v39 = vsel %vm16671_vm10, %v13611_v37, %v7295_v19  ;;  %v7297_v48 = vrot.slane %v7295_v19, 4  ;;  %v20242_v23 = vpop.f32.mrb[49].mxu1 }
 0x380   : > { %v20238_v34 = vpack.c.bf16 %v11269_v13, %v11268_v30  ;;  %v13418_v33 = vcombine.low %v4863_v25, %v4866_v58  ;;  %v7497_v45 = vsel %vm16535_vm7, %v13626_v5, %v7496_v41  ;;  %v7498_v21 = vrot.slane %v7496_v41, 4  ;;  %v8222_v44 = vld [vmem:[#allocation2 + $0x140] sm:$0xf]  ;;  %v8223_v15 = vld [vmem:[#allocation2 + $0x144] sm:$0x1]  ;;  %v20251_v28 = vpop.f32.mrb[50].mxu1 }
 0x381   : > { %v13371_v11 = vrot.slane %v4719_v46, 11  ;;  %v7299_v6 = vsel %vm16671_vm10, %v7297_v48, %v7298_v40  ;;  %v4869_v30 = vrot.slane %v4720_v35, 7  ;;  %v4872_v50 = vrot.slane %v4721_v57, 7  ;;  %v8426_v37 = vld [vmem:[#allocation2 + $0x128] sm:$0xc]  ;;  %v20249_v19 = vpop.permute.xlu0 %7634  ;;  %21847 = vst [vmem:[#allocation50_spill] sm:$0xff] %v20251_v28 }
 0x382   : > { %21846 = vst [vmem:[#allocation48_spill] sm:$0xff] %v20238_v34  ;;  %v11322_v13 = vsub.s32 1, %v19956_v10  ;;  %v5550_v25 = vsel %vm1257_vm5, %v13418_v33, %v20010_v61  ;;  %v13659_v5 = vcombine.low %v7296_v39, %v7299_v6  ;;  %v7500_v46 = vsel %vm16535_vm7, %v7498_v21, %v7499_v43  ;;  %v8427_v58 = vld [vmem:[#allocation2 + $0x12c] sm:$0xf]  ;;  %v8428_v34 = vld [vmem:[#allocation2 + $0x130] sm:$0x3] }
 0x383   : > { %v13708_v41 = vrot.slane %v8221_v1, 9  ;;  %v20257_v40 = vpop.f32.mrb[51].mxu1  ;;  %v13674_v35 = vcombine.low %v7497_v45, %v7500_v46  ;;  %v5585_v57 = vsel %vm2432_vm0, %v5550_v25, %v20035_v3  ;;  %v4870_v48 = vsel %vm16535_vm7, %v13371_v11, %v4869_v30  ;;  %v15329_v33 = vld [vmem:[#allocation2 + $0x364] sm:$0xff]   ;;  %v7362_v25 = vld [vmem:[#allocation2 + $0x48c] sm:$0xf] }
 0x384   : > { %21848 = vst [vmem:[#allocation43_spill] sm:$0xff] %v20257_v40  ;;  %v4871_v10 = vrot.slane %v4869_v30, 4  ;;  %7654 = vrot.lane.b32.xlu0 %v13659_v5, %s15593_s17  ;;  %v20265_v61 = vrot.slane %v19947_v17, %v11322_v13  ;;  %14514 = vmatprep.mubr.msk.bf16.mxu0 %vm3211_vm1, %v5585_v57  ;;  %v8363_v43 = vrot.slane %v8222_v44, 5  ;;  %v8366_v39 = vrot.slane %v8223_v15, 5  ;;  %v20268_v21 = vpop.permute.xlu1 %7712  ;;  %v7361_v6 = vld [vmem:[#allocation2 + $0x488] sm:$0x8] }
 0x385   : > { %v13723_v1 = vrot.slane %v8426_v37, 10  ;;  %7732 = vrot.lane.b32.xlu1 %v13674_v35, %s15592_s12  ;;  %v8564_v45 = vrot.slane %v8427_v58, 6  ;;  %v8567_v11 = vrot.slane %v8428_v34, 6  ;;  %v9687_v17 = vsel %vm2432_vm0, %v20215_v22, %v20071_v26  ;;  %v21849_v44 = vld [vmem:[#allocation31_spill] sm:$0xff]  ;;  %v7363_v22 = vld [vmem:[#allocation2 + $0x490] sm:$0x7] }
 0x386   : > { %v4873_v3 = vsel %vm16535_vm7, %v4871_v10, %v4872_v50  ;;  %v11326_v15 = vadd.f32 %v21849_v44, %v20265_v61  ;;  %v8364_v13 = vsel %vm16671_vm10, %v13708_v41, %v8363_v43  ;;  %v8365_v37 = vrot.slane %v8363_v43, 4  ;;  %14582 = vmatprep.mubr.msk.bf16.mxu1 %vm3211_vm1, %v9687_v17  ;;  %v21850_v50 = vld [vmem:[#allocation33_spill] sm:$0xff]  ;;  %v15331_v40 = vld [vmem:[#allocation2 + $0x39c] sm:$0xff]  }
 0x387   : > { %v13419_v30 = vcombine.low %v4870_v48, %v4873_v3  ;;  %v8565_v10 = vsel %vm17490_vm13, %v13723_v1, %v8564_v45  ;;  %v8566_v34 = vrot.slane %v8564_v45, 4  ;;  %v11324_v5 = vadd.f32 %v20265_v61, %v21850_v50  ;;  %v20287_v46 = vpop.permute.xlu0 %8734  ;;  %v8429_v48 = vld [vmem:[#allocation2 + $0x144] sm:$0xc]  ;;  %v8430_v43 = vld [vmem:[#allocation2 + $0x148] sm:$0xf] }
 0x388   : > { %v11327_v26 = vadd.f32 %v19841_v16, %v20265_v61  ;;  %v11358_v58 = vmax.f32 %v11326_v15, 0.0  ;;  %v8367_v35 = vsel %vm16671_vm10, %v8365_v37, %v8366_v39  ;;  %v9655_v57 = vsel %vm1257_vm5, %v15329_v33, %v20074_v38  ;;  %v8431_v17 = vld [vmem:[#allocation2 + $0x14c] sm:$0x3]  ;;  %v7156_v50 = vld [vmem:[#allocation2 + $0x4a0] sm:$0xe] }
 0x389   : > { %v5553_v41 = vsel %vm1257_vm5, %v13419_v30, %v20042_v14  ;;  %v13756_v1 = vcombine.low %v8364_v13, %v8367_v35  ;;  %v8568_v3 = vsel %vm17490_vm13, %v8566_v34, %v8567_v11  ;;  %v11356_v16 = vmax.f32 %v11324_v5, 0.0  ;;  %v7157_v39 = vld [vmem:[#allocation2 + $0x4a4] sm:$0xf]  ;;  %v7158_v34 = vld [vmem:[#allocation2 + $0x4a8] sm:$0x1] }
 0x38a   : > { %v11359_v45 = vmax.f32 %v11327_v26, 0.0  ;;  %v13771_v44 = vcombine.low %v8565_v10, %v8568_v3  ;;  %v11325_v14 = vadd.f32 %v20265_v61, %v19855_v27  ;;  %v13627_v30 = vrot.slane %v7361_v6, 11  ;;  %v20299_v37 = vpop.permute.xlu1 %8812  ;;  %v8224_v26 = vld [vmem:[#allocation2 + $0x158] sm:$0xe]  ;;  %v15330_v3 = vld [vmem:[#allocation2 + $0x380] sm:$0xff]  }
 0x38b   : > { %v7503_v15 = vrot.slane %v7362_v25, 7  ;;  %8754 = vrot.lane.b32.xlu0 %v13756_v1, %s15593_s17  ;;  %v7506_v33 = vrot.slane %v7363_v22, 7  ;;  %v13724_v13 = vrot.slane %v8429_v48, 10  ;;  %v8571_v11 = vrot.slane %v8430_v43, 6  ;;  %v20304_v5 = vpop.permute.xlu0 %7714  ;;  %v8225_v43 = vld [vmem:[#allocation2 + $0x15c] sm:$0xf] }
 0x38c   : > { %v20302_v38 = vpack.c.bf16 %v11359_v45, %v11358_v58  ;;  %8832 = vrot.lane.b32.xlu1 %v13771_v44, %s15592_s12  ;;  %v11357_v10 = vmax.f32 %v11325_v14, 0.0  ;;  %v8574_v25 = vrot.slane %v8431_v17, 6  ;;  %v9689_v22 = vsel %vm2432_vm0, %v9655_v57, %v20088_v36  ;;  %v8226_v1 = vld [vmem:[#allocation2 + $0x160] sm:$0x1] }
 0x38d   : > { %v7504_v27 = vsel %vm16535_vm7, %v13627_v30, %v7503_v15  ;;  %v7505_v6 = vrot.slane %v7503_v15, 4  ;;  %v8572_v35 = vsel %vm17490_vm13, %v13724_v13, %v8571_v11  ;;  %v8573_v58 = vrot.slane %v8571_v11, 4  ;;  %14583 = vmatmul.mubr.msk.bf16.gmra.mrb[88].mxu1 %vm3211_vm1, %v9689_v22  ;;  %v4722_v30 = vld [vmem:[#allocation2 + $0x230] sm:$0x8]  ;;  %v4723_v15 = vld [vmem:[#allocation2 + $0x234] sm:$0xf] }
 0x38e   : > { %21851 = vst [vmem:[#allocation47_spill] sm:$0xff] %v20302_v38  ;;  %v5587_v48 = vsel %vm2432_vm0, %v5553_v41, %v20100_v53  ;;  %v20315_v45 = vpack.c.bf16 %v11357_v10, %v11356_v16  ;;  %v13612_v17 = vrot.slane %v7156_v50, 9  ;;  %v7302_v14 = vrot.slane %v7157_v39, 5  ;;  %v20321_v36 = vpop.permute.xlu1 %8814  ;;  %v4724_v13 = vld [vmem:[#allocation2 + $0x238] sm:$0x7] }
 0x38f   : > { %v7507_v44 = vsel %vm16535_vm7, %v7505_v6, %v7506_v33  ;;  %14515 = vmatmul.mubr.msk.bf16.gmra.mrb[28].mxu0 %vm3211_vm1, %v5587_v48  ;;  %v8575_v53 = vsel %vm17490_vm13, %v8573_v58, %v8574_v25  ;;  %v7305_v41 = vrot.slane %v7158_v34, 5  ;;  %v13709_v16 = vrot.slane %v8224_v26, 9  ;;  %v7159_v11 = vld [vmem:[#allocation2 + $0x4bc] sm:$0xe]  ;;  %v7160_v25 = vld [vmem:[#allocation2 + $0x4c0] sm:$0xf] }
 0x390   : > { %21852 = vst [vmem:[#allocation44_spill] sm:$0xff] %v20315_v45  ;;  %v13675_v57 = vcombine.low %v7504_v27, %v7507_v44  ;;  %v13772_v10 = vcombine.low %v8572_v35, %v8575_v53  ;;  %v7303_v33 = vsel %vm16671_vm10, %v13612_v17, %v7302_v14  ;;  %v7304_v6 = vrot.slane %v7302_v14, 4  ;;  %v20332_v34 = vpop.permute.xlu0 %7636  ;;  %v7364_v14 = vld [vmem:[#allocation2 + $0x4a4] sm:$0x8] }
 0x391   : > { %v8370_v22 = vrot.slane %v8225_v43, 5  ;;  %v8373_v50 = vrot.slane %v8226_v1, 5  ;;  %v20330_v39 = vsel %vm1257_vm5, %v15330_v3, %v20115_v49  ;;  %v13372_v27 = vrot.slane %v4722_v30, 11  ;;  %v7161_v1 = vld [vmem:[#allocation2 + $0x4c4] sm:$0x1] }
 0x392   : > { %7734 = vrot.lane.b32.xlu0 %v13675_v57, %s15592_s12  ;;  %v4876_v48 = vrot.slane %v4723_v15, 7  ;;  %8834 = vrot.lane.b32.xlu1 %v13772_v10, %s15592_s12  ;;  %v7306_v26 = vsel %vm16671_vm10, %v7304_v6, %v7305_v41  ;;  %v4879_v43 = vrot.slane %v4724_v13, 7  ;;  %v11330_v17 = vadd.f32 %v19869_v2, %v20265_v61  ;;  %v20343_v30 = vpop.permute.xlu1 %8736  ;;  %v21853_v57 = vld [vmem:[#allocation27_spill] sm:$0xff]  ;;  %v7365_v13 = vld [vmem:[#allocation2 + $0x4a8] sm:$0xf] }
 0x393   : > { %v8371_v35 = vsel %vm16671_vm10, %v13709_v16, %v8370_v22  ;;  %v8372_v58 = vrot.slane %v8370_v22, 4  ;;  %v13660_v44 = vcombine.low %v7303_v33, %v7306_v26  ;;  %v11328_v53 = vadd.f32 %v20265_v61, %v21853_v57  ;;  %v7366_v10 = vld [vmem:[#allocation2 + $0x4ac] sm:$0x7] }
 0x394   : > { %v4877_v49 = vsel %vm16535_vm7, %v13372_v27, %v4876_v48  ;;  %v4878_v3 = vrot.slane %v4876_v48, 4  ;;  %v13613_v41 = vrot.slane %v7159_v11, 9  ;;  %v7309_v16 = vrot.slane %v7160_v25, 5  ;;  %v4725_v27 = vld [vmem:[#allocation2 + $0x24c] sm:$0x8] }
 0x395   : > { %v8374_v15 = vsel %vm16671_vm10, %v8372_v58, %v8373_v50  ;;  %v11362_v2 = vmax.f32 %v11330_v17, 0.0  ;;  %v7312_v22 = vrot.slane %v7161_v1, 5  ;;  %v4726_v48 = vld [vmem:[#allocation2 + $0x250] sm:$0xf]  ;;  %v11360_v38 = vmax.f32 %v11328_v53, 0.0  ;;  %v20357_v1 = vpop.permute.xlu0 %7638  ;;  %v20359_v17 = vpop.f32.mrb[52].mxu1 }
 0x396   : > { %7656 = vrot.lane.b32.xlu0 %v13660_v44, %s15593_s17  ;;  %v13757_v33 = vcombine.low %v8371_v35, %v8374_v15  ;;  %v4880_v6 = vsel %vm16535_vm7, %v4878_v3, %v4879_v43  ;;  %v7310_v50 = vsel %vm16671_vm10, %v13613_v41, %v7309_v16  ;;  %v7311_v58 = vrot.slane %v7309_v16, 4  ;;  %v4727_v11 = vld [vmem:[#allocation2 + $0x254] sm:$0x7]  ;;  %v21854_v15 = vld [vmem:[#allocation25_spill] sm:$0xff]  ;;  %v8228_v3 = vld [vmem:[#allocation2 + $0x178] sm:$0xf] }
 0x397   : > { %v13420_v26 = vcombine.low %v4877_v49, %v4880_v6  ;;  %v8227_v25 = vld [vmem:[#allocation2 + $0x174] sm:$0xe]  ;;  %v13628_v57 = vrot.slane %v7364_v14, 11  ;;  %v7510_v44 = vrot.slane %v7365_v13, 7  ;;  %v7513_v35 = vrot.slane %v7366_v10, 7  ;;  %21855 = vst [vmem:[#allocation49_spill] sm:$0xff] %v20359_v17 }
 0x398   : > { %8756 = vrot.lane.b32.xlu1 %v13757_v33, %s15593_s17  ;;  %v11331_v43 = vadd.f32 %v21854_v15, %v20265_v61  ;;  %v7313_v53 = vsel %vm16671_vm10, %v7311_v58, %v7312_v22  ;;  %v21856_v41 = vld [vmem:[#allocation30_spill] sm:$0xff]  ;;  %v13373_v14 = vrot.slane %v4725_v27, 11  ;;  %v8229_v13 = vld [vmem:[#allocation2 + $0x17c] sm:$0x1]  ;;  %v8432_v10 = vld [vmem:[#allocation2 + $0x160] sm:$0xc] }
 0x399   : > { %v5556_v49 = vsel %vm1257_vm5, %v13420_v26, %v20123_v29  ;;  %v11329_v16 = vadd.f32 %v20265_v61, %v21856_v41  ;;  %v20367_v33 = vpop.f32.mrb[53].mxu1  ;;  %v13661_v6 = vcombine.low %v7310_v50, %v7313_v53  ;;  %v7511_v15 = vsel %vm16535_vm7, %v13628_v57, %v7510_v44  ;;  %v8433_v17 = vld [vmem:[#allocation2 + $0x164] sm:$0xf]  ;;  %v20371_v29 = vpop.permute.xlu1 %7716  ;;  %v8434_v53 = vld [vmem:[#allocation2 + $0x168] sm:$0x3] }
 0x39a   : > { %21857 = vst [vmem:[#allocation29_spill] sm:$0xff] %v20367_v33  ;;  %v7512_v45 = vrot.slane %v7510_v44, 4  ;;  %v11363_v4 = vmax.f32 %v11331_v43, 0.0  ;;  %v5589_v22 = vsel %vm2432_vm0, %v5556_v49, %v20155_v7  ;;  %v4883_v58 = vrot.slane %v4726_v48, 7  ;;  %v20375_v41 = vpop.f32.mrb[54].mxu1 }
 0x39b   : > { %v11361_v26 = vmax.f32 %v11329_v16, 0.0  ;;  %v4886_v27 = vrot.slane %v4727_v11, 7  ;;  %7658 = vrot.lane.b32.xlu0 %v13661_v6, %s15593_s17  ;;  %14518 = vmatprep.mubr.msk.bf16.mxu0 %vm3211_vm1, %v5589_v22  ;;  %v13710_v44 = vrot.slane %v8227_v25, 9  ;;  %v8377_v43 = vrot.slane %v8228_v3, 5  ;;  %v7367_v16 = vld [vmem:[#allocation2 + $0x4c0] sm:$0x8]  ;;  %v20391_v3 = vpop.permute.xlu0 %8738 }
 0x39c   : > { %v7514_v50 = vsel %vm16535_vm7, %v7512_v45, %v7513_v35  ;;  %v20380_v57 = vpack.c.bf16 %v11363_v4, %v11362_v2  ;;  %v4884_v7 = vsel %vm16535_vm7, %v13373_v14, %v4883_v58  ;;  %v4885_v48 = vrot.slane %v4883_v58, 4  ;;  %v7368_v11 = vld [vmem:[#allocation2 + $0x4c4] sm:$0xf]  ;;  %v7369_v49 = vld [vmem:[#allocation2 + $0x4c8] sm:$0x7]  ;;  %v20387_v6 = vpop.f32.mrb[55].mxu1 }
 0x39d   : > { %v13676_v33 = vcombine.low %v7511_v15, %v7514_v50  ;;  %v20383_v28 = vpack.c.bf16 %v11361_v26, %v11360_v38  ;;  %v8378_v4 = vsel %vm16671_vm10, %v13710_v44, %v8377_v43  ;;  %v8379_v45 = vrot.slane %v8377_v43, 4  ;;  %v8435_v35 = vld [vmem:[#allocation2 + $0x17c] sm:$0xc]  ;;  %v8436_v22 = vld [vmem:[#allocation2 + $0x180] sm:$0xf] }
 0x39e   : > { %21858 = vst [vmem:[#allocation31_spill] sm:$0xff] %v20380_v57  ;;  %v8380_v2 = vrot.slane %v8229_v13, 5  ;;  %v13725_v25 = vrot.slane %v8432_v10, 10  ;;  %v4887_v38 = vsel %vm16535_vm7, %v4885_v48, %v4886_v27  ;;  %v8578_v14 = vrot.slane %v8433_v17, 6  ;;  %v8437_v58 = vld [vmem:[#allocation2 + $0x184] sm:$0x3]  ;;  %v20404_v17 = vpop.permute.xlu1 %8816 }
 0x39f   : > { %21859 = vst [vmem:[#allocation33_spill] sm:$0xff] %v20383_v28  ;;  %7736 = vrot.lane.b32.xlu1 %v13676_v33, %s15592_s12  ;;  %v8581_v15 = vrot.slane %v8434_v53, 6  ;;  %v9691_v26 = vsel %vm2432_vm0, %v20330_v39, %v20183_v32  ;;  %v13421_v50 = vcombine.low %v4884_v7, %v4887_v38  ;;  %v9661_v10 = vsel %vm1257_vm5, %v15331_v40, %v20193_v0  ;;  %v7162_v44 = vld [vmem:[#allocation2 + $0x4d8] sm:$0xe]  ;;  %v7163_v27 = vld [vmem:[#allocation2 + $0x4dc] sm:$0xf] }
 0x3a0   : > { %v8381_v13 = vsel %vm16671_vm10, %v8379_v45, %v8380_v2  ;;  %14586 = vmatprep.mubr.msk.bf16.mxu1 %vm3211_vm1, %v9691_v26  ;;  %v13629_v33 = vrot.slane %v7367_v16, 11  ;;  %v8579_v32 = vsel %vm17490_vm13, %v13725_v25, %v8578_v14  ;;  %v8580_v39 = vrot.slane %v8578_v14, 4  ;;  %v7164_v7 = vld [vmem:[#allocation2 + $0x4e0] sm:$0x1]  ;;  %v8230_v48 = vld [vmem:[#allocation2 + $0x190] sm:$0xe] }
 0x3a1   : > { %v13758_v43 = vcombine.low %v8378_v4, %v8381_v13  ;;  %v7517_v53 = vrot.slane %v7368_v11, 7  ;;  %v5559_v45 = vsel %vm1257_vm5, %v13421_v50, %v20160_v24  ;;  %v7520_v2 = vrot.slane %v7369_v49, 7  ;;  %v8231_v38 = vld [vmem:[#allocation2 + $0x194] sm:$0xf]  ;;  %v8232_v11 = vld [vmem:[#allocation2 + $0x198] sm:$0x1] }
 0x3a2   : > { %v13726_v0 = vrot.slane %v8435_v35, 10  ;;  %v8585_v40 = vrot.slane %v8436_v22, 6  ;;  %v8582_v16 = vsel %vm17490_vm13, %v8580_v39, %v8581_v15  ;;  %v8588_v14 = vrot.slane %v8437_v58, 6  ;;  %v6912_v26 = vld [vmem:[#allocation2 + $0x348] sm:$0x8]  ;;  %v15332_v50 = vld [vmem:[#allocation2] sm:$0xff]  }
 0x3a3   : > { %8758 = vrot.lane.b32.xlu0 %v13758_v43, %s15593_s17  ;;  %v7518_v4 = vsel %vm16535_vm7, %v13629_v33, %v7517_v53  ;;  %v7519_v25 = vrot.slane %v7517_v53, 4  ;;  %v13773_v13 = vcombine.low %v8579_v32, %v8582_v16  ;;  %v9693_v35 = vsel %vm2432_vm0, %v9661_v10, %v20207_v56  ;;  %v6913_v22 = vld [vmem:[#allocation2 + $0x34c] sm:$0xf]  ;;  %v20419_v43 = vpop.permute.xlu0 %7718  ;;  %v6914_v39 = vld [vmem:[#allocation2 + $0x350] sm:$0x7] }
 0x3a4   : > { %v8586_v24 = vsel %vm17490_vm13, %v13726_v0, %v8585_v40  ;;  %v8587_v49 = vrot.slane %v8585_v40, 4  ;;  %v5591_v58 = vsel %vm2432_vm0, %v5559_v45, %v20217_v54  ;;  %14587 = vmatmul.mubr.msk.bf16.gmra.mrb[92].mxu1 %vm3211_vm1, %v9693_v35  ;;  %v13614_v33 = vrot.slane %v7162_v44, 9  ;;  %v20430_v40 = vpop.permute.xlu1 %8818  ;;  %v10346_v57 = vld [vmem:[#allocation2 + $0x438] sm:$0xc]  ;;  %v10347_v28 = vld [vmem:[#allocation2 + $0x43c] sm:$0xf] }
 0x3a5   : > { %v7521_v15 = vsel %vm16535_vm7, %v7519_v25, %v7520_v2  ;;  %v7316_v32 = vrot.slane %v7163_v27, 5  ;;  %8836 = vrot.lane.b32.xlu1 %v13773_v13, %s15592_s12  ;;  %14519 = vmatmul.mubr.msk.bf16.gmra.mrb[32].mxu0 %vm3211_vm1, %v5591_v58  ;;  %v7319_v10 = vrot.slane %v7164_v7, 5  ;;  %v13711_v0 = vrot.slane %v8230_v48, 9  ;;  %v7165_v27 = vld [vmem:[#allocation2 + $0x4f4] sm:$0xe] }
 0x3a6   : > { %v13677_v53 = vcombine.low %v7518_v4, %v7521_v15  ;;  %v8589_v56 = vsel %vm17490_vm13, %v8587_v49, %v8588_v14  ;;  %v8384_v44 = vrot.slane %v8231_v38, 5  ;;  %v8387_v16 = vrot.slane %v8232_v11, 5  ;;  %v7166_v14 = vld [vmem:[#allocation2 + $0x4f8] sm:$0xf]  ;;  %v7167_v38 = vld [vmem:[#allocation2 + $0x4fc] sm:$0x1] }
 0x3a7   : > { %v13774_v2 = vcombine.low %v8586_v24, %v8589_v56  ;;  %v7317_v54 = vsel %vm16671_vm10, %v13614_v33, %v7316_v32  ;;  %v7318_v45 = vrot.slane %v7316_v32, 4  ;;  %v13584_v4 = vrot.slane %v6912_v26, 11  ;;  %v7370_v15 = vld [vmem:[#allocation2 + $0x4dc] sm:$0x8]  ;;  %v20448_v58 = vpop.permute.xlu0 %7640 }
 0x3a8   : > { %7738 = vrot.lane.b32.xlu0 %v13677_v53, %s15592_s12  ;;  %v7010_v25 = vrot.slane %v6913_v22, 7  ;;  %v7013_v13 = vrot.slane %v6914_v39, 7  ;;  %v8385_v48 = vsel %vm16671_vm10, %v13711_v0, %v8384_v44  ;;  %v8386_v24 = vrot.slane %v8384_v44, 4  ;;  %v7371_v39 = vld [vmem:[#allocation2 + $0x4e0] sm:$0xf] }
 0x3a9   : > { %v7320_v7 = vsel %vm16671_vm10, %v7318_v45, %v7319_v10  ;;  %v20441_v49 = vsel %vm1257_vm5, %v15332_v50, %v20234_v47  ;;  %8838 = vrot.lane.b32.xlu1 %v13774_v2, %s15592_s12  ;;  %v11334_v22 = vadd.f32 %v20016_v9, %v20265_v61  ;;  %v11332_v47 = vadd.f32 %v20265_v61, %v20030_v31  ;;  %v7372_v53 = vld [vmem:[#allocation2 + $0x4e4] sm:$0x7]  ;;  %v6915_v2 = vld [vmem:[#allocation2 + $0x364] sm:$0x8]  ;;  %v20457_v45 = vpop.permute.xlu1 %8740 }
 0x3aa   : > { %v13662_v35 = vcombine.low %v7317_v54, %v7320_v7  ;;  %v7011_v11 = vsel %vm16535_vm7, %v13584_v4, %v7010_v25  ;;  %v7012_v26 = vrot.slane %v7010_v25, 4  ;;  %v8388_v33 = vsel %vm16671_vm10, %v8386_v24, %v8387_v16  ;;  %v6916_v54 = vld [vmem:[#allocation2 + $0x368] sm:$0xf]  ;;  %v6917_v4 = vld [vmem:[#allocation2 + $0x36c] sm:$0x7] }
 0x3ab   : > { %v13615_v50 = vrot.slane %v7165_v27, 9  ;;  %v7323_v32 = vrot.slane %v7166_v14, 5  ;;  %v13759_v56 = vcombine.low %v8385_v48, %v8388_v33  ;;  %v11366_v9 = vmax.f32 %v11334_v22, 0.0  ;;  %v20464_v48 = vpop.f32.mrb[56].mxu1  ;;  %v8234_v22 = vld [vmem:[#allocation2 + $0x1b0] sm:$0xf] }
 0x3ac   : > { %7660 = vrot.lane.b32.xlu0 %v13662_v35, %s15593_s17  ;;  %v7014_v10 = vsel %vm16535_vm7, %v7012_v26, %v7013_v13  ;;  %v7326_v0 = vrot.slane %v7167_v38, 5  ;;  %v11364_v16 = vmax.f32 %v11332_v47, 0.0  ;;  %v13630_v25 = vrot.slane %v7370_v15, 11  ;;  %v8233_v26 = vld [vmem:[#allocation2 + $0x1ac] sm:$0xe]  ;;  %v20472_v15 = vpop.f32.mrb[57].mxu1 }
 0x3ad   : > { %v13632_v44 = vcombine.low %v7011_v11, %v7014_v10  ;;  %v7324_v31 = vsel %vm16671_vm10, %v13615_v50, %v7323_v32  ;;  %v7325_v27 = vrot.slane %v7323_v32, 4  ;;  %8760 = vrot.lane.b32.xlu1 %v13759_v56, %s15593_s17  ;;  %v7524_v14 = vrot.slane %v7371_v39, 7  ;;  %v8235_v32 = vld [vmem:[#allocation2 + $0x1b4] sm:$0x1]  ;;  %v15335_v39 = vld [vmem:[#allocation2 + $0x1c] sm:$0xff]  }
 0x3ae   : > { %v7527_v7 = vrot.slane %v7372_v53, 7  ;;  %v11335_v13 = vadd.f32 %v20050_v60, %v20265_v61  ;;  %v11333_v35 = vadd.f32 %v20265_v61, %v20064_v20  ;;  %v13585_v11 = vrot.slane %v6915_v2, 11  ;;  %v20480_v2 = vpop.f32.mrb[58].mxu1 }
 0x3af   : > { %v7746_v24 = vsel %vm1257_vm5, %v13632_v44, %v20229_v55  ;;  %v7327_v38 = vsel %vm16671_vm10, %v7325_v27, %v7326_v0  ;;  %v7525_v60 = vsel %vm16535_vm7, %v13630_v25, %v7524_v14  ;;  %v7526_v47 = vrot.slane %v7524_v14, 4  ;;  %v20476_v55 = vpop.permute.xlu0 %7642  ;;  %v8438_v0 = vld [vmem:[#allocation2 + $0x198] sm:$0xc]  ;;  %v8439_v14 = vld [vmem:[#allocation2 + $0x19c] sm:$0xf] }
 0x3b0   : > { %v13663_v33 = vcombine.low %v7324_v31, %v7327_v38  ;;  %v11367_v50 = vmax.f32 %v11335_v13, 0.0  ;;  %v11365_v53 = vmax.f32 %v11333_v35, 0.0  ;;  %v7017_v56 = vrot.slane %v6916_v54, 7  ;;  %v8440_v13 = vld [vmem:[#allocation2 + $0x1a0] sm:$0x3]  ;;  %v20488_v54 = vpop.permute.xlu1 %7720 }
 0x3b1   : > { %v7020_v10 = vrot.slane %v6917_v4, 7  ;;  %v7793_v20 = vsel %vm2432_vm0, %v7746_v24, %v20268_v21  ;;  %v7528_v44 = vsel %vm16535_vm7, %v7526_v47, %v7527_v7  ;;  %v13712_v27 = vrot.slane %v8233_v26, 9  ;;  %v7373_v35 = vld [vmem:[#allocation2 + $0x4f8] sm:$0x8]  ;;  %v7375_v7 = vld [vmem:[#allocation2 + $0x500] sm:$0x7] }
 0x3b2   : > { %7662 = vrot.lane.b32.xlu0 %v13663_v33, %s15593_s17  ;;  %v20485_v31 = vpack.c.bf16 %v11367_v50, %v11366_v9  ;;  %v8391_v25 = vrot.slane %v8234_v22, 5  ;;  %14524 = vmatprep.mubr.msk.bf16.mxu0 %vm3211_vm1, %v7793_v20  ;;  %v13678_v4 = vcombine.low %v7525_v60, %v7528_v44  ;;  %v20490_v21 = vpack.c.bf16 %v11365_v53, %v11364_v16  ;;  %v7374_v33 = vld [vmem:[#allocation2 + $0x4fc] sm:$0xf]  ;;  %v20494_v9 = vpop.f32.mrb[59].mxu1  ;;  %v20499_v26 = vld [vmem:[%s21537_s6 + $0x40] sm:$0xff]  }
 0x3b3   : > { %v7018_v24 = vsel %vm16535_vm7, %v13585_v11, %v7017_v56  ;;  %v7019_v38 = vrot.slane %v7017_v56, 4  ;;  %v8394_v16 = vrot.slane %v8235_v32, 5  ;;  %v13727_v47 = vrot.slane %v8438_v0, 10  ;;  %v8441_v50 = vld [vmem:[#allocation2 + $0x1b4] sm:$0xc] }
 0x3b4   : > { %21860 = vst [vmem:[#allocation27_spill] sm:$0xff] %v20485_v31  ;;  %21861 = vst [vmem:[#allocation25_spill] sm:$0xff] %v20490_v21  ;;  %v8392_v22 = vsel %vm16671_vm10, %v13712_v27, %v8391_v25  ;;  %v8393_v60 = vrot.slane %v8391_v25, 4  ;;  %7740 = vrot.lane.b32.xlu1 %v13678_v4, %s15592_s12  ;;  %v8592_v53 = vrot.slane %v8439_v14, 6  ;;  %v8595_v56 = vrot.slane %v8440_v13, 6 }
 0x3b5   : > { %v7021_v11 = vsel %vm16535_vm7, %v7019_v38, %v7020_v10  ;;  %v7865_v20 = vsel %vm3244_vm14, %v20142_v63, 0  ;;  %v8442_v44 = vld [vmem:[#allocation2 + $0x1b8] sm:$0xf]  ;;  %v9936_v32 = vsel %vm3244_vm14, %v20149_v42, 0  ;;  %v8849_v0 = vsel %vm1257_vm5, %v15335_v39, %v20287_v46  ;;  %v8443_v27 = vld [vmem:[#allocation2 + $0x1bc] sm:$0x3]  ;;  %v20514_v10 = vpop.permute.xlu0 %8742 }
 0x3b6   : > { %v13633_v31 = vcombine.low %v7018_v24, %v7021_v11  ;;  %v8395_v21 = vsel %vm16671_vm10, %v8393_v60, %v8394_v16  ;;  %14523 = vmatpush3.bf16.msra.mxu0 %v7865_v20  ;;  %v10132_v25 = vld [vmem:[#allocation2 + $0x3f8] sm:$0xe]  ;;  %v8593_v63 = vsel %vm17490_vm13, %v13727_v47, %v8592_v53  ;;  %v8594_v13 = vrot.slane %v8592_v53, 4  ;;  %14591 = vmatpush3.bf16.msra.mxu1 %v9936_v32  ;;  %v10133_v24 = vld [vmem:[#allocation2 + $0x3fc] sm:$0xf] }
 0x3b7   : > { %v13760_v14 = vcombine.low %v8392_v22, %v8395_v21  ;;  %v8893_v4 = vsel %vm2432_vm0, %v20441_v49, %v20299_v37  ;;  %v10134_v38 = vld [vmem:[#allocation2 + $0x400] sm:$0x1]  ;;  %v10135_v42 = vld [vmem:[#allocation2 + $0x414] sm:$0xe]  ;;  %14658 = vmatprep.subr.bf16.mxu0 %v20499_v26  ;;  %v13631_v39 = vrot.slane %v7373_v35, 11  ;;  %v7531_v60 = vrot.slane %v7374_v33, 7  ;;  %v20525_v22 = vpop.permute.xlu1 %8820 }
 0x3b8   : > { %v7749_v46 = vsel %vm1257_vm5, %v13633_v31, %v20249_v19  ;;  %v7534_v21 = vrot.slane %v7375_v7, 7  ;;  %14592 = vmatprep.mubr.msk.bf16.mxu1 %vm3211_vm1, %v8893_v4  ;;  %v8596_v37 = vsel %vm17490_vm13, %v8594_v13, %v8595_v56  ;;  %v13728_v49 = vrot.slane %v8441_v50, 10  ;;  %v10136_v35 = vld [vmem:[#allocation2 + $0x418] sm:$0xf]  ;;  %v10137_v33 = vld [vmem:[#allocation2 + $0x41c] sm:$0x1] }
 0x3b9   : > { %8762 = vrot.lane.b32.xlu0 %v13760_v14, %s15593_s17  ;;  %v8599_v16 = vrot.slane %v8442_v44, 6  ;;  %v8602_v47 = vrot.slane %v8443_v27, 6  ;;  %v13775_v11 = vcombine.low %v8593_v63, %v8596_v37  ;;  %v7532_v53 = vsel %vm16535_vm7, %v13631_v39, %v7531_v60  ;;  %v15350_v7 = vld [vmem:[%s21537_s6 + $0x48] sm:$0xff]   ;;  %v6918_v32 = vld [vmem:[#allocation2 + $0x380] sm:$0x8]  ;;  %v20546_v39 = vpop.permute.xlu0 %7722 }
 0x3ba   : > { %v7533_v19 = vrot.slane %v7531_v60, 4  ;;  %v7795_v31 = vsel %vm2432_vm0, %v7749_v46, %v20304_v5  ;;  %v8895_v20 = vsel %vm2432_vm0, %v8849_v0, %v20321_v36  ;;  %v13891_v44 = vrot.slane %v10132_v25, 9  ;;  %v6919_v27 = vld [vmem:[#allocation2 + $0x384] sm:$0xf]  ;;  %v6920_v4 = vld [vmem:[#allocation2 + $0x388] sm:$0x7] }
 0x3bb   : > { %v8600_v56 = vsel %vm17490_vm13, %v13728_v49, %v8599_v16  ;;  %v8601_v50 = vrot.slane %v8599_v16, 4  ;;  %14525 = vmatmul.mubr.msk.bf16.vlgmr.msra.gmra.mrb[4].mxu0 %vm3211_vm1, %v7795_v31  ;;  %8840 = vrot.lane.b32.xlu1 %v13775_v11, %s15592_s12  ;;  %v10230_v14 = vrot.slane %v10133_v24, 5  ;;  %v10233_v63 = vrot.slane %v10134_v38, 5  ;;  %v15336_v46 = vld [vmem:[#allocation2 + $0x38] sm:$0xff]   ;;  %v10340_v37 = vld [vmem:[#allocation2 + $0x400] sm:$0xc]  ;;  %v20555_v11 = vpop.permute.xlu1 %8822 }
 0x3bc   : > { %v7535_v5 = vsel %vm16535_vm7, %v7533_v19, %v7534_v21  ;;  %v13892_v13 = vrot.slane %v10135_v42, 9  ;;  %14593 = vmatmul.mubr.msk.bf16.vlgmr.msra.gmra.mrb[64].mxu1 %vm3211_vm1, %v8895_v20  ;;  %v10237_v25 = vrot.slane %v10136_v35, 5  ;;  %v10240_v60 = vrot.slane %v10137_v33, 5  ;;  %14659 = vmatpush3.bf16.msra.mxu0 %v20499_v26  ;;  %v10341_v21 = vld [vmem:[#allocation2 + $0x404] sm:$0xf] }
 0x3bd   : > { %v13679_v36 = vcombine.low %v7532_v53, %v7535_v5  ;;  %v8603_v0 = vsel %vm17490_vm13, %v8601_v50, %v8602_v47  ;;  %v10231_v24 = vsel %vm16671_vm10, %v13891_v44, %v10230_v14  ;;  %v10232_v38 = vrot.slane %v10230_v14, 4  ;;  %v20553_v16 = vld [vmem:[#allocation2 + $0x408] sm:$0x3]  ;;  %14660 = vmatprep.subr.bf16.mxu0 %v15350_v7  ;;  %v15351_v47 = vld [vmem:[%s21537_s6 + $0x50] sm:$0xff]   ;;  %v10343_v20 = vld [vmem:[#allocation2 + $0x41c] sm:$0xc] }
 0x3be   : > { %v13776_v49 = vcombine.low %v8600_v56, %v8603_v0  ;;  %v13586_v42 = vrot.slane %v6918_v32, 11  ;;  %v10238_v26 = vsel %vm16671_vm10, %v13892_v13, %v10237_v25  ;;  %v10239_v53 = vrot.slane %v10237_v25, 4  ;;  %v15343_v44 = vld [vmem:[#allocation13 + $0x10] sm:$0x3f]   ;;  %v15353_v0 = vld [vmem:[%s21537_s6 + $0x58] sm:$0xff]  }
 0x3bf   : > { %7742 = vrot.lane.b32.xlu0 %v13679_v36, %s15592_s12  ;;  %v7024_v19 = vrot.slane %v6919_v27, 7  ;;  %v7027_v31 = vrot.slane %v6920_v4, 7  ;;  %v10234_v35 = vsel %vm16671_vm10, %v10232_v38, %v10233_v63  ;;  %v20568_v33 = vsel %vm1257_vm5, %v15336_v46, %v20343_v30  ;;  %v10344_v63 = vld [vmem:[#allocation2 + $0x420] sm:$0xf]  ;;  %v10345_v30 = vld [vmem:[#allocation2 + $0x424] sm:$0x3]  ;;  %v20581_v36 = vpop.permute.xlu0 %7644  ;;  %15170 = vmatprep.subr.msk.bf16.mxu1 %vm3244_vm14, %v15343_v44 }
 0x3c0   : > { %8842 = vrot.lane.b32.xlu1 %v13776_v49, %s15592_s12  ;;  %v11338_v56 = vadd.f32 %v20102_v8, %v20265_v61  ;;  %v20574_v50 = vadd.f32 %v20265_v61, %v20112_v59  ;;  %v13939_v32 = vcombine.low %v10231_v24, %v10234_v35  ;;  %v10241_v27 = vsel %vm16671_vm10, %v10239_v53, %v10240_v60  ;;  %v6921_v59 = vld [vmem:[#allocation2 + $0x39c] sm:$0x8]  ;;  %v20596_v35 = vpop.permute.xlu1 %8744  ;;  %v10139_v44 = vld [vmem:[#allocation2 + $0x434] sm:$0xf] }
 0x3c1   : > { %v7025_v5 = vsel %vm16535_vm7, %v13586_v42, %v7024_v19  ;;  %v7026_v14 = vrot.slane %v7024_v19, 4  ;;  %14661 = vmatpush3.bf16.msra.mxu0 %v15350_v7  ;;  %v13940_v13 = vcombine.low %v10238_v26, %v10241_v27  ;;  %v13907_v46 = vrot.slane %v10340_v37, 10  ;;  %v6922_v37 = vld [vmem:[#allocation2 + $0x3a0] sm:$0xf]  ;;  %v6923_v19 = vld [vmem:[#allocation2 + $0x3a4] sm:$0x7] }
 0x3c2   : > { %v11370_v4 = vmax.f32 %v11338_v56, 0.0  ;;  %v11368_v8 = vmax.f32 %v20574_v50, 0.0  ;;  %14662 = vmatprep.subr.bf16.mxu0 %v15351_v47  ;;  %v10438_v25 = vrot.slane %v10341_v21, 6  ;;  %v10441_v60 = vrot.slane %v20553_v16, 6  ;;  %v20591_v24 = vpop.f32.mrb[60].mxu1  ;;  %v21863_v16 = vld [vmem:[#allocation46_spill] sm:$0xff] }
 0x3c3   : > { %10676 = vrot.lane.b32.xlu0 %v13939_v32, %s15593_s17  ;;  %v7028_v7 = vsel %vm16535_vm7, %v7026_v14, %v7027_v31  ;;  %v13908_v49 = vrot.slane %v10343_v20, 10  ;;  %21862 = vst [vmem:[#allocation30_spill] sm:$0xff] %v20591_v24  ;;  %v10445_v42 = vrot.slane %v10344_v63, 6  ;;  %v10448_v26 = vrot.slane %v10345_v30, 6  ;;  %v10138_v20 = vld [vmem:[#allocation2 + $0x430] sm:$0xe]  ;;  %v20621_v24 = vpop.permute.xlu0 %7646 }
 0x3c4   : > { %10678 = vrot.lane.b32.xlu1 %v13940_v13, %s15593_s17  ;;  %v13634_v38 = vcombine.low %v7025_v5, %v7028_v7  ;;  %v11339_v53 = vadd.f32 %v20119_v62, %v20265_v61  ;;  %v10439_v21 = vsel %vm17490_vm13, %v13907_v46, %v10438_v25  ;;  %v10440_v31 = vrot.slane %v10438_v25, 4  ;;  %v20602_v32 = vld [vmem:[#allocation2 + $0x438] sm:$0x1]  ;;  %v10141_v63 = vld [vmem:[#allocation2 + $0x44c] sm:$0xe]  ;;  %v15354_v13 = vld [vmem:[%s21537_s6 + $0x60] sm:$0xff]  }
 0x3c5   : > { %v11337_v56 = vadd.f32 %v20265_v61, %v21863_v16  ;;  %v13587_v50 = vrot.slane %v6921_v59, 11  ;;  %14663 = vmatpush3.bf16.msra.mxu0 %v15351_v47  ;;  %v10446_v62 = vsel %vm17490_vm13, %v13908_v49, %v10445_v42  ;;  %v10447_v5 = vrot.slane %v10445_v42, 4  ;;  %v15337_v30 = vld [vmem:[#allocation2 + $0x54] sm:$0xff]   ;;  %v10142_v25 = vld [vmem:[#allocation2 + $0x450] sm:$0xf] }
 0x3c6   : > { %v7752_v27 = vsel %vm1257_vm5, %v13634_v38, %v20332_v34  ;;  %v11371_v14 = vmax.f32 %v11339_v53, 0.0  ;;  %14664 = vmatprep.subr.bf16.mxu0 %v15353_v0  ;;  %v10442_v46 = vsel %vm17490_vm13, %v10440_v31, %v10441_v60  ;;  %v7031_v47 = vrot.slane %v6922_v37, 7  ;;  %v20613_v34 = vpop.f32.mrb[61].mxu1  ;;  %v10143_v16 = vld [vmem:[#allocation2 + $0x454] sm:$0x1] }
 0x3c7   : > { %v11369_v59 = vmax.f32 %v11337_v56, 0.0  ;;  %v7034_v7 = vrot.slane %v6923_v19, 7  ;;  %v13955_v38 = vcombine.low %v10439_v21, %v10442_v46  ;;  %v10449_v49 = vsel %vm17490_vm13, %v10447_v5, %v10448_v26  ;;  %v10348_v26 = vld [vmem:[#allocation2 + $0x440] sm:$0x3]  ;;  %v20630_v31 = vpop.f32.mrb[62].mxu1 }
 0x3c8   : > { %v20617_v42 = vpack.c.bf16 %v11371_v14, %v11370_v4  ;;  %v7797_v53 = vsel %vm2432_vm0, %v7752_v27, %v20371_v29  ;;  %v13956_v60 = vcombine.low %v10446_v62, %v10449_v49  ;;  %v7032_v19 = vsel %vm16535_vm7, %v13587_v50, %v7031_v47  ;;  %v20628_v4 = vld [vmem:[#allocation2 + $0x454] sm:$0xc]  ;;  %v20635_v29 = vld [vmem:[%s21537_s6 + $0x68] sm:$0xff]   ;;  %v20639_v62 = vpop.permute.xlu1 %7724 }
 0x3c9   : > { %v20623_v37 = vpack.c.bf16 %v11369_v59, %v11368_v8  ;;  %v7033_v21 = vrot.slane %v7031_v47, 4  ;;  %14528 = vmatprep.mubr.msk.bf16.mxu0 %vm3211_vm1, %v7797_v53  ;;  %14665 = vmatpush3.bf16.msra.mxu0 %v15353_v0  ;;  %v13893_v8 = vrot.slane %v10138_v20, 9  ;;  %v10244_v56 = vrot.slane %v10139_v44, 5  ;;  %v10350_v59 = vld [vmem:[#allocation2 + $0x458] sm:$0xf]  ;;  %v20646_v20 = vpop.f32.mrb[63].mxu1 }
 0x3ca   : > { %21864 = vst [vmem:[#allocation46_spill] sm:$0xff] %v20617_v42  ;;  %10756 = vrot.lane.b32.xlu0 %v13955_v38, %s15592_s12  ;;  %v10247_v50 = vrot.slane %v20602_v32, 5  ;;  %v13894_v27 = vrot.slane %v10141_v63, 9  ;;  %14666 = vmatprep.subr.bf16.mxu0 %v15354_v13  ;;  %v10251_v5 = vrot.slane %v10142_v25, 5  ;;  %v10254_v14 = vrot.slane %v10143_v16, 5 }
 0x3cb   : > { %21865 = vst [vmem:[#allocation51_spill] sm:$0xff] %v20623_v37  ;;  %10758 = vrot.lane.b32.xlu1 %v13956_v60, %s15592_s12  ;;  %v7035_v0 = vsel %vm16535_vm7, %v7033_v21, %v7034_v7  ;;  %v8855_v46 = vsel %vm1257_vm5, %v15337_v30, %v20391_v3  ;;  %v10351_v47 = vld [vmem:[#allocation2 + $0x45c] sm:$0x3]  ;;  %v10245_v32 = vsel %vm16671_vm10, %v13893_v8, %v10244_v56  ;;  %v10246_v63 = vrot.slane %v10244_v56, 4  ;;  %v10144_v49 = vld [vmem:[#allocation2 + $0x468] sm:$0xe] }
 0x3cc   : > { %v13635_v44 = vcombine.low %v7032_v19, %v7035_v0  ;;  %v8897_v38 = vsel %vm2432_vm0, %v20568_v33, %v20404_v17  ;;  %v10145_v7 = vld [vmem:[#allocation2 + $0x46c] sm:$0xf]  ;;  %v10252_v25 = vsel %vm16671_vm10, %v13894_v27, %v10251_v5  ;;  %v10253_v53 = vrot.slane %v10251_v5, 4  ;;  %v10146_v16 = vld [vmem:[#allocation2 + $0x470] sm:$0x1]  ;;  %v20656_v60 = vpop.f32.mrb[0].mxu0  ;;  %v20663_v27 = vpop.permute.xlu0 %8746 }
 0x3cd   : > { %v13909_v3 = vrot.slane %v10346_v57, 10  ;;  %v10452_v30 = vrot.slane %v10347_v28, 6  ;;  %14596 = vmatprep.mubr.msk.bf16.mxu1 %vm3211_vm1, %v8897_v38  ;;  %14667 = vmatpush3.bf16.msra.mxu0 %v15354_v13  ;;  %v10248_v17 = vsel %vm16671_vm10, %v10246_v63, %v10247_v50  ;;  %v10455_v33 = vrot.slane %v10348_v26, 6  ;;  %v10147_v8 = vld [vmem:[#allocation2 + $0x484] sm:$0xe]  ;;  %v20670_v26 = vpop.f32.mrb[1].mxu0  ;;  %v20674_v42 = vpop.permute.xlu1 %8824 }
 0x3ce   : > { %v7755_v19 = vsel %vm1257_vm5, %v13635_v44, %v20357_v1  ;;  %v13910_v21 = vrot.slane %v20628_v4, 10  ;;  %v10148_v56 = vld [vmem:[#allocation2 + $0x488] sm:$0xf]  ;;  %14668 = vmatprep.subr.bf16.mxu0 %v20635_v29  ;;  %v13941_v28 = vcombine.low %v10245_v32, %v10248_v17  ;;  %v10255_v57 = vsel %vm16671_vm10, %v10253_v53, %v10254_v14  ;;  %v10149_v0 = vld [vmem:[#allocation2 + $0x48c] sm:$0x1]  ;;  %21866 = vst [vmem:[#allocation52_spill] sm:$0xff] %v20670_v26 }
 0x3cf   : > { %v10453_v13 = vsel %vm17490_vm13, %v13909_v3, %v10452_v30  ;;  %v10454_v1 = vrot.slane %v10452_v30, 4  ;;  %v6924_v5 = vld [vmem:[#allocation2 + $0x3b8] sm:$0x8]  ;;  %v6925_v50 = vld [vmem:[#allocation2 + $0x3bc] sm:$0xf]  ;;  %v13942_v4 = vcombine.low %v10252_v25, %v10255_v57  ;;  %v10459_v44 = vrot.slane %v10350_v59, 6 }
 0x3d0   : > { %v10462_v63 = vrot.slane %v10351_v47, 6  ;;  %v7799_v38 = vsel %vm2432_vm0, %v7755_v19, %v20419_v43  ;;  %v15357_v14 = vld [vmem:[%s21537_s6 + $0x70] sm:$0xff]   ;;  %10680 = vrot.lane.b32.xlu0 %v13941_v28, %s15593_s17  ;;  %v8899_v53 = vsel %vm2432_vm0, %v8855_v46, %v20430_v40  ;;  %v13895_v25 = vrot.slane %v10144_v49, 9  ;;  %v6926_v19 = vld [vmem:[#allocation2 + $0x3c0] sm:$0x7] }
 0x3d1   : > { %v10456_v32 = vsel %vm17490_vm13, %v10454_v1, %v10455_v33  ;;  %v10258_v59 = vrot.slane %v10145_v7, 5  ;;  %14529 = vmatmul.mubr.msk.bf16.gmra.mrb[8].mxu0 %vm3211_vm1, %v7799_v38  ;;  %10682 = vrot.lane.b32.xlu1 %v13942_v4, %s15593_s17  ;;  %v10460_v47 = vsel %vm17490_vm13, %v13910_v21, %v10459_v44  ;;  %v10461_v3 = vrot.slane %v10459_v44, 4  ;;  %v15338_v49 = vld [vmem:[#allocation2 + $0x70] sm:$0xff]   ;;  %v10354_v1 = vld [vmem:[#allocation2 + $0x478] sm:$0x3]  ;;  %v20694_v4 = vpop.permute.xlu0 %7726 }
 0x3d2   : > { %v13957_v43 = vcombine.low %v10453_v13, %v10456_v32  ;;  %v10261_v30 = vrot.slane %v10146_v16, 5  ;;  %14597 = vmatmul.mubr.msk.bf16.gmra.mrb[68].mxu1 %vm3211_vm1, %v8899_v53  ;;  %v13896_v40 = vrot.slane %v10147_v8, 9  ;;  %v10265_v46 = vrot.slane %v10148_v56, 5  ;;  %v10352_v7 = vld [vmem:[#allocation2 + $0x470] sm:$0xc]  ;;  %14669 = vmatpush3.bf16.msra.mxu0 %v20635_v29  ;;  %v15360_v8 = vld [vmem:[%s21537_s6 + $0x78] sm:$0xff]  }
 0x3d3   : > { %v10259_v17 = vsel %vm16671_vm10, %v13895_v25, %v10258_v59  ;;  %v10260_v33 = vrot.slane %v10258_v59, 4  ;;  %v10353_v28 = vld [vmem:[#allocation2 + $0x474] sm:$0xf]  ;;  %v10463_v57 = vsel %vm17490_vm13, %v10461_v3, %v10462_v63  ;;  %v10268_v21 = vrot.slane %v10149_v0, 5  ;;  %14670 = vmatprep.subr.bf16.mxu0 %v15357_v14  ;;  %v20704_v63 = vpop.f32.mrb[2].mxu0  ;;  %v20708_v59 = vpop.permute.xlu1 %8826  ;;  %v15339_v37 = vld [vmem:[#allocation2 + $0x8c] sm:$0xff]  }
 0x3d4   : > { %v13588_v13 = vrot.slane %v6924_v5, 11  ;;  %v7038_v16 = vrot.slane %v6925_v50, 7  ;;  %10760 = vrot.lane.b32.xlu0 %v13957_v43, %s15592_s12  ;;  %v13958_v56 = vcombine.low %v10460_v47, %v10463_v57  ;;  %v10266_v44 = vsel %vm16671_vm10, %v13896_v40, %v10265_v46  ;;  %v10355_v5 = vld [vmem:[#allocation2 + $0x48c] sm:$0xc]  ;;  %v10356_v50 = vld [vmem:[#allocation2 + $0x490] sm:$0xf] }
 0x3d5   : > { %v10262_v29 = vsel %vm16671_vm10, %v10260_v33, %v10261_v30  ;;  %v10267_v0 = vrot.slane %v10265_v46, 4  ;;  %21867 = vst [vmem:[#allocation53_spill] sm:$0xff] %v20704_v63  ;;  %v7041_v25 = vrot.slane %v6926_v19, 7  ;;  %v20715_v47 = vsel %vm1257_vm5, %v15338_v49, %v20457_v45  ;;  %v6927_v57 = vld [vmem:[#allocation2 + $0x3d4] sm:$0x8] }
 0x3d6   : > { %v13943_v38 = vcombine.low %v10259_v17, %v10262_v29  ;;  %v7039_v32 = vsel %vm16535_vm7, %v13588_v13, %v7038_v16  ;;  %v7040_v53 = vrot.slane %v7038_v16, 4  ;;  %10762 = vrot.lane.b32.xlu1 %v13958_v56, %s15592_s12  ;;  %v11342_v3 = vadd.f32 %v20231_v51, %v20265_v61  ;;  %v10357_v17 = vld [vmem:[#allocation2 + $0x494] sm:$0x3]  ;;  %v6928_v13 = vld [vmem:[#allocation2 + $0x3d8] sm:$0xf]  ;;  %14671 = vmatpush3.bf16.msra.mxu0 %v15357_v14 }
 0x3d7   : > { %v10269_v43 = vsel %vm16671_vm10, %v10267_v0, %v10268_v21  ;;  %v11340_v30 = vadd.f32 %v20265_v61, %v20242_v23  ;;  %v13911_v40 = vrot.slane %v10352_v7, 10  ;;  %v10466_v46 = vrot.slane %v10353_v28, 6  ;;  %v6929_v51 = vld [vmem:[#allocation2 + $0x3dc] sm:$0x7]  ;;  %v10150_v56 = vld [vmem:[#allocation2 + $0x4a0] sm:$0xe]  ;;  %14672 = vmatprep.subr.bf16.mxu0 %v15360_v8  ;;  %v20728_v0 = vpop.permute.xlu0 %7648 }
 0x3d8   : > { %v13944_v33 = vcombine.low %v10266_v44, %v10269_v43  ;;  %v7042_v19 = vsel %vm16535_vm7, %v7040_v53, %v7041_v25  ;;  %10684 = vrot.lane.b32.xlu0 %v13943_v38, %s15593_s17  ;;  %v11374_v49 = vmax.f32 %v11342_v3, 0.0  ;;  %v10469_v16 = vrot.slane %v10354_v1, 6  ;;  %v20724_v23 = vpop.f32.mrb[3].mxu0  ;;  %v21869_v1 = vld [vmem:[#allocation50_spill] sm:$0xff]  ;;  %v21870_v53 = vld [vmem:[#allocation43_spill] sm:$0xff] }
 0x3d9   : > { %v13636_v45 = vcombine.low %v7039_v32, %v7042_v19  ;;  %v11372_v21 = vmax.f32 %v11340_v30, 0.0  ;;  %21868 = vst [vmem:[#allocation54_spill] sm:$0xff] %v20724_v23  ;;  %v10467_v29 = vsel %vm17490_vm13, %v13911_v40, %v10466_v46  ;;  %v10468_v44 = vrot.slane %v10466_v46, 4  ;;  %v10151_v43 = vld [vmem:[#allocation2 + $0x4a4] sm:$0xf] }
 0x3da   : > { %v13912_v7 = vrot.slane %v10355_v5, 10  ;;  %v10473_v28 = vrot.slane %v10356_v50, 6  ;;  %10686 = vrot.lane.b32.xlu1 %v13944_v33, %s15593_s17  ;;  %v10476_v38 = vrot.slane %v10357_v17, 6  ;;  %v11343_v32 = vadd.f32 %v21869_v1, %v20265_v61  ;;  %v10152_v3 = vld [vmem:[#allocation2 + $0x4a8] sm:$0x1]  ;;  %v20741_v17 = vpop.permute.xlu1 %8748  ;;  %14673 = vmatpush3.bf16.msra.mxu0 %v15360_v8 }
 0x3db   : > { %v7758_v14 = vsel %vm1257_vm5, %v13636_v45, %v20448_v58  ;;  %v11341_v25 = vadd.f32 %v20265_v61, %v21870_v53  ;;  %v10153_v30 = vld [vmem:[#allocation2 + $0x4bc] sm:$0xe]  ;;  %v10470_v5 = vsel %vm17490_vm13, %v10468_v44, %v10469_v16  ;;  %v13589_v19 = vrot.slane %v6927_v57, 11  ;;  %v10154_v40 = vld [vmem:[#allocation2 + $0x4c0] sm:$0xf] }
 0x3dc   : > { %v10474_v50 = vsel %vm17490_vm13, %v13912_v7, %v10473_v28  ;;  %v10475_v33 = vrot.slane %v10473_v28, 4  ;;  %v10155_v58 = vld [vmem:[#allocation2 + $0x4c4] sm:$0x1]  ;;  %v13959_v46 = vcombine.low %v10467_v29, %v10470_v5  ;;  %v11375_v45 = vmax.f32 %v11343_v32, 0.0  ;;  %v10358_v23 = vld [vmem:[#allocation2 + $0x4a8] sm:$0xc] }
 0x3dd   : > { %v11373_v1 = vmax.f32 %v11341_v25, 0.0  ;;  %v7045_v53 = vrot.slane %v6928_v13, 7  ;;  %v7048_v16 = vrot.slane %v6929_v51, 7  ;;  %v7801_v44 = vsel %vm2432_vm0, %v7758_v14, %v20488_v54  ;;  %v10359_v57 = vld [vmem:[#allocation2 + $0x4ac] sm:$0xf]  ;;  %v20755_v54 = vpop.permute.xlu0 %7650 }
 0x3de   : > { %v10477_v63 = vsel %vm17490_vm13, %v10475_v33, %v10476_v38  ;;  %v13897_v7 = vrot.slane %v10150_v56, 9  ;;  %10764 = vrot.lane.b32.xlu0 %v13959_v46, %s15592_s12  ;;  %v20748_v26 = vpack.c.bf16 %v11375_v45, %v11374_v49  ;;  %v10360_v29 = vld [vmem:[#allocation2 + $0x4b0] sm:$0x3]  ;;  %v10361_v32 = vld [vmem:[#allocation2 + $0x4c4] sm:$0xc]  ;;  %v10272_v51 = vrot.slane %v10151_v43, 5  ;;  %14532 = vmatprep.mubr.msk.bf16.mxu0 %vm3211_vm1, %v7801_v44 }
 0x3df   : > { %v13960_v28 = vcombine.low %v10474_v50, %v10477_v63  ;;  %v20750_v8 = vpack.c.bf16 %v11373_v1, %v11372_v21  ;;  %v7046_v13 = vsel %vm16535_vm7, %v13589_v19, %v7045_v53  ;;  %v10362_v25 = vld [vmem:[#allocation2 + $0x4c8] sm:$0xf]  ;;  %v7047_v38 = vrot.slane %v7045_v53, 4  ;;  %v10363_v50 = vld [vmem:[#allocation2 + $0x4cc] sm:$0x3] }
 0x3e0   : > { %21871 = vst [vmem:[#allocation50_spill] sm:$0xff] %v20748_v26  ;;  %v10275_v5 = vrot.slane %v10152_v3, 5  ;;  %v13898_v33 = vrot.slane %v10153_v30, 9  ;;  %v10279_v63 = vrot.slane %v10154_v40, 5  ;;  %v10282_v49 = vrot.slane %v10155_v58, 5  ;;  %v20768_v40 = vpop.permute.xlu1 %7728 }
 0x3e1   : > { %10766 = vrot.lane.b32.xlu1 %v13960_v28, %s15592_s12  ;;  %v8861_v21 = vsel %vm1257_vm5, %v15339_v37, %v20514_v10  ;;  %v8901_v56 = vsel %vm2432_vm0, %v20715_v47, %v20525_v22  ;;  %v7049_v14 = vsel %vm16535_vm7, %v7047_v38, %v7048_v16  ;;  %v10273_v43 = vsel %vm16671_vm10, %v13897_v7, %v10272_v51  ;;  %v10156_v19 = vld [vmem:[#allocation2 + $0x4d8] sm:$0xe]  ;;  %v10157_v47 = vld [vmem:[#allocation2 + $0x4dc] sm:$0xf]  ;;  %v10158_v46 = vld [vmem:[#allocation2 + $0x4e0] sm:$0x1] }
 0x3e2   : > { %v10274_v3 = vrot.slane %v10272_v51, 4  ;;  %v13913_v30 = vrot.slane %v10358_v23, 10  ;;  %14600 = vmatprep.mubr.msk.bf16.mxu1 %vm3211_vm1, %v8901_v56  ;;  %v13637_v58 = vcombine.low %v7046_v13, %v7049_v14  ;;  %v10280_v10 = vsel %vm16671_vm10, %v13898_v33, %v10279_v63  ;;  %v10159_v45 = vld [vmem:[#allocation2 + $0x4f4] sm:$0xe]  ;;  %v10160_v44 = vld [vmem:[#allocation2 + $0x4f8] sm:$0xf]  ;;  %v20782_v56 = vpop.permute.xlu0 %8750 }
 0x3e3   : > { %v10281_v37 = vrot.slane %v10279_v63, 4  ;;  %v10480_v22 = vrot.slane %v10359_v57, 6  ;;  %v10483_v53 = vrot.slane %v10360_v29, 6  ;;  %v13914_v23 = vrot.slane %v10361_v32, 10  ;;  %v10161_v7 = vld [vmem:[#allocation2 + $0x4fc] sm:$0x1] }
 0x3e4   : > { %v10276_v1 = vsel %vm16671_vm10, %v10274_v3, %v10275_v5  ;;  %v10487_v16 = vrot.slane %v10362_v25, 6  ;;  %v7761_v28 = vsel %vm1257_vm5, %v13637_v58, %v20476_v55  ;;  %v6930_v51 = vld [vmem:[#allocation2 + $0x3f0] sm:$0x8]  ;;  %v6931_v25 = vld [vmem:[#allocation2 + $0x3f4] sm:$0xf]  ;;  %v10490_v55 = vrot.slane %v10363_v50, 6 }
 0x3e5   : > { %v13945_v13 = vcombine.low %v10273_v43, %v10276_v1  ;;  %v10283_v38 = vsel %vm16671_vm10, %v10281_v37, %v10282_v49  ;;  %v10481_v57 = vsel %vm17490_vm13, %v13913_v30, %v10480_v22  ;;  %v10482_v63 = vrot.slane %v10480_v22, 4  ;;  %v6932_v5 = vld [vmem:[#allocation2 + $0x3f8] sm:$0x7]  ;;  %v15340_v37 = vld [vmem:[#allocation2 + $0xa8] sm:$0xff]   ;;  %v20793_v22 = vpop.permute.xlu1 %8828 }
 0x3e6   : > { %v13946_v33 = vcombine.low %v10280_v10, %v10283_v38  ;;  %v10488_v29 = vsel %vm17490_vm13, %v13914_v23, %v10487_v16  ;;  %v10489_v32 = vrot.slane %v10487_v16, 4  ;;  %v7803_v49 = vsel %vm2432_vm0, %v7761_v28, %v20546_v39  ;;  %v10366_v23 = vld [vmem:[#allocation2 + $0x4e8] sm:$0x3]  ;;  %v10367_v16 = vld [vmem:[#allocation2 + $0x4fc] sm:$0xc] }
 0x3e7   : > { %10688 = vrot.lane.b32.xlu0 %v13945_v13, %s15593_s17  ;;  %v8903_v14 = vsel %vm2432_vm0, %v8861_v21, %v20555_v11  ;;  %v13899_v43 = vrot.slane %v10156_v19, 9  ;;  %v10484_v3 = vsel %vm17490_vm13, %v10482_v63, %v10483_v53  ;;  %v10286_v30 = vrot.slane %v10157_v47, 5  ;;  %14533 = vmatmul.mubr.msk.bf16.gmra.mrb[12].mxu0 %vm3211_vm1, %v7803_v49  ;;  %v10364_v21 = vld [vmem:[#allocation2 + $0x4e0] sm:$0xc]  ;;  %v10365_v53 = vld [vmem:[#allocation2 + $0x4e4] sm:$0xf] }
 0x3e8   : > { %10690 = vrot.lane.b32.xlu1 %v13946_v33, %s15593_s17  ;;  %v10289_v58 = vrot.slane %v10158_v46, 5  ;;  %v13900_v10 = vrot.slane %v10159_v45, 9  ;;  %v13961_v50 = vcombine.low %v10481_v57, %v10484_v3  ;;  %v10491_v39 = vsel %vm17490_vm13, %v10489_v32, %v10490_v55  ;;  %14601 = vmatmul.mubr.msk.bf16.gmra.mrb[72].mxu1 %vm3211_vm1, %v8903_v14  ;;  %v10368_v38 = vld [vmem:[#allocation2 + $0x500] sm:$0xf]  ;;  %v10369_v57 = vld [vmem:[#allocation2 + $0x504] sm:$0x3]  ;;  %v20819_v49 = vpop.permute.xlu0 %7730 }
 0x3e9   : > { %v10293_v1 = vrot.slane %v10160_v44, 5  ;;  %v10296_v11 = vrot.slane %v10161_v7, 5  ;;  %v13962_v19 = vcombine.low %v10488_v29, %v10491_v39  ;;  %v10287_v47 = vsel %vm16671_vm10, %v13899_v43, %v10286_v30  ;;  %v20806_v33 = vld [vmem:[%s21537_s6] sm:$0xff]   ;;  %v21872_v29 = vld [vmem:[#allocation49_spill] sm:$0xff]  ;;  %v6935_v39 = vld [vmem:[#allocation2 + $0x414] sm:$0x7] }
 0x3ea   : > { %v10288_v46 = vrot.slane %v10286_v30, 4  ;;  %v13590_v45 = vrot.slane %v6930_v51, 11  ;;  %v7052_v44 = vrot.slane %v6931_v25, 7  ;;  %v7055_v7 = vrot.slane %v6932_v5, 7  ;;  %v21873_v25 = vld [vmem:[#allocation29_spill] sm:$0xff]  ;;  %14706 = vmatprep.subr.bf16.mxu0 %v20806_v33 }
 0x3eb   : > { %10768 = vrot.lane.b32.xlu0 %v13961_v50, %s15592_s12  ;;  %v10294_v28 = vsel %vm16671_vm10, %v13900_v10, %v10293_v1  ;;  %v10295_v13 = vrot.slane %v10293_v1, 4  ;;  %v20813_v63 = vsel %vm1257_vm5, %v15340_v37, %v20596_v35  ;;  %v11346_v32 = vadd.f32 %v21872_v29, %v20265_v61  ;;  %v6933_v55 = vld [vmem:[#allocation2 + $0x40c] sm:$0x8]  ;;  %v6934_v50 = vld [vmem:[#allocation2 + $0x410] sm:$0xf]  ;;  %v20826_v1 = vpop.permute.xlu1 %8830 }
 0x3ec   : > { %10770 = vrot.lane.b32.xlu1 %v13962_v19, %s15592_s12  ;;  %v10290_v51 = vsel %vm16671_vm10, %v10288_v46, %v10289_v58  ;;  %v11344_v5 = vadd.f32 %v20265_v61, %v21873_v25  ;;  %v7053_v3 = vsel %vm16535_vm7, %v13590_v45, %v7052_v44  ;;  %v7054_v30 = vrot.slane %v7052_v44, 4 }
 0x3ed   : > { %v13947_v14 = vcombine.low %v10287_v47, %v10290_v51  ;;  %v10297_v43 = vsel %vm16671_vm10, %v10295_v13, %v10296_v11  ;;  %v11378_v58 = vmax.f32 %v11346_v32, 0.0  ;;  %v13915_v37 = vrot.slane %v10364_v21, 10 }
 0x3ee   : > { %v13948_v35 = vcombine.low %v10294_v28, %v10297_v43  ;;  %v11376_v10 = vmax.f32 %v11344_v5, 0.0  ;;  %v7056_v19 = vsel %vm16535_vm7, %v7054_v30, %v7055_v7  ;;  %v10494_v11 = vrot.slane %v10365_v53, 6  ;;  %v10162_v7 = vld [vmem:[#allocation2 + $0x510] sm:$0xe]  ;;  %v10163_v53 = vld [vmem:[#allocation2 + $0x514] sm:$0xf] }
 0x3ef   : > { %10692 = vrot.lane.b32.xlu0 %v13947_v14, %s15593_s17  ;;  %v10497_v47 = vrot.slane %v10366_v23, 6  ;;  %v13916_v46 = vrot.slane %v10367_v16, 10  ;;  %v13638_v45 = vcombine.low %v7053_v3, %v7056_v19  ;;  %v10501_v13 = vrot.slane %v10368_v38, 6  ;;  %v10164_v23 = vld [vmem:[#allocation2 + $0x518] sm:$0x1]  ;;  %v20842_v43 = vpop.permute.xlu0 %7652 }
 0x3f0   : > { %10694 = vrot.lane.b32.xlu1 %v13948_v35, %s15593_s17  ;;  %v10504_v28 = vrot.slane %v10369_v57, 6  ;;  %v11347_v21 = vadd.f32 %v20375_v41, %v20265_v61  ;;  %v10495_v44 = vsel %vm17490_vm13, %v13915_v37, %v10494_v11  ;;  %v10496_v51 = vrot.slane %v10494_v11, 4  ;;  %v10165_v16 = vld [vmem:[#allocation2 + $0x52c] sm:$0xe]  ;;  %v10166_v5 = vld [vmem:[#allocation2 + $0x530] sm:$0xf] }
 0x3f1   : > { %v11345_v29 = vadd.f32 %v20265_v61, %v20387_v6  ;;  %v13591_v32 = vrot.slane %v6933_v55, 11  ;;  %v7764_v25 = vsel %vm1257_vm5, %v13638_v45, %v20581_v36  ;;  %v10502_v38 = vsel %vm17490_vm13, %v13916_v46, %v10501_v13  ;;  %v10167_v14 = vld [vmem:[#allocation2 + $0x534] sm:$0x1]  ;;  %v15341_v35 = vld [vmem:[#allocation2 + $0xc4] sm:$0xff]   ;;  %v10370_v46 = vld [vmem:[#allocation2 + $0x518] sm:$0xc] }
 0x3f2   : > { %v10503_v57 = vrot.slane %v10501_v13, 4  ;;  %v11379_v41 = vmax.f32 %v11347_v21, 0.0  ;;  %v10498_v6 = vsel %vm17490_vm13, %v10496_v51, %v10497_v47  ;;  %v7059_v3 = vrot.slane %v6934_v50, 7  ;;  %v10371_v45 = vld [vmem:[#allocation2 + $0x51c] sm:$0xf]  ;;  %v20852_v13 = vpop.permute.xlu1 %8752 }
 0x3f3   : > { %v11377_v55 = vmax.f32 %v11345_v29, 0.0  ;;  %v7062_v30 = vrot.slane %v6935_v39, 7  ;;  %v13963_v37 = vcombine.low %v10495_v44, %v10498_v6  ;;  %v7805_v11 = vsel %vm2432_vm0, %v7764_v25, %v20639_v62  ;;  %v10372_v47 = vld [vmem:[#allocation2 + $0x520] sm:$0x3]  ;;  %v10373_v51 = vld [vmem:[#allocation2 + $0x534] sm:$0xc] }
 0x3f4   : > { %v10505_v36 = vsel %vm17490_vm13, %v10503_v57, %v10504_v28  ;;  %v20848_v19 = vpack.c.bf16 %v11379_v41, %v11378_v58  ;;  %v7060_v50 = vsel %vm16535_vm7, %v13591_v32, %v7059_v3  ;;  %v7061_v39 = vrot.slane %v7059_v3, 4  ;;  %14536 = vmatprep.mubr.msk.bf16.mxu0 %vm3211_vm1, %v7805_v11  ;;  %v10375_v57 = vld [vmem:[#allocation2 + $0x53c] sm:$0x3]  ;;  %v10169_v6 = vld [vmem:[#allocation2 + $0x54c] sm:$0xf] }
 0x3f5   : > { %v13964_v21 = vcombine.low %v10502_v38, %v10505_v36  ;;  %v20854_v26 = vpack.c.bf16 %v11377_v55, %v11376_v10  ;;  %10772 = vrot.lane.b32.xlu0 %v13963_v37, %s15592_s12  ;;  %v13901_v58 = vrot.slane %v10162_v7, 9  ;;  %v10300_v28 = vrot.slane %v10163_v53, 5  ;;  %v10374_v38 = vld [vmem:[#allocation2 + $0x538] sm:$0xf]  ;;  %v10171_v36 = vld [vmem:[#allocation2 + $0x564] sm:$0xe] }
 0x3f6   : > { %v10303_v44 = vrot.slane %v10164_v23, 5  ;;  %v13902_v62 = vrot.slane %v10165_v16, 9  ;;  %v7063_v10 = vsel %vm16535_vm7, %v7061_v39, %v7062_v30  ;;  %v10307_v29 = vrot.slane %v10166_v5, 5  ;;  %v10168_v16 = vld [vmem:[#allocation2 + $0x548] sm:$0xe]  ;;  %v20870_v55 = vpop.permute.xlu0 %7654 }
 0x3f7   : > { %10774 = vrot.lane.b32.xlu1 %v13964_v21, %s15592_s12  ;;  %v10310_v25 = vrot.slane %v10167_v14, 5  ;;  %v8867_v32 = vsel %vm1257_vm5, %v15341_v35, %v20663_v27  ;;  %v13639_v41 = vcombine.low %v7060_v50, %v7063_v10  ;;  %v10301_v7 = vsel %vm16671_vm10, %v13901_v58, %v10300_v28  ;;  %v10170_v30 = vld [vmem:[#allocation2 + $0x550] sm:$0x1]  ;;  %v10172_v11 = vld [vmem:[#allocation2 + $0x568] sm:$0xf]  ;;  %v20879_v21 = vpop.permute.xlu1 %7732 }
 0x3f8   : > { %v10302_v53 = vrot.slane %v10300_v28, 4  ;;  %v8905_v23 = vsel %vm2432_vm0, %v20813_v63, %v20674_v42  ;;  %v10308_v5 = vsel %vm16671_vm10, %v13902_v62, %v10307_v29  ;;  %v10309_v14 = vrot.slane %v10307_v29, 4  ;;  %v10173_v58 = vld [vmem:[#allocation2 + $0x56c] sm:$0x1]  ;;  %v6936_v28 = vld [vmem:[#allocation2 + $0x428] sm:$0x8] }
 0x3f9   : > { %v13917_v27 = vrot.slane %v10370_v46, 10  ;;  %v10508_v3 = vrot.slane %v10371_v45, 6  ;;  %14604 = vmatprep.mubr.msk.bf16.mxu1 %vm3211_vm1, %v8905_v23  ;;  %v7767_v35 = vsel %vm1257_vm5, %v13639_v41, %v20621_v24  ;;  %v10511_v42 = vrot.slane %v10372_v47, 6  ;;  %v6937_v24 = vld [vmem:[#allocation2 + $0x42c] sm:$0xf] }
 0x3fa   : > { %v10304_v37 = vsel %vm16671_vm10, %v10302_v53, %v10303_v44  ;;  %v13918_v63 = vrot.slane %v10373_v51, 10  ;;  %v10311_v46 = vsel %vm16671_vm10, %v10309_v14, %v10310_v25  ;;  %v10515_v10 = vrot.slane %v10374_v38, 6  ;;  %v10376_v14 = vld [vmem:[#allocation2 + $0x550] sm:$0xc] }
 0x3fb   : > { %v13949_v50 = vcombine.low %v10301_v7, %v10304_v37  ;;  %v10509_v45 = vsel %vm17490_vm13, %v13917_v27, %v10508_v3  ;;  %v10510_v39 = vrot.slane %v10508_v3, 4  ;;  %v13950_v62 = vcombine.low %v10308_v5, %v10311_v46  ;;  %v6938_v7 = vld [vmem:[#allocation2 + $0x430] sm:$0x7]  ;;  %v15342_v5 = vld [vmem:[#allocation2 + $0xe0] sm:$0xff]   ;;  %v10377_v27 = vld [vmem:[#allocation2 + $0x554] sm:$0xf] }
 0x3fc   : > { %v10518_v44 = vrot.slane %v10375_v57, 6  ;;  %v7807_v47 = vsel %vm2432_vm0, %v7767_v35, %v20694_v4  ;;  %v8907_v29 = vsel %vm2432_vm0, %v8867_v32, %v20708_v59  ;;  %v13903_v25 = vrot.slane %v10168_v16, 9 }
 0x3fd   : > { %10696 = vrot.lane.b32.xlu0 %v13949_v50, %s15593_s17  ;;  %v10512_v51 = vsel %vm17490_vm13, %v10510_v39, %v10511_v42  ;;  %v10314_v41 = vrot.slane %v10169_v6, 5  ;;  %14537 = vmatmul.mubr.msk.bf16.gmra.mrb[16].mxu0 %vm3211_vm1, %v7807_v47  ;;  %v10516_v57 = vsel %vm17490_vm13, %v13918_v63, %v10515_v10  ;;  %v10517_v4 = vrot.slane %v10515_v10, 4  ;;  %v20897_v23 = vpop.permute.xlu0 %8754  ;;  %v10380_v39 = vld [vmem:[#allocation2 + $0x570] sm:$0xf]  ;;  %v10381_v10 = vld [vmem:[#allocation2 + $0x574] sm:$0x3] }
 0x3fe   : > { %10698 = vrot.lane.b32.xlu1 %v13950_v62, %s15593_s17  ;;  %v13965_v38 = vcombine.low %v10509_v45, %v10512_v51  ;;  %v10317_v53 = vrot.slane %v10170_v30, 5  ;;  %14605 = vmatmul.mubr.msk.bf16.gmra.mrb[76].mxu1 %vm3211_vm1, %v8907_v29  ;;  %v13904_v16 = vrot.slane %v10171_v36, 9  ;;  %v10321_v6 = vrot.slane %v10172_v11, 5  ;;  %v10378_v30 = vld [vmem:[#allocation2 + $0x558] sm:$0x3]  ;;  %v20903_v63 = vpop.permute.xlu1 %8832 }
 0x3ff   : > { %v10315_v59 = vsel %vm16671_vm10, %v13903_v25, %v10314_v41  ;;  %v10316_v32 = vrot.slane %v10314_v41, 4  ;;  %v10519_v3 = vsel %vm17490_vm13, %v10517_v4, %v10518_v44  ;;  %v10324_v35 = vrot.slane %v10173_v58, 5  ;;  %v10379_v45 = vld [vmem:[#allocation2 + $0x56c] sm:$0xc]  ;;  %v6939_v25 = vld [vmem:[#allocation2 + $0x444] sm:$0x8] }
 0x400   : > { %v13592_v37 = vrot.slane %v6936_v28, 11  ;;  %v7066_v42 = vrot.slane %v6937_v24, 7  ;;  %v13966_v50 = vcombine.low %v10516_v57, %v10519_v3  ;;  %v10322_v36 = vsel %vm16671_vm10, %v13904_v16, %v10321_v6  ;;  %v6940_v4 = vld [vmem:[#allocation2 + $0x448] sm:$0xf] }
 0x401   : > { %10776 = vrot.lane.b32.xlu0 %v13965_v38, %s15592_s12  ;;  %v10318_v46 = vsel %vm16671_vm10, %v10316_v32, %v10317_v53  ;;  %v10323_v11 = vrot.slane %v10321_v6, 4  ;;  %v7069_v24 = vrot.slane %v6938_v7, 7  ;;  %v20917_v47 = vsel %vm1257_vm5, %v15342_v5, %v20741_v17 }
 0x402   : > { %v13951_v62 = vcombine.low %v10315_v59, %v10318_v46  ;;  %v7067_v58 = vsel %vm16535_vm7, %v13592_v37, %v7066_v42  ;;  %v7068_v28 = vrot.slane %v7066_v42, 4  ;;  %10778 = vrot.lane.b32.xlu1 %v13966_v50, %s15592_s12  ;;  %v11350_v51 = vadd.f32 %v20464_v48, %v20265_v61  ;;  %v6941_v48 = vld [vmem:[#allocation2 + $0x44c] sm:$0x7]  ;;  %v10175_v50 = vld [vmem:[#allocation2 + $0x584] sm:$0xf] }
 0x403   : > { %v10325_v44 = vsel %vm16671_vm10, %v10323_v11, %v10324_v35  ;;  %v11348_v29 = vadd.f32 %v20265_v61, %v20472_v15  ;;  %v13919_v38 = vrot.slane %v10376_v14, 10  ;;  %v10522_v57 = vrot.slane %v10377_v27, 6  ;;  %v10174_v35 = vld [vmem:[#allocation2 + $0x580] sm:$0xe]  ;;  %v10176_v46 = vld [vmem:[#allocation2 + $0x588] sm:$0x1] }
 0x404   : > { %v13952_v41 = vcombine.low %v10322_v36, %v10325_v44  ;;  %v7070_v7 = vsel %vm16535_vm7, %v7068_v28, %v7069_v24  ;;  %v20925_v53 = vpop.permute.xlu0 %7734  ;;  %v11382_v59 = vmax.f32 %v11350_v51, 0.0  ;;  %v10525_v16 = vrot.slane %v10378_v30, 6  ;;  %v20930_v37 = vpop.permute.xlu1 %8834  ;;  %v10177_v36 = vld [vmem:[#allocation2 + $0x59c] sm:$0xe] }
 0x405   : > { %10700 = vrot.lane.b32.xlu0 %v13951_v62, %s15593_s17  ;;  %v13640_v17 = vcombine.low %v7067_v58, %v7070_v7  ;;  %v11380_v32 = vmax.f32 %v11348_v29, 0.0  ;;  %v10523_v15 = vsel %vm17490_vm13, %v13919_v38, %v10522_v57  ;;  %v10524_v6 = vrot.slane %v10522_v57, 4  ;;  %v10178_v58 = vld [vmem:[#allocation2 + $0x5a0] sm:$0xf]  ;;  %v10382_v38 = vld [vmem:[#allocation2 + $0x588] sm:$0xc] }
 0x406   : > { %v13920_v5 = vrot.slane %v10379_v45, 10  ;;  %v10529_v3 = vrot.slane %v10380_v39, 6  ;;  %10702 = vrot.lane.b32.xlu1 %v13952_v41, %s15593_s17  ;;  %v10532_v27 = vrot.slane %v10381_v10, 6  ;;  %v11351_v42 = vadd.f32 %v20480_v2, %v20265_v61  ;;  %v15344_v44 = vld [vmem:[#allocation2 + $0xfc] sm:$0xff]  }
 0x407   : > { %v7770_v14 = vsel %vm1257_vm5, %v13640_v17, %v20728_v0  ;;  %v11349_v30 = vadd.f32 %v20265_v61, %v20494_v9  ;;  %v10526_v11 = vsel %vm17490_vm13, %v10524_v6, %v10525_v16  ;;  %v13593_v62 = vrot.slane %v6939_v25, 11  ;;  %v10179_v0 = vld [vmem:[#allocation2 + $0x5a4] sm:$0x1]  ;;  %v10383_v16 = vld [vmem:[#allocation2 + $0x58c] sm:$0xf] }
 0x408   : > { %v10530_v45 = vsel %vm17490_vm13, %v13920_v5, %v10529_v3  ;;  %v10531_v39 = vrot.slane %v10529_v3, 4  ;;  %v13967_v28 = vcombine.low %v10523_v15, %v10526_v11  ;;  %v11383_v24 = vmax.f32 %v11351_v42, 0.0  ;;  %v20943_v51 = vpop.permute.xlu0 %7656  ;;  %v10384_v15 = vld [vmem:[#allocation2 + $0x590] sm:$0x3]  ;;  %v10385_v6 = vld [vmem:[#allocation2 + $0x5a4] sm:$0xc] }
 0x409   : > { %v11381_v10 = vmax.f32 %v11349_v30, 0.0  ;;  %v7073_v2 = vrot.slane %v6940_v4, 7  ;;  %v7076_v29 = vrot.slane %v6941_v48, 7  ;;  %v7809_v41 = vsel %vm2432_vm0, %v7770_v14, %v20768_v40  ;;  %v10386_v40 = vld [vmem:[#allocation2 + $0x5a8] sm:$0xf] }
 0x40a   : > { %v10533_v9 = vsel %vm17490_vm13, %v10531_v39, %v10532_v27  ;;  %v13905_v7 = vrot.slane %v10174_v35, 9  ;;  %10780 = vrot.lane.b32.xlu0 %v13967_v28, %s15592_s12  ;;  %v20950_v57 = vpack.c.bf16 %v11383_v24, %v11382_v59  ;;  %v10328_v48 = vrot.slane %v10175_v50, 5  ;;  %14540 = vmatprep.mubr.msk.bf16.mxu0 %vm3211_vm1, %v7809_v41  ;;  %v20957_v35 = vpop.permute.xlu1 %8756  ;;  %v15412_v14 = vld [vmem:[#allocation13 + $0x10] sm:$0x3f]   ;;  %v10387_v11 = vld [vmem:[#allocation2 + $0x5ac] sm:$0x3] }
 0x40b   : > { %v13968_v25 = vcombine.low %v10530_v45, %v10533_v9  ;;  %v20952_v17 = vpack.c.bf16 %v11381_v10, %v11380_v32  ;;  %v7074_v4 = vsel %vm16535_vm7, %v13593_v62, %v7073_v2  ;;  %v7075_v5 = vrot.slane %v7073_v2, 4  ;;  %v6943_v28 = vld [vmem:[#allocation2 + $0x464] sm:$0xf]  ;;  %v6944_v24 = vld [vmem:[#allocation2 + $0x468] sm:$0x7] }
 0x40c   : > { %v10331_v3 = vrot.slane %v10176_v46, 5  ;;  %v13906_v27 = vrot.slane %v10177_v36, 9  ;;  %v10335_v59 = vrot.slane %v10178_v58, 5  ;;  %v10338_v32 = vrot.slane %v10179_v0, 5 }
 0x40d   : > { %10782 = vrot.lane.b32.xlu1 %v13968_v25, %s15592_s12  ;;  %v10909_v42 = vsel %vm3244_vm14, %v15412_v14, 0  ;;  %v8873_v30 = vsel %vm1257_vm5, %v15344_v44, %v20782_v56  ;;  %v7077_v50 = vsel %vm16535_vm7, %v7075_v5, %v7076_v29  ;;  %v10329_v46 = vsel %vm16671_vm10, %v13905_v7, %v10328_v48  ;;  %v6942_v56 = vld [vmem:[#allocation2 + $0x460] sm:$0x8]  ;;  %v20973_v10 = vpop.permute.xlu0 %7658  ;;  %v15345_v25 = vld [vmem:[#allocation2 + $0x118] sm:$0xff]  }
 0x40e   : > { %v10330_v36 = vrot.slane %v10328_v48, 4  ;;  %14625 = vmatpush3.bf16.msra.mxu1 %v10909_v42  ;;  %v8909_v45 = vsel %vm2432_vm0, %v20917_v47, %v20793_v22  ;;  %v13641_v39 = vcombine.low %v7074_v4, %v7077_v50  ;;  %v10336_v62 = vsel %vm16671_vm10, %v13906_v27, %v10335_v59  ;;  %v15346_v50 = vld [vmem:[#allocation2 + $0x134] sm:$0xff]  }
 0x40f   : > { %v10337_v58 = vrot.slane %v10335_v59, 4  ;;  %v13921_v0 = vrot.slane %v10382_v38, 10  ;;  %14608 = vmatprep.mubr.msk.bf16.mxu1 %vm3211_vm1, %v8909_v45  ;;  %v21874_v2 = vmov 0.0   ;;  %v10536_v9 = vrot.slane %v10383_v16, 6  ;;  %v6945_v59 = vld [vmem:[#allocation2 + $0x47c] sm:$0x8] }
 0x410   : > { %14850 = vmatprep.subr.bf16.mxu1 %v21874_v2  ;;  %v10332_v44 = vsel %vm16671_vm10, %v10330_v36, %v10331_v3  ;;  %v10539_v22 = vrot.slane %v10384_v15, 6  ;;  %v13922_v47 = vrot.slane %v10385_v6, 10  ;;  %v7773_v29 = vsel %vm1257_vm5, %v13641_v39, %v20755_v54  ;;  %v6946_v6 = vld [vmem:[#allocation2 + $0x480] sm:$0xf] }
 0x411   : > { %v13953_v41 = vcombine.low %v10329_v46, %v10332_v44  ;;  %v10339_v7 = vsel %vm16671_vm10, %v10337_v58, %v10338_v32  ;;  %v10543_v38 = vrot.slane %v10386_v40, 6  ;;  %v10537_v5 = vsel %vm17490_vm13, %v13921_v0, %v10536_v9  ;;  %v20984_v3 = vpop.permute.xlu1 %7736  ;;  %v6947_v40 = vld [vmem:[#allocation2 + $0x484] sm:$0x7]  ;;  %v6949_v44 = vld [vmem:[#allocation2 + $0x49c] sm:$0xf] }
 0x412   : > { %v13954_v4 = vcombine.low %v10336_v62, %v10339_v7  ;;  %v10538_v48 = vrot.slane %v10536_v9, 4  ;;  %v10546_v27 = vrot.slane %v10387_v11, 6  ;;  %v7811_v52 = vsel %vm2432_vm0, %v7773_v29, %v20819_v49  ;;  %v6950_v9 = vld [vmem:[#allocation2 + $0x4a0] sm:$0x7]  ;;  %v6952_v7 = vld [vmem:[#allocation2 + $0x4b8] sm:$0xf] }
 0x413   : > { %10704 = vrot.lane.b32.xlu0 %v13953_v41, %s15593_s17  ;;  %v10544_v54 = vsel %vm17490_vm13, %v13922_v47, %v10543_v38  ;;  %v10545_v16 = vrot.slane %v10543_v38, 4  ;;  %v8911_v15 = vsel %vm2432_vm0, %v8873_v30, %v20826_v1  ;;  %14541 = vmatmul.mubr.msk.bf16.gmra.mrb[20].mxu0 %vm3211_vm1, %v7811_v52  ;;  %v13594_v14 = vrot.slane %v6942_v56, 11  ;;  %v21875_v30 = vld [vmem:[#allocation30_spill] sm:$0xff] }
 0x414   : > { %10706 = vrot.lane.b32.xlu1 %v13954_v4, %s15593_s17  ;;  %v10540_v32 = vsel %vm17490_vm13, %v10538_v48, %v10539_v22  ;;  %v7080_v42 = vrot.slane %v6943_v28, 7  ;;  %v7083_v11 = vrot.slane %v6944_v24, 7  ;;  %14609 = vmatmul.mubr.msk.bf16.gmra.mrb[80].mxu1 %vm3211_vm1, %v8911_v15  ;;  %v8876_v1 = vsel %vm1257_vm5, %v15345_v25, %v20852_v13  ;;  %v6951_v41 = vld [vmem:[#allocation2 + $0x4b4] sm:$0x8]  ;;  %s12875_s17 = sshll.u32 %s21383_s24, 4  ;;  %s21478_s17 = int_to_ptr.vmem [resolvable:$true] %s12875_s17 }
 0x415   : > { %v13969_v46 = vcombine.low %v10537_v5, %v10540_v32  ;;  %v10547_v49 = vsel %vm17490_vm13, %v10545_v16, %v10546_v27  ;;  %v11354_v36 = vadd.f32 %v21875_v30, %v20265_v61  ;;  %v21004_v45 = vpop.permute.xlu0 %8758  ;;  %v11352_v0 = vadd.f32 %v20265_v61, %v20613_v34  ;;  %v6954_v32 = vld [vmem:[#allocation2 + $0x4d0] sm:$0x8]  ;;  %s15498_s19 = scalar_lea.vmem %s21478_s17, 4096  ;;  %p15505_p2 = scmp.lt.s32.totalorder %s21478_s17, %s15503_s23 }
 0x416   : > { %v13970_v39 = vcombine.low %v10544_v54, %v10547_v49  ;;  %v7081_v62 = vsel %vm16535_vm7, %v13594_v14, %v7080_v42  ;;  %v7082_v58 = vrot.slane %v7080_v42, 4  ;;  %v11355_v13 = vadd.f32 %v20630_v31, %v20265_v61  ;;  %v15347_v54 = vld [vmem:[#allocation2 + $0x150] sm:$0xff]   ;;  %p15499_p13 = scmp.ne.s32.totalorder %s21478_s17, %s15498_s19  ;;  %p15506_p3 = scmp.lt.s32.totalorder %s15504_s21, %s15498_s19 }
 0x417   : > { %10784 = vrot.lane.b32.xlu0 %v13969_v46, %s15592_s12  ;;  %v11386_v56 = vmax.f32 %v11354_v36, 0.0  ;;  %v11353_v28 = vadd.f32 %v20265_v61, %v20646_v20  ;;  %v13595_v24 = vrot.slane %v6945_v59, 11  ;;  %v11384_v47 = vmax.f32 %v11352_v0, 0.0  ;;  %v8837_v38 = vpop.permute.xlu1 %8836  ;;  %v6953_v20 = vld [vmem:[#allocation2 + $0x4bc] sm:$0x7] }
 0x418   : > { %10786 = vrot.lane.b32.xlu1 %v13970_v39, %s15592_s12  ;;  %v7084_v22 = vsel %vm16535_vm7, %v7082_v58, %v7083_v11  ;;  %v7087_v34 = vrot.slane %v6946_v6, 7  ;;  %v7090_v29 = vrot.slane %v6947_v40, 7  ;;  %v11387_v4 = vmax.f32 %v11355_v13, 0.0  ;;  %v15349_v40 = vld [vmem:[#allocation2 + $0x16c] sm:$0xff]   ;;  %p15500_p11 = pnand %p15499_p13, %p21905_p10  ;;  %p15507_p5 = por %p15506_p3, %p15505_p2 }
 0x419   : > { %v13642_v25 = vcombine.low %v7081_v62, %v7084_v22  ;;  %v11385_v31 = vmax.f32 %v11353_v28, 0.0  ;;  %v8879_v61 = vsel %vm1257_vm5, %v15346_v50, %v20897_v23  ;;  %v8913_v27 = vsel %vm2432_vm0, %v8876_v1, %v20903_v63  ;;  %v6955_v50 = vld [vmem:[#allocation2 + $0x4d4] sm:$0xf]  ;;  %v6958_v13 = vld [vmem:[#allocation2 + $0x4f0] sm:$0xf] }
 0x41a   : > { %v7088_v5 = vsel %vm16535_vm7, %v13595_v24, %v7087_v34  ;;  %v7089_v48 = vrot.slane %v7087_v34, 4  ;;  %v8915_v59 = vsel %vm2432_vm0, %v8879_v61, %v20930_v37  ;;  %v7739_v16 = vpop.permute.xlu0 %7738  ;;  %v21028_v15 = vpack.c.bf16 %v11387_v4, %v11386_v56  ;;  %14612 = vmatprep.mubr.msk.bf16.mxu1 %vm3211_vm1, %v8913_v27  ;;  %p15501_p0 = pneg %p15500_p11 }
 0x41b   : > { %v7776_v52 = vsel %vm1257_vm5, %v13642_v25, %v20842_v43  ;;  %v21030_v6 = vpack.c.bf16 %v11385_v31, %v11384_v47  ;;  %v13596_v23 = vrot.slane %v6948_v18, 11  ;;  %v7094_v14 = vrot.slane %v6949_v44, 7  ;;  %v8839_v11 = vpop.permute.xlu1 %8838 }
 0x41c   : > { %v7091_v63 = vsel %vm16535_vm7, %v7089_v48, %v7090_v29  ;;  %v7813_v37 = vsel %vm2432_vm0, %v7776_v52, %v20879_v21  ;;  %v7097_v42 = vrot.slane %v6950_v9, 7  ;;  %14613 = vmatmul.mubr.msk.bf16.gmra.mrb[84].mxu1 %vm3211_vm1, %v8915_v59  ;;  %v13597_v46 = vrot.slane %v6951_v41, 11  ;;  %v6956_v21 = vld [vmem:[#allocation2 + $0x4d8] sm:$0x7]  ;;  %v6957_v29 = vld [vmem:[#allocation2 + $0x4ec] sm:$0x8]  ;;  %p15508_p6 = pnand %p15507_p5, %p15501_p0 }
 0x41d   : > { %v13643_v43 = vcombine.low %v7088_v5, %v7091_v63  ;;  %14544 = vmatprep.mubr.msk.bf16.mxu0 %vm3211_vm1, %v7813_v37  ;;  %v7101_v49 = vrot.slane %v6952_v7, 7  ;;  %v7095_v1 = vsel %vm16535_vm7, %v13596_v23, %v7094_v14  ;;  %v7096_v30 = vrot.slane %v7094_v14, 4  ;;  %v21876_v59 = vld [vmem:[#allocation28_spill] sm:$0xff]  ;;  %v21879_v14 = vld [vmem:[#allocation54_spill] sm:$0xff] }
 0x41e   : > { %v8882_v36 = vsel %vm1257_vm5, %v15347_v54, %v20957_v35  ;;  %v7104_v39 = vrot.slane %v6953_v20, 7  ;;  %v7661_v56 = vpop.permute.xlu0 %7660  ;;  %v8885_v35 = vsel %vm1257_vm5, %v15349_v40, %v21004_v45  ;;  %v7108_v22 = vrot.slane %v6955_v50, 7  ;;  %v21877_v23 = vld [vmem:[#allocation52_spill] sm:$0xff] }
 0x41f   : > { %v7779_v62 = vsel %vm1257_vm5, %v13643_v43, %v20870_v55  ;;  %v7102_v58 = vsel %vm16535_vm7, %v13597_v46, %v7101_v49  ;;  %v7103_v0 = vrot.slane %v7101_v49, 4  ;;  %v8917_v18 = vsel %vm2432_vm0, %v8882_v36, %v8837_v38  ;;  %v8761_v34 = vpop.permute.xlu1 %8760  ;;  %v15352_v46 = vld [vmem:[#allocation2 + $0x188] sm:$0xff]  }
 0x420   : > { %v7815_v28 = vsel %vm2432_vm0, %v7779_v62, %v20925_v53  ;;  %v7098_v24 = vsel %vm16535_vm7, %v7096_v30, %v7097_v42  ;;  %14616 = vmatprep.mubr.msk.bf16.mxu1 %vm3211_vm1, %v8917_v18  ;;  %v13598_v55 = vrot.slane %v6954_v32, 11  ;;  %v7111_v47 = vrot.slane %v6956_v21, 7  ;;  %v6959_v53 = vld [vmem:[#allocation2 + $0x4f4] sm:$0x7] }
 0x421   : > { %14545 = vmatmul.mubr.msk.bf16.gmra.mrb[24].mxu0 %vm3211_vm1, %v7815_v28  ;;  %v13644_v44 = vcombine.low %v7095_v1, %v7098_v24  ;;  %v7105_v9 = vsel %vm16535_vm7, %v7103_v0, %v7104_v39  ;;  %v8919_v7 = vsel %vm2432_vm0, %v8885_v35, %v8839_v11  ;;  %v7115_v38 = vrot.slane %v6958_v13, 7 }
 0x422   : > { %v13645_v41 = vcombine.low %v7102_v58, %v7105_v9  ;;  %v7109_v25 = vsel %vm16535_vm7, %v13598_v55, %v7108_v22  ;;  %v7110_v4 = vrot.slane %v7108_v22, 4  ;;  %v13599_v61 = vrot.slane %v6957_v29, 11  ;;  %v15355_v58 = vld [vmem:[#allocation2 + $0x1a4] sm:$0xff]   ;;  %v15358_v22 = vld [vmem:[#allocation2 + $0x3f0] sm:$0xff]   ;;  %v21881_v29 = vld [vmem:[#allocation47_spill] sm:$0xff] }
 0x423   : > { %v7782_v45 = vsel %vm1257_vm5, %v13644_v44, %v20943_v51  ;;  %v7118_v20 = vrot.slane %v6959_v53, 7  ;;  %v7117_v51 = vrot.slane %v7115_v38, 4  ;;  %v11210_v54 = vadd.f32 %v20656_v60, %v21876_v59  ;;  %v21880_v55 = vld [vmem:[#allocation44_spill] sm:$0xff] }
 0x424   : > { %v7817_v31 = vsel %vm2432_vm0, %v7782_v45, %v20984_v3  ;;  %v7785_v5 = vsel %vm1257_vm5, %v13645_v41, %v20973_v10  ;;  %14617 = vmatmul.mubr.msk.bf16.gmra.mrb[88].mxu1 %vm3211_vm1, %v8919_v7  ;;  %v7112_v48 = vsel %vm16535_vm7, %v7110_v4, %v7111_v47  ;;  %v7663_v27 = vpop.permute.xlu0 %7662  ;;  %v11208_v40 = vadd.f32 %v21876_v59, %v21877_v23  ;;  %v21878_v10 = vld [vmem:[#allocation53_spill] sm:$0xff] }
 0x425   : > { %14548 = vmatprep.mubr.msk.bf16.mxu0 %vm3211_vm1, %v7817_v31  ;;  %v7819_v52 = vsel %vm2432_vm0, %v7785_v5, %v7739_v16  ;;  %v13646_v3 = vcombine.low %v7109_v25, %v7112_v48  ;;  %v11211_v32 = vadd.f32 %v21878_v10, %v21876_v59  ;;  %v11242_v37 = vmax.f32 %v11210_v54, 0.0  ;;  %v15359_v47 = vld [vmem:[#allocation2 + $0x40c] sm:$0xff]  }
 0x426   : > { %v7741_v63 = vpop.permute.xlu1 %7740  ;;  %v11209_v42 = vadd.f32 %v21876_v59, %v21879_v14  ;;  %v11240_v50 = vmax.f32 %v11208_v40, 0.0  ;;  %v7116_v49 = vsel %vm16535_vm7, %v13599_v61, %v7115_v38  ;;  %v7119_v1 = vsel %vm16535_vm7, %v7117_v51, %v7118_v20  ;;  %v21882_v7 = vld [vmem:[#allocation33_spill] sm:$0xff]  ;;  %v15372_v38 = vld [vmem:[%s21537_s6 + $0x100] sm:$0xff]   ;;  %v15379_v20 = vld [vmem:[%s21537_s6 + $0x18] sm:$0xff]  }
 0x427   : > { %v7788_v11 = vsel %vm1257_vm5, %v13646_v3, %v7661_v56  ;;  %v11243_v43 = vmax.f32 %v11211_v32, 0.0  ;;  %v13647_v21 = vcombine.low %v7116_v49, %v7119_v1  ;;  %v8888_v62 = vsel %vm1257_vm5, %v15352_v46, %v8761_v34  ;;  %v15373_v34 = vld [vmem:[%s21537_s6 + $0x8] sm:$0xff]   ;;  %v15375_v31 = vld [vmem:[%s21537_s6 + $0x10] sm:$0xff]   ;;  %v21883_v51 = vld [vmem:[#allocation31_spill] sm:$0xff] }
 0x428   : > { %v7821_v60 = vsel %vm2432_vm0, %v7788_v11, %v7741_v63  ;;  %v11241_v16 = vmax.f32 %v11209_v42, 0.0  ;;  %v15361_v5 = vld [vmem:[#allocation2 + $0x428] sm:$0xff]   ;;  %v15378_v54 = vld [vmem:[%s21537_s6 + $0x110] sm:$0xff]   ;;  %v15381_v3 = vld [vmem:[%s21537_s6 + $0x20] sm:$0xff]  }
 0x429   : > { %14549 = vmatmul.mubr.msk.bf16.gmra.mrb[28].mxu0 %vm3211_vm1, %v7819_v52  ;;  %v21088_v30 = vpack.c.bf16 %v11243_v43, %v11242_v37  ;;  %v7791_v56 = vsel %vm1257_vm5, %v13647_v21, %v7663_v27  ;;  %v21884_v59 = vld [vmem:[#allocation25_spill] sm:$0xff]  ;;  %v15380_v32 = vld [vmem:[%s21537_s6 + $0x118] sm:$0xff]  }
 0x42a   : > { %14552 = vmatprep.mubr.msk.bf16.mxu0 %vm3211_vm1, %v7821_v60  ;;  %v21090_v39 = vpack.c.bf16 %v11241_v16, %v11240_v50  ;;  %v15362_v52 = vld [vmem:[#allocation2 + $0x444] sm:$0xff]   ;;  %v21885_v50 = vld [vmem:[#allocation27_spill] sm:$0xff]  ;;  %v15387_v49 = vld [vmem:[%s21537_s6 + $0x30] sm:$0xff]  }
 0x42b   : > { %v8763_v36 = vpop.permute.xlu0 %8762  ;;  %v15385_v42 = vld [vmem:[%s21537_s6 + $0x28] sm:$0xff]   ;;  %v21886_v43 = vld [vmem:[#allocation51_spill] sm:$0xff] }
 0x42c   : > { %v8891_v13 = vsel %vm1257_vm5, %v15355_v58, %v8763_v36  ;;  %v15384_v60 = vld [vmem:[%s21537_s6 + $0x120] sm:$0xff]   ;;  %v15386_v36 = vld [vmem:[%s21537_s6 + $0x128] sm:$0xff]  }
 0x42d   : > { %v8841_v0 = vpop.permute.xlu1 %8840  ;;  %v15363_v16 = vld [vmem:[#allocation2 + $0x460] sm:$0xff]  }
 0x42e   : > { %v8921_v18 = vsel %vm2432_vm0, %v8888_v62, %v8841_v0  ;;  %v15364_v1 = vld [vmem:[#allocation2 + $0x47c] sm:$0xff]  }
 0x42f   : > { %14620 = vmatprep.mubr.msk.bf16.mxu1 %vm3211_vm1, %v8921_v18  ;;  %v15389_v0 = vld [vmem:[%s21537_s6 + $0x38] sm:$0xff]  }
 0x431   : > { %v7743_v12 = vpop.permute.xlu0 %7742 }
 0x432   : > { %v7823_v28 = vsel %vm2432_vm0, %v7791_v56, %v7743_v12  ;;  %v8843_v24 = vpop.permute.xlu1 %8842  ;;  %v21887_v12 = vld [vmem:[#allocation46_spill] sm:$0xff] }
 0x433   : > { %v8923_v35 = vsel %vm2432_vm0, %v8891_v13, %v8843_v24  ;;  %14553 = vmatmul.mubr.msk.bf16.gmra.mrb[32].mxu0 %vm3211_vm1, %v7823_v28  ;;  %v15388_v28 = vld [vmem:[%s21537_s6 + $0x130] sm:$0xff]   ;;  %v15392_v24 = vld [vmem:[%s21537_s6 + $0x80] sm:$0xff]  }
 0x434   : > { %14621 = vmatmul.mubr.msk.bf16.gmra.mrb[92].mxu1 %vm3211_vm1, %v8923_v35  ;;  %14674 = vmatprep.mubr.bf16.mxu0 %v21880_v55  ;;  %v15365_v35 = vld [vmem:[#allocation2 + $0x498] sm:$0xff]  }
 0x435   : > { %v10677_v44 = vpop.permute.xlu0 %10676 }
 0x436   : > { %v10679_v9 = vpop.permute.xlu1 %10678  ;;  %v10790_v53 = vsel %vm1257_vm5, %v15358_v22, %v10677_v44  ;;  %v15366_v44 = vld [vmem:[#allocation2 + $0x4b4] sm:$0xff]  }
 0x437   : > { %v10793_v45 = vsel %vm1257_vm5, %v15359_v47, %v10679_v9  ;;  %v21888_v22 = vld [vmem:[#allocation50_spill] sm:$0xff] }
 0x43b   : > { %14675 = vmatmul.mubr.bf16.vlgmr.msra.gmra.mrb[36].mxu0 %v21881_v29 }
 0x43c   : > { %v10757_v41 = vpop.permute.xlu0 %10756  ;;  %14678 = vmatprep.mubr.bf16.mxu0 %v21882_v7  ;;  %14707 = vmatpush3.bf16.msra.mxu0 %v20806_v33  ;;  %v15374_v33 = vld [vmem:[%s21537_s6 + $0x108] sm:$0xff]  }
 0x43d   : > { %v10837_v25 = vsel %vm2432_vm0, %v10790_v53, %v10757_v41  ;;  %v10759_v4 = vpop.permute.xlu1 %10758  ;;  %14708 = vmatprep.subr.bf16.mxu0 %v15373_v34 }
 0x43e   : > { %v10839_v61 = vsel %vm2432_vm0, %v10793_v45, %v10759_v4  ;;  %14626 = vmatprep.mubr.msk.bf16.mxu1 %vm3211_vm1, %v10837_v25  ;;  %v15368_v25 = vld [vmem:[#allocation2 + $0x4ec] sm:$0xff]  }
 0x43f   : > { %14627 = vmatmul.mubr.msk.bf16.vlgmr.msra.gmra.mrb[64].mxu1 %vm3211_vm1, %v10839_v61 }
 0x440   : > { %14851 = vmatpush3.bf16.msra.mxu1 %v15372_v38  ;;  %14709 = vmatpush3.bf16.msra.mxu0 %v15373_v34 }
 0x441   : > { %14852 = vmatprep.subr.bf16.mxu1 %v21874_v2  ;;  %14710 = vmatprep.subr.bf16.mxu0 %v15375_v31 }
 0x442   : > { %v10681_v48 = vpop.permute.xlu0 %10680 }
 0x443   : > { %14679 = vmatmul.mubr.bf16.gmra.mrb[40].mxu0 %v21883_v51  ;;  %v10683_v27 = vpop.permute.xlu1 %10682  ;;  %v10796_v23 = vsel %vm1257_vm5, %v15361_v5, %v10681_v48  ;;  %v15371_v51 = vld [vmem:[#allocation2 + $0x524] sm:$0xff]  }
 0x444   : > { %14682 = vmatprep.mubr.bf16.mxu0 %v21884_v59  ;;  %14853 = vmatpush3.bf16.msra.mxu1 %v15374_v33  ;;  %v10799_v63 = vsel %vm1257_vm5, %v15362_v52, %v10683_v27 }
 0x445   : > { %14711 = vmatpush3.bf16.msra.mxu0 %v15375_v31  ;;  %14854 = vmatprep.subr.bf16.mxu1 %v21874_v2 }
 0x446   : > { %14712 = vmatprep.subr.bf16.mxu0 %v15379_v20  ;;  %v10761_v40 = vpop.permute.xlu0 %10760 }
 0x447   : > { %v10841_v10 = vsel %vm2432_vm0, %v10796_v23, %v10761_v40 }
 0x448   : > { %14855 = vmatpush3.bf16.msra.mxu1 %v15378_v54  ;;  %v10763_v37 = vpop.permute.xlu1 %10762  ;;  %14630 = vmatprep.mubr.msk.bf16.mxu1 %vm3211_vm1, %v10841_v10  ;;  %v15376_v10 = vld [vmem:[#allocation2 + $0x540] sm:$0xff]  }
 0x449   : > { %14713 = vmatpush3.bf16.msra.mxu0 %v15379_v20  ;;  %v10843_v14 = vsel %vm2432_vm0, %v10799_v63, %v10763_v37  ;;  %14856 = vmatprep.subr.bf16.mxu1 %v21874_v2  ;;  %v21889_v37 = vld [vmem:[#allocation35_spill] sm:$0xff] }
 0x44a   : > { %14714 = vmatprep.subr.bf16.mxu0 %v15381_v3  ;;  %14631 = vmatmul.mubr.msk.bf16.gmra.mrb[68].mxu1 %vm3211_vm1, %v10843_v14  ;;  %v10685_v11 = vpop.permute.xlu0 %10684 }
 0x44b   : > { %14683 = vmatmul.mubr.bf16.gmra.mrb[44].mxu0 %v21885_v50  ;;  %v10802_v21 = vsel %vm1257_vm5, %v15363_v16, %v10685_v11  ;;  %v15394_v11 = vld [vmem:[%s21537_s6 + $0x90] sm:$0xff]  }
 0x44c   : > { %14686 = vmatprep.mubr.bf16.mxu0 %v21886_v43  ;;  %14857 = vmatpush3.bf16.msra.mxu1 %v15380_v32  ;;  %v10687_v46 = vpop.permute.xlu1 %10686  ;;  %v21223_v43 = vld [vmem:[%s21538_s7] sm:$0x3f] }
 0x44d   : > { %14715 = vmatpush3.bf16.msra.mxu0 %v15381_v3  ;;  %14858 = vmatprep.subr.bf16.mxu1 %v21874_v2  ;;  %v10805_v18 = vsel %vm1257_vm5, %v15364_v1, %v10687_v46 }
 0x44e   : > { %14716 = vmatprep.subr.bf16.mxu0 %v15385_v42 }
 0x450   : > { %14859 = vmatpush3.bf16.msra.mxu1 %v15384_v60  ;;  %v10765_v62 = vpop.permute.xlu0 %10764  ;;  %v21890_v60 = vld [vmem:[#allocation32_spill] sm:$0xff] }
 0x451   : > { %14717 = vmatpush3.bf16.msra.mxu0 %v15385_v42  ;;  %14860 = vmatprep.subr.bf16.mxu1 %v21874_v2  ;;  %v10845_v58 = vsel %vm2432_vm0, %v10802_v21, %v10765_v62  ;;  %v21891_v62 = vld [vmem:[#allocation34_spill] sm:$0xff] }
 0x452   : > { %14718 = vmatprep.subr.bf16.mxu0 %v15387_v49  ;;  %14634 = vmatprep.mubr.msk.bf16.mxu1 %vm3211_vm1, %v10845_v58  ;;  %v21892_v58 = vld [vmem:[#allocation24_spill] sm:$0xff] }
 0x453   : > { %v10767_v56 = vpop.permute.xlu1 %10766  ;;  %14687 = vmatmul.mubr.bf16.gmra.mrb[48].mxu0 %v21887_v12  ;;  %v15383_v12 = vld [vmem:[#allocation2 + $0x594] sm:$0xff]  }
 0x454   : > { %v10847_v13 = vsel %vm2432_vm0, %v10805_v18, %v10767_v56  ;;  %14690 = vmatprep.mubr.bf16.mxu0 %v20750_v8  ;;  %14861 = vmatpush3.bf16.msra.mxu1 %v15386_v36  ;;  %v15390_v8 = vld [vmem:[%s21537_s6 + $0x138] sm:$0xff]   ;;  %v15396_v56 = vld [vmem:[%s21537_s6 + $0xa0] sm:$0xff]  }
 0x455   : > { %14635 = vmatmul.mubr.msk.bf16.gmra.mrb[72].mxu1 %vm3211_vm1, %v10847_v13  ;;  %14719 = vmatpush3.bf16.msra.mxu0 %v15387_v49  ;;  %v15395_v36 = vld [vmem:[%s21537_s6 + $0x98] sm:$0xff]  }
 0x456   : > { %14862 = vmatprep.subr.bf16.mxu1 %v21874_v2  ;;  %14720 = vmatprep.subr.bf16.mxu0 %v15389_v0 }
 0x458   : > { %14863 = vmatpush3.bf16.msra.mxu1 %v15388_v28 }
 0x459   : > { %v10689_v55 = vpop.permute.xlu0 %10688  ;;  %14721 = vmatpush3.bf16.msra.mxu0 %v15389_v0  ;;  %14864 = vmatprep.subr.bf16.mxu1 %v21874_v2  ;;  %v15382_v0 = vld [vmem:[#allocation2 + $0x578] sm:$0xff]  }
 0x45a   : > { %v10691_v9 = vpop.permute.xlu1 %10690  ;;  %14754 = vmatprep.subr.bf16.mxu0 %v15392_v24  ;;  %v10808_v47 = vsel %vm1257_vm5, %v15365_v35, %v10689_v55 }
 0x45b   : > { %14691 = vmatmul.mubr.bf16.gmra.mrb[52].mxu0 %v21888_v22  ;;  %v10811_v29 = vsel %vm1257_vm5, %v15366_v44, %v10691_v9 }
 0x45c   : > { %14694 = vmatprep.mubr.bf16.mxu0 %v20854_v26  ;;  %14865 = vmatpush3.bf16.msra.mxu1 %v15390_v8  ;;  %v15367_v26 = vld [vmem:[#allocation2 + $0x4d0] sm:$0xff]   ;;  %v11438_v8 = vsub.s32 2, %v21890_v60 }
 0x45d   : > { %v10769_v34 = vpop.permute.xlu0 %10768 }
 0x45e   : > { %v10849_v53 = vsel %vm2432_vm0, %v10808_v47, %v10769_v34  ;;  %v10771_v41 = vpop.permute.xlu1 %10770  ;;  %v15397_v34 = vld [vmem:[%s21537_s6 + $0xa8] sm:$0xff]  }
 0x45f   : > { %v10851_v7 = vsel %vm2432_vm0, %v10811_v29, %v10771_v41  ;;  %14638 = vmatprep.mubr.msk.bf16.mxu1 %vm3211_vm1, %v10849_v53  ;;  %v21893_v53 = vld [vmem:[#allocation26_spill] sm:$0xff]  ;;  %v21251_v41 = vrot.slane %v21223_v43, %v11438_v8 }
 0x460   : > { %14639 = vmatmul.mubr.msk.bf16.gmra.mrb[76].mxu1 %vm3211_vm1, %v10851_v7  ;;  %v21894_v7 = vld [vmem:[#allocation40_spill] sm:$0xff] }
 0x461   : > { %v10693_v38 = vpop.permute.xlu0 %10692 }
 0x462   : > { %v10695_v45 = vpop.permute.xlu1 %10694  ;;  %v10814_v4 = vsel %vm1257_vm5, %v15367_v26, %v10693_v38  ;;  %v15398_v26 = vld [vmem:[%s21537_s6 + $0xb0] sm:$0xff]  }
 0x463   : > { %14695 = vmatmul.mubr.bf16.gmra.mrb[56].mxu0 %v20848_v19  ;;  %v10817_v61 = vsel %vm1257_vm5, %v15368_v25, %v10695_v45  ;;  %v15370_v19 = vld [vmem:[#allocation2 + $0x508] sm:$0xff]  }
 0x464   : > { %14698 = vmatprep.mubr.bf16.mxu0 %v20952_v17 }
 0x467   : > { %v10773_v31 = vpop.permute.xlu0 %10772 }
 0x468   : > { %v10853_v33 = vsel %vm2432_vm0, %v10814_v4, %v10773_v31 }
 0x469   : > { %v10775_v20 = vpop.permute.xlu1 %10774  ;;  %14642 = vmatprep.mubr.msk.bf16.mxu1 %vm3211_vm1, %v10853_v33 }
 0x46a   : > { %v10855_v5 = vsel %vm2432_vm0, %v10817_v61, %v10775_v20 }
 0x46b   : > { %14643 = vmatmul.mubr.msk.bf16.gmra.mrb[80].mxu1 %vm3211_vm1, %v10855_v5  ;;  %14699 = vmatmul.mubr.bf16.gmra.mrb[60].mxu0 %v20950_v57 }
 0x46c   : > { %14702 = vmatprep.mubr.bf16.mxu0 %v21030_v6  ;;  %v15596_v6 = vmov 1966171168  }
 0x46d   : > { %v11640_v23 = vunpack.c.l.s4 %v15596_v6  ;;  %v21897_v6 = vld [vmem:[#allocation37_spill] sm:$0xff] }
 0x46f   : > { %v10697_v17 = vpop.permute.xlu0 %10696  ;;  %v11641_v63 = vunpack.c.0.s8 %v11640_v23  ;;  %v21898_v23 = vld [vmem:[#allocation42_spill] sm:$0xff] }
 0x470   : > { %v10699_v48 = vpop.permute.xlu1 %10698  ;;  %v10820_v27 = vsel %vm1257_vm5, %v15370_v19, %v10697_v17  ;;  %v15399_v19 = vld [vmem:[%s21537_s6 + $0xb8] sm:$0xff]  }
 0x471   : > { %v10823_v52 = vsel %vm1257_vm5, %v15371_v51, %v10699_v48  ;;  %v11644_v16 = vsub.s32 %v11641_v63, %v21890_v60  ;;  %v21895_v17 = vld [vmem:[#allocation38_spill] sm:$0xff] }
 0x473   : > { %v10777_v59 = vpop.permute.xlu0 %10776  ;;  %14703 = vmatmul.mubr.bf16.gmra.mrb[64].mxu0 %v21028_v15  ;;  %v15393_v15 = vld [vmem:[%s21537_s6 + $0x88] sm:$0xff]  }
 0x474   : > { %v10857_v54 = vsel %vm2432_vm0, %v10820_v27, %v10777_v59  ;;  %14722 = vmatprep.mubr.bf16.mxu0 %v21090_v39  ;;  %v10779_v3 = vpop.permute.xlu1 %10778  ;;  %v15377_v39 = vld [vmem:[#allocation2 + $0x55c] sm:$0xff]  }
 0x475   : > { %14646 = vmatprep.mubr.msk.bf16.mxu1 %vm3211_vm1, %v10857_v54  ;;  %v10859_v57 = vsel %vm2432_vm0, %v10823_v52, %v10779_v3  ;;  %v21896_v27 = vld [vmem:[#allocation36_spill] sm:$0xff] }
 0x476   : > { %14647 = vmatmul.mubr.msk.bf16.gmra.mrb[84].mxu1 %vm3211_vm1, %v10859_v57  ;;  %v15400_v57 = vld [vmem:[%s21537_s6 + $0xc0] sm:$0xff]  }
 0x477   : > { %v10701_v40 = vpop.permute.xlu0 %10700 }
 0x478   : > { %v10703_v32 = vpop.permute.xlu1 %10702  ;;  %v10826_v14 = vsel %vm1257_vm5, %v15376_v10, %v10701_v40  ;;  %v21899_v40 = vld [vmem:[#allocation39_spill] sm:$0xff]  ;;  %v21900_v10 = vld [vmem:[#allocation45_spill] sm:$0xff] }
 0x479   : > { %v10829_v46 = vsel %vm1257_vm5, %v15377_v39, %v10703_v32 }
 0x47b   : > { %14723 = vmatmul.mubr.bf16.vlgmr.msra.gmra.mrb[36].mxu0 %v21088_v30  ;;  %v11638_v30 = vcombine.high %v21223_v43, %v21223_v43 }
 0x47c   : > { %14726 = vmatprep.mubr.bf16.mxu0 %v21889_v37  ;;  %14755 = vmatpush3.bf16.msra.mxu0 %v15392_v24  ;;  %v10781_v42 = vpop.permute.xlu0 %10780  ;;  %v11636_v24 = vld [vmem:[#allocation7] sm:$0x1] }
 0x47d   : > { %14756 = vmatprep.subr.bf16.mxu0 %v15393_v15  ;;  %v10861_v50 = vsel %vm2432_vm0, %v10826_v14, %v10781_v42  ;;  %v11645_v21 = vrot.slane %v11638_v30, %v11644_v16 }
 0x47e   : > { %14650 = vmatprep.mubr.msk.bf16.mxu1 %vm3211_vm1, %v10861_v50 }
 0x47f   : > { %v10783_v49 = vpop.permute.xlu1 %10782  ;;  %v11652_v28 = vrot.slane %v11645_v21, %v11644_v16  ;;  %v21902_v21 = vld [vmem:[#allocation48_spill] sm:$0xff] }
 0x480   : > { %v10863_v1 = vsel %vm2432_vm0, %v10829_v46, %v10783_v49  ;;  %14757 = vmatpush3.bf16.msra.mxu0 %v15393_v15 }
 0x481   : > { %14651 = vmatmul.mubr.msk.bf16.gmra.mrb[88].mxu1 %vm3211_vm1, %v10863_v1  ;;  %14758 = vmatprep.subr.bf16.mxu0 %v15394_v11  ;;  %v11654_v47 = vadd.f32 %v11652_v28, %v11636_v24  ;;  %v21901_v1 = vld [vmem:[#allocation41_spill] sm:$0xff] }
 0x482   : > { %v15402_v28 = vld [vmem:[%s21537_s6 + $0xd0] sm:$0xff]  }
 0x483   : > { %14727 = vmatmul.mubr.bf16.gmra.mrb[40].mxu0 %v21891_v62  ;;  %v11655_v38 = vmax.f32 %v11654_v47, 0.0  ;;  %v21903_v62 = vld [vmem:[#allocation23_spill] sm:$0xff] }
 0x484   : > { %14730 = vmatprep.mubr.bf16.mxu0 %v21892_v58  ;;  %14759 = vmatpush3.bf16.msra.mxu0 %v15394_v11  ;;  %v15401_v58 = vld [vmem:[%s21537_s6 + $0xc8] sm:$0xff]   ;;  %v15403_v47 = vld [vmem:[%s21537_s6 + $0xd8] sm:$0xff]  }
 0x485   : > { %v10705_v18 = vpop.permute.xlu0 %10704  ;;  %14760 = vmatprep.subr.bf16.mxu0 %v15395_v36  ;;  %v11656_v5 = vpack.c.bf16 %v11655_v38, %v11655_v38  ;;  %v15406_v38 = vld [vmem:[%s21537_s6 + $0xf0] sm:$0xff]  }
 0x486   : > { %v10707_v13 = vpop.permute.xlu1 %10706  ;;  %v10832_v35 = vsel %vm1257_vm5, %v15382_v0, %v10705_v18 }
 0x487   : > { %v10835_v44 = vsel %vm1257_vm5, %v15383_v12, %v10707_v13 }
 0x488   : > { %14761 = vmatpush3.bf16.msra.mxu0 %v15395_v36 }
 0x489   : > { %v10785_v55 = vpop.permute.xlu0 %10784  ;;  %14762 = vmatprep.subr.bf16.mxu0 %v15396_v56 }
 0x48a   : > { %v10865_v9 = vsel %vm2432_vm0, %v10832_v35, %v10785_v55  ;;  %v10787_v22 = vpop.permute.xlu1 %10786 }
 0x48b   : > { %v10867_v29 = vsel %vm2432_vm0, %v10835_v44, %v10787_v22  ;;  %14654 = vmatprep.mubr.msk.bf16.mxu1 %vm3211_vm1, %v10865_v9  ;;  %14731 = vmatmul.mubr.bf16.gmra.mrb[44].mxu0 %v21893_v53  ;;  %v15404_v53 = vld [vmem:[%s21537_s6 + $0xe0] sm:$0xff]  }
 0x48c   : > { %14655 = vmatmul.mubr.msk.bf16.gmra.mrb[92].mxu1 %vm3211_vm1, %v10867_v29  ;;  %14734 = vmatprep.mubr.bf16.mxu0 %v21894_v7  ;;  %v15405_v7 = vld [vmem:[%s21537_s6 + $0xe8] sm:$0xff]  }
 0x48d   : > { %14866 = vmatprep.mubr.msk.bf16.mxu1 %vm15595_vm15, %v21874_v2  ;;  %14763 = vmatpush3.bf16.msra.mxu0 %v15396_v56 }
 0x48e   : > { %v14526_v45 = vpop.f32.mrb[4].mxu0  ;;  %14764 = vmatprep.subr.bf16.mxu0 %v15397_v34 }
 0x48f   : > { %v11442_v25 = vadd.f32 %v14526_v45, %v21251_v41  ;;  %v7901_v4 = vpop.f32.mrb[5].mxu0 }
 0x490   : > { %v11440_v31 = vadd.f32 %v21251_v41, %v7901_v4  ;;  %v14527_v61 = vpop.f32.mrb[6].mxu0  ;;  %v15407_v4 = vld [vmem:[%s21537_s6 + $0xf8] sm:$0xff]  }
 0x491   : > { %v11443_v33 = vadd.f32 %v14527_v61, %v21251_v41  ;;  %v7904_v20 = vpop.f32.mrb[7].mxu0  ;;  %14765 = vmatpush3.bf16.msra.mxu0 %v15397_v34  ;;  %v11474_v48 = vmax.f32 %v11442_v25, 0.0 }
 0x492   : > { %v11441_v2 = vadd.f32 %v21251_v41, %v7904_v20  ;;  %14766 = vmatprep.subr.bf16.mxu0 %v15398_v26  ;;  %v11472_v59 = vmax.f32 %v11440_v31, 0.0 }
 0x493   : > { %14735 = vmatmul.mubr.bf16.gmra.mrb[48].mxu0 %v21895_v17  ;;  %v11475_v51 = vmax.f32 %v11443_v33, 0.0 }
 0x494   : > { %14867 = vmatmul.mubr.bf16.vlgmr.msra.gmra.mrb[96].mxu1 %v11656_v5  ;;  %14738 = vmatprep.mubr.bf16.mxu0 %v21896_v27  ;;  %v11473_v54 = vmax.f32 %v11441_v2, 0.0 }
 0x495   : > { %v11505_v52 = vpack.c.bf16 %v11475_v51, %v11474_v48  ;;  %14767 = vmatpush3.bf16.msra.mxu0 %v15398_v26 }
 0x496   : > { %v11504_v3 = vpack.c.bf16 %v11473_v54, %v11472_v59  ;;  %14768 = vmatprep.subr.bf16.mxu0 %v15399_v19 }
 0x499   : > { %14769 = vmatpush3.bf16.msra.mxu0 %v15399_v19 }
 0x49a   : > { %14802 = vmatprep.subr.bf16.mxu0 %v15400_v57 }
 0x49b   : > { %14739 = vmatmul.mubr.bf16.gmra.mrb[52].mxu0 %v21897_v6 }
 0x49c   : > { %14742 = vmatprep.mubr.bf16.mxu0 %v21898_v23 }
 0x4a3   : > { %14743 = vmatmul.mubr.bf16.gmra.mrb[56].mxu0 %v21899_v40 }
 0x4a4   : > { %14746 = vmatprep.mubr.bf16.mxu0 %v21900_v10  ;;  %v14530_v32 = vpop.f32.mrb[8].mxu0 }
 0x4a5   : > { %v11446_v15 = vadd.f32 %v14530_v32, %v21251_v41  ;;  %v7917_v63 = vpop.f32.mrb[9].mxu0 }
 0x4a6   : > { %v11444_v39 = vadd.f32 %v21251_v41, %v7917_v63  ;;  %v14531_v37 = vpop.f32.mrb[10].mxu0 }
 0x4a7   : > { %v11447_v14 = vadd.f32 %v14531_v37, %v21251_v41  ;;  %v7920_v42 = vpop.f32.mrb[11].mxu0  ;;  %v11478_v50 = vmax.f32 %v11446_v15, 0.0 }
 0x4a8   : > { %v11445_v11 = vadd.f32 %v21251_v41, %v7920_v42  ;;  %v11476_v16 = vmax.f32 %v11444_v39, 0.0 }
 0x4a9   : > { %v11479_v30 = vmax.f32 %v11447_v14, 0.0 }
 0x4aa   : > { %v11477_v46 = vmax.f32 %v11445_v11, 0.0 }
 0x4ab   : > { %v11507_v49 = vpack.c.bf16 %v11479_v30, %v11478_v50  ;;  %14747 = vmatmul.mubr.bf16.gmra.mrb[60].mxu0 %v21901_v1 }
 0x4ac   : > { %v11506_v36 = vpack.c.bf16 %v11477_v46, %v11476_v16  ;;  %14750 = vmatprep.mubr.bf16.mxu0 %v21902_v21 }
 0x4b3   : > { %14751 = vmatmul.mubr.bf16.gmra.mrb[64].mxu0 %v21903_v62 }
 0x4b4   : > { %14770 = vmatprep.mubr.bf16.mxu0 %v11504_v3 }
 0x4ba   : > { %v14534_v0 = vpop.f32.mrb[12].mxu0 }
 0x4bb   : > { %14771 = vmatmul.mubr.bf16.vlgmr.msra.gmra.mrb[36].mxu0 %v11505_v52  ;;  %v11450_v18 = vadd.f32 %v14534_v0, %v21251_v41  ;;  %v7933_v56 = vpop.f32.mrb[13].mxu0 }
 0x4bc   : > { %14774 = vmatprep.mubr.bf16.mxu0 %v11506_v36  ;;  %14803 = vmatpush3.bf16.msra.mxu0 %v15400_v57  ;;  %v11448_v12 = vadd.f32 %v21251_v41, %v7933_v56  ;;  %v14535_v13 = vpop.f32.mrb[14].mxu0 }
 0x4bd   : > { %14804 = vmatprep.subr.bf16.mxu0 %v15401_v58  ;;  %v11451_v24 = vadd.f32 %v14535_v13, %v21251_v41  ;;  %v7936_v8 = vpop.f32.mrb[15].mxu0  ;;  %v11482_v55 = vmax.f32 %v11450_v18, 0.0 }
 0x4be   : > { %v11449_v35 = vadd.f32 %v21251_v41, %v7936_v8  ;;  %v11480_v9 = vmax.f32 %v11448_v12, 0.0 }
 0x4bf   : > { %v11483_v44 = vmax.f32 %v11451_v24, 0.0 }
 0x4c0   : > { %14805 = vmatpush3.bf16.msra.mxu0 %v15401_v58  ;;  %v11481_v22 = vmax.f32 %v11449_v35, 0.0 }
 0x4c1   : > { %14806 = vmatprep.subr.bf16.mxu0 %v15402_v28  ;;  %v11509_v34 = vpack.c.bf16 %v11483_v44, %v11482_v55 }
 0x4c2   : > { %v11508_v29 = vpack.c.bf16 %v11481_v22, %v11480_v9 }
 0x4c3   : > { %14775 = vmatmul.mubr.bf16.gmra.mrb[40].mxu0 %v11507_v49 }
 0x4c4   : > { %14807 = vmatpush3.bf16.msra.mxu0 %v15402_v28  ;;  %14778 = vmatprep.mubr.bf16.mxu0 %v11508_v29 }
 0x4c5   : > { %14808 = vmatprep.subr.bf16.mxu0 %v15403_v47 }
 0x4c8   : > { %14809 = vmatpush3.bf16.msra.mxu0 %v15403_v47 }
 0x4c9   : > { %14810 = vmatprep.subr.bf16.mxu0 %v15404_v53 }
 0x4cb   : > { %14779 = vmatmul.mubr.bf16.gmra.mrb[44].mxu0 %v11509_v34 }
 0x4cc   : > { %14811 = vmatpush3.bf16.msra.mxu0 %v15404_v53 }
 0x4cd   : > { %14812 = vmatprep.subr.bf16.mxu0 %v15405_v7 }
 0x4d0   : > { %v14538_v45 = vpop.f32.mrb[16].mxu0  ;;  %14813 = vmatpush3.bf16.msra.mxu0 %v15405_v7 }
 0x4d1   : > { %v11454_v26 = vadd.f32 %v14538_v45, %v21251_v41  ;;  %v7949_v25 = vpop.f32.mrb[17].mxu0  ;;  %14814 = vmatprep.subr.bf16.mxu0 %v15406_v38 }
 0x4d2   : > { %v11452_v31 = vadd.f32 %v21251_v41, %v7949_v25  ;;  %v14539_v61 = vpop.f32.mrb[18].mxu0 }
 0x4d3   : > { %v11455_v33 = vadd.f32 %v14539_v61, %v21251_v41  ;;  %v7952_v20 = vpop.f32.mrb[19].mxu0  ;;  %v11486_v2 = vmax.f32 %v11454_v26, 0.0 }
 0x4d4   : > { %v11453_v5 = vadd.f32 %v21251_v41, %v7952_v20  ;;  %14815 = vmatpush3.bf16.msra.mxu0 %v15406_v38  ;;  %v11484_v17 = vmax.f32 %v11452_v31, 0.0 }
 0x4d5   : > { %v11487_v19 = vmax.f32 %v11455_v33, 0.0  ;;  %14816 = vmatprep.subr.bf16.mxu0 %v15407_v4  ;;  %v11554_v33 = vsub.s32 3, %v21890_v60 }
 0x4d6   : > { %v11485_v48 = vmax.f32 %v11453_v5, 0.0 }
 0x4d7   : > { %v11511_v51 = vpack.c.bf16 %v11487_v19, %v11486_v2 }
 0x4d8   : > { %v11510_v27 = vpack.c.bf16 %v11485_v48, %v11484_v17  ;;  %14817 = vmatpush3.bf16.msra.mxu0 %v15407_v4  ;;  %v21330_v17 = vrot.slane %v21223_v43, %v11554_v33 }
 0x4da   : > { %14782 = vmatprep.mubr.bf16.mxu0 %v11510_v27 }
 0x4db   : > { %14783 = vmatmul.mubr.bf16.gmra.mrb[48].mxu0 %v11511_v51 }
 0x4e6   : > { %v14542_v59 = vpop.f32.mrb[20].mxu0 }
 0x4e7   : > { %v11458_v54 = vadd.f32 %v14542_v59, %v21251_v41  ;;  %v7965_v52 = vpop.f32.mrb[21].mxu0 }
 0x4e8   : > { %v11456_v3 = vadd.f32 %v21251_v41, %v7965_v52  ;;  %v14543_v57 = vpop.f32.mrb[22].mxu0 }
 0x4e9   : > { %v11459_v6 = vadd.f32 %v14543_v57, %v21251_v41  ;;  %v7968_v23 = vpop.f32.mrb[23].mxu0  ;;  %v11490_v10 = vmax.f32 %v11458_v54, 0.0 }
 0x4ea   : > { %v11457_v40 = vadd.f32 %v21251_v41, %v7968_v23  ;;  %v11488_v15 = vmax.f32 %v11456_v3, 0.0 }
 0x4eb   : > { %v11491_v32 = vmax.f32 %v11459_v6, 0.0 }
 0x4ec   : > { %v11489_v63 = vmax.f32 %v11457_v40, 0.0 }
 0x4ed   : > { %v11513_v39 = vpack.c.bf16 %v11491_v32, %v11490_v10 }
 0x4ee   : > { %v11512_v37 = vpack.c.bf16 %v11489_v63, %v11488_v15 }
 0x4f0   : > { %14786 = vmatprep.mubr.bf16.mxu0 %v11512_v37 }
 0x4f1   : > { %14787 = vmatmul.mubr.bf16.gmra.mrb[52].mxu0 %v11513_v39 }
 0x4f4   : > { %v14546_v14 = vpop.f32.mrb[24].mxu0 }
 0x4f5   : > { %v11462_v42 = vadd.f32 %v14546_v14, %v21251_v41  ;;  %v7981_v11 = vpop.f32.mrb[25].mxu0 }
 0x4f6   : > { %v11460_v50 = vadd.f32 %v21251_v41, %v7981_v11  ;;  %v14547_v30 = vpop.f32.mrb[26].mxu0 }
 0x4f7   : > { %v11463_v16 = vadd.f32 %v14547_v30, %v21251_v41  ;;  %v7984_v46 = vpop.f32.mrb[27].mxu0  ;;  %v11494_v1 = vmax.f32 %v11462_v42, 0.0 }
 0x4f8   : > { %v11461_v49 = vadd.f32 %v21251_v41, %v7984_v46  ;;  %v11492_v21 = vmax.f32 %v11460_v50, 0.0 }
 0x4f9   : > { %v11495_v36 = vmax.f32 %v11463_v16, 0.0 }
 0x4fa   : > { %v11493_v62 = vmax.f32 %v11461_v49, 0.0 }
 0x4fb   : > { %v11515_v58 = vpack.c.bf16 %v11495_v36, %v11494_v1 }
 0x4fc   : > { %v11514_v0 = vpack.c.bf16 %v11493_v62, %v11492_v21  ;;  %v14550_v18 = vpop.f32.mrb[28].mxu0 }
 0x4fd   : > { %v11466_v56 = vadd.f32 %v14550_v18, %v21251_v41  ;;  %v7997_v12 = vpop.f32.mrb[29].mxu0 }
 0x4fe   : > { %14790 = vmatprep.mubr.bf16.mxu0 %v11514_v0  ;;  %v11464_v13 = vadd.f32 %v21251_v41, %v7997_v12  ;;  %v14551_v28 = vpop.f32.mrb[30].mxu0 }
 0x4ff   : > { %14791 = vmatmul.mubr.bf16.gmra.mrb[56].mxu0 %v11515_v58  ;;  %v11467_v24 = vadd.f32 %v14551_v28, %v21251_v41  ;;  %v8000_v8 = vpop.f32.mrb[31].mxu0  ;;  %v11498_v55 = vmax.f32 %v11466_v56, 0.0 }
 0x500   : > { %v11465_v35 = vadd.f32 %v21251_v41, %v8000_v8  ;;  %v11496_v9 = vmax.f32 %v11464_v13, 0.0 }
 0x501   : > { %v11499_v44 = vmax.f32 %v11467_v24, 0.0 }
 0x502   : > { %v11497_v22 = vmax.f32 %v11465_v35, 0.0 }
 0x503   : > { %v11517_v47 = vpack.c.bf16 %v11499_v44, %v11498_v55 }
 0x504   : > { %v11516_v34 = vpack.c.bf16 %v11497_v22, %v11496_v9 }
 0x506   : > { %14794 = vmatprep.mubr.bf16.mxu0 %v11516_v34  ;;  %v14554_v29 = vpop.f32.mrb[32].mxu0 }
 0x507   : > { %14795 = vmatmul.mubr.bf16.gmra.mrb[60].mxu0 %v11517_v47  ;;  %v11470_v53 = vadd.f32 %v14554_v29, %v21251_v41  ;;  %v8013_v7 = vpop.f32.mrb[33].mxu0 }
 0x508   : > { %v11468_v38 = vadd.f32 %v21251_v41, %v8013_v7  ;;  %v14555_v45 = vpop.f32.mrb[34].mxu0 }
 0x509   : > { %v11471_v26 = vadd.f32 %v14555_v45, %v21251_v41  ;;  %v8016_v25 = vpop.f32.mrb[35].mxu0  ;;  %v11502_v31 = vmax.f32 %v11470_v53, 0.0 }
 0x50a   : > { %v11469_v4 = vadd.f32 %v21251_v41, %v8016_v25  ;;  %v11500_v20 = vmax.f32 %v11468_v38, 0.0 }
 0x50b   : > { %v11503_v61 = vmax.f32 %v11471_v26, 0.0 }
 0x50c   : > { %v11501_v5 = vmax.f32 %v11469_v4, 0.0 }
 0x50d   : > { %v11519_v2 = vpack.c.bf16 %v11503_v61, %v11502_v31 }
 0x50e   : > { %v11518_v19 = vpack.c.bf16 %v11501_v5, %v11500_v20 }
 0x510   : > { %14798 = vmatprep.mubr.bf16.mxu0 %v11518_v19 }
 0x511   : > { %14799 = vmatmul.mubr.bf16.gmra.mrb[64].mxu0 %v11519_v2 }
 0x512   : > { %v14628_v48 = vpop.f32.mrb[64].mxu1 }
 0x513   : > { %v11558_v51 = vadd.f32 %v14628_v48, %v21330_v17  ;;  %v10945_v27 = vpop.f32.mrb[65].mxu1 }
 0x514   : > { %v11556_v59 = vadd.f32 %v21330_v17, %v10945_v27  ;;  %v14629_v41 = vpop.f32.mrb[66].mxu1 }
 0x515   : > { %v11559_v54 = vadd.f32 %v14629_v41, %v21330_v17  ;;  %v10948_v52 = vpop.f32.mrb[67].mxu1  ;;  %v11590_v57 = vmax.f32 %v11558_v51, 0.0 }
 0x516   : > { %v11557_v3 = vadd.f32 %v21330_v17, %v10948_v52  ;;  %v11588_v23 = vmax.f32 %v11556_v59, 0.0 }
 0x517   : > { %v11591_v6 = vmax.f32 %v11559_v54, 0.0 }
 0x518   : > { %v11589_v40 = vmax.f32 %v11557_v3, 0.0 }
 0x519   : > { %v11621_v10 = vpack.c.bf16 %v11591_v6, %v11590_v57 }
 0x51a   : > { %v11620_v32 = vpack.c.bf16 %v11589_v40, %v11588_v23 }
 0x51c   : > { %14818 = vmatprep.mubr.bf16.mxu0 %v11620_v32 }
 0x51d   : > { %14819 = vmatmul.mubr.bf16.vlgmr.msra.gmra.mrb[36].mxu0 %v11621_v10  ;;  %v14632_v15 = vpop.f32.mrb[68].mxu1 }
 0x51e   : > { %v11562_v63 = vadd.f32 %v14632_v15, %v21330_v17  ;;  %v10961_v39 = vpop.f32.mrb[69].mxu1 }
 0x51f   : > { %v11560_v37 = vadd.f32 %v21330_v17, %v10961_v39  ;;  %v14633_v14 = vpop.f32.mrb[70].mxu1 }
 0x520   : > { %v11563_v42 = vadd.f32 %v14633_v14, %v21330_v17  ;;  %v10964_v11 = vpop.f32.mrb[71].mxu1  ;;  %v11594_v30 = vmax.f32 %v11562_v63, 0.0 }
 0x521   : > { %v11561_v50 = vadd.f32 %v21330_v17, %v10964_v11  ;;  %v11592_v46 = vmax.f32 %v11560_v37, 0.0 }
 0x522   : > { %v11595_v16 = vmax.f32 %v11563_v42, 0.0 }
 0x523   : > { %v11593_v49 = vmax.f32 %v11561_v50, 0.0 }
 0x524   : > { %v11623_v1 = vpack.c.bf16 %v11595_v16, %v11594_v30 }
 0x525   : > { %v11622_v36 = vpack.c.bf16 %v11593_v49, %v11592_v46 }
 0x527   : > { %14822 = vmatprep.mubr.bf16.mxu0 %v11622_v36 }
 0x528   : > { %v14636_v21 = vpop.f32.mrb[72].mxu1  ;;  %14823 = vmatmul.mubr.bf16.gmra.mrb[40].mxu0 %v11623_v1 }
 0x529   : > { %v11566_v62 = vadd.f32 %v14636_v21, %v21330_v17  ;;  %v10977_v58 = vpop.f32.mrb[73].mxu1 }
 0x52a   : > { %v11564_v0 = vadd.f32 %v21330_v17, %v10977_v58  ;;  %v14637_v18 = vpop.f32.mrb[74].mxu1 }
 0x52b   : > { %v11567_v56 = vadd.f32 %v14637_v18, %v21330_v17  ;;  %v10980_v12 = vpop.f32.mrb[75].mxu1  ;;  %v11598_v28 = vmax.f32 %v11566_v62, 0.0 }
 0x52c   : > { %v11565_v13 = vadd.f32 %v21330_v17, %v10980_v12  ;;  %v11596_v8 = vmax.f32 %v11564_v0, 0.0 }
 0x52d   : > { %v11599_v24 = vmax.f32 %v11567_v56, 0.0 }
 0x52e   : > { %v11597_v35 = vmax.f32 %v11565_v13, 0.0 }
 0x52f   : > { %v11625_v55 = vpack.c.bf16 %v11599_v24, %v11598_v28 }
 0x530   : > { %v11624_v44 = vpack.c.bf16 %v11597_v35, %v11596_v8 }
 0x532   : > { %14826 = vmatprep.mubr.bf16.mxu0 %v11624_v44 }
 0x533   : > { %v14640_v9 = vpop.f32.mrb[76].mxu1  ;;  %14827 = vmatmul.mubr.bf16.gmra.mrb[44].mxu0 %v11625_v55 }
 0x534   : > { %v11570_v22 = vadd.f32 %v14640_v9, %v21330_v17  ;;  %v10993_v47 = vpop.f32.mrb[77].mxu1 }
 0x535   : > { %v11568_v34 = vadd.f32 %v21330_v17, %v10993_v47  ;;  %v14641_v29 = vpop.f32.mrb[78].mxu1 }
 0x536   : > { %v11571_v53 = vadd.f32 %v14641_v29, %v21330_v17  ;;  %v10996_v7 = vpop.f32.mrb[79].mxu1  ;;  %v11602_v45 = vmax.f32 %v11570_v22, 0.0 }
 0x537   : > { %v11569_v38 = vadd.f32 %v21330_v17, %v10996_v7  ;;  %v11600_v25 = vmax.f32 %v11568_v34, 0.0 }
 0x538   : > { %v11603_v26 = vmax.f32 %v11571_v53, 0.0 }
 0x539   : > { %v11601_v4 = vmax.f32 %v11569_v38, 0.0 }
 0x53a   : > { %v11627_v31 = vpack.c.bf16 %v11603_v26, %v11602_v45 }
 0x53b   : > { %v11626_v61 = vpack.c.bf16 %v11601_v4, %v11600_v25 }
 0x53d   : > { %14830 = vmatprep.mubr.bf16.mxu0 %v11626_v61  ;;  %v12763_v61 = vsub.s32 5, %v21890_v60 }
 0x53e   : > { %v14644_v33 = vpop.f32.mrb[80].mxu1  ;;  %14831 = vmatmul.mubr.bf16.gmra.mrb[48].mxu0 %v11627_v31 }
 0x53f   : > { %v11574_v20 = vadd.f32 %v14644_v33, %v21330_v17  ;;  %v11009_v5 = vpop.f32.mrb[81].mxu1  ;;  %v21904_v33 = vsub.s32 0, %v21890_v60 }
 0x540   : > { %v11572_v2 = vadd.f32 %v21330_v17, %v11009_v5  ;;  %v14645_v19 = vpop.f32.mrb[82].mxu1 }
 0x541   : > { %v11575_v48 = vadd.f32 %v14645_v19, %v21330_v17  ;;  %v11012_v51 = vpop.f32.mrb[83].mxu1  ;;  %v11606_v59 = vmax.f32 %v11574_v20, 0.0 }
 0x542   : > { %v11573_v27 = vadd.f32 %v21330_v17, %v11012_v51  ;;  %v11604_v54 = vmax.f32 %v11572_v2, 0.0 }
 0x543   : > { %v11607_v41 = vmax.f32 %v11575_v48, 0.0 }
 0x544   : > { %v11605_v52 = vmax.f32 %v11573_v27, 0.0 }
 0x545   : > { %v11629_v3 = vpack.c.bf16 %v11607_v41, %v11606_v59 }
 0x546   : > { %v11628_v57 = vpack.c.bf16 %v11605_v52, %v11604_v54 }
 0x548   : > { %14834 = vmatprep.mubr.bf16.mxu0 %v11628_v57 }
 0x549   : > { %14835 = vmatmul.mubr.bf16.gmra.mrb[52].mxu0 %v11629_v3  ;;  %v14648_v6 = vpop.f32.mrb[84].mxu1 }
 0x54a   : > { %v11578_v23 = vadd.f32 %v14648_v6, %v21330_v17  ;;  %v11025_v40 = vpop.f32.mrb[85].mxu1 }
 0x54b   : > { %v11576_v10 = vadd.f32 %v21330_v17, %v11025_v40  ;;  %v14649_v32 = vpop.f32.mrb[86].mxu1 }
 0x54c   : > { %v11579_v15 = vadd.f32 %v14649_v32, %v21330_v17  ;;  %v11028_v63 = vpop.f32.mrb[87].mxu1  ;;  %v11610_v37 = vmax.f32 %v11578_v23, 0.0 }
 0x54d   : > { %v11577_v39 = vadd.f32 %v21330_v17, %v11028_v63  ;;  %v11608_v42 = vmax.f32 %v11576_v10, 0.0 }
 0x54e   : > { %v11611_v14 = vmax.f32 %v11579_v15, 0.0 }
 0x54f   : > { %v11609_v11 = vmax.f32 %v11577_v39, 0.0 }
 0x550   : > { %v11631_v50 = vpack.c.bf16 %v11611_v14, %v11610_v37 }
 0x551   : > { %v11630_v30 = vpack.c.bf16 %v11609_v11, %v11608_v42 }
 0x553   : > { %14838 = vmatprep.mubr.bf16.mxu0 %v11630_v30 }
 0x554   : > { %v14652_v16 = vpop.f32.mrb[88].mxu1  ;;  %14839 = vmatmul.mubr.bf16.gmra.mrb[56].mxu0 %v11631_v50 }
 0x555   : > { %v11582_v46 = vadd.f32 %v14652_v16, %v21330_v17  ;;  %v11041_v49 = vpop.f32.mrb[89].mxu1 }
 0x556   : > { %v11580_v1 = vadd.f32 %v21330_v17, %v11041_v49  ;;  %v14653_v36 = vpop.f32.mrb[90].mxu1 }
 0x557   : > { %v11583_v21 = vadd.f32 %v14653_v36, %v21330_v17  ;;  %v11044_v62 = vpop.f32.mrb[91].mxu1  ;;  %v11614_v0 = vmax.f32 %v11582_v46, 0.0 }
 0x558   : > { %v11581_v58 = vadd.f32 %v21330_v17, %v11044_v62  ;;  %v11612_v56 = vmax.f32 %v11580_v1, 0.0 }
 0x559   : > { %v11615_v18 = vmax.f32 %v11583_v21, 0.0 }
 0x55a   : > { %v11613_v12 = vmax.f32 %v11581_v58, 0.0 }
 0x55b   : > { %v11633_v13 = vpack.c.bf16 %v11615_v18, %v11614_v0 }
 0x55c   : > { %v11632_v28 = vpack.c.bf16 %v11613_v12, %v11612_v56 }
 0x55e   : > { %14842 = vmatprep.mubr.bf16.mxu0 %v11632_v28 }
 0x55f   : > { %v14656_v24 = vpop.f32.mrb[92].mxu1  ;;  %14843 = vmatmul.mubr.bf16.gmra.mrb[60].mxu0 %v11633_v13 }
 0x560   : > { %v11586_v8 = vadd.f32 %v14656_v24, %v21330_v17  ;;  %v11057_v35 = vpop.f32.mrb[93].mxu1 }
 0x561   : > { %v11584_v55 = vadd.f32 %v21330_v17, %v11057_v35  ;;  %v14657_v44 = vpop.f32.mrb[94].mxu1 }
 0x562   : > { %v11587_v9 = vadd.f32 %v14657_v44, %v21330_v17  ;;  %v11060_v22 = vpop.f32.mrb[95].mxu1  ;;  %v11618_v34 = vmax.f32 %v11586_v8, 0.0 }
 0x563   : > { %v11585_v47 = vadd.f32 %v21330_v17, %v11060_v22  ;;  %v11616_v53 = vmax.f32 %v11584_v55, 0.0  ;;  %v21371_v17 = vrot.slane %v21223_v43, %v12763_v61 }
 0x564   : > { %v11619_v29 = vmax.f32 %v11587_v9, 0.0 }
 0x565   : > { %v11617_v7 = vmax.f32 %v11585_v47, 0.0 }
 0x566   : > { %v11635_v38 = vpack.c.bf16 %v11619_v29, %v11618_v34 }
 0x567   : > { %v11634_v45 = vpack.c.bf16 %v11617_v7, %v11616_v53  ;;  %v12719_v26 = vpop.f32.mrb[96].mxu1 }
 0x568   : > { %v14868_v25 = vpop.f32.mrb[97].mxu1  ;;  %v21368_v20 = vrot.slane %v12719_v26, %v21904_v33 }
 0x569   : > { %14846 = vmatprep.mubr.bf16.mxu0 %v11634_v45  ;;  %v12722_v4 = vpop.f32.mrb[98].mxu1 }
 0x56a   : > { %14847 = vmatmul.mubr.bf16.gmra.mrb[64].mxu0 %v11635_v38  ;;  %v14869_v31 = vpop.f32.mrb[99].mxu1 }
 0x5f0   : > { %v14820_v5 = vpop.f32.mrb[36].mxu0 }
 0x5f1   : > { %v12731_v2 = vadd.f32 %v14820_v5, %v21368_v20  ;;  %v12478_v19 = vpop.f32.mrb[37].mxu0 }
 0x5f2   : > { %v12729_v48 = vadd.f32 %v21368_v20, %v12478_v19  ;;  %v14821_v51 = vpop.f32.mrb[38].mxu0 }
 0x5f3   : > { %v12767_v27 = vadd.f32 %v21371_v17, %v12731_v2  ;;  %v12732_v59 = vadd.f32 %v14821_v51, %v21368_v20  ;;  %v12481_v41 = vpop.f32.mrb[39].mxu0 }
 0x5f4   : > { %v12765_v60 = vadd.f32 %v21371_v17, %v12729_v48  ;;  %v12730_v54 = vadd.f32 %v21368_v20, %v12481_v41 }
 0x5f5   : > { %v12799_v43 = vmax.f32 %v12767_v27, 0.0  ;;  %v12768_v52 = vadd.f32 %v21371_v17, %v12732_v59 }
 0x5f6   : > { %v12797_v3 = vmax.f32 %v12765_v60, 0.0  ;;  %v12766_v57 = vadd.f32 %v21371_v17, %v12730_v54 }
 0x5f7   : > { %12831 = vst [vmem:[%s21383_s24 + $0x10] sm:$0xff] %v12799_v43  ;;  %v12800_v6 = vmax.f32 %v12768_v52, 0.0 }
 0x5f8   : > { %12829 = vst [vmem:[%s21383_s24] sm:$0xff] %v12797_v3  ;;  %v12798_v23 = vmax.f32 %v12766_v57, 0.0 }
 0x5f9   : > { %12832 = vst [vmem:[%s21383_s24 + $0x18] sm:$0xff] %v12800_v6 }
 0x5fa   : > { %12830 = vst [vmem:[%s21383_s24 + $0x8] sm:$0xff] %v12798_v23 }
 0x5fb   : > { %v14824_v40 = vpop.f32.mrb[40].mxu0 }
 0x5fc   : > { %v12735_v10 = vadd.f32 %v14824_v40, %v21368_v20  ;;  %v12494_v32 = vpop.f32.mrb[41].mxu0 }
 0x5fd   : > { %v12733_v15 = vadd.f32 %v21368_v20, %v12494_v32  ;;  %v14825_v63 = vpop.f32.mrb[42].mxu0 }
 0x5fe   : > { %v12771_v39 = vadd.f32 %v21371_v17, %v12735_v10  ;;  %v12736_v37 = vadd.f32 %v14825_v63, %v21368_v20  ;;  %v12497_v14 = vpop.f32.mrb[43].mxu0 }
 0x5ff   : > { %v12769_v42 = vadd.f32 %v21371_v17, %v12733_v15  ;;  %v12734_v11 = vadd.f32 %v21368_v20, %v12497_v14 }
 0x600   : > { %v12803_v50 = vmax.f32 %v12771_v39, 0.0  ;;  %v12772_v30 = vadd.f32 %v21371_v17, %v12736_v37 }
 0x601   : > { %v12801_v16 = vmax.f32 %v12769_v42, 0.0  ;;  %v12770_v46 = vadd.f32 %v21371_v17, %v12734_v11 }
 0x602   : > { %12835 = vst [vmem:[%s21383_s24 + $0x30] sm:$0xff] %v12803_v50  ;;  %v12804_v49 = vmax.f32 %v12772_v30, 0.0 }
 0x603   : > { %12833 = vst [vmem:[%s21383_s24 + $0x20] sm:$0xff] %v12801_v16  ;;  %v12802_v1 = vmax.f32 %v12770_v46, 0.0 }
 0x604   : > { %12836 = vst [vmem:[%s21383_s24 + $0x38] sm:$0xff] %v12804_v49 }
 0x605   : > { %12834 = vst [vmem:[%s21383_s24 + $0x28] sm:$0xff] %v12802_v1 }
 0x606   : > { %v14828_v36 = vpop.f32.mrb[44].mxu0 }
 0x607   : > { %v12739_v21 = vadd.f32 %v14828_v36, %v21368_v20  ;;  %v12510_v62 = vpop.f32.mrb[45].mxu0 }
 0x608   : > { %v12737_v58 = vadd.f32 %v21368_v20, %v12510_v62  ;;  %v14829_v0 = vpop.f32.mrb[46].mxu0 }
 0x609   : > { %v12775_v18 = vadd.f32 %v21371_v17, %v12739_v21  ;;  %v12740_v56 = vadd.f32 %v14829_v0, %v21368_v20  ;;  %v12513_v12 = vpop.f32.mrb[47].mxu0 }
 0x60a   : > { %v12773_v13 = vadd.f32 %v21371_v17, %v12737_v58  ;;  %v12738_v28 = vadd.f32 %v21368_v20, %v12513_v12 }
 0x60b   : > { %v12807_v24 = vmax.f32 %v12775_v18, 0.0  ;;  %v12776_v8 = vadd.f32 %v21371_v17, %v12740_v56 }
 0x60c   : > { %v12805_v35 = vmax.f32 %v12773_v13, 0.0  ;;  %v12774_v55 = vadd.f32 %v21371_v17, %v12738_v28 }
 0x60d   : > { %12839 = vst [vmem:[%s21383_s24 + $0x50] sm:$0xff] %v12807_v24  ;;  %v12808_v44 = vmax.f32 %v12776_v8, 0.0 }
 0x60e   : > { %12837 = vst [vmem:[%s21383_s24 + $0x40] sm:$0xff] %v12805_v35  ;;  %v12806_v9 = vmax.f32 %v12774_v55, 0.0 }
 0x60f   : > { %12840 = vst [vmem:[%s21383_s24 + $0x58] sm:$0xff] %v12808_v44 }
 0x610   : > { %12838 = vst [vmem:[%s21383_s24 + $0x48] sm:$0xff] %v12806_v9 }
 0x611   : > { %v14832_v22 = vpop.f32.mrb[48].mxu0 }
 0x612   : > { %v12743_v47 = vadd.f32 %v14832_v22, %v21368_v20  ;;  %v12526_v34 = vpop.f32.mrb[49].mxu0 }
 0x613   : > { %v12741_v29 = vadd.f32 %v21368_v20, %v12526_v34  ;;  %v14833_v53 = vpop.f32.mrb[50].mxu0 }
 0x614   : > { %v12779_v7 = vadd.f32 %v21371_v17, %v12743_v47  ;;  %v12744_v38 = vadd.f32 %v14833_v53, %v21368_v20  ;;  %v12529_v45 = vpop.f32.mrb[51].mxu0 }
 0x615   : > { %v12777_v26 = vadd.f32 %v21371_v17, %v12741_v29  ;;  %v12742_v25 = vadd.f32 %v21368_v20, %v12529_v45 }
 0x616   : > { %v12811_v4 = vmax.f32 %v12779_v7, 0.0  ;;  %v12780_v31 = vadd.f32 %v21371_v17, %v12744_v38 }
 0x617   : > { %v12809_v61 = vmax.f32 %v12777_v26, 0.0  ;;  %v12778_v33 = vadd.f32 %v21371_v17, %v12742_v25 }
 0x618   : > { %12843 = vst [vmem:[%s21383_s24 + $0x70] sm:$0xff] %v12811_v4  ;;  %v12812_v5 = vmax.f32 %v12780_v31, 0.0 }
 0x619   : > { %12841 = vst [vmem:[%s21383_s24 + $0x60] sm:$0xff] %v12809_v61  ;;  %v12810_v2 = vmax.f32 %v12778_v33, 0.0 }
 0x61a   : > { %12844 = vst [vmem:[%s21383_s24 + $0x78] sm:$0xff] %v12812_v5 }
 0x61b   : > { %12842 = vst [vmem:[%s21383_s24 + $0x68] sm:$0xff] %v12810_v2 }
 0x61c   : > { %v14836_v19 = vpop.f32.mrb[52].mxu0 }
 0x61d   : > { %v12747_v48 = vadd.f32 %v14836_v19, %v21368_v20  ;;  %v12542_v51 = vpop.f32.mrb[53].mxu0 }
 0x61e   : > { %v12745_v27 = vadd.f32 %v21368_v20, %v12542_v51  ;;  %v14837_v59 = vpop.f32.mrb[54].mxu0 }
 0x61f   : > { %v12783_v41 = vadd.f32 %v21371_v17, %v12747_v48  ;;  %v12748_v60 = vadd.f32 %v14837_v59, %v21368_v20  ;;  %v12545_v54 = vpop.f32.mrb[55].mxu0 }
 0x620   : > { %v12781_v43 = vadd.f32 %v21371_v17, %v12745_v27  ;;  %v12746_v52 = vadd.f32 %v21368_v20, %v12545_v54 }
 0x621   : > { %v12815_v3 = vmax.f32 %v12783_v41, 0.0  ;;  %v12784_v57 = vadd.f32 %v21371_v17, %v12748_v60 }
 0x622   : > { %v12813_v6 = vmax.f32 %v12781_v43, 0.0  ;;  %v12782_v23 = vadd.f32 %v21371_v17, %v12746_v52 }
 0x623   : > { %12847 = vst [vmem:[%s21383_s24 + $0x90] sm:$0xff] %v12815_v3  ;;  %v12816_v40 = vmax.f32 %v12784_v57, 0.0 }
 0x624   : > { %12845 = vst [vmem:[%s21383_s24 + $0x80] sm:$0xff] %v12813_v6  ;;  %v12814_v10 = vmax.f32 %v12782_v23, 0.0 }
 0x625   : > { %12848 = vst [vmem:[%s21383_s24 + $0x98] sm:$0xff] %v12816_v40 }
 0x626   : > { %12846 = vst [vmem:[%s21383_s24 + $0x88] sm:$0xff] %v12814_v10 }
 0x627   : > { %v14840_v32 = vpop.f32.mrb[56].mxu0 }
 0x628   : > { %v12751_v15 = vadd.f32 %v14840_v32, %v21368_v20  ;;  %v12558_v63 = vpop.f32.mrb[57].mxu0 }
 0x629   : > { %v12749_v39 = vadd.f32 %v21368_v20, %v12558_v63  ;;  %v14841_v37 = vpop.f32.mrb[58].mxu0 }
 0x62a   : > { %v12787_v14 = vadd.f32 %v21371_v17, %v12751_v15  ;;  %v12752_v42 = vadd.f32 %v14841_v37, %v21368_v20  ;;  %v12561_v11 = vpop.f32.mrb[59].mxu0 }
 0x62b   : > { %v12785_v50 = vadd.f32 %v21371_v17, %v12749_v39  ;;  %v12750_v30 = vadd.f32 %v21368_v20, %v12561_v11 }
 0x62c   : > { %v12819_v16 = vmax.f32 %v12787_v14, 0.0  ;;  %v12788_v46 = vadd.f32 %v21371_v17, %v12752_v42 }
 0x62d   : > { %v12817_v49 = vmax.f32 %v12785_v50, 0.0  ;;  %v12786_v1 = vadd.f32 %v21371_v17, %v12750_v30 }
 0x62e   : > { %12851 = vst [vmem:[%s21383_s24 + $0xb0] sm:$0xff] %v12819_v16  ;;  %v12820_v36 = vmax.f32 %v12788_v46, 0.0 }
 0x62f   : > { %12849 = vst [vmem:[%s21383_s24 + $0xa0] sm:$0xff] %v12817_v49  ;;  %v12818_v21 = vmax.f32 %v12786_v1, 0.0 }
 0x630   : > { %12852 = vst [vmem:[%s21383_s24 + $0xb8] sm:$0xff] %v12820_v36 }
 0x631   : > { %12850 = vst [vmem:[%s21383_s24 + $0xa8] sm:$0xff] %v12818_v21 }
 0x632   : > { %v14844_v62 = vpop.f32.mrb[60].mxu0 }
 0x633   : > { %v12755_v58 = vadd.f32 %v14844_v62, %v21368_v20  ;;  %v12574_v0 = vpop.f32.mrb[61].mxu0 }
 0x634   : > { %v12753_v18 = vadd.f32 %v21368_v20, %v12574_v0  ;;  %v14845_v56 = vpop.f32.mrb[62].mxu0 }
 0x635   : > { %v12791_v12 = vadd.f32 %v21371_v17, %v12755_v58  ;;  %v12756_v13 = vadd.f32 %v14845_v56, %v21368_v20  ;;  %v12577_v28 = vpop.f32.mrb[63].mxu0 }
 0x636   : > { %v12789_v24 = vadd.f32 %v21371_v17, %v12753_v18  ;;  %v12754_v8 = vadd.f32 %v21368_v20, %v12577_v28 }
 0x637   : > { %v12823_v35 = vmax.f32 %v12791_v12, 0.0  ;;  %v12792_v55 = vadd.f32 %v21371_v17, %v12756_v13 }
 0x638   : > { %v12821_v44 = vmax.f32 %v12789_v24, 0.0  ;;  %v12790_v9 = vadd.f32 %v21371_v17, %v12754_v8 }
 0x639   : > { %12855 = vst [vmem:[%s21383_s24 + $0xd0] sm:$0xff] %v12823_v35  ;;  %v12824_v22 = vmax.f32 %v12792_v55, 0.0 }
 0x63a   : > { %12853 = vst [vmem:[%s21383_s24 + $0xc0] sm:$0xff] %v12821_v44  ;;  %v12822_v47 = vmax.f32 %v12790_v9, 0.0 }
 0x63b   : > { %12856 = vst [vmem:[%s21383_s24 + $0xd8] sm:$0xff] %v12824_v22 }
 0x63c   : > { %12854 = vst [vmem:[%s21383_s24 + $0xc8] sm:$0xff] %v12822_v47 }
 0x63d   : > { %v14848_v34 = vpop.f32.mrb[64].mxu0 }
 0x63e   : > { %v12759_v29 = vadd.f32 %v14848_v34, %v21368_v20  ;;  %v12590_v53 = vpop.f32.mrb[65].mxu0 }
 0x63f   : > { %v12757_v7 = vadd.f32 %v21368_v20, %v12590_v53  ;;  %v14849_v38 = vpop.f32.mrb[66].mxu0 }
 0x640   : > { %v12795_v45 = vadd.f32 %v21371_v17, %v12759_v29  ;;  %v12760_v26 = vadd.f32 %v14849_v38, %v21368_v20  ;;  %v12593_v25 = vpop.f32.mrb[67].mxu0 }
 0x641   : > { %v12793_v4 = vadd.f32 %v21371_v17, %v12757_v7  ;;  %v12758_v31 = vadd.f32 %v21368_v20, %v12593_v25 }
 0x642   : > { %v12827_v61 = vmax.f32 %v12795_v45, 0.0  ;;  %v12796_v33 = vadd.f32 %v21371_v17, %v12760_v26 }
 0x643   : > { %v12825_v5 = vmax.f32 %v12793_v4, 0.0  ;;  %v12794_v2 = vadd.f32 %v21371_v17, %v12758_v31 }
 0x644   : > { %12859 = vst [vmem:[%s21383_s24 + $0xf0] sm:$0xff] %v12827_v61  ;;  %v12828_v19 = vmax.f32 %v12796_v33, 0.0 }
 0x645   : > { %12857 = vst [vmem:[%s21383_s24 + $0xe0] sm:$0xff] %v12825_v5  ;;  %v12826_v48 = vmax.f32 %v12794_v2, 0.0 }
 0x646   : > { %12860 = vst [vmem:[%s21383_s24 + $0xf8] sm:$0xff] %v12828_v19 }
 0x647   : > { %12858 = vst [vmem:[%s21383_s24 + $0xe8] sm:$0xff] %v12826_v48 }
 0x648   : > { %15511 = shalt.err (!%p15508_p6)
}
 0x649   : > { %s15512_s26 = scalar_lea.hbm %s21475_s29, 4096  ;;  %s15516_s13 = scalar_lea.hbm %s21539_s8, 8192 }
 0x64a   : > { %p15513_p7 = scmp.ne.s32.totalorder %s21475_s29, %s15512_s26  ;;  %p15517_p4 = scmp.lt.u32.totalorder %s21475_s29, %s21539_s8 }
 0x64b   : > { %p15518_p1 = scmp.lt.u32.totalorder %s15516_s13, %s15512_s26  ;;  %p15520_p13 = scmp.lt.u32.totalorder %s15512_s26, %s21475_s29 }
 0x64c   : > { %p15514_p9 = pnand %p15513_p7, %p21905_p10 }
 0x64d   : > { %p15519_p8 = por %p15518_p1, %p15517_p4 }
 0x64e   : > { %p15515_p12 = pneg %p15514_p9 }
 0x64f   : > { %p15521_p11 = por %p15520_p13, %p15519_p8 }
 0x651   : > { %p15522_p0 = pnand %p15521_p11, %p15515_p12 }
 0x653   : > { %15525 = shalt.err (!%p15522_p0)
}
 0x654   : > { %s15598_s16 = smov 128  }
 0x655   : > { %15183 = dma.vmem_to_hbm [thread:$0]  (%p21905_p10), %s21478_s17, 4096, %s21475_s29, %s21484_s30, %s15598_s16, %s15598_s16, %s15592_s12  }
 0x656 PF: > { %s21906_s24 = sld [smem:[#allocation21_spill]]  ;;  %p15205_p2 = scmp.ge.s32.totalorder %s15584_s10, 2 }
 0x657   : > { %s12890_s9 = sand.u32 1, %s15564_s27  }
 0x658   : > { %s12891_s25 = scalar_lea.sflag [#allocation10], %s12890_s9 }
 0x65c   : > { %p21907_p3 = scmp.ne.s32.totalorder %s21906_s24, 0 }
 0x65e   : > { %p15196_p5 = pnand %p15205_p2, %p21907_p3 }
 0x660   : > { %15559 = dma.done.wait (!%p15196_p5), %s12891_s25, 4096  }
 0x661   : > { %15561 = vsyncadd (!%p15196_p5), %s12891_s25, 4294963200  ;;  %s23_s10 = sadd.s32 1, %s15584_s10   ;;  %s21908_s15 = sld [smem:[#allocation18_spill]] }
 0x662   : > { %p20_p6 = scmp.ge.s32.totalorder %s23_s10, 4   ;;  %s21909_s29 = sld [smem:[#allocation22_spill]] }
 0x663   : > { %s21910_s30 = sld [smem:[#allocation19_spill]]  ;;  %s21911_s9 = sld [smem:[#allocation20_spill]] }
 0x664   : > { %s21912_s27 = smov %s15568_s28  ;;  %22 = sbr.rel (!%p20_p6) target bundleno = 8 (0x8), region = 129 }
 0x667   : > { %s21913_s28 = smov %s21908_s15 }
 0x66b   :  { %12896 = vsyncpa [#allocation9], 1 }
 0x66c   :  { %12898 = vsyncpa [#allocation9 + $0x1], 1 }
 0x66d   :  { %12899 = vsyncpa [#allocation12], 1 }
 0x66e   :  { %12900 = vsyncpa [#allocation10], 1 }
 0x66f   :  { %12902 = vsyncpa [#allocation10 + $0x1], 1 }

</bundles_post_ra>
